<compile_context>
chip_gen: v6e
topology: v6e:2x2x1
jax: 0.10.0
libtpu: 0.0.40
codegen_flags: <defaults>
</compile_context>

<pallas_src>
import functools

import jax
import jax.numpy as jnp
from jax import lax
from jax.experimental import pallas as pl
from jax.experimental.pallas import tpu as pltpu


def _round_up(x, m):
    return (x + m - 1) // m * m


def _pick_tile(total, target, multiple=1):
    """Largest divisor of `total` that is <= target and a multiple of `multiple`."""
    for d in range(min(total, target), 0, -1):
        if total % d == 0 and d % multiple == 0:
            return d
    return total


# ------------------- kernel 1: fused upsample2x + conv3x3 --------------------


def _make_upconv_kernel(tb, w, w8, cin, c2p):
    """4-phase conv over the original-resolution image; one K=4*Cin matmul/phase."""

    def kernel(x_ref, k_ref, o_ref, st_ref):
        # x_ref : (1, H+2, W8+2, Cin)   padded input image (resident per batch elem)
        # k_ref : (4, 4*Cin, C2p)       per-phase merged 2x2-tap weights (resident)
        # o_ref : (1, 4, tb, W8, C2p)   conv output tile (phase = a*2+b)
        # st_ref: (1, 1, 2, C2p)        per-tile [sum ; sum of squares] (f32)
        r = pl.program_id(1)
        row0 = r * tb

        # Nine shifted (tb, W8, Cin) views -> (tb*W8, Cin) matmul operands.
        # Already in the MXU compute dtype (cast once, wrapper side).
        xs = {}
        for dr in range(3):
            for dc in range(3):
                xs[(dr, dc)] = x_ref[0, pl.ds(row0 + dr, tb),
                                     dc:dc + w8, :].reshape(tb * w8, cin)

        if w8 != w:
            # Hoisted width mask: statistics must ignore the alignment padding.
            colmask = lax.broadcasted_iota(jnp.int32, (tb, w8, c2p), 1) < w

        s_sum = jnp.zeros((1, c2p), jnp.float32)
        s_sq = jnp.zeros((1, c2p), jnp.float32)
        for a in range(2):
            for b in range(2):
                # Single MXU matmul per phase: the four (p,q) taps are stacked
                # along the contraction axis (no f32 accumulator adds).
                lhs = jnp.concatenate(
                    [xs[(a + p, b + q)] for p in range(2) for q in range(2)],
                    axis=1)
                acc = jnp.dot(lhs, k_ref[a * 2 + b],
                              preferred_element_type=jnp.float32)
                acc3 = acc.reshape(tb, w8, c2p)
                o_ref[0, a * 2 + b] = acc3.astype(o_ref.dtype)
                if w8 != w:
                    accm = jnp.where(colmask, acc3, 0.0)
                    s_sum = s_sum + jnp.sum(
                        jnp.sum(accm, axis=1), axis=0, keepdims=True)
                    s_sq = s_sq + jnp.sum(
                        jnp.sum(accm * accm, axis=1), axis=0, keepdims=True)
                else:
                    s_sum = s_sum + jnp.sum(acc, axis=0, keepdims=True)
                    s_sq = s_sq + jnp.sum(acc * acc, axis=0, keepdims=True)
        st_ref[0, 0] = jnp.concatenate([s_sum, s_sq], axis=0)

    return kernel


# ------------------------ kernel 2: BatchNorm + GLU ---------------------------


def _make_bn_glu_kernel(tb, w8, cout, c2p):
    rows = tb * w8
    out_lanes = 2 * cout

    def kernel(y_ref, scale_ref, bias_ref, o_ref):
        # y_ref : (1, 2, tb, W8, C2p)  conv tiles for both column phases of one
        #                              row phase (bf16 on the default path)
        # scale/bias : (1, C2p)        folded BN scale / bias (resident)
        # o_ref : (1, 1, tb, W8, 2*cout)  lane-dense packed GLU output (f32)
        scale = scale_ref[...]
        bias = bias_ref[...]
        lane = lax.broadcasted_iota(jnp.int32, (rows, c2p), 1)

        def glu(b):
            y = y_ref[0, b].reshape(rows, c2p).astype(jnp.float32) * scale + bias
            # Align the gate half under the activation half via an XLU roll
            # instead of sub-vreg lane slices (free slot in a mem-bound kernel).
            g = pltpu.roll(y, shift=c2p - cout, axis=1)
            return y * jax.nn.sigmoid(g)          # lanes [0, cout) are valid

        act0 = glu(0)                                          # phase b=0
        act1 = pltpu.roll(glu(1), shift=cout, axis=1)          # b=1 -> [cout,2cout)
        merged = jnp.where(lane < cout, act0, act1)
        if out_lanes < c2p:
            merged = merged[:, :out_lanes]
        o_ref[0, 0] = merged.reshape(tb, w8, out_lanes).astype(o_ref.dtype)

    return kernel


# ------------------------------- host wrapper ---------------------------------


@functools.partial(jax.jit, static_argnames=("compute_dtype",))
def up_block_forward(x_nchw, conv_w, gamma, beta, *, compute_dtype=jnp.bfloat16):
    """UpBlock forward.

    x_nchw : (N, Cin, H, W) f32      conv_w : (2*Cout, Cin, 3, 3) f32
    gamma, beta : (2*Cout,) BatchNorm affine params
    compute_dtype : MXU operand / conv-intermediate dtype (bf16 default;
                    statistics and normalization stay f32)
    returns (N, Cout, 2H, 2W) f32
    """
    n, cin, h, w = x_nchw.shape
    c2 = conv_w.shape[0]
    assert conv_w.shape == (c2, cin, 3, 3) and c2 % 2 == 0
    cout = c2 // 2
    eps = 1e-5

    c2p = _round_up(c2, 128)       # lane-dense conv-output channels
    w8 = _round_up(w, 8)           # sublane-friendly width

    # glue: NCHW -> NHWC, conv zero pad (+ width alignment pad on the right);
    # cast to the MXU operand dtype ONCE here (halves HBM read + VMEM residency
    # of the image on the bf16 default path).
    x_nhwc = jnp.transpose(x_nchw, (0, 2, 3, 1))
    x_pad = jnp.pad(x_nhwc, ((0, 0), (1, 1), (1, w8 - w + 1), (0, 0)))
    x_pad = x_pad.astype(compute_dtype)

    # Merged per-phase weights:
    #   conv3x3(up2x(x))[2i+a, 2j+b] = sum_{p,q in {0,1}} x_pad[i+a+p, j+b+q] @ K[a,b,p,q]
    # The four (p,q) taps of each phase are concatenated along the contraction
    # axis so the kernel issues one K=4*Cin matmul per phase.
    wt = jnp.transpose(conv_w, (2, 3, 1, 0)).astype(jnp.float32)  # (3,3,Cin,C2)
    sets = (((0,), (1, 2)), ((0, 1), (2,)))  # [phase][tap] -> original taps
    phase_ws = []
    for a in range(2):
        for b in range(2):
            taps = []
            for p in range(2):
                for q in range(2):
                    k = jnp.zeros((cin, c2), jnp.float32)
                    for rr in sets[a][p]:
                        for cc in sets[b][q]:
                            k = k + wt[rr, cc]
                    taps.append(k)
            phase_ws.append(jnp.concatenate(taps, axis=0))       # (4*Cin, C2)
    keff = jnp.stack(phase_ws, axis=0)                           # (4, 4*Cin, C2)
    keff = jnp.pad(keff, ((0, 0), (0, 0), (0, c2p - c2))).astype(compute_dtype)

    # ---- kernel 1: tiled over (batch, row blocks) -----------------------------
    tb = _pick_tile(h, max(1, 1024 // w8))
    t = h // tb
    # TODO(synk): for very large images on v7x (64 MiB VMEM), switch the
    # resident-image in_spec to row-haloed manual DMA (memory_space=pl.ANY) or
    # pipeline_mode=pl.Buffered(1); unnecessary at these sizes.
    conv_out, stats = pl.pallas_call(
        _make_upconv_kernel(tb, w, w8, cin, c2p),
        out_shape=(
            jax.ShapeDtypeStruct((n, 4, h, w8, c2p), compute_dtype),
            jax.ShapeDtypeStruct((n, t, 2, c2p), jnp.float32),
        ),
        grid_spec=pltpu.PrefetchScalarGridSpec(
            num_scalar_prefetch=0,
            grid=(n, t),
            in_specs=[
                # full padded image stays resident across the row tiles of one
                # batch element -> read from HBM exactly once per image
                pl.BlockSpec((1, h + 2, w8 + 2, cin), lambda bi, ri: (bi, 0, 0, 0)),
                pl.BlockSpec((4, 4 * cin, c2p), lambda bi, ri: (0, 0, 0)),
            ],
            out_specs=[
                pl.BlockSpec((1, 4, tb, w8, c2p), lambda bi, ri: (bi, 0, ri, 0, 0)),
                pl.BlockSpec((1, 1, 2, c2p), lambda bi, ri: (bi, ri, 0, 0)),
            ],
        ),
        compiler_params=pltpu.CompilerParams(
            # "arbitrary" on the row axis keeps one image's rows on one core
            # (avoids duplicating the resident image across v7x's 2 TCs).
            dimension_semantics=("parallel", "arbitrary"),
            vmem_limit_bytes=32 * 1024 * 1024,
        ),
    )(x_pad, keff)

    # ---- BatchNorm batch statistics from the kernel-1 partial sums -----------
    # Note: var = E[x^2] - E[x]^2 in f32; clamped at 0 (activations here are
    # roughly zero-mean so cancellation is benign).
    count = jnp.float32(n * 4 * h * w)           # real output pixels
    tot = jnp.sum(stats, axis=(0, 1))            # (2, C2p)
    mean = tot[0] / count
    var = jnp.maximum(tot[1] / count - mean * mean, 0.0)
    inv = lax.rsqrt(var + eps)
    gamma_p = jnp.pad(gamma.astype(jnp.float32), (0, c2p - c2))
    beta_p = jnp.pad(beta.astype(jnp.float32), (0, c2p - c2))
    scale = (gamma_p * inv).reshape(1, c2p)
    bias = (beta_p - mean * gamma_p * inv).reshape(1, c2p)

    # ---- kernel 2: row-tiled normalize + GLU, lane-packed column phases -------
    tb2 = _pick_tile(h, max(1, 2048 // w8))
    t2 = h // tb2
    glu = pl.pallas_call(
        _make_bn_glu_kernel(tb2, w8, cout, c2p),
        out_shape=jax.ShapeDtypeStruct((n, 2, h, w8, 2 * cout), jnp.float32),
        grid_spec=pltpu.PrefetchScalarGridSpec(
            num_scalar_prefetch=0,
            grid=(n, 2, t2),
            in_specs=[
                # both column phases (b=0,1) of row phase `ai` in one block
                pl.BlockSpec((1, 2, tb2, w8, c2p),
                             lambda bi, ai, ri: (bi, ai, ri, 0, 0)),
                pl.BlockSpec((1, c2p), lambda bi, ai, ri: (0, 0)),   # resident
                pl.BlockSpec((1, c2p), lambda bi, ai, ri: (0, 0)),   # resident
            ],
            out_specs=pl.BlockSpec((1, 1, tb2, w8, 2 * cout),
                                   lambda bi, ai, ri: (bi, ai, ri, 0, 0)),
        ),
        compiler_params=pltpu.CompilerParams(
            dimension_semantics=("parallel", "parallel", "arbitrary"),
            vmem_limit_bytes=32 * 1024 * 1024,
        ),
    )(conv_out, scale, bias)

    # glue: drop width padding, interleave phases, NHWC -> NCHW
    # glu[b, a, i, j, pb*cout + c] -> out[b, c, 2i+a, 2j+pb]
    # TODO(synk): the final NCHW relayout is left to XLA (required to match the
    # PyTorch output layout).
    glu6 = glu.reshape(n, 2, h, w8, 2, cout)[:, :, :, :w, :, :]
    out = jnp.transpose(glu6, (0, 5, 2, 1, 3, 4)).reshape(n, cout, 2 * h, 2 * w)
    return out


# --------------------------- reference (pure JAX) -----------------------------


def up_block_reference(x_nchw, conv_w, gamma, beta):
    x_up = jnp.repeat(jnp.repeat(x_nchw, 2, axis=2), 2, axis=3)
    y = lax.conv_general_dilated(
        x_up, conv_w, window_strides=(1, 1), padding=((1, 1), (1, 1)),
        dimension_numbers=("NCHW", "OIHW", "NCHW"),
        precision=lax.Precision.HIGHEST,
    )
    mean = jnp.mean(y, axis=(0, 2, 3), keepdims=True)
    var = jnp.mean((y - mean) ** 2, axis=(0, 2, 3), keepdims=True)
    yn = (y - mean) * lax.rsqrt(var + 1e-5)
    yn = yn * gamma[None, :, None, None] + beta[None, :, None, None]
    c = yn.shape[1] // 2
    return yn[:, :c] * jax.nn.sigmoid(yn[:, c:])


# ------------------------------------ main ------------------------------------


if __name__ == "__main__":
    def run_case(key, n, ngf, h, w, compute_dtype, tol):
        cin, cout = 2 * ngf, ngf          # UpBlock(ngf*2, ngf) in GEN_Module_1
        c2 = 2 * cout
        kx, kw, kg, kb = jax.random.split(key, 4)
        x = jax.random.normal(kx, (n, cin, h, w), dtype=jnp.float32)
        fan_in = cin * 9
        conv_w = jax.random.normal(kw, (c2, cin, 3, 3), jnp.float32) / jnp.sqrt(fan_in)
        gamma = 1.0 + 0.1 * jax.random.normal(kg, (c2,), jnp.float32)
        beta = 0.1 * jax.random.normal(kb, (c2,), jnp.float32)

        out = jax.block_until_ready(
            up_block_forward(x, conv_w, gamma, beta, compute_dtype=compute_dtype))
        ref = up_block_reference(x, conv_w, gamma, beta)
        assert out.shape == (n, cout, 2 * h, 2 * w), out.shape
        err = float(jnp.max(jnp.abs(out - ref)))
        assert err < tol, (n, ngf, h, w, str(compute_dtype), err)

    k1, k2, k3 = jax.random.split(jax.random.PRNGKey(0), 3)
    # main config: UpBlock(128 -> 64), lane-dense channels, bf16 perf default
    run_case(k1, n=2, ngf=64, h=16, w=16, compute_dtype=jnp.bfloat16, tol=1.5e-1)
    # f32 operands / f32 intermediate: strict-accuracy path
    run_case(k2, n=2, ngf=64, h=16, w=16, compute_dtype=jnp.float32, tol=5e-3)
    # tiny / unaligned config: exercises channel- and width-padding paths
    run_case(k3, n=2, ngf=4, h=6, w=6, compute_dtype=jnp.float32, tol=5e-3)
    print("KERNEL_OK")
</pallas_src>

<mosaic_0001>
module attributes {stable_mosaic.version = 11 : i64} {
  func.func @kernel(%arg0: i32, %arg1: i32, %arg2: i32, %arg3: memref<1x2x16x16x128xbf16, #tpu.memory_space<vmem>>, %arg4: memref<1x128xf32, #tpu.memory_space<vmem>>, %arg5: memref<1x128xf32, #tpu.memory_space<vmem>>, %arg6: memref<1x1x16x16x128xf32, #tpu.memory_space<vmem>>) attributes {dimension_semantics = [#tpu.dimension_semantics<parallel>, #tpu.dimension_semantics<parallel>, #tpu.dimension_semantics<arbitrary>], iteration_bounds = array<i64: 2, 2, 1>, scalar_prefetch = 0 : i64, scratch_operands = 0 : i64, tpu.core_type = #tpu.core_type<tc>, window_params = [{transform_indices = @transform_0, window_bounds = array<i64: 1, 2, 16, 16, 128>}, {pipeline_mode = #tpu.pipeline_mode<synchronous>, transform_indices = @transform_1, window_bounds = array<i64: 1, 128>}, {pipeline_mode = #tpu.pipeline_mode<synchronous>, transform_indices = @transform_2, window_bounds = array<i64: 1, 128>}, {transform_indices = @transform_3, window_bounds = array<i64: 1, 1, 16, 16, 128>}]} {
    %c0 = arith.constant 0 : index
    %c0_0 = arith.constant 0 : index
    %0 = vector.load %arg4[%c0, %c0_0] : memref<1x128xf32, #tpu.memory_space<vmem>>, vector<1x128xf32>
    %c0_1 = arith.constant 0 : index
    %c0_2 = arith.constant 0 : index
    %1 = vector.load %arg5[%c0_1, %c0_2] : memref<1x128xf32, #tpu.memory_space<vmem>>, vector<1x128xf32>
    %2 = tpu.iota {dimensions = array<i32: 1>} : vector<256x128xi32>
    %c0_3 = arith.constant 0 : index
    %c0_4 = arith.constant 0 : index
    %c0_5 = arith.constant 0 : index
    %c0_6 = arith.constant 0 : index
    %c0_7 = arith.constant 0 : index
    %3 = vector.load %arg3[%c0_3, %c0_4, %c0_5, %c0_6, %c0_7] : memref<1x2x16x16x128xbf16, #tpu.memory_space<vmem>>, vector<1x1x16x16x128xbf16>
    %4 = vector.shape_cast %3 : vector<1x1x16x16x128xbf16> to vector<16x16x128xbf16>
    %5 = vector.shape_cast %4 : vector<16x16x128xbf16> to vector<256x128xbf16>
    %6 = arith.extf %5 : vector<256x128xbf16> to vector<256x128xf32>
    %7 = vector.broadcast %0 : vector<1x128xf32> to vector<256x128xf32>
    %8 = arith.mulf %6, %7 : vector<256x128xf32>
    %9 = vector.broadcast %1 : vector<1x128xf32> to vector<256x128xf32>
    %10 = arith.addf %8, %9 : vector<256x128xf32>
    %c64_i32 = arith.constant 64 : i32
    %11 = tpu.dynamic_rotate %10 by %c64_i32 dim 1 : vector<256x128xf32>, i32 -> vector<256x128xf32>
    %12 = arith.negf %11 : vector<256x128xf32>
    %13 = math.exp %12 : vector<256x128xf32>
    %cst = arith.constant 1.000000e+00 : f32
    %14 = vector.broadcast %cst : f32 to vector<256x128xf32>
    %15 = arith.addf %14, %13 : vector<256x128xf32>
    %16 = arith.divf %14, %15 : vector<256x128xf32>
    %17 = arith.mulf %10, %16 : vector<256x128xf32>
    %c0_8 = arith.constant 0 : index
    %c1 = arith.constant 1 : index
    %c0_9 = arith.constant 0 : index
    %c0_10 = arith.constant 0 : index
    %c0_11 = arith.constant 0 : index
    %18 = vector.load %arg3[%c0_8, %c1, %c0_9, %c0_10, %c0_11] : memref<1x2x16x16x128xbf16, #tpu.memory_space<vmem>>, vector<1x1x16x16x128xbf16>
    %19 = vector.shape_cast %18 : vector<1x1x16x16x128xbf16> to vector<16x16x128xbf16>
    %20 = vector.shape_cast %19 : vector<16x16x128xbf16> to vector<256x128xbf16>
    %21 = arith.extf %20 : vector<256x128xbf16> to vector<256x128xf32>
    %22 = vector.broadcast %0 : vector<1x128xf32> to vector<256x128xf32>
    %23 = arith.mulf %21, %22 : vector<256x128xf32>
    %24 = vector.broadcast %1 : vector<1x128xf32> to vector<256x128xf32>
    %25 = arith.addf %23, %24 : vector<256x128xf32>
    %c64_i32_12 = arith.constant 64 : i32
    %26 = tpu.dynamic_rotate %25 by %c64_i32_12 dim 1 : vector<256x128xf32>, i32 -> vector<256x128xf32>
    %27 = arith.negf %26 : vector<256x128xf32>
    %28 = math.exp %27 : vector<256x128xf32>
    %cst_13 = arith.constant 1.000000e+00 : f32
    %29 = vector.broadcast %cst_13 : f32 to vector<256x128xf32>
    %30 = arith.addf %29, %28 : vector<256x128xf32>
    %31 = arith.divf %29, %30 : vector<256x128xf32>
    %32 = arith.mulf %25, %31 : vector<256x128xf32>
    %c64_i32_14 = arith.constant 64 : i32
    %33 = tpu.dynamic_rotate %32 by %c64_i32_14 dim 1 : vector<256x128xf32>, i32 -> vector<256x128xf32>
    %c64_i32_15 = arith.constant 64 : i32
    %34 = vector.broadcast %c64_i32_15 : i32 to vector<256x128xi32>
    %35 = arith.cmpi slt, %2, %34 : vector<256x128xi32>
    %36 = arith.select %35, %17, %33 : vector<256x128xi1>, vector<256x128xf32>
    %37 = vector.shape_cast %36 : vector<256x128xf32> to vector<16x16x128xf32>
    %c0_16 = arith.constant 0 : index
    %c0_17 = arith.constant 0 : index
    %c0_18 = arith.constant 0 : index
    %c0_19 = arith.constant 0 : index
    %c0_20 = arith.constant 0 : index
    %38 = vector.load %arg6[%c0_16, %c0_17, %c0_18, %c0_19, %c0_20] : memref<1x1x16x16x128xf32, #tpu.memory_space<vmem>>, vector<1x1x16x16x128xf32>
    %39 = vector.shape_cast %38 : vector<1x1x16x16x128xf32> to vector<16x16x128xf32>
    %40 = vector.shape_cast %37 : vector<16x16x128xf32> to vector<1x1x16x16x128xf32>
    tpu.vector_store %arg6[%c0_16, %c0_17, %c0_18, %c0_19, %c0_20], %40 {strides = array<i32>} : memref<1x1x16x16x128xf32, #tpu.memory_space<vmem>>, vector<1x1x16x16x128xf32>,
    return
  }
  func.func @transform_0(%arg0: i32, %arg1: i32, %arg2: i32) -> (i32, i32, i32, i32, i32) {
    %c0_i32 = arith.constant 0 : i32
    %c0_i32_0 = arith.constant 0 : i32
    %c0_i32_1 = arith.constant 0 : i32
    return %arg0, %arg1, %arg2, %c0_i32, %c0_i32_0 : i32, i32, i32, i32, i32
  }
  func.func @transform_1(%arg0: i32, %arg1: i32, %arg2: i32) -> (i32, i32) {
    %c0_i32 = arith.constant 0 : i32
    %c0_i32_0 = arith.constant 0 : i32
    %c0_i32_1 = arith.constant 0 : i32
    return %c0_i32, %c0_i32_0 : i32, i32
  }
  func.func @transform_2(%arg0: i32, %arg1: i32, %arg2: i32) -> (i32, i32) {
    %c0_i32 = arith.constant 0 : i32
    %c0_i32_0 = arith.constant 0 : i32
    %c0_i32_1 = arith.constant 0 : i32
    return %c0_i32, %c0_i32_0 : i32, i32
  }
  func.func @transform_3(%arg0: i32, %arg1: i32, %arg2: i32) -> (i32, i32, i32, i32, i32) {
    %c0_i32 = arith.constant 0 : i32
    %c0_i32_0 = arith.constant 0 : i32
    %c0_i32_1 = arith.constant 0 : i32
    return %arg0, %arg1, %arg2, %c0_i32, %c0_i32_0 : i32, i32, i32, i32, i32
  }
}

module attributes {stable_mosaic.version = 11 : i64} {
  func.func @kernel(%arg0: i32, %arg1: i32, %arg2: memref<1x18x18x128xbf16, #tpu.memory_space<vmem>>, %arg3: memref<4x512x128xbf16, #tpu.memory_space<vmem>>, %arg4: memref<1x4x16x16x128xbf16, #tpu.memory_space<vmem>>, %arg5: memref<1x1x2x128xf32, #tpu.memory_space<vmem>>) attributes {dimension_semantics = [#tpu.dimension_semantics<parallel>, #tpu.dimension_semantics<arbitrary>], iteration_bounds = array<i64: 2, 1>, scalar_prefetch = 0 : i64, scratch_operands = 0 : i64, tpu.core_type = #tpu.core_type<tc>, window_params = [{transform_indices = @transform_0, window_bounds = array<i64: 1, 18, 18, 128>}, {pipeline_mode = #tpu.pipeline_mode<synchronous>, transform_indices = @transform_1, window_bounds = array<i64: 4, 512, 128>}, {transform_indices = @transform_2, window_bounds = array<i64: 1, 4, 16, 16, 128>}, {transform_indices = @transform_3, window_bounds = array<i64: 1, 1, 2, 128>}]} {
    %c16_i32 = arith.constant 16 : i32
    %0 = arith.muli %arg1, %c16_i32 : i32
    %c0_i32 = arith.constant 0 : i32
    %1 = arith.addi %0, %c0_i32 : i32
    %c0 = arith.constant 0 : index
    %2 = arith.index_cast %1 : i32 to index
    %c0_0 = arith.constant 0 : index
    %c0_1 = arith.constant 0 : index
    %3 = vector.load %arg2[%c0, %2, %c0_0, %c0_1] : memref<1x18x18x128xbf16, #tpu.memory_space<vmem>>, vector<1x16x16x128xbf16>
    %4 = vector.shape_cast %3 : vector<1x16x16x128xbf16> to vector<16x16x128xbf16>
    %5 = vector.shape_cast %4 : vector<16x16x128xbf16> to vector<256x128xbf16>
    %c0_i32_2 = arith.constant 0 : i32
    %6 = arith.addi %0, %c0_i32_2 : i32
    %c0_3 = arith.constant 0 : index
    %7 = arith.index_cast %6 : i32 to index
    %c1 = arith.constant 1 : index
    %c0_4 = arith.constant 0 : index
    %8 = vector.load %arg2[%c0_3, %7, %c1, %c0_4] : memref<1x18x18x128xbf16, #tpu.memory_space<vmem>>, vector<1x16x16x128xbf16>
    %9 = vector.shape_cast %8 : vector<1x16x16x128xbf16> to vector<16x16x128xbf16>
    %10 = vector.shape_cast %9 : vector<16x16x128xbf16> to vector<256x128xbf16>
    %c0_i32_5 = arith.constant 0 : i32
    %11 = arith.addi %0, %c0_i32_5 : i32
    %c0_6 = arith.constant 0 : index
    %12 = arith.index_cast %11 : i32 to index
    %c2 = arith.constant 2 : index
    %c0_7 = arith.constant 0 : index
    %13 = vector.load %arg2[%c0_6, %12, %c2, %c0_7] : memref<1x18x18x128xbf16, #tpu.memory_space<vmem>>, vector<1x16x16x128xbf16>
    %14 = vector.shape_cast %13 : vector<1x16x16x128xbf16> to vector<16x16x128xbf16>
    %15 = vector.shape_cast %14 : vector<16x16x128xbf16> to vector<256x128xbf16>
    %c1_i32 = arith.constant 1 : i32
    %16 = arith.addi %0, %c1_i32 : i32
    %c0_8 = arith.constant 0 : index
    %17 = arith.index_cast %16 : i32 to index
    %c0_9 = arith.constant 0 : index
    %c0_10 = arith.constant 0 : index
    %18 = vector.load %arg2[%c0_8, %17, %c0_9, %c0_10] : memref<1x18x18x128xbf16, #tpu.memory_space<vmem>>, vector<1x16x16x128xbf16>
    %19 = vector.shape_cast %18 : vector<1x16x16x128xbf16> to vector<16x16x128xbf16>
    %20 = vector.shape_cast %19 : vector<16x16x128xbf16> to vector<256x128xbf16>
    %c1_i32_11 = arith.constant 1 : i32
    %21 = arith.addi %0, %c1_i32_11 : i32
    %c0_12 = arith.constant 0 : index
    %22 = arith.index_cast %21 : i32 to index
    %c1_13 = arith.constant 1 : index
    %c0_14 = arith.constant 0 : index
    %23 = vector.load %arg2[%c0_12, %22, %c1_13, %c0_14] : memref<1x18x18x128xbf16, #tpu.memory_space<vmem>>, vector<1x16x16x128xbf16>
    %24 = vector.shape_cast %23 : vector<1x16x16x128xbf16> to vector<16x16x128xbf16>
    %25 = vector.shape_cast %24 : vector<16x16x128xbf16> to vector<256x128xbf16>
    %c1_i32_15 = arith.constant 1 : i32
    %26 = arith.addi %0, %c1_i32_15 : i32
    %c0_16 = arith.constant 0 : index
    %27 = arith.index_cast %26 : i32 to index
    %c2_17 = arith.constant 2 : index
    %c0_18 = arith.constant 0 : index
    %28 = vector.load %arg2[%c0_16, %27, %c2_17, %c0_18] : memref<1x18x18x128xbf16, #tpu.memory_space<vmem>>, vector<1x16x16x128xbf16>
    %29 = vector.shape_cast %28 : vector<1x16x16x128xbf16> to vector<16x16x128xbf16>
    %30 = vector.shape_cast %29 : vector<16x16x128xbf16> to vector<256x128xbf16>
    %c2_i32 = arith.constant 2 : i32
    %31 = arith.addi %0, %c2_i32 : i32
    %c0_19 = arith.constant 0 : index
    %32 = arith.index_cast %31 : i32 to index
    %c0_20 = arith.constant 0 : index
    %c0_21 = arith.constant 0 : index
    %33 = vector.load %arg2[%c0_19, %32, %c0_20, %c0_21] : memref<1x18x18x128xbf16, #tpu.memory_space<vmem>>, vector<1x16x16x128xbf16>
    %34 = vector.shape_cast %33 : vector<1x16x16x128xbf16> to vector<16x16x128xbf16>
    %35 = vector.shape_cast %34 : vector<16x16x128xbf16> to vector<256x128xbf16>
    %c2_i32_22 = arith.constant 2 : i32
    %36 = arith.addi %0, %c2_i32_22 : i32
    %c0_23 = arith.constant 0 : index
    %37 = arith.index_cast %36 : i32 to index
    %c1_24 = arith.constant 1 : index
    %c0_25 = arith.constant 0 : index
    %38 = vector.load %arg2[%c0_23, %37, %c1_24, %c0_25] : memref<1x18x18x128xbf16, #tpu.memory_space<vmem>>, vector<1x16x16x128xbf16>
    %39 = vector.shape_cast %38 : vector<1x16x16x128xbf16> to vector<16x16x128xbf16>
    %40 = vector.shape_cast %39 : vector<16x16x128xbf16> to vector<256x128xbf16>
    %c2_i32_26 = arith.constant 2 : i32
    %41 = arith.addi %0, %c2_i32_26 : i32
    %c0_27 = arith.constant 0 : index
    %42 = arith.index_cast %41 : i32 to index
    %c2_28 = arith.constant 2 : index
    %c0_29 = arith.constant 0 : index
    %43 = vector.load %arg2[%c0_27, %42, %c2_28, %c0_29] : memref<1x18x18x128xbf16, #tpu.memory_space<vmem>>, vector<1x16x16x128xbf16>
    %44 = vector.shape_cast %43 : vector<1x16x16x128xbf16> to vector<16x16x128xbf16>
    %45 = vector.shape_cast %44 : vector<16x16x128xbf16> to vector<256x128xbf16>
    %cst = arith.constant 0.000000e+00 : f32
    %46 = vector.broadcast %cst : f32 to vector<1x128xf32>
    %cst_30 = arith.constant 0.000000e+00 : f32
    %47 = vector.broadcast %cst_30 : f32 to vector<1x128xf32>
    %48 = tpu.concatenate %5, %10, %20, %25 in 1 : vector<256x128xbf16>, vector<256x128xbf16>, vector<256x128xbf16>, vector<256x128xbf16> -> vector<256x512xbf16>
    %c0_31 = arith.constant 0 : index
    %c0_32 = arith.constant 0 : index
    %c0_33 = arith.constant 0 : index
    %49 = vector.load %arg3[%c0_31, %c0_32, %c0_33] : memref<4x512x128xbf16, #tpu.memory_space<vmem>>, vector<1x512x128xbf16>
    %50 = vector.shape_cast %49 : vector<1x512x128xbf16> to vector<512x128xbf16>
    %cst_34 = arith.constant dense<0.000000e+00> : vector<256x128xf32>
    %51 = tpu.matmul %48, %50, %cst_34 {dimension_numbers = #tpu.dot_dimension_numbers<[1], [0], [0], [1], [0, 0, 1, 1], [], []>} : vector<256x512xbf16>, vector<512x128xbf16>, vector<256x128xf32> -> vector<256x128xf32>
    %52 = vector.shape_cast %51 : vector<256x128xf32> to vector<16x16x128xf32>
    %53 = arith.truncf %52 : vector<16x16x128xf32> to vector<16x16x128xbf16>
    %c0_35 = arith.constant 0 : index
    %c0_36 = arith.constant 0 : index
    %c0_37 = arith.constant 0 : index
    %c0_38 = arith.constant 0 : index
    %c0_39 = arith.constant 0 : index
    %54 = vector.load %arg4[%c0_35, %c0_36, %c0_37, %c0_38, %c0_39] : memref<1x4x16x16x128xbf16, #tpu.memory_space<vmem>>, vector<1x1x16x16x128xbf16>
    %55 = vector.shape_cast %54 : vector<1x1x16x16x128xbf16> to vector<16x16x128xbf16>
    %56 = vector.shape_cast %53 : vector<16x16x128xbf16> to vector<1x1x16x16x128xbf16>
    tpu.vector_store %arg4[%c0_35, %c0_36, %c0_37, %c0_38, %c0_39], %56 {strides = array<i32>} : memref<1x4x16x16x128xbf16, #tpu.memory_space<vmem>>, vector<1x1x16x16x128xbf16>,
    %cst_40 = arith.constant dense<0.000000e+00> : vector<128xf32>
    %57 = vector.multi_reduction <add>, %51, %cst_40 [0] : vector<256x128xf32> to vector<128xf32>
    %58 = vector.shape_cast %57 : vector<128xf32> to vector<1x128xf32>
    %59 = arith.addf %46, %58 : vector<1x128xf32>
    %60 = arith.mulf %51, %51 : vector<256x128xf32>
    %cst_41 = arith.constant dense<0.000000e+00> : vector<128xf32>
    %61 = vector.multi_reduction <add>, %60, %cst_41 [0] : vector<256x128xf32> to vector<128xf32>
    %62 = vector.shape_cast %61 : vector<128xf32> to vector<1x128xf32>
    %63 = arith.addf %47, %62 : vector<1x128xf32>
    %64 = tpu.concatenate %10, %15, %25, %30 in 1 : vector<256x128xbf16>, vector<256x128xbf16>, vector<256x128xbf16>, vector<256x128xbf16> -> vector<256x512xbf16>
    %c1_42 = arith.constant 1 : index
    %c0_43 = arith.constant 0 : index
    %c0_44 = arith.constant 0 : index
    %65 = vector.load %arg3[%c1_42, %c0_43, %c0_44] : memref<4x512x128xbf16, #tpu.memory_space<vmem>>, vector<1x512x128xbf16>
    %66 = vector.shape_cast %65 : vector<1x512x128xbf16> to vector<512x128xbf16>
    %cst_45 = arith.constant dense<0.000000e+00> : vector<256x128xf32>
    %67 = tpu.matmul %64, %66, %cst_45 {dimension_numbers = #tpu.dot_dimension_numbers<[1], [0], [0], [1], [0, 0, 1, 1], [], []>} : vector<256x512xbf16>, vector<512x128xbf16>, vector<256x128xf32> -> vector<256x128xf32>
    %68 = vector.shape_cast %67 : vector<256x128xf32> to vector<16x16x128xf32>
    %69 = arith.truncf %68 : vector<16x16x128xf32> to vector<16x16x128xbf16>
    %c0_46 = arith.constant 0 : index
    %c1_47 = arith.constant 1 : index
    %c0_48 = arith.constant 0 : index
    %c0_49 = arith.constant 0 : index
    %c0_50 = arith.constant 0 : index
    %70 = vector.load %arg4[%c0_46, %c1_47, %c0_48, %c0_49, %c0_50] : memref<1x4x16x16x128xbf16, #tpu.memory_space<vmem>>, vector<1x1x16x16x128xbf16>
    %71 = vector.shape_cast %70 : vector<1x1x16x16x128xbf16> to vector<16x16x128xbf16>
    %72 = vector.shape_cast %69 : vector<16x16x128xbf16> to vector<1x1x16x16x128xbf16>
    tpu.vector_store %arg4[%c0_46, %c1_47, %c0_48, %c0_49, %c0_50], %72 {strides = array<i32>} : memref<1x4x16x16x128xbf16, #tpu.memory_space<vmem>>, vector<1x1x16x16x128xbf16>,
    %cst_51 = arith.constant dense<0.000000e+00> : vector<128xf32>
    %73 = vector.multi_reduction <add>, %67, %cst_51 [0] : vector<256x128xf32> to vector<128xf32>
    %74 = vector.shape_cast %73 : vector<128xf32> to vector<1x128xf32>
    %75 = arith.addf %59, %74 : vector<1x128xf32>
    %76 = arith.mulf %67, %67 : vector<256x128xf32>
    %cst_52 = arith.constant dense<0.000000e+00> : vector<128xf32>
    %77 = vector.multi_reduction <add>, %76, %cst_52 [0] : vector<256x128xf32> to vector<128xf32>
    %78 = vector.shape_cast %77 : vector<128xf32> to vector<1x128xf32>
    %79 = arith.addf %63, %78 : vector<1x128xf32>
    %80 = tpu.concatenate %20, %25, %35, %40 in 1 : vector<256x128xbf16>, vector<256x128xbf16>, vector<256x128xbf16>, vector<256x128xbf16> -> vector<256x512xbf16>
    %c2_53 = arith.constant 2 : index
    %c0_54 = arith.constant 0 : index
    %c0_55 = arith.constant 0 : index
    %81 = vector.load %arg3[%c2_53, %c0_54, %c0_55] : memref<4x512x128xbf16, #tpu.memory_space<vmem>>, vector<1x512x128xbf16>
    %82 = vector.shape_cast %81 : vector<1x512x128xbf16> to vector<512x128xbf16>
    %cst_56 = arith.constant dense<0.000000e+00> : vector<256x128xf32>
    %83 = tpu.matmul %80, %82, %cst_56 {dimension_numbers = #tpu.dot_dimension_numbers<[1], [0], [0], [1], [0, 0, 1, 1], [], []>} : vector<256x512xbf16>, vector<512x128xbf16>, vector<256x128xf32> -> vector<256x128xf32>
    %84 = vector.shape_cast %83 : vector<256x128xf32> to vector<16x16x128xf32>
    %85 = arith.truncf %84 : vector<16x16x128xf32> to vector<16x16x128xbf16>
    %c0_57 = arith.constant 0 : index
    %c2_58 = arith.constant 2 : index
    %c0_59 = arith.constant 0 : index
    %c0_60 = arith.constant 0 : index
    %c0_61 = arith.constant 0 : index
    %86 = vector.load %arg4[%c0_57, %c2_58, %c0_59, %c0_60, %c0_61] : memref<1x4x16x16x128xbf16, #tpu.memory_space<vmem>>, vector<1x1x16x16x128xbf16>
    %87 = vector.shape_cast %86 : vector<1x1x16x16x128xbf16> to vector<16x16x128xbf16>
    %88 = vector.shape_cast %85 : vector<16x16x128xbf16> to vector<1x1x16x16x128xbf16>
    tpu.vector_store %arg4[%c0_57, %c2_58, %c0_59, %c0_60, %c0_61], %88 {strides = array<i32>} : memref<1x4x16x16x128xbf16, #tpu.memory_space<vmem>>, vector<1x1x16x16x128xbf16>,
    %cst_62 = arith.constant dense<0.000000e+00> : vector<128xf32>
    %89 = vector.multi_reduction <add>, %83, %cst_62 [0] : vector<256x128xf32> to vector<128xf32>
    %90 = vector.shape_cast %89 : vector<128xf32> to vector<1x128xf32>
    %91 = arith.addf %75, %90 : vector<1x128xf32>
    %92 = arith.mulf %83, %83 : vector<256x128xf32>
    %cst_63 = arith.constant dense<0.000000e+00> : vector<128xf32>
    %93 = vector.multi_reduction <add>, %92, %cst_63 [0] : vector<256x128xf32> to vector<128xf32>
    %94 = vector.shape_cast %93 : vector<128xf32> to vector<1x128xf32>
    %95 = arith.addf %79, %94 : vector<1x128xf32>
    %96 = tpu.concatenate %25, %30, %40, %45 in 1 : vector<256x128xbf16>, vector<256x128xbf16>, vector<256x128xbf16>, vector<256x128xbf16> -> vector<256x512xbf16>
    %c3 = arith.constant 3 : index
    %c0_64 = arith.constant 0 : index
    %c0_65 = arith.constant 0 : index
    %97 = vector.load %arg3[%c3, %c0_64, %c0_65] : memref<4x512x128xbf16, #tpu.memory_space<vmem>>, vector<1x512x128xbf16>
    %98 = vector.shape_cast %97 : vector<1x512x128xbf16> to vector<512x128xbf16>
    %cst_66 = arith.constant dense<0.000000e+00> : vector<256x128xf32>
    %99 = tpu.matmul %96, %98, %cst_66 {dimension_numbers = #tpu.dot_dimension_numbers<[1], [0], [0], [1], [0, 0, 1, 1], [], []>} : vector<256x512xbf16>, vector<512x128xbf16>, vector<256x128xf32> -> vector<256x128xf32>
    %100 = vector.shape_cast %99 : vector<256x128xf32> to vector<16x16x128xf32>
    %101 = arith.truncf %100 : vector<16x16x128xf32> to vector<16x16x128xbf16>
    %c0_67 = arith.constant 0 : index
    %c3_68 = arith.constant 3 : index
    %c0_69 = arith.constant 0 : index
    %c0_70 = arith.constant 0 : index
    %c0_71 = arith.constant 0 : index
    %102 = vector.load %arg4[%c0_67, %c3_68, %c0_69, %c0_70, %c0_71] : memref<1x4x16x16x128xbf16, #tpu.memory_space<vmem>>, vector<1x1x16x16x128xbf16>
    %103 = vector.shape_cast %102 : vector<1x1x16x16x128xbf16> to vector<16x16x128xbf16>
    %104 = vector.shape_cast %101 : vector<16x16x128xbf16> to vector<1x1x16x16x128xbf16>
    tpu.vector_store %arg4[%c0_67, %c3_68, %c0_69, %c0_70, %c0_71], %104 {strides = array<i32>} : memref<1x4x16x16x128xbf16, #tpu.memory_space<vmem>>, vector<1x1x16x16x128xbf16>,
    %cst_72 = arith.constant dense<0.000000e+00> : vector<128xf32>
    %105 = vector.multi_reduction <add>, %99, %cst_72 [0] : vector<256x128xf32> to vector<128xf32>
    %106 = vector.shape_cast %105 : vector<128xf32> to vector<1x128xf32>
    %107 = arith.addf %91, %106 : vector<1x128xf32>
    %108 = arith.mulf %99, %99 : vector<256x128xf32>
    %cst_73 = arith.constant dense<0.000000e+00> : vector<128xf32>
    %109 = vector.multi_reduction <add>, %108, %cst_73 [0] : vector<256x128xf32> to vector<128xf32>
    %110 = vector.shape_cast %109 : vector<128xf32> to vector<1x128xf32>
    %111 = arith.addf %95, %110 : vector<1x128xf32>
    %112 = tpu.concatenate %107, %111 in 0 : vector<1x128xf32>, vector<1x128xf32> -> vector<2x128xf32>
    %c0_74 = arith.constant 0 : index
    %c0_75 = arith.constant 0 : index
    %c0_76 = arith.constant 0 : index
    %c0_77 = arith.constant 0 : index
    %113 = vector.load %arg5[%c0_74, %c0_75, %c0_76, %c0_77] : memref<1x1x2x128xf32, #tpu.memory_space<vmem>>, vector<1x1x2x128xf32>
    %114 = vector.shape_cast %113 : vector<1x1x2x128xf32> to vector<2x128xf32>
    %115 = vector.shape_cast %112 : vector<2x128xf32> to vector<1x1x2x128xf32>
    tpu.vector_store %arg5[%c0_74, %c0_75, %c0_76, %c0_77], %115 {strides = array<i32>} : memref<1x1x2x128xf32, #tpu.memory_space<vmem>>, vector<1x1x2x128xf32>,
    return
  }
  func.func @transform_0(%arg0: i32, %arg1: i32) -> (i32, i32, i32, i32) {
    %c0_i32 = arith.constant 0 : i32
    %c0_i32_0 = arith.constant 0 : i32
    %c0_i32_1 = arith.constant 0 : i32
    %c0_i32_2 = arith.constant 0 : i32
    return %arg0, %c0_i32, %c0_i32_0, %c0_i32_1 : i32, i32, i32, i32
  }
  func.func @transform_1(%arg0: i32, %arg1: i32) -> (i32, i32, i32) {
    %c0_i32 = arith.constant 0 : i32
    %c0_i32_0 = arith.constant 0 : i32
    %c0_i32_1 = arith.constant 0 : i32
    %c0_i32_2 = arith.constant 0 : i32
    return %c0_i32, %c0_i32_0, %c0_i32_1 : i32, i32, i32
  }
  func.func @transform_2(%arg0: i32, %arg1: i32) -> (i32, i32, i32, i32, i32) {
    %c0_i32 = arith.constant 0 : i32
    %c0_i32_0 = arith.constant 0 : i32
    %c0_i32_1 = arith.constant 0 : i32
    %c0_i32_2 = arith.constant 0 : i32
    return %arg0, %c0_i32, %arg1, %c0_i32_0, %c0_i32_1 : i32, i32, i32, i32, i32
  }
  func.func @transform_3(%arg0: i32, %arg1: i32) -> (i32, i32, i32, i32) {
    %c0_i32 = arith.constant 0 : i32
    %c0_i32_0 = arith.constant 0 : i32
    %c0_i32_1 = arith.constant 0 : i32
    return %arg0, %arg1, %c0_i32, %c0_i32_0 : i32, i32, i32, i32
  }
}

</mosaic_0001>

<bundles_post_ra>
// kernel: up_block_forward.3
= control target key start
LH: loop header
LB: loop body
LE: loop exit
PB: predicated region body
PF: predicated region fallthrough
CT: control target
= control target key end

     0   :  { %s1982_s12 = smov 0   ;;  %s1984_s13 = smov 0   ;;  %s2795_s0 = inlined_call_operand.vmem [shape: bf16[2,4,16,16,128], index: 0, kind: input, shape index: {}]   ;;  %s2796_s1 = inlined_call_operand.vmem [shape: f32[1,128], index: 1, kind: input, shape index: {}]   ;;  %s2797_s2 = inlined_call_operand.vmem [shape: f32[1,128], index: 2, kind: input, shape index: {}]   ;;  %s2798_s3 = inlined_call_operand.vmem [shape: f32[2,2,16,16,128], index: 3, kind: output, shape index: {}]  }
   0x1   :  { %s1986_s14 = smov 0   ;;  %s1988_s15 = smov 0  }
   0x2   :  { %s1990_s16 = smov 0  }
   0x3 LB: > { %s28_s17 = sadd.s32 1, %s1951_s14  ;;  %s32_s18 = sadd.s32 1, %s1955_s15  ;;  %s1959_s16 = sphi %s1990_s16, %s13_s16   ;;  %s1955_s15 = sphi %s1988_s15, %s2912_s15   ;;  %s1951_s14 = sphi %s1986_s14, %s2911_s14   ;;  %s1947_s13 = sphi %s1984_s13, %s2910_s13   ;;  %s1943_s12 = sphi %s1982_s12, %s2909_s12  }
   0x4   : > { %p30_p0 = scmp.ge.s32.totalorder %s28_s17, 2  ;;  %p1357_p1 = scmp.ge.s32.totalorder %s1959_s16, 1 }
   0x5   : > { %p176_p2 = scmp.lt.s32.totalorder %s1959_s16, 5 }
   0x6   : > { %s2914_s17 = smov (%p30_p0, %s28_s17), 0  ;;  %s2916_s18 = smov (!%p30_p0, %s32_s18), %s1955_s15 }
   0x7   : > { %p177_p3 = pnand %p1357_p1, %p176_p2  ;;  %p34_p4 = scmp.ge.s32.totalorder %s2916_s18, 2 }
   0x9   : > { %s2918_s18 = smov (%p34_p4, %s2916_s18), 0  ;;  %180 = sbr.rel (%p177_p3) target bundleno = 402 (0x192), region = 32 }
   0xe   : > { %s1358_s19 = sshll.u32 %s1943_s12, 1  ;;  %p221_p5 = scmp.lt.s32.totalorder %s1947_s13, 1  ;;  %v2026_v0 = vld [vmem:[%s2796_s1] ss:$0 sm:$0xff] }
   0xf   : > { %p223_p6 = scmp.lt.s32.totalorder %s1358_s19, 3  ;;  %v2034_v8 = vld [vmem:[%s2797_s2] ss:$0 sm:$0xff]  ;;  %s1961_s4 = smov 64  }
  0x10   : > { %s2920_s13 = smov (!%p221_p5, %s1947_s13), 1  ;;  %p239_p7 = scmp.lt.s32.totalorder %s1943_s12, 1 }
  0x11   : > { %s2922_s19 = smov (!%p223_p6, %s1358_s19), 3  ;;  %s1360_s20 = sshll.u32 %s2920_s13, 7 }
  0x12   : > { %s1359_s21 = sshll.u32 %s2922_s19, 5  ;;  %s2924_s12 = smov (!%p239_p7, %s1943_s12), 1 }
  0x13   : > { %s231_s22 = sadd.s32 %s1360_s20, %s1359_s21  ;;  %s1362_s5 = sshll.u32 %s2924_s12, 5 }
  0x14   : > { %s1361_s23 = sshll.u32 %s231_s22, 2  ;;  %s1363_s6 = sshll.u32 %s2920_s13, 6 }
  0x15   : > { %s2021_s26 = scalar_lea.vmem %s2795_s0, %s1361_s23  ;;  %s247_s7 = sadd.s32 %s1363_s6, %s1362_s5 }
  0x16   : > { %v1593_v1 = vld [vmem:[%s2021_s26 + $0x8] sm:$0xff]   ;;  %v1466_v2 = vld [vmem:[%s2021_s26] sm:$0xff]   ;;  %v1594_v3 = vld [vmem:[%s2021_s26 + $0x10] sm:$0xff]   ;;  %s1364_s8 = sshll.u32 %s247_s7, 3 }
  0x17   : > { %v1471_v4 = vunpack.c.l.bf16 %v1593_v1  ;;  %v1472_v5 = vunpack.c.h.bf16 %v1593_v1  ;;  %v1467_v6 = vunpack.c.l.bf16 %v1466_v2  ;;  %v1468_v7 = vunpack.c.h.bf16 %v1466_v2  ;;  %v1595_v11 = vld [vmem:[%s2021_s26 + $0x18] sm:$0xff]   ;;  %v1596_v24 = vld [vmem:[%s2021_s26 + $0x20] sm:$0xff]   ;;  %v1597_v27 = vld [vmem:[%s2021_s26 + $0x28] sm:$0xff]   ;;  %s2638_s11 = scalar_lea.vmem %s2798_s3, %s1364_s8 }
  0x18   : > { %v1476_v9 = vunpack.c.h.bf16 %v1594_v3  ;;  %v1475_v10 = vunpack.c.l.bf16 %v1594_v3  ;;  %v1480_v18 = vunpack.c.h.bf16 %v1595_v11  ;;  %v1479_v20 = vunpack.c.l.bf16 %v1595_v11  ;;  %v1598_v32 = vld [vmem:[%s2021_s26 + $0x30] sm:$0xff]   ;;  %v1599_v33 = vld [vmem:[%s2021_s26 + $0x38] sm:$0xff]   ;;  %v1600_v34 = vld [vmem:[%s2021_s26 + $0x40] sm:$0xff]  }
  0x19   : > { %v327_v12 = vmul.f32 %v1471_v4, %v2026_v0  ;;  %v325_v13 = vmul.f32 %v1467_v6, %v2026_v0  ;;  %v328_v14 = vmul.f32 %v1472_v5, %v2026_v0  ;;  %v326_v15 = vmul.f32 %v1468_v7, %v2026_v0  ;;  %v1601_v46 = vld [vmem:[%s2021_s26 + $0x48] sm:$0xff]   ;;  %v2092_v50 = vld [vmem:[%s2021_s26 + $0x80] sm:$0xff]   ;;  %v2095_v51 = vld [vmem:[%s2021_s26 + $0x50] sm:$0xff]  }
  0x1a   : > { %v330_v19 = vmul.f32 %v1476_v9, %v2026_v0  ;;  %v329_v23 = vmul.f32 %v1475_v10, %v2026_v0  ;;  %v332_v25 = vmul.f32 %v1480_v18, %v2026_v0  ;;  %v331_v26 = vmul.f32 %v1479_v20, %v2026_v0  ;;  %v2115_v63 = vld [vmem:[%s2021_s26 + $0x88] sm:$0xff]   ;;  %v1614_v1 = vld [vmem:[%s2021_s26 + $0xb0] sm:$0xff]   ;;  %v1615_v10 = vld [vmem:[%s2021_s26 + $0xb8] sm:$0xff]  }
  0x1b   : > { %v2042_v16 = vadd.f32 %v2034_v8, %v327_v12  ;;  %v2045_v17 = vadd.f32 %v2034_v8, %v325_v13  ;;  %v2053_v21 = vadd.f32 %v2034_v8, %v328_v14  ;;  %v2056_v22 = vadd.f32 %v2034_v8, %v326_v15  ;;  %v1616_v15 = vld [vmem:[%s2021_s26 + $0xc0] sm:$0xff]   ;;  %v1617_v18 = vld [vmem:[%s2021_s26 + $0xc8] sm:$0xff]  }
  0x1c   : > { %v2068_v28 = vadd.f32 %v2034_v8, %v330_v19  ;;  %v2071_v29 = vadd.f32 %v2034_v8, %v329_v23  ;;  %v1484_v30 = vunpack.c.h.bf16 %v1596_v24  ;;  %v1483_v31 = vunpack.c.l.bf16 %v1596_v24 }
  0x1d   : > { %2831 = vst [vmem:[#allocation2_spill] sm:$0xff] %v2042_v16  ;;  %2832 = vst [vmem:[#allocation3_spill] sm:$0xff] %v2045_v17  ;;  %399 = vrot.lane.b32.xlu1 %v2042_v16, %s1961_s4  ;;  %395 = vrot.lane.b32.xlu0 %v2045_v17, %s1961_s4  ;;  %v2077_v35 = vadd.f32 %v2034_v8, %v332_v25  ;;  %v1488_v36 = vunpack.c.h.bf16 %v1597_v27  ;;  %v1487_v37 = vunpack.c.l.bf16 %v1597_v27  ;;  %v1492_v38 = vunpack.c.h.bf16 %v1598_v32  ;;  %v2162_v25 = vld [vmem:[%s2021_s26 + $0xa8] sm:$0xff]  }
  0x1e   : > { %2833 = vst [vmem:[#allocation4_spill] sm:$0xff] %v2053_v21  ;;  %2834 = vst [vmem:[#allocation5_spill] sm:$0xff] %v2056_v22  ;;  %v1491_v39 = vunpack.c.l.bf16 %v1598_v32  ;;  %v1496_v40 = vunpack.c.h.bf16 %v1599_v33  ;;  %v1495_v41 = vunpack.c.l.bf16 %v1599_v33  ;;  %v2084_v42 = vadd.f32 %v2034_v8, %v331_v26 }
  0x1f   : > { %2835 = vst [vmem:[#allocation6_spill] sm:$0xff] %v2068_v28  ;;  %2836 = vst [vmem:[#allocation7_spill] sm:$0xff] %v2071_v29  ;;  %v334_v43 = vmul.f32 %v1484_v30, %v2026_v0  ;;  %v333_v44 = vmul.f32 %v1483_v31, %v2026_v0  ;;  %v1500_v45 = vunpack.c.h.bf16 %v1600_v34  ;;  %v336_v47 = vmul.f32 %v1488_v36, %v2026_v0 }
  0x20   : > { %2837 = vst [vmem:[#allocation8_spill] sm:$0xff] %v2077_v35  ;;  %2838 = vst [vmem:[#allocation9_spill] sm:$0xff] %v2084_v42  ;;  %v335_v48 = vmul.f32 %v1487_v37, %v2026_v0  ;;  %v1499_v49 = vunpack.c.l.bf16 %v1600_v34  ;;  %v338_v52 = vmul.f32 %v1492_v38, %v2026_v0  ;;  %v337_v53 = vmul.f32 %v1491_v39, %v2026_v0  ;;  %v1618_v37 = vld [vmem:[%s2021_s26 + $0xd0] sm:$0xff]  }
  0x21   : > { %401 = vrot.lane.b32.xlu1 %v2053_v21, %s1961_s4  ;;  %397 = vrot.lane.b32.xlu0 %v2056_v22, %s1961_s4  ;;  %v340_v54 = vmul.f32 %v1496_v40, %v2026_v0  ;;  %v339_v55 = vmul.f32 %v1495_v41, %v2026_v0  ;;  %v2106_v56 = vadd.f32 %v2034_v8, %v334_v43  ;;  %v1504_v59 = vunpack.c.h.bf16 %v1601_v46 }
  0x22   : > { %v2109_v57 = vadd.f32 %v2034_v8, %v333_v44  ;;  %v342_v58 = vmul.f32 %v1500_v45, %v2026_v0  ;;  %v1503_v60 = vunpack.c.l.bf16 %v1601_v46  ;;  %v1531_v61 = vunpack.c.l.bf16 %v2092_v50 }
  0x23   : > { %2839 = vst [vmem:[#allocation10_spill] sm:$0xff] %v2106_v56  ;;  %v1507_v62 = vunpack.c.l.bf16 %v2095_v51  ;;  %v2119_v2 = vadd.f32 %v2034_v8, %v336_v47  ;;  %v2122_v3 = vadd.f32 %v2034_v8, %v335_v48  ;;  %v341_v4 = vmul.f32 %v1499_v49, %v2026_v0  ;;  %v1619_v47 = vld [vmem:[%s2021_s26 + $0xd8] sm:$0xff]  }
  0x24   : > { %2840 = vst [vmem:[#allocation11_spill] sm:$0xff] %v2109_v57  ;;  %v2126_v5 = vadd.f32 %v2034_v8, %v338_v52  ;;  %v2129_v6 = vadd.f32 %v2034_v8, %v337_v53  ;;  %v2132_v7 = vadd.f32 %v2034_v8, %v340_v54  ;;  %v2135_v9 = vadd.f32 %v2034_v8, %v339_v55  ;;  %v1620_v54 = vld [vmem:[%s2021_s26 + $0xe0] sm:$0xff]   ;;  %v1621_v55 = vld [vmem:[%s2021_s26 + $0xe8] sm:$0xff]  }
  0x25   : > { %405 = vrot.lane.b32.xlu1 %v2068_v28, %s1961_s4  ;;  %403 = vrot.lane.b32.xlu0 %v2071_v29, %s1961_s4  ;;  %2841 = vst [vmem:[#allocation12_spill] sm:$0xff] %v2119_v2  ;;  %2842 = vst [vmem:[#allocation13_spill] sm:$0xff] %v2122_v3  ;;  %v2143_v11 = vadd.f32 %v2034_v8, %v342_v58  ;;  %v2146_v12 = vmul.f32 %v1504_v59, %v2026_v0  ;;  %v1535_v13 = vunpack.c.l.bf16 %v2115_v63 }
  0x26   : > { %2843 = vst [vmem:[#allocation14_spill] sm:$0xff] %v2126_v5  ;;  %2844 = vst [vmem:[#allocation15_spill] sm:$0xff] %v2129_v6  ;;  %v1555_v14 = vunpack.c.l.bf16 %v1614_v1  ;;  %v2152_v19 = vmul.f32 %v1503_v60, %v2026_v0  ;;  %v2155_v20 = vmul.f32 %v1531_v61, %v2026_v0  ;;  %v2158_v23 = vmul.f32 %v1507_v62, %v2026_v0 }
  0x27   : > { %2845 = vst [vmem:[#allocation16_spill] sm:$0xff] %v2132_v7  ;;  %2846 = vst [vmem:[#allocation17_spill] sm:$0xff] %v2135_v9  ;;  %v1532_v24 = vunpack.c.h.bf16 %v2092_v50  ;;  %v2165_v26 = vadd.f32 %v2034_v8, %v341_v4  ;;  %v1552_v30 = vunpack.c.h.bf16 %v2162_v25  ;;  %v1559_v31 = vunpack.c.l.bf16 %v1615_v10 }
  0x28   : > { %2847 = vst [vmem:[#allocation18_spill] sm:$0xff] %v2143_v11  ;;  %v760_v27 = vmul.f32 %v1555_v14, %v2026_v0  ;;  %v1556_v32 = vunpack.c.h.bf16 %v1614_v1  ;;  %v1563_v33 = vunpack.c.l.bf16 %v1616_v15  ;;  %v1560_v34 = vunpack.c.h.bf16 %v1615_v10 }
  0x29   : > { %409 = vrot.lane.b32.xlu1 %v2077_v35, %s1961_s4  ;;  %407 = vrot.lane.b32.xlu0 %v2084_v42, %s1961_s4  ;;  %2848 = vst [vmem:[#allocation19_spill] sm:$0xff] %v2165_v26  ;;  %v1567_v36 = vunpack.c.l.bf16 %v1617_v18  ;;  %v759_v39 = vmul.f32 %v1552_v30, %v2026_v0  ;;  %v762_v40 = vmul.f32 %v1559_v31, %v2026_v0  ;;  %v1564_v41 = vunpack.c.h.bf16 %v1616_v15  ;;  %v1622_v31 = vld [vmem:[%s2021_s26 + $0xf0] sm:$0xff]  }
  0x2a   : > { %v2175_v38 = vadd.f32 %v2034_v8, %v760_v27  ;;  %v761_v43 = vmul.f32 %v1556_v32, %v2026_v0  ;;  %v764_v44 = vmul.f32 %v1563_v33, %v2026_v0  ;;  %v763_v45 = vmul.f32 %v1560_v34, %v2026_v0 }
  0x2b   : > { %v766_v46 = vmul.f32 %v1567_v36, %v2026_v0  ;;  %v2185_v48 = vadd.f32 %v2034_v8, %v759_v39  ;;  %v2188_v49 = vadd.f32 %v2034_v8, %v762_v40  ;;  %v765_v52 = vmul.f32 %v1564_v41, %v2026_v0  ;;  %v1623_v41 = vld [vmem:[%s2021_s26 + $0xf8] sm:$0xff]  }
  0x2c   : > { %v1571_v53 = vunpack.c.l.bf16 %v1618_v37  ;;  %v2194_v58 = vadd.f32 %v2034_v8, %v761_v43  ;;  %v2197_v59 = vadd.f32 %v2034_v8, %v764_v44  ;;  %v2200_v60 = vadd.f32 %v2034_v8, %v763_v45 }
  0x2d   : > { %413 = vrot.lane.b32.xlu1 %v2106_v56, %s1961_s4  ;;  %411 = vrot.lane.b32.xlu0 %v2109_v57, %s1961_s4  ;;  %v2203_v61 = vadd.f32 %v2034_v8, %v766_v46  ;;  %v2210_v62 = vadd.f32 %v2034_v8, %v765_v52  ;;  %v1568_v4 = vunpack.c.h.bf16 %v1617_v18  ;;  %v1575_v10 = vunpack.c.l.bf16 %v1619_v47 }
  0x2e   : > { %v768_v1 = vmul.f32 %v1571_v53, %v2026_v0  ;;  %v1572_v14 = vunpack.c.h.bf16 %v1618_v37  ;;  %v1579_v15 = vunpack.c.l.bf16 %v1620_v54  ;;  %v1576_v27 = vunpack.c.h.bf16 %v1619_v47 }
  0x2f   : > { %v1583_v30 = vunpack.c.l.bf16 %v1621_v55  ;;  %v767_v33 = vmul.f32 %v1568_v4, %v2026_v0  ;;  %v770_v34 = vmul.f32 %v1575_v10, %v2026_v0  ;;  %v1580_v36 = vunpack.c.h.bf16 %v1620_v54 }
  0x30   : > { %v2215_v32 = vadd.f32 %v2034_v8, %v768_v1  ;;  %v769_v39 = vmul.f32 %v1572_v14, %v2026_v0  ;;  %v772_v40 = vmul.f32 %v1579_v15, %v2026_v0  ;;  %v771_v18 = vmul.f32 %v1576_v27, %v2026_v0 }
  0x31   : > { %417 = vrot.lane.b32.xlu1 %v2119_v2, %s1961_s4  ;;  %415 = vrot.lane.b32.xlu0 %v2122_v3, %s1961_s4  ;;  %v774_v37 = vmul.f32 %v1583_v30, %v2026_v0  ;;  %v2229_v43 = vadd.f32 %v2034_v8, %v767_v33  ;;  %v2232_v44 = vadd.f32 %v2034_v8, %v770_v34  ;;  %v1587_v46 = vunpack.c.l.bf16 %v1622_v31  ;;  %v1610_v34 = vld [vmem:[%s2021_s26 + $0x90] sm:$0xff]  }
  0x32   : > { %v773_v45 = vmul.f32 %v1580_v36, %v2026_v0  ;;  %v2236_v47 = vadd.f32 %v2034_v8, %v769_v39  ;;  %v2239_v52 = vadd.f32 %v2034_v8, %v772_v40  ;;  %v2242_v53 = vadd.f32 %v2034_v8, %v771_v18 }
  0x33   : > { %v2245_v54 = vadd.f32 %v2034_v8, %v774_v37  ;;  %v776_v4 = vmul.f32 %v1587_v46, %v2026_v0  ;;  %v1584_v10 = vunpack.c.h.bf16 %v1621_v55  ;;  %v1591_v14 = vunpack.c.l.bf16 %v1623_v41 }
  0x34   : > { %v2248_v1 = vadd.f32 %v2034_v8, %v773_v45  ;;  %v2253_v15 = vadd.f32 %v2034_v8, %v2146_v12  ;;  %v2257_v27 = vadd.f32 %v2034_v8, %v2152_v19  ;;  %v1588_v30 = vunpack.c.h.bf16 %v1622_v31 }
  0x35   : > { %421 = vrot.lane.b32.xlu1 %v2126_v5, %s1961_s4  ;;  %419 = vrot.lane.b32.xlu0 %v2129_v6, %s1961_s4  ;;  %v1592_v33 = vunpack.c.h.bf16 %v1623_v41  ;;  %v2265_v55 = vadd.f32 %v2034_v8, %v776_v4  ;;  %v775_v36 = vmul.f32 %v1584_v10, %v2026_v0  ;;  %v778_v12 = vmul.f32 %v1591_v14, %v2026_v0  ;;  %v1611_v4 = vld [vmem:[%s2021_s26 + $0x98] sm:$0xff]  }
  0x36   : > { %2849 = vst [vmem:[#allocation20_spill] sm:$0xff] %v2253_v15  ;;  %2850 = vst [vmem:[#allocation21_spill] sm:$0xff] %v2257_v27  ;;  %v777_v19 = vmul.f32 %v1588_v30, %v2026_v0  ;;  %v750_v39 = vmul.f32 %v1535_v13, %v2026_v0  ;;  %v749_v37 = vmul.f32 %v1532_v24, %v2026_v0  ;;  %v1539_v41 = vunpack.c.l.bf16 %v1610_v34  ;;  %v1603_v10 = vld [vmem:[%s2021_s26 + $0x58] sm:$0xff]   ;;  %v1612_v30 = vld [vmem:[%s2021_s26 + $0xa0] sm:$0xff]  }
  0x37   : > { %v779_v31 = vmul.f32 %v1592_v33, %v2026_v0  ;;  %v2275_v40 = vadd.f32 %v2034_v8, %v775_v36  ;;  %v2278_v18 = vadd.f32 %v2034_v8, %v778_v12  ;;  %v2295_v13 = vadd.f32 %v2034_v8, %v2155_v20 }
  0x38   : > { %v2284_v45 = vadd.f32 %v2034_v8, %v777_v19  ;;  %v2299_v50 = vadd.f32 %v2034_v8, %v2158_v23  ;;  %v1536_v24 = vunpack.c.h.bf16 %v2115_v63  ;;  %v2305_v14 = vadd.f32 %v2034_v8, %v750_v39 }
  0x39   : > { %425 = vrot.lane.b32.xlu1 %v2132_v7, %s1961_s4  ;;  %423 = vrot.lane.b32.xlu0 %v2135_v9, %s1961_s4  ;;  %v2287_v46 = vadd.f32 %v2034_v8, %v779_v31  ;;  %v1508_v33 = vunpack.c.h.bf16 %v2095_v51  ;;  %v1511_v36 = vunpack.c.l.bf16 %v1603_v10  ;;  %v2310_v12 = vadd.f32 %v2034_v8, %v749_v37  ;;  %v1604_v37 = vld [vmem:[%s2021_s26 + $0x60] sm:$0xff]  }
  0x3a   : > { %2851 = vst [vmem:[#allocation22_spill] sm:$0xff] %v2299_v50  ;;  %v752_v20 = vmul.f32 %v1539_v41, %v2026_v0  ;;  %v1543_v19 = vunpack.c.l.bf16 %v1611_v4  ;;  %v1540_v23 = vunpack.c.h.bf16 %v1610_v34  ;;  %v751_v63 = vmul.f32 %v1536_v24, %v2026_v0 }
  0x3b   : > { %v346_v31 = vmul.f32 %v1508_v33, %v2026_v0  ;;  %v347_v51 = vmul.f32 %v1511_v36, %v2026_v0  ;;  %v1547_v39 = vunpack.c.l.bf16 %v1612_v30  ;;  %v1512_v41 = vunpack.c.h.bf16 %v1603_v10 }
  0x3c   : > { %v754_v24 = vmul.f32 %v1543_v19, %v2026_v0  ;;  %v753_v33 = vmul.f32 %v1540_v23, %v2026_v0  ;;  %v2337_v36 = vadd.f32 %v2034_v8, %v751_v63  ;;  %v1605_v19 = vld [vmem:[%s2021_s26 + $0x68] sm:$0xff]  }
  0x3d   : > { %429 = vrot.lane.b32.xlu1 %v2143_v11, %s1961_s4  ;;  %427 = vrot.lane.b32.xlu0 %v2165_v26, %s1961_s4  ;;  %v2325_v34 = vadd.f32 %v2034_v8, %v347_v51  ;;  %v1515_v11 = vunpack.c.l.bf16 %v1604_v37  ;;  %v348_v10 = vmul.f32 %v1512_v41, %v2026_v0  ;;  %v1516_v51 = vunpack.c.h.bf16 %v1604_v37 }
  0x3e   : > { %v1519_v7 = vunpack.c.l.bf16 %v1605_v19  ;;  %v2350_v26 = vadd.f32 %v2034_v8, %v754_v24  ;;  %v756_v63 = vmul.f32 %v1547_v39, %v2026_v0 }
  0x3f   : > { %2853 = vst [vmem:[#allocation24_spill] sm:$0xff] %v2325_v34  ;;  %v2344_v23 = vadd.f32 %v2034_v8, %v348_v10  ;;  %v350_v37 = vmul.f32 %v1516_v51, %v2026_v0  ;;  %v1606_v10 = vld [vmem:[%s2021_s26 + $0x70] sm:$0xff]  }
  0x40   : > { %v351_v24 = vmul.f32 %v1519_v7, %v2026_v0  ;;  %v2371_v5 = vadd.f32 %v2034_v8, %v756_v63 }
  0x41   : > { %433 = vrot.lane.b32.xlu1 %v2253_v15, %s1961_s4  ;;  %431 = vrot.lane.b32.xlu0 %v2257_v27, %s1961_s4  ;;  %v2322_v15 = vadd.f32 %v2034_v8, %v346_v31  ;;  %v2328_v27 = vadd.f32 %v2034_v8, %v752_v20  ;;  %v349_v31 = vmul.f32 %v1515_v11, %v2026_v0  ;;  %v1551_v20 = vunpack.c.l.bf16 %v2162_v25 }
  0x42   : > { %2854 = vst [vmem:[#allocation25_spill] sm:$0xff] %v2344_v23  ;;  %v1548_v11 = vunpack.c.h.bf16 %v1612_v30  ;;  %v2359_v25 = vadd.f32 %v2034_v8, %v753_v33  ;;  %v2365_v39 = vadd.f32 %v2034_v8, %v350_v37  ;;  %v1520_v30 = vunpack.c.h.bf16 %v1605_v19  ;;  %v1607_v37 = vld [vmem:[%s2021_s26 + $0x78] sm:$0xff]  }
  0x43   : > { %2852 = vst [vmem:[#allocation23_spill] sm:$0xff] %v2322_v15  ;;  %v758_v33 = vmul.f32 %v1551_v20, %v2026_v0 }
  0x44   : > { %2856 = vst [vmem:[#allocation27_spill] sm:$0xff] %v2365_v39  ;;  %v757_v9 = vmul.f32 %v1548_v11, %v2026_v0  ;;  %v352_v51 = vmul.f32 %v1520_v30, %v2026_v0  ;;  %v1524_v11 = vunpack.c.h.bf16 %v1606_v10 }
  0x45   : > { %812 = vrot.lane.b32.xlu1 %v2295_v13, %s1961_s4  ;;  %435 = vrot.lane.b32.xlu0 %v2299_v50, %s1961_s4  ;;  %v1544_v50 = vunpack.c.h.bf16 %v1611_v4  ;;  %v2347_v4 = vadd.f32 %v2034_v8, %v349_v31  ;;  %v1523_v31 = vunpack.c.l.bf16 %v1606_v10  ;;  %v2392_v2 = vadd.f32 %v2034_v8, %v758_v33 }
  0x46   : > { %v2386_v63 = vadd.f32 %v2034_v8, %v352_v51  ;;  %v354_v30 = vmul.f32 %v1524_v11, %v2026_v0  ;;  %v1528_v33 = vunpack.c.h.bf16 %v1607_v37 }
  0x47   : > { %2855 = vst [vmem:[#allocation26_spill] sm:$0xff] %v2347_v4  ;;  %v755_v41 = vmul.f32 %v1544_v50, %v2026_v0  ;;  %v2368_v50 = vadd.f32 %v2034_v8, %v351_v24  ;;  %v353_v19 = vmul.f32 %v1523_v31, %v2026_v0  ;;  %v1527_v24 = vunpack.c.l.bf16 %v1607_v37 }
  0x48   : > { %2858 = vst [vmem:[#allocation29_spill] sm:$0xff] %v2386_v63  ;;  %v2404_v51 = vadd.f32 %v2034_v8, %v354_v30 }
  0x49   : > { %816 = vrot.lane.b32.xlu1 %v2305_v14, %s1961_s4  ;;  %814 = vrot.lane.b32.xlu0 %v2310_v12, %s1961_s4  ;;  %2857 = vst [vmem:[#allocation28_spill] sm:$0xff] %v2368_v50  ;;  %v2380_v7 = vadd.f32 %v2034_v8, %v755_v41  ;;  %v2389_v20 = vadd.f32 %v2034_v8, %v353_v19 }
  0x4a   : > { %v2399_v41 = vadd.f32 %v2034_v8, %v757_v9  ;;  %v355_v31 = vmul.f32 %v1527_v24, %v2026_v0  ;;  %2860 = vst [vmem:[#allocation31_spill] sm:$0xff] %v2404_v51  ;;  %v356_v9 = vmul.f32 %v1528_v33, %v2026_v0 }
  0x4b   : > { %2859 = vst [vmem:[#allocation30_spill] sm:$0xff] %v2389_v20 }
  0x4c   : > { %v2407_v10 = vadd.f32 %v2034_v8, %v355_v31  ;;  %v2415_v19 = vadd.f32 %v2034_v8, %v356_v9 }
  0x4d   : > { %820 = vrot.lane.b32.xlu1 %v2328_v27, %s1961_s4  ;;  %818 = vrot.lane.b32.xlu0 %v2337_v36, %s1961_s4 }
  0x4e   : > { %2861 = vst [vmem:[#allocation32_spill] sm:$0xff] %v2407_v10  ;;  %2862 = vst [vmem:[#allocation33_spill] sm:$0xff] %v2415_v19 }
  0x51   : > { %824 = vrot.lane.b32.xlu1 %v2350_v26, %s1961_s4  ;;  %822 = vrot.lane.b32.xlu0 %v2359_v25, %s1961_s4 }
  0x55   : > { %828 = vrot.lane.b32.xlu1 %v2371_v5, %s1961_s4  ;;  %826 = vrot.lane.b32.xlu0 %v2380_v7, %s1961_s4 }
  0x59   : > { %832 = vrot.lane.b32.xlu1 %v2392_v2, %s1961_s4  ;;  %830 = vrot.lane.b32.xlu0 %v2399_v41, %s1961_s4 }
  0x5d   : > { %836 = vrot.lane.b32.xlu1 %v2175_v38, %s1961_s4  ;;  %834 = vrot.lane.b32.xlu0 %v2185_v48, %s1961_s4 }
  0x61   : > { %840 = vrot.lane.b32.xlu1 %v2188_v49, %s1961_s4  ;;  %838 = vrot.lane.b32.xlu0 %v2194_v58, %s1961_s4 }
  0x65   : > { %844 = vrot.lane.b32.xlu1 %v2197_v59, %s1961_s4  ;;  %842 = vrot.lane.b32.xlu0 %v2200_v60, %s1961_s4 }
  0x69   : > { %848 = vrot.lane.b32.xlu1 %v2203_v61, %s1961_s4  ;;  %846 = vrot.lane.b32.xlu0 %v2210_v62, %s1961_s4 }
  0x6d   : > { %852 = vrot.lane.b32.xlu1 %v2215_v32, %s1961_s4  ;;  %850 = vrot.lane.b32.xlu0 %v2229_v43, %s1961_s4 }
  0x71   : > { %856 = vrot.lane.b32.xlu1 %v2232_v44, %s1961_s4  ;;  %854 = vrot.lane.b32.xlu0 %v2236_v47, %s1961_s4 }
  0x75   : > { %860 = vrot.lane.b32.xlu1 %v2239_v52, %s1961_s4  ;;  %858 = vrot.lane.b32.xlu0 %v2242_v53, %s1961_s4 }
  0x79   : > { %864 = vrot.lane.b32.xlu1 %v2245_v54, %s1961_s4  ;;  %862 = vrot.lane.b32.xlu0 %v2248_v1, %s1961_s4 }
  0x7d   : > { %868 = vrot.lane.b32.xlu1 %v2265_v55, %s1961_s4  ;;  %866 = vrot.lane.b32.xlu0 %v2275_v40, %s1961_s4 }
  0x81   : > { %872 = vrot.lane.b32.xlu1 %v2278_v18, %s1961_s4  ;;  %870 = vrot.lane.b32.xlu0 %v2284_v45, %s1961_s4 }
  0x85   : > { %874 = vrot.lane.b32.xlu0 %v2287_v46, %s1961_s4  ;;  %437 = vrot.lane.b32.xlu1 %v2322_v15, %s1961_s4 }
  0x89   : > { %439 = vrot.lane.b32.xlu0 %v2325_v34, %s1961_s4  ;;  %441 = vrot.lane.b32.xlu1 %v2344_v23, %s1961_s4 }
  0x8d   : > { %443 = vrot.lane.b32.xlu0 %v2347_v4, %s1961_s4  ;;  %445 = vrot.lane.b32.xlu1 %v2365_v39, %s1961_s4 }
  0x8f   : > { %v2469_v0 = vpop.permute.xlu1 %399  ;;  %v2471_v8 = vpop.permute.xlu0 %395 }
  0x91   : > { %447 = vrot.lane.b32.xlu0 %v2368_v50, %s1961_s4  ;;  %449 = vrot.lane.b32.xlu1 %v2386_v63, %s1961_s4 }
  0x93   : > { %v2477_v37 = vpop.permute.xlu1 %401  ;;  %v2479_v11 = vpop.permute.xlu0 %397 }
  0x95   : > { %451 = vrot.lane.b32.xlu0 %v2389_v20, %s1961_s4  ;;  %453 = vrot.lane.b32.xlu1 %v2404_v51, %s1961_s4 }
  0x97   : > { %v2485_v24 = vpop.permute.xlu1 %405  ;;  %v2487_v30 = vpop.permute.xlu0 %403 }
  0x99   : > { %455 = vrot.lane.b32.xlu0 %v2407_v10, %s1961_s4  ;;  %457 = vrot.lane.b32.xlu1 %v2415_v19, %s1961_s4 }
  0x9b   : > { %v2493_v31 = vpop.permute.xlu1 %409  ;;  %v2495_v33 = vpop.permute.xlu0 %407 }
  0x9f   : > { %v2497_v9 = vpop.permute.xlu1 %413  ;;  %v2499_v63 = vpop.permute.xlu0 %411 }
  0xa3   : > { %v2501_v20 = vpop.permute.xlu1 %417  ;;  %v2503_v51 = vpop.permute.xlu0 %415 }
  0xa7   : > { %v2505_v39 = vpop.permute.xlu1 %421  ;;  %v2507_v50 = vpop.permute.xlu0 %419 }
  0xab   : > { %v2509_v10 = vpop.permute.xlu1 %425  ;;  %v2511_v23 = vpop.permute.xlu0 %423 }
  0xac   : > { %2863 = vst [vmem:[#allocation34_spill] sm:$0xff] %v2509_v10  ;;  %2864 = vst [vmem:[#allocation35_spill] sm:$0xff] %v2511_v23 }
  0xaf   : > { %v2513_v19 = vpop.permute.xlu1 %429  ;;  %v2515_v4 = vpop.permute.xlu0 %427 }
  0xb0   : > { %2865 = vst [vmem:[#allocation36_spill] sm:$0xff] %v2513_v19  ;;  %2866 = vst [vmem:[#allocation37_spill] sm:$0xff] %v2515_v4 }
  0xb3   : > { %v2517_v15 = vpop.permute.xlu1 %433  ;;  %v2519_v34 = vpop.permute.xlu0 %431 }
  0xb4   : > { %2867 = vst [vmem:[#allocation38_spill] sm:$0xff] %v2517_v15  ;;  %2868 = vst [vmem:[#allocation39_spill] sm:$0xff] %v2519_v34 }
  0xb7   : > { %v813_v6 = vpop.permute.xlu1 %812  ;;  %v2521_v56 = vpop.permute.xlu0 %435 }
  0xb8   : > { %2869 = vst [vmem:[#allocation40_spill] sm:$0xff] %v2521_v56  ;;  %v1431_v3 = vmul.f32 -1.442695, %v813_v6 }
  0xba   : > { %1665 = vpow2.f32 %v1431_v3 }
  0xbb   : > { %v817_v35 = vpop.permute.xlu1 %816  ;;  %v815_v57 = vpop.permute.xlu0 %814 }
  0xbc   : > { %v1433_v28 = vmul.f32 -1.442695, %v817_v35  ;;  %v1432_v42 = vmul.f32 -1.442695, %v815_v57 }
  0xbe   : > { %1667 = vpow2.f32 %v1433_v28 }
  0xbf   : > { %1669 = vpow2.f32 %v1432_v42  ;;  %v821_v21 = vpop.permute.xlu1 %820  ;;  %v819_v29 = vpop.permute.xlu0 %818 }
  0xc0   : > { %v1435_v22 = vmul.f32 -1.442695, %v821_v21  ;;  %v1434_v16 = vmul.f32 -1.442695, %v819_v29 }
  0xc2   : > { %1671 = vpow2.f32 %v1435_v22 }
  0xc3   : > { %v825_v17 = vpop.permute.xlu1 %824  ;;  %v823_v19 = vpop.permute.xlu0 %822  ;;  %1673 = vpow2.f32 %v1434_v16 }
  0xc4   : > { %v1437_v15 = vmul.f32 -1.442695, %v825_v17  ;;  %v1436_v34 = vmul.f32 -1.442695, %v823_v19 }
  0xc6   : > { %1675 = vpow2.f32 %v1437_v15 }
  0xc7   : > { %v1666_v4 = vpop.eup %1665  ;;  %v829_v56 = vpop.permute.xlu1 %828  ;;  %1677 = vpow2.f32 %v1436_v34 }
  0xc8   : > { %v827_v6 = vpop.permute.xlu0 %826  ;;  %v972_v3 = vadd.f32 1.0, %v1666_v4  ;;  %v1439_v10 = vmul.f32 -1.442695, %v829_v56 }
  0xc9   : > { %v1438_v35 = vmul.f32 -1.442695, %v827_v6 }
  0xca   : > { %1679 = vrcp.f32 %v972_v3 }
  0xcb   : > { %v1668_v28 = vpop.eup %1667  ;;  %v833_v42 = vpop.permute.xlu1 %832  ;;  %1681 = vpow2.f32 %v1439_v10 }
  0xcc   : > { %v831_v57 = vpop.permute.xlu0 %830  ;;  %v1670_v21 = vpop.eup %1669  ;;  %v974_v29 = vadd.f32 1.0, %v1668_v28  ;;  %v1441_v23 = vmul.f32 -1.442695, %v833_v42  ;;  %1683 = vpow2.f32 %v1438_v35 }
  0xcd   : > { %v973_v22 = vadd.f32 1.0, %v1670_v21  ;;  %v1440_v16 = vmul.f32 -1.442695, %v831_v57 }
  0xce   : > { %1685 = vrcp.f32 %v974_v29 }
  0xcf   : > { %1687 = vrcp.f32 %v973_v22  ;;  %v837_v17 = vpop.permute.xlu1 %836  ;;  %v1672_v34 = vpop.eup %1671 }
  0xd0   : > { %v835_v19 = vpop.permute.xlu0 %834  ;;  %1689 = vpow2.f32 %v1441_v23  ;;  %v1443_v15 = vmul.f32 -1.442695, %v837_v17  ;;  %v1674_v4 = vpop.eup %1673  ;;  %v976_v6 = vadd.f32 1.0, %v1672_v34 }
  0xd1   : > { %v1442_v56 = vmul.f32 -1.442695, %v835_v19  ;;  %1691 = vpow2.f32 %v1440_v16  ;;  %v975_v3 = vadd.f32 1.0, %v1674_v4 }
  0xd2   : > { %1693 = vpow2.f32 %v1443_v15 }
  0xd3   : > { %1695 = vpow2.f32 %v1442_v56  ;;  %v841_v28 = vpop.permute.xlu1 %840  ;;  %v1676_v57 = vpop.eup %1675 }
  0xd4   : > { %v839_v10 = vpop.permute.xlu0 %838  ;;  %1697 = vrcp.f32 %v976_v6  ;;  %v1445_v42 = vmul.f32 -1.442695, %v841_v28  ;;  %v1678_v21 = vpop.eup %1677  ;;  %v978_v29 = vadd.f32 1.0, %v1676_v57 }
  0xd5   : > { %v1444_v35 = vmul.f32 -1.442695, %v839_v10  ;;  %1699 = vrcp.f32 %v975_v3  ;;  %v977_v22 = vadd.f32 1.0, %v1678_v21 }
  0xd6   : > { %1701 = vpow2.f32 %v1445_v42 }
  0xd7   : > { %v1680_v23 = vpop.eup %1679  ;;  %1703 = vpow2.f32 %v1444_v35  ;;  %v845_v17 = vpop.permute.xlu1 %844 }
  0xd8   : > { %v843_v16 = vpop.permute.xlu0 %842  ;;  %1705 = vrcp.f32 %v978_v29  ;;  %v1447_v19 = vmul.f32 -1.442695, %v845_v17  ;;  %v1068_v56 = vmul.f32 %v1680_v23, %v2295_v13  ;;  %v1682_v34 = vpop.eup %1681 }
  0xd9   : > { %v1446_v15 = vmul.f32 -1.442695, %v843_v16  ;;  %1707 = vrcp.f32 %v977_v22  ;;  %v1684_v4 = vpop.eup %1683  ;;  %v980_v6 = vadd.f32 1.0, %v1682_v34 }
  0xda   : > { %1709 = vpow2.f32 %v1447_v19  ;;  %1100 = vrot.lane.b32.xlu0 %v1068_v56, %s1961_s4  ;;  %v979_v28 = vadd.f32 1.0, %v1684_v4 }
  0xdb   : > { %v1686_v3 = vpop.eup %1685  ;;  %1711 = vpow2.f32 %v1446_v15  ;;  %v849_v10 = vpop.permute.xlu1 %848 }
  0xdc   : > { %v847_v42 = vpop.permute.xlu0 %846  ;;  %v1688_v35 = vpop.eup %1687  ;;  %1713 = vrcp.f32 %v980_v6  ;;  %v1449_v57 = vmul.f32 -1.442695, %v849_v10  ;;  %v1070_v29 = vmul.f32 %v1686_v3, %v2305_v14 }
  0xdd   : > { %v1448_v21 = vmul.f32 -1.442695, %v847_v42  ;;  %v1690_v17 = vpop.eup %1689  ;;  %1715 = vrcp.f32 %v979_v28  ;;  %v1069_v13 = vmul.f32 %v1688_v35, %v2310_v12 }
  0xde   : > { %v1692_v23 = vpop.eup %1691  ;;  %v982_v22 = vadd.f32 1.0, %v1690_v17  ;;  %1717 = vpow2.f32 %v1449_v57  ;;  %1104 = vrot.lane.b32.xlu0 %v1070_v29, %s1961_s4 }
  0xdf   : > { %v1694_v16 = vpop.eup %1693  ;;  %v981_v19 = vadd.f32 1.0, %v1692_v23  ;;  %1719 = vpow2.f32 %v1448_v21  ;;  %1102 = vrot.lane.b32.xlu1 %v1069_v13, %s1961_s4  ;;  %v853_v15 = vpop.permute.xlu1 %852 }
  0xe0   : > { %v851_v56 = vpop.permute.xlu0 %850  ;;  %v1696_v34 = vpop.eup %1695  ;;  %1721 = vrcp.f32 %v982_v22  ;;  %v984_v4 = vadd.f32 1.0, %v1694_v16  ;;  %v1451_v14 = vmul.f32 -1.442695, %v853_v15 }
  0xe1   : > { %v1698_v6 = vpop.eup %1697  ;;  %1723 = vrcp.f32 %v981_v19  ;;  %v983_v3 = vadd.f32 1.0, %v1696_v34  ;;  %v1450_v12 = vmul.f32 -1.442695, %v851_v56 }
  0xe2   : > { %v1700_v28 = vpop.eup %1699  ;;  %1725 = vrcp.f32 %v984_v4  ;;  %v1072_v10 = vmul.f32 %v1698_v6, %v2328_v27 }
  0xe3   : > { %v1702_v42 = vpop.eup %1701  ;;  %1727 = vrcp.f32 %v983_v3  ;;  %v1071_v35 = vmul.f32 %v1700_v28, %v2337_v36  ;;  %v857_v57 = vpop.permute.xlu1 %856 }
  0xe4   : > { %v855_v21 = vpop.permute.xlu0 %854  ;;  %v1704_v29 = vpop.eup %1703  ;;  %v986_v17 = vadd.f32 1.0, %v1702_v42  ;;  %1729 = vpow2.f32 %v1451_v14  ;;  %1108 = vrot.lane.b32.xlu0 %v1072_v10, %s1961_s4  ;;  %v1453_v13 = vmul.f32 -1.442695, %v857_v57 }
  0xe5   : > { %v1706_v23 = vpop.eup %1705  ;;  %v985_v22 = vadd.f32 1.0, %v1704_v29  ;;  %1731 = vpow2.f32 %v1450_v12  ;;  %1106 = vrot.lane.b32.xlu1 %v1071_v35, %s1961_s4  ;;  %v1452_v16 = vmul.f32 -1.442695, %v855_v21 }
  0xe6   : > { %v1708_v19 = vpop.eup %1707  ;;  %1733 = vrcp.f32 %v986_v17  ;;  %v1074_v27 = vmul.f32 %v1706_v23, %v2350_v26 }
  0xe7   : > { %v1710_v15 = vpop.eup %1709  ;;  %1735 = vrcp.f32 %v985_v22  ;;  %v1073_v36 = vmul.f32 %v1708_v19, %v2359_v25  ;;  %v861_v56 = vpop.permute.xlu1 %860 }
  0xe8   : > { %v859_v34 = vpop.permute.xlu0 %858  ;;  %v1712_v4 = vpop.eup %1711  ;;  %v988_v14 = vadd.f32 1.0, %v1710_v15  ;;  %1737 = vpow2.f32 %v1453_v13  ;;  %1112 = vrot.lane.b32.xlu0 %v1074_v27, %s1961_s4  ;;  %v1455_v6 = vmul.f32 -1.442695, %v861_v56 }
  0xe9   : > { %v1714_v3 = vpop.eup %1713  ;;  %v987_v12 = vadd.f32 1.0, %v1712_v4  ;;  %1739 = vpow2.f32 %v1452_v16  ;;  %1110 = vrot.lane.b32.xlu1 %v1073_v36, %s1961_s4  ;;  %v1454_v28 = vmul.f32 -1.442695, %v859_v34 }
  0xea   : > { %v1716_v10 = vpop.eup %1715  ;;  %1741 = vrcp.f32 %v988_v14  ;;  %v1076_v26 = vmul.f32 %v1714_v3, %v2371_v5 }
  0xeb   : > { %v1718_v42 = vpop.eup %1717  ;;  %1743 = vrcp.f32 %v987_v12  ;;  %v1075_v25 = vmul.f32 %v1716_v10, %v2380_v7  ;;  %v865_v35 = vpop.permute.xlu1 %864 }
  0xec   : > { %v863_v57 = vpop.permute.xlu0 %862  ;;  %v1720_v21 = vpop.eup %1719  ;;  %v990_v29 = vadd.f32 1.0, %v1718_v42  ;;  %1745 = vpow2.f32 %v1455_v6  ;;  %1116 = vrot.lane.b32.xlu0 %v1076_v26, %s1961_s4  ;;  %v1457_v17 = vmul.f32 -1.442695, %v865_v35 }
  0xed   : > { %v1722_v13 = vpop.eup %1721  ;;  %v989_v23 = vadd.f32 1.0, %v1720_v21  ;;  %1747 = vpow2.f32 %v1454_v28  ;;  %1114 = vrot.lane.b32.xlu1 %v1075_v25, %s1961_s4  ;;  %v1456_v22 = vmul.f32 -1.442695, %v863_v57 }
  0xee   : > { %v1724_v16 = vpop.eup %1723  ;;  %1749 = vrcp.f32 %v990_v29  ;;  %v1078_v5 = vmul.f32 %v1722_v13, %v2392_v2 }
  0xef   : > { %v1726_v19 = vpop.eup %1725  ;;  %1751 = vrcp.f32 %v989_v23  ;;  %v1077_v7 = vmul.f32 %v1724_v16, %v2399_v41  ;;  %v869_v27 = vpop.permute.xlu1 %868 }
  0xf0   : > { %v867_v15 = vpop.permute.xlu0 %866  ;;  %v1728_v36 = vpop.eup %1727  ;;  %1753 = vpow2.f32 %v1457_v17  ;;  %1120 = vrot.lane.b32.xlu0 %v1078_v5, %s1961_s4  ;;  %v1459_v56 = vmul.f32 -1.442695, %v869_v27  ;;  %v1080_v4 = vmul.f32 %v1726_v19, %v2175_v38 }
  0xf1   : > { %v1458_v34 = vmul.f32 -1.442695, %v867_v15  ;;  %v1730_v14 = vpop.eup %1729  ;;  %1755 = vpow2.f32 %v1456_v22  ;;  %1118 = vrot.lane.b32.xlu1 %v1077_v7, %s1961_s4  ;;  %v1079_v2 = vmul.f32 %v1728_v36, %v2185_v48 }
  0xf2   : > { %v1732_v6 = vpop.eup %1731  ;;  %v992_v3 = vadd.f32 1.0, %v1730_v14  ;;  %1757 = vpow2.f32 %v1459_v56 }
  0xf3   : > { %v1734_v41 = vpop.eup %1733  ;;  %v991_v12 = vadd.f32 1.0, %v1732_v6  ;;  %1759 = vpow2.f32 %v1458_v34  ;;  %v873_v28 = vpop.permute.xlu1 %872 }
  0xf4   : > { %v871_v10 = vpop.permute.xlu0 %870  ;;  %v1736_v26 = vpop.eup %1735  ;;  %1761 = vrcp.f32 %v992_v3  ;;  %1124 = vrot.lane.b32.xlu0 %v1080_v4, %s1961_s4  ;;  %v1461_v42 = vmul.f32 -1.442695, %v873_v28  ;;  %v1082_v25 = vmul.f32 %v1734_v41, %v2188_v49 }
  0xf5   : > { %v1460_v38 = vmul.f32 -1.442695, %v871_v10  ;;  %v1738_v35 = vpop.eup %1737  ;;  %1763 = vrcp.f32 %v991_v12  ;;  %1122 = vrot.lane.b32.xlu1 %v1079_v2, %s1961_s4  ;;  %v1081_v48 = vmul.f32 %v1736_v26, %v2194_v58 }
  0xf6   : > { %v1740_v57 = vpop.eup %1739  ;;  %v994_v21 = vadd.f32 1.0, %v1738_v35  ;;  %1765 = vpow2.f32 %v1461_v42 }
  0xf7   : > { %v1742_v29 = vpop.eup %1741  ;;  %v993_v17 = vadd.f32 1.0, %v1740_v57  ;;  %1767 = vpow2.f32 %v1460_v38 }
  0xf8   : > { %v875_v13 = vpop.permute.xlu0 %874  ;;  %v1744_v23 = vpop.eup %1743  ;;  %1769 = vrcp.f32 %v994_v21  ;;  %1128 = vrot.lane.b32.xlu0 %v1082_v25, %s1961_s4  ;;  %v1084_v49 = vmul.f32 %v1742_v29, %v2197_v59 }
  0xf9   : > { %v1462_v22 = vmul.f32 -1.442695, %v875_v13  ;;  %v1746_v16 = vpop.eup %1745  ;;  %1771 = vrcp.f32 %v993_v17  ;;  %1126 = vrot.lane.b32.xlu1 %v1081_v48, %s1961_s4  ;;  %v1083_v58 = vmul.f32 %v1744_v23, %v2200_v60 }
  0xfa   : > { %v1748_v5 = vpop.eup %1747  ;;  %v996_v19 = vadd.f32 1.0, %v1746_v16 }
  0xfb   : > { %1773 = vpow2.f32 %v1462_v22  ;;  %v1750_v7 = vpop.eup %1749  ;;  %v995_v27 = vadd.f32 1.0, %v1748_v5 }
  0xfc   : > { %v1752_v15 = vpop.eup %1751  ;;  %1775 = vrcp.f32 %v996_v19  ;;  %1132 = vrot.lane.b32.xlu0 %v1084_v49, %s1961_s4  ;;  %v1086_v36 = vmul.f32 %v1750_v7, %v2203_v61  ;;  %v1369_v19 = vmul.f32 -1.442695, %v2469_v0  ;;  %v2591_v7 = vpop.permute.xlu1 %437 }
  0xfd   : > { %v1754_v56 = vpop.eup %1753  ;;  %1777 = vrcp.f32 %v995_v27  ;;  %1130 = vrot.lane.b32.xlu1 %v1083_v58, %s1961_s4  ;;  %v1085_v59 = vmul.f32 %v1752_v15, %v2210_v62  ;;  %v1370_v27 = vmul.f32 -1.442695, %v2477_v37  ;;  %v2594_v15 = vpop.permute.xlu0 %439  ;;  %v1374_v37 = vmul.f32 -1.442695, %v2493_v31 }
  0xfe   : > { %v1756_v34 = vpop.eup %1755  ;;  %v998_v4 = vadd.f32 1.0, %v1754_v56 }
  0xff   : > { %v1758_v60 = vpop.eup %1757  ;;  %v997_v14 = vadd.f32 1.0, %v1756_v34 }
 0x100   : > { %v1760_v2 = vpop.eup %1759  ;;  %1779 = vrcp.f32 %v998_v4  ;;  %v1000_v6 = vadd.f32 1.0, %v1758_v60  ;;  %1136 = vrot.lane.b32.xlu0 %v1086_v36, %s1961_s4  ;;  %v2598_v0 = vpop.permute.xlu1 %441  ;;  %v1376_v60 = vmul.f32 -1.442695, %v2497_v9 }
 0x101   : > { %v1762_v3 = vpop.eup %1761  ;;  %1781 = vrcp.f32 %v997_v14  ;;  %v999_v41 = vadd.f32 1.0, %v1760_v2  ;;  %1134 = vrot.lane.b32.xlu1 %v1085_v59, %s1961_s4 }
 0x102   : > { %v1764_v61 = vpop.eup %1763  ;;  %1783 = vrcp.f32 %v1000_v6  ;;  %v1088_v12 = vmul.f32 %v1762_v3, %v2215_v32  ;;  %v1378_v6 = vmul.f32 -1.442695, %v2501_v20  ;;  %v1380_v3 = vmul.f32 -1.442695, %v2505_v39  ;;  %v2872_v39 = vld [vmem:[#allocation37_spill] sm:$0xff] }
 0x103   : > { %v1766_v28 = vpop.eup %1765  ;;  %1785 = vrcp.f32 %v999_v41  ;;  %v1087_v62 = vmul.f32 %v1764_v61, %v2229_v43  ;;  %v2870_v41 = vld [vmem:[#allocation35_spill] sm:$0xff] }
 0x104   : > { %v1768_v10 = vpop.eup %1767  ;;  %v1002_v26 = vadd.f32 1.0, %v1766_v28  ;;  %1140 = vrot.lane.b32.xlu0 %v1088_v12, %s1961_s4  ;;  %v1381_v61 = vmul.f32 -1.442695, %v2870_v41 }
 0x105   : > { %v1770_v42 = vpop.eup %1769  ;;  %v1001_v38 = vadd.f32 1.0, %v1768_v10  ;;  %1138 = vrot.lane.b32.xlu1 %v1087_v62, %s1961_s4  ;;  %v253_v10 = vlaneseq }
 0x106   : > { %v1772_v25 = vpop.eup %1771  ;;  %1787 = vrcp.f32 %v1002_v26  ;;  %v1090_v35 = vmul.f32 %v1770_v42, %v2232_v44  ;;  %v2871_v26 = vld [vmem:[#allocation34_spill] sm:$0xff] }
 0x107   : > { %1789 = vrcp.f32 %v1001_v38  ;;  %v1089_v32 = vmul.f32 %v1772_v25, %v2236_v47  ;;  %v1382_v42 = vmul.f32 -1.442695, %v2871_v26  ;;  %v1383_v38 = vmul.f32 -1.442695, %v2872_v39  ;;  %v2881_v39 = vld [vmem:[#allocation4_spill] sm:$0xff] }
 0x108   : > { %v1774_v48 = vpop.eup %1773  ;;  %1144 = vrot.lane.b32.xlu0 %v1090_v35, %s1961_s4 }
 0x109   : > { %v1003_v57 = vadd.f32 1.0, %v1774_v48  ;;  %v1776_v43 = vpop.eup %1775  ;;  %1142 = vrot.lane.b32.xlu1 %v1089_v32, %s1961_s4 }
 0x10a   : > { %v1778_v21 = vpop.eup %1777  ;;  %v1092_v29 = vmul.f32 %v1776_v43, %v2239_v52  ;;  %v2627_v43 = vand.u32 127, %v253_v10  ;;  %v2880_v10 = vld [vmem:[#allocation7_spill] sm:$0xff] }
 0x10b   : > { %1791 = vrcp.f32 %v1003_v57  ;;  %v1091_v17 = vmul.f32 %v1778_v21, %v2242_v53 }
 0x10c   : > { %1148 = vrot.lane.b32.xlu0 %v1092_v29, %s1961_s4  ;;  %v2873_v29 = vld [vmem:[#allocation36_spill] sm:$0xff]  ;;  %vm1164_vm0 = vcmp.lt.s32.totalorder %v2627_v43, 64 }
 0x10d   : > { %v1780_v13 = vpop.eup %1779  ;;  %1146 = vrot.lane.b32.xlu1 %v1091_v17, %s1961_s4  ;;  %v1384_v17 = vmul.f32 -1.442695, %v2873_v29 }
 0x10e   : > { %v1782_v44 = vpop.eup %1781  ;;  %v1094_v47 = vmul.f32 %v1780_v13, %v2245_v54 }
 0x10f   : > { %v1784_v23 = vpop.eup %1783  ;;  %v1093_v22 = vmul.f32 %v1782_v44, %v2248_v1  ;;  %v2874_v44 = vld [vmem:[#allocation39_spill] sm:$0xff] }
 0x110   : > { %v1786_v49 = vpop.eup %1785  ;;  %1152 = vrot.lane.b32.xlu0 %v1094_v47, %s1961_s4  ;;  %v1096_v16 = vmul.f32 %v1784_v23, %v2265_v55  ;;  %v1385_v47 = vmul.f32 -1.442695, %v2874_v44 }
 0x111   : > { %1150 = vrot.lane.b32.xlu1 %v1093_v22, %s1961_s4  ;;  %v1095_v52 = vmul.f32 %v1786_v49, %v2275_v40  ;;  %v1367_v40 = vmul.f32 -1.442695, %v2471_v8  ;;  %v1372_v8 = vmul.f32 -1.442695, %v2485_v24  ;;  %v1377_v24 = vmul.f32 -1.442695, %v2503_v51 }
 0x113   : > { %v1788_v53 = vpop.eup %1787  ;;  %1793 = vpow2.f32 %v1367_v40  ;;  %v2877_v40 = vld [vmem:[#allocation40_spill] sm:$0xff] }
 0x114   : > { %v1790_v58 = vpop.eup %1789  ;;  %1156 = vrot.lane.b32.xlu0 %v1096_v16, %s1961_s4  ;;  %v1098_v5 = vmul.f32 %v1788_v53, %v2278_v18  ;;  %1795 = vpow2.f32 %v1369_v19  ;;  %v1368_v18 = vmul.f32 -1.442695, %v2479_v11  ;;  %v2600_v11 = vpop.permute.xlu0 %443  ;;  %v2875_v53 = vld [vmem:[#allocation38_spill] sm:$0xff]  ;;  %v1387_v19 = vmul.f32 -1.442695, %v2877_v40 }
 0x115   : > { %1154 = vrot.lane.b32.xlu1 %v1095_v52, %s1961_s4  ;;  %v1097_v54 = vmul.f32 %v1790_v58, %v2284_v45  ;;  %v1371_v45 = vmul.f32 -1.442695, %v2487_v30  ;;  %v1375_v30 = vmul.f32 -1.442695, %v2499_v63  ;;  %v1379_v63 = vmul.f32 -1.442695, %v2507_v50 }
 0x116   : > { %1797 = vpow2.f32 %v1368_v18  ;;  %v1386_v58 = vmul.f32 -1.442695, %v2875_v53 }
 0x117   : > { %1799 = vpow2.f32 %v1371_v45 }
 0x118   : > { %v1792_v1 = vpop.eup %1791  ;;  %1160 = vrot.lane.b32.xlu0 %v1098_v5, %s1961_s4  ;;  %1801 = vpow2.f32 %v1370_v27  ;;  %v2608_v14 = vpop.permute.xlu0 %447 }
 0x119   : > { %1158 = vrot.lane.b32.xlu1 %v1097_v54, %s1961_s4  ;;  %v1099_v55 = vmul.f32 %v1792_v1, %v2287_v46  ;;  %v1373_v46 = vmul.f32 -1.442695, %v2495_v33  ;;  %v2605_v33 = vpop.permute.xlu1 %445  ;;  %v2876_v54 = vld [vmem:[#allocation3_spill] sm:$0xff] }
 0x11b   : > { %1803 = vpow2.f32 %v1373_v46 }
 0x11c   : > { %1805 = vpow2.f32 %v1372_v8  ;;  %v2618_v12 = vpop.permute.xlu0 %451 }
 0x11d   : > { %1162 = vrot.lane.b32.xlu1 %v1099_v55, %s1961_s4  ;;  %1807 = vpow2.f32 %v1375_v30  ;;  %v2615_v9 = vpop.permute.xlu1 %449  ;;  %v2878_v30 = vld [vmem:[#allocation2_spill] sm:$0xff] }
 0x11e   : > { %1809 = vpow2.f32 %v1374_v37 }
 0x120   : > { %v1794_v36 = vpop.eup %1793  ;;  %v2625_v57 = vpop.permute.xlu0 %455 }
 0x121   : > { %v1796_v56 = vpop.eup %1795  ;;  %v555_v59 = vadd.f32 1.0, %v1794_v36  ;;  %v2623_v35 = vpop.permute.xlu1 %453 }
 0x122   : > { %v557_v34 = vadd.f32 1.0, %v1796_v56 }
 0x123   : > { %v1798_v4 = vpop.eup %1797  ;;  %1811 = vrcp.f32 %v555_v59 }
 0x124   : > { %1813 = vrcp.f32 %v557_v34  ;;  %v556_v31 = vadd.f32 1.0, %v1798_v4  ;;  %v1800_v2 = vpop.eup %1799  ;;  %v1388_v34 = vmul.f32 -1.442695, %v2591_v7  ;;  %v2879_v4 = vld [vmem:[#allocation5_spill] sm:$0xff] }
 0x125   : > { %1815 = vpow2.f32 %v1377_v24  ;;  %v1802_v51 = vpop.eup %1801  ;;  %v559_v50 = vadd.f32 1.0, %v1800_v2  ;;  %v2633_v5 = vpop.permute.xlu1 %457 }
 0x126   : > { %1817 = vpow2.f32 %v1376_v60  ;;  %v558_v62 = vadd.f32 1.0, %v1802_v51 }
 0x127   : > { %1819 = vpow2.f32 %v1379_v63 }
 0x128   : > { %1821 = vrcp.f32 %v556_v31  ;;  %v1804_v28 = vpop.eup %1803  ;;  %v1389_v31 = vmul.f32 -1.442695, %v2594_v15  ;;  %v1391_v15 = vmul.f32 -1.442695, %v2600_v11 }
 0x129   : > { %1823 = vpow2.f32 %v1378_v6  ;;  %v1806_v20 = vpop.eup %1805  ;;  %v561_v25 = vadd.f32 1.0, %v1804_v28 }
 0x12a   : > { %1825 = vpow2.f32 %v1380_v3  ;;  %v1808_v48 = vpop.eup %1807  ;;  %v560_v32 = vadd.f32 1.0, %v1806_v20 }
 0x12b   : > { %1827 = vpow2.f32 %v1381_v61  ;;  %v1810_v21 = vpop.eup %1809  ;;  %v563_v22 = vadd.f32 1.0, %v1808_v48 }
 0x12c   : > { %1829 = vrcp.f32 %v559_v50  ;;  %v562_v16 = vadd.f32 1.0, %v1810_v21 }
 0x12d   : > { %1831 = vrcp.f32 %v558_v62 }
 0x12e   : > { %1833 = vpow2.f32 %v1382_v42  ;;  %v1390_v42 = vmul.f32 -1.442695, %v2598_v0  ;;  %v1393_v0 = vmul.f32 -1.442695, %v2608_v14 }
 0x12f   : > { %1835 = vpow2.f32 %v1383_v38 }
 0x130   : > { %v1812_v13 = vpop.eup %1811  ;;  %1837 = vrcp.f32 %v561_v25 }
 0x131   : > { %v1814_v23 = vpop.eup %1813  ;;  %1839 = vrcp.f32 %v560_v32  ;;  %v651_v1 = vmul.f32 %v1812_v13, %v2876_v54 }
 0x132   : > { %v1816_v49 = vpop.eup %1815  ;;  %1841 = vpow2.f32 %v1384_v17  ;;  %v653_v37 = vmul.f32 %v1814_v23, %v2878_v30 }
 0x133   : > { %v1818_v52 = vpop.eup %1817  ;;  %1843 = vpow2.f32 %v1385_v47  ;;  %v565_v27 = vadd.f32 1.0, %v1816_v49  ;;  %v2882_v47 = vld [vmem:[#allocation9_spill] sm:$0xff]  ;;  %v1392_v49 = vmul.f32 -1.442695, %v2605_v33  ;;  %v1395_v33 = vmul.f32 -1.442695, %v2618_v12 }
 0x134   : > { %v1820_v55 = vpop.eup %1819  ;;  %1845 = vrcp.f32 %v563_v22  ;;  %v564_v8 = vadd.f32 1.0, %v1818_v52 }
 0x135   : > { %v1822_v45 = vpop.eup %1821  ;;  %1847 = vrcp.f32 %v562_v16  ;;  %v567_v56 = vadd.f32 1.0, %v1820_v55  ;;  %v2883_v16 = vld [vmem:[#allocation6_spill] sm:$0xff] }
 0x136   : > { %v1824_v36 = vpop.eup %1823  ;;  %1849 = vpow2.f32 %v1386_v58  ;;  %v652_v24 = vmul.f32 %v1822_v45, %v2879_v4  ;;  %v2884_v45 = vld [vmem:[#allocation11_spill] sm:$0xff] }
 0x137   : > { %v1826_v59 = vpop.eup %1825  ;;  %1851 = vpow2.f32 %v1387_v19  ;;  %v566_v3 = vadd.f32 1.0, %v1824_v36  ;;  %v2885_v36 = vld [vmem:[#allocation8_spill] sm:$0xff] }
 0x138   : > { %v1828_v63 = vpop.eup %1827  ;;  %1853 = vrcp.f32 %v565_v27  ;;  %v568_v61 = vadd.f32 1.0, %v1826_v59 }
 0x139   : > { %v1830_v51 = vpop.eup %1829  ;;  %1855 = vrcp.f32 %v564_v8  ;;  %v569_v28 = vadd.f32 1.0, %v1828_v63  ;;  %v1394_v8 = vmul.f32 -1.442695, %v2615_v9  ;;  %v1397_v9 = vmul.f32 -1.442695, %v2625_v57 }
 0x13a   : > { %v1832_v7 = vpop.eup %1831  ;;  %1857 = vrcp.f32 %v567_v56  ;;  %v655_v20 = vmul.f32 %v1830_v51, %v2880_v10  ;;  %v1396_v51 = vmul.f32 -1.442695, %v2623_v35  ;;  %v2888_v35 = vld [vmem:[#allocation15_spill] sm:$0xff] }
 0x13b   : > { %v1834_v50 = vpop.eup %1833  ;;  %1859 = vpow2.f32 %v1388_v34  ;;  %v654_v38 = vmul.f32 %v1832_v7, %v2881_v39  ;;  %v1398_v39 = vmul.f32 -1.442695, %v2633_v5  ;;  %v2890_v5 = vld [vmem:[#allocation17_spill] sm:$0xff] }
 0x13c   : > { %v1836_v62 = vpop.eup %1835  ;;  %1861 = vpow2.f32 %v1389_v31  ;;  %v570_v32 = vadd.f32 1.0, %v1834_v50  ;;  %v2886_v31 = vld [vmem:[#allocation13_spill] sm:$0xff] }
 0x13d   : > { %v1838_v26 = vpop.eup %1837  ;;  %1863 = vrcp.f32 %v566_v3  ;;  %v571_v11 = vadd.f32 1.0, %v1836_v62  ;;  %v2887_v3 = vld [vmem:[#allocation10_spill] sm:$0xff] }
 0x13e   : > { %v1840_v48 = vpop.eup %1839  ;;  %1865 = vrcp.f32 %v568_v61  ;;  %v657_v23 = vmul.f32 %v1838_v26, %v2882_v47 }
 0x13f   : > { %v1842_v17 = vpop.eup %1841  ;;  %1867 = vrcp.f32 %v569_v28  ;;  %v656_v52 = vmul.f32 %v1840_v48, %v2883_v16 }
 0x140   : > { %v1844_v44 = vpop.eup %1843  ;;  %1869 = vpow2.f32 %v1391_v15  ;;  %v572_v54 = vadd.f32 1.0, %v1842_v17 }
 0x141   : > { %v1846_v22 = vpop.eup %1845  ;;  %1871 = vpow2.f32 %v1390_v42  ;;  %v573_v40 = vadd.f32 1.0, %v1844_v44 }
 0x142   : > { %v1848_v58 = vpop.eup %1847  ;;  %1873 = vrcp.f32 %v570_v32  ;;  %v659_v27 = vmul.f32 %v1846_v22, %v2884_v45  ;;  %v2891_v22 = vld [vmem:[#allocation14_spill] sm:$0xff]  ;;  %v2893_v45 = vld [vmem:[#allocation16_spill] sm:$0xff] }
 0x143   : > { %v1850_v14 = vpop.eup %1849  ;;  %1875 = vrcp.f32 %v571_v11  ;;  %v658_v56 = vmul.f32 %v1848_v58, %v2885_v36 }
 0x144   : > { %1877 = vpow2.f32 %v1393_v0  ;;  %v574_v59 = vadd.f32 1.0, %v1850_v14 }
 0x145   : > { %1879 = vpow2.f32 %v1392_v49 }
 0x146   : > { %1881 = vrcp.f32 %v572_v54 }
 0x14c   : > { %v1101_v18 = vpop.permute.xlu0 %1100 }
 0x14d   : > { %v1165_v46 = vsel %vm1164_vm0, %v651_v1, %v1101_v18  ;;  %v1852_v18 = vpop.eup %1851  ;;  %1883 = vrcp.f32 %v573_v40  ;;  %v2892_v40 = vld [vmem:[#allocation19_spill] sm:$0xff] }
 0x14e   : > { %1197 = vst [vmem:[%s2638_s11] sm:$0xff] %v1165_v46  ;;  %v1854_v46 = vpop.eup %1853  ;;  %1885 = vpow2.f32 %v1395_v33 }
 0x150   : > { %v1105_v60 = vpop.permute.xlu0 %1104 }
 0x151   : > { %v1103_v2 = vpop.permute.xlu1 %1102  ;;  %v1167_v6 = vsel %vm1164_vm0, %v653_v37, %v1105_v60  ;;  %v1856_v37 = vpop.eup %1855  ;;  %1887 = vpow2.f32 %v1394_v8 }
 0x152   : > { %v1166_v41 = vsel %vm1164_vm0, %v652_v24, %v1103_v2  ;;  %1199 = vst [vmem:[%s2638_s11 + $0x10] sm:$0xff] %v1167_v6  ;;  %v1858_v12 = vpop.eup %1857  ;;  %v575_v24 = vadd.f32 1.0, %v1852_v18  ;;  %v661_v2 = vmul.f32 %v1854_v46, %v2886_v31  ;;  %1889 = vrcp.f32 %v574_v59 }
 0x153   : > { %1198 = vst [vmem:[%s2638_s11 + $0x8] sm:$0xff] %v1166_v41  ;;  %v1860_v63 = vpop.eup %1859  ;;  %v660_v41 = vmul.f32 %v1856_v37, %v2887_v3  ;;  %v663_v26 = vmul.f32 %v1858_v12, %v2888_v35 }
 0x154   : > { %v1862_v6 = vpop.eup %1861  ;;  %1891 = vrcp.f32 %v575_v24  ;;  %v576_v57 = vadd.f32 1.0, %v1860_v63  ;;  %v2895_v63 = vld [vmem:[#allocation18_spill] sm:$0xff] }
 0x155   : > { %v1864_v61 = vpop.eup %1863  ;;  %1893 = vpow2.f32 %v1397_v9 }
 0x156   : > { %v1109_v25 = vpop.permute.xlu0 %1108  ;;  %v1866_v62 = vpop.eup %1865  ;;  %1895 = vpow2.f32 %v1396_v51 }
 0x157   : > { %v1107_v21 = vpop.permute.xlu1 %1106  ;;  %v1169_v29 = vsel %vm1164_vm0, %v655_v20, %v1109_v25  ;;  %v1868_v10 = vpop.eup %1867  ;;  %v577_v20 = vadd.f32 1.0, %v1862_v6  ;;  %1897 = vrcp.f32 %v576_v57  ;;  %v664_v49 = vmul.f32 %v1866_v62, %v2891_v22  ;;  %v2897_v57 = vld [vmem:[#allocation20_spill] sm:$0xff] }
 0x158   : > { %v1168_v13 = vsel %vm1164_vm0, %v654_v38, %v1107_v21  ;;  %1201 = vst [vmem:[%s2638_s11 + $0x20] sm:$0xff] %v1169_v29  ;;  %v1870_v42 = vpop.eup %1869  ;;  %v2889_v38 = vld [vmem:[#allocation12_spill] sm:$0xff]  ;;  %v665_v0 = vmul.f32 %v1868_v10, %v2890_v5  ;;  %v2900_v5 = vld [vmem:[#allocation26_spill] sm:$0xff] }
 0x159   : > { %1200 = vst [vmem:[%s2638_s11 + $0x18] sm:$0xff] %v1168_v13  ;;  %v662_v25 = vmul.f32 %v1864_v61, %v2889_v38  ;;  %v1872_v32 = vpop.eup %1871  ;;  %1899 = vrcp.f32 %v577_v20  ;;  %v579_v44 = vadd.f32 1.0, %v1870_v42  ;;  %v2896_v61 = vld [vmem:[#allocation22_spill] sm:$0xff] }
 0x15a   : > { %v1113_v53 = vpop.permute.xlu0 %1112  ;;  %v1874_v17 = vpop.eup %1873  ;;  %1901 = vpow2.f32 %v1398_v39  ;;  %v2898_v39 = vld [vmem:[#allocation24_spill] sm:$0xff] }
 0x15b   : > { %v1111_v1 = vpop.permute.xlu1 %1110  ;;  %v1171_v55 = vsel %vm1164_vm0, %v657_v23, %v1113_v53  ;;  %v1876_v13 = vpop.eup %1875  ;;  %v578_v23 = vadd.f32 1.0, %v1872_v32  ;;  %1903 = vrcp.f32 %v579_v44  ;;  %v2899_v32 = vld [vmem:[#allocation23_spill] sm:$0xff] }
 0x15c   : > { %v1170_v19 = vsel %vm1164_vm0, %v656_v52, %v1111_v1  ;;  %1203 = vst [vmem:[%s2638_s11 + $0x30] sm:$0xff] %v1171_v55  ;;  %v1878_v47 = vpop.eup %1877 }
 0x15d   : > { %1202 = vst [vmem:[%s2638_s11 + $0x28] sm:$0xff] %v1170_v19  ;;  %v1880_v52 = vpop.eup %1879  ;;  %v581_v14 = vadd.f32 1.0, %v1878_v47  ;;  %v667_v19 = vmul.f32 %v1876_v13, %v2892_v40  ;;  %1905 = vrcp.f32 %v578_v23  ;;  %v2901_v23 = vld [vmem:[#allocation25_spill] sm:$0xff] }
 0x15e   : > { %v1117_v30 = vpop.permute.xlu0 %1116  ;;  %v1882_v54 = vpop.eup %1881  ;;  %v580_v33 = vadd.f32 1.0, %v1880_v52 }
 0x15f   : > { %v1115_v34 = vpop.permute.xlu1 %1114  ;;  %v1173_v4 = vsel %vm1164_vm0, %v659_v27, %v1117_v30  ;;  %v1884_v55 = vpop.eup %1883  ;;  %v666_v27 = vmul.f32 %v1874_v17, %v2893_v45  ;;  %1907 = vrcp.f32 %v581_v14  ;;  %v668_v9 = vmul.f32 %v1882_v54, %v2895_v63  ;;  %v2902_v54 = vld [vmem:[#allocation28_spill] sm:$0xff]  ;;  %v2903_v14 = vld [vmem:[#allocation27_spill] sm:$0xff] }
 0x160   : > { %v1172_v60 = vsel %vm1164_vm0, %v658_v56, %v1115_v34  ;;  %1205 = vst [vmem:[%s2638_s11 + $0x40] sm:$0xff] %v1173_v4  ;;  %v1886_v18 = vpop.eup %1885  ;;  %v2894_v4 = vld [vmem:[#allocation21_spill] sm:$0xff]  ;;  %1909 = vrcp.f32 %v580_v33  ;;  %v2907_v63 = vld [vmem:[#allocation31_spill] sm:$0xff] }
 0x161   : > { %1204 = vst [vmem:[%s2638_s11 + $0x38] sm:$0xff] %v1172_v60  ;;  %v1888_v8 = vpop.eup %1887  ;;  %v583_v34 = vadd.f32 1.0, %v1886_v18  ;;  %v669_v12 = vmul.f32 %v1884_v55, %v2894_v4 }
 0x162   : > { %v1121_v7 = vpop.permute.xlu0 %1120  ;;  %v1890_v30 = vpop.eup %1889  ;;  %v582_v60 = vadd.f32 1.0, %v1888_v8 }
 0x163   : > { %v1119_v50 = vpop.permute.xlu1 %1118  ;;  %v1175_v28 = vsel %vm1164_vm0, %v661_v2, %v1121_v7  ;;  %v1892_v59 = vpop.eup %1891  ;;  %1911 = vrcp.f32 %v583_v34 }
 0x164   : > { %v1174_v15 = vsel %vm1164_vm0, %v660_v41, %v1119_v50  ;;  %1207 = vst [vmem:[%s2638_s11 + $0x50] sm:$0xff] %v1175_v28  ;;  %v1894_v24 = vpop.eup %1893  ;;  %v671_v50 = vmul.f32 %v1892_v59, %v2896_v61  ;;  %1913 = vrcp.f32 %v582_v60 }
 0x165   : > { %1206 = vst [vmem:[%s2638_s11 + $0x48] sm:$0xff] %v1174_v15  ;;  %v1896_v2 = vpop.eup %1895  ;;  %v585_v7 = vadd.f32 1.0, %v1894_v24  ;;  %v670_v15 = vmul.f32 %v1890_v30, %v2897_v57  ;;  %v2906_v24 = vld [vmem:[#allocation32_spill] sm:$0xff] }
 0x166   : > { %v1125_v48 = vpop.permute.xlu0 %1124  ;;  %v1898_v41 = vpop.eup %1897  ;;  %v584_v62 = vadd.f32 1.0, %v1896_v2 }
 0x167   : > { %v1123_v21 = vpop.permute.xlu1 %1122  ;;  %v1177_v29 = vsel %vm1164_vm0, %v663_v26, %v1125_v48  ;;  %v1900_v28 = vpop.eup %1899  ;;  %1915 = vrcp.f32 %v585_v7 }
 0x168   : > { %v1176_v11 = vsel %vm1164_vm0, %v662_v25, %v1123_v21  ;;  %1209 = vst [vmem:[%s2638_s11 + $0x60] sm:$0xff] %v1177_v29  ;;  %v1902_v20 = vpop.eup %1901  ;;  %v673_v38 = vmul.f32 %v1900_v28, %v2898_v39  ;;  %1917 = vrcp.f32 %v584_v62  ;;  %v672_v21 = vmul.f32 %v1898_v41, %v2899_v32  ;;  %v2908_v41 = vld [vmem:[#allocation33_spill] sm:$0xff] }
 0x169   : > { %1208 = vst [vmem:[%s2638_s11 + $0x58] sm:$0xff] %v1176_v11  ;;  %v1904_v25 = vpop.eup %1903  ;;  %v586_v48 = vadd.f32 1.0, %v1902_v20 }
 0x16a   : > { %v1129_v16 = vpop.permute.xlu0 %1128  ;;  %v1906_v17 = vpop.eup %1905 }
 0x16b   : > { %v1127_v53 = vpop.permute.xlu1 %1126  ;;  %v1179_v58 = vsel %vm1164_vm0, %v665_v0, %v1129_v16  ;;  %v675_v0 = vmul.f32 %v1904_v25, %v2900_v5  ;;  %1919 = vrcp.f32 %v586_v48  ;;  %v674_v22 = vmul.f32 %v1906_v17, %v2901_v23 }
 0x16c   : > { %v1178_v1 = vsel %vm1164_vm0, %v664_v49, %v1127_v53  ;;  %1211 = vst [vmem:[%s2638_s11 + $0x70] sm:$0xff] %v1179_v58  ;;  %v1908_v47 = vpop.eup %1907 }
 0x16d   : > { %1210 = vst [vmem:[%s2638_s11 + $0x68] sm:$0xff] %v1178_v1  ;;  %v1910_v16 = vpop.eup %1909  ;;  %v677_v1 = vmul.f32 %v1908_v47, %v2902_v54 }
 0x16e   : > { %v1133_v46 = vpop.permute.xlu0 %1132  ;;  %v676_v40 = vmul.f32 %v1910_v16, %v2903_v14 }
 0x16f   : > { %v1131_v36 = vpop.permute.xlu1 %1130  ;;  %v1181_v56 = vsel %vm1164_vm0, %v667_v19, %v1133_v46  ;;  %v2904_v46 = vld [vmem:[#allocation30_spill] sm:$0xff] }
 0x170   : > { %v1180_v37 = vsel %vm1164_vm0, %v666_v27, %v1131_v36  ;;  %1213 = vst [vmem:[%s2638_s11 + $0x80] sm:$0xff] %v1181_v56  ;;  %v1912_v55 = vpop.eup %1911  ;;  %v2905_v56 = vld [vmem:[#allocation29_spill] sm:$0xff] }
 0x171   : > { %1212 = vst [vmem:[%s2638_s11 + $0x78] sm:$0xff] %v1180_v37  ;;  %v1914_v18 = vpop.eup %1913  ;;  %v679_v8 = vmul.f32 %v1912_v55, %v2904_v46 }
 0x172   : > { %v1137_v31 = vpop.permute.xlu0 %1136  ;;  %v678_v30 = vmul.f32 %v1914_v18, %v2905_v56 }
 0x173   : > { %v1135_v6 = vpop.permute.xlu1 %1134  ;;  %v1183_v51 = vsel %vm1164_vm0, %v669_v12, %v1137_v31 }
 0x174   : > { %v1182_v3 = vsel %vm1164_vm0, %v668_v9, %v1135_v6  ;;  %1215 = vst [vmem:[%s2638_s11 + $0x90] sm:$0xff] %v1183_v51  ;;  %v1916_v36 = vpop.eup %1915 }
 0x175   : > { %1214 = vst [vmem:[%s2638_s11 + $0x88] sm:$0xff] %v1182_v3  ;;  %v1918_v59 = vpop.eup %1917  ;;  %v681_v60 = vmul.f32 %v1916_v36, %v2906_v24 }
 0x176   : > { %v1141_v10 = vpop.permute.xlu0 %1140  ;;  %v680_v9 = vmul.f32 %v1918_v59, %v2907_v63 }
 0x177   : > { %v1139_v35 = vpop.permute.xlu1 %1138  ;;  %v1185_v26 = vsel %vm1164_vm0, %v671_v50, %v1141_v10 }
 0x178   : > { %v1184_v42 = vsel %vm1164_vm0, %v670_v15, %v1139_v35  ;;  %1217 = vst [vmem:[%s2638_s11 + $0xa0] sm:$0xff] %v1185_v26  ;;  %v1920_v2 = vpop.eup %1919 }
 0x179   : > { %1216 = vst [vmem:[%s2638_s11 + $0x98] sm:$0xff] %v1184_v42  ;;  %v682_v7 = vmul.f32 %v1920_v2, %v2908_v41 }
 0x17a   : > { %v1145_v29 = vpop.permute.xlu0 %1144 }
 0x17b   : > { %v1143_v11 = vpop.permute.xlu1 %1142  ;;  %v1187_v13 = vsel %vm1164_vm0, %v673_v38, %v1145_v29 }
 0x17c   : > { %v1186_v44 = vsel %vm1164_vm0, %v672_v21, %v1143_v11  ;;  %1219 = vst [vmem:[%s2638_s11 + $0xb0] sm:$0xff] %v1187_v13 }
 0x17d   : > { %1218 = vst [vmem:[%s2638_s11 + $0xa8] sm:$0xff] %v1186_v44 }
 0x17e   : > { %v1149_v49 = vpop.permute.xlu0 %1148 }
 0x17f   : > { %v1147_v52 = vpop.permute.xlu1 %1146  ;;  %v1189_v53 = vsel %vm1164_vm0, %v675_v0, %v1149_v49 }
 0x180   : > { %v1188_v58 = vsel %vm1164_vm0, %v674_v22, %v1147_v52  ;;  %1221 = vst [vmem:[%s2638_s11 + $0xc0] sm:$0xff] %v1189_v53 }
 0x181   : > { %1220 = vst [vmem:[%s2638_s11 + $0xb8] sm:$0xff] %v1188_v58 }
 0x182   : > { %v1153_v19 = vpop.permute.xlu0 %1152 }
 0x183   : > { %v1151_v33 = vpop.permute.xlu1 %1150  ;;  %v1191_v45 = vsel %vm1164_vm0, %v677_v1, %v1153_v19 }
 0x184   : > { %v1190_v27 = vsel %vm1164_vm0, %v676_v40, %v1151_v33  ;;  %1223 = vst [vmem:[%s2638_s11 + $0xd0] sm:$0xff] %v1191_v45 }
 0x185   : > { %1222 = vst [vmem:[%s2638_s11 + $0xc8] sm:$0xff] %v1190_v27 }
 0x186   : > { %v1157_v37 = vpop.permute.xlu0 %1156 }
 0x187   : > { %v1155_v34 = vpop.permute.xlu1 %1154  ;;  %v1193_v4 = vsel %vm1164_vm0, %v679_v8, %v1157_v37 }
 0x188   : > { %v1192_v12 = vsel %vm1164_vm0, %v678_v30, %v1155_v34  ;;  %1225 = vst [vmem:[%s2638_s11 + $0xe0] sm:$0xff] %v1193_v4 }
 0x189   : > { %1224 = vst [vmem:[%s2638_s11 + $0xd8] sm:$0xff] %v1192_v12 }
 0x18a   : > { %v1161_v31 = vpop.permute.xlu0 %1160 }
 0x18b   : > { %v1159_v6 = vpop.permute.xlu1 %1158  ;;  %v1195_v51 = vsel %vm1164_vm0, %v681_v60, %v1161_v31 }
 0x18c   : > { %v1194_v3 = vsel %vm1164_vm0, %v680_v9, %v1159_v6  ;;  %1227 = vst [vmem:[%s2638_s11 + $0xf0] sm:$0xff] %v1195_v51 }
 0x18d   : > { %1226 = vst [vmem:[%s2638_s11 + $0xe8] sm:$0xff] %v1194_v3 }
 0x18f   : > { %v1163_v61 = vpop.permute.xlu1 %1162 }
 0x190   : > { %v1196_v50 = vsel %vm1164_vm0, %v682_v7, %v1163_v61 }
 0x191   : > { %1228 = vst [vmem:[%s2638_s11 + $0xf8] sm:$0xff] %v1196_v50 }
 0x192 PF: > { %s13_s16 = sadd.s32 1, %s1959_s16   ;;  %s2909_s12 = smov %s1951_s14 }
 0x193   : > { %p10_p8 = scmp.ge.s32.totalorder %s13_s16, 6   ;;  %s2910_s13 = smov %s1955_s15 }
 0x194   : > { %s2911_s14 = smov %s2914_s17  ;;  %s2912_s15 = smov %s2918_s18 }
 0x195   :  { %12 = sbr.rel (!%p10_p8) target bundleno = 3 (0x3), region = 63 }

// kernel: up_block_forward.2
= control target key start
LH: loop header
LB: loop body
LE: loop exit
PB: predicated region body
PF: predicated region fallthrough
CT: control target
= control target key end

     0   :  { %s8833_s12 = smov 0   ;;  %s8835_s13 = smov 0   ;;  %s10964_s0 = inlined_call_operand.vmem [shape: bf16[2,18,18,128], index: 0, kind: input, shape index: {}]   ;;  %s10965_s1 = inlined_call_operand.vmem [shape: bf16[4,512,128], index: 1, kind: input, shape index: {}]   ;;  %s10966_s2 = inlined_call_operand.vmem [shape: bf16[2,4,16,16,128], index: 2, kind: output, shape index: {0}]   ;;  %s10967_s3 = inlined_call_operand.vmem [shape: f32[2,1,2,128], index: 3, kind: output, shape index: {1}]  }
   0x1   :  { %s8837_s14 = smov 0  }
   0x2 LB: > { %s26_s15 = sadd.s32 1, %s8807_s13  ;;  %p6217_p0 = scmp.ge.s32.totalorder %s8811_s14, 1  ;;  %s8811_s14 = sphi %s8837_s14, %s14_s14   ;;  %s8807_s13 = sphi %s8835_s13, %s11101_s13   ;;  %s8803_s12 = sphi %s8833_s12, %s11100_s12  }
   0x3   : > { %p28_p1 = scmp.ge.s32.totalorder %s26_s15, 2  ;;  %p156_p2 = scmp.lt.s32.totalorder %s8811_s14, 3 }
   0x5   : > { %s11103_s15 = smov (%p28_p1, %s26_s15), 0  ;;  %p157_p3 = pnand %p6217_p0, %p156_p2 }
   0x7   : > { %160 = sbr.rel (%p157_p3) target bundleno = 783 (0x30f), region = 28 }
   0xc   : > { %v8521_v0 = vld [vmem:[%s10965_s1 + $0x78] sm:$0xff]   ;;  %v8525_v4 = vld [vmem:[%s10965_s1 + $0x70] sm:$0xff]   ;;  %v8529_v8 = vld [vmem:[%s10965_s1 + $0x68] sm:$0xff]   ;;  %p192_p4 = scmp.lt.s32.totalorder %s8803_s12, 1  ;;  %vm268_vm0 = vsmask.f32 3328 }
   0xd   : > { %v8522_v1 = vld [vmem:[%s10965_s1 + $0xf8] sm:$0xff]   ;;  %7600 = vmatprep.subr.bf16.mxu0 %v8521_v0  ;;  %v8526_v5 = vld [vmem:[%s10965_s1 + $0xf0] sm:$0xff]   ;;  %v8530_v9 = vld [vmem:[%s10965_s1 + $0xe8] sm:$0xff]   ;;  %vm269_vm1 = vsmask.f32 7440  ;;  %vm719_vm3 = vcmask 1042432  }
   0xe   : > { %v8523_v2 = vld [vmem:[%s10965_s1 + $0x38] sm:$0xff]   ;;  %7712 = vmatprep.subr.bf16.mxu1 %v8522_v1  ;;  %v8527_v6 = vld [vmem:[%s10965_s1 + $0x30] sm:$0xff]   ;;  %v8531_v10 = vld [vmem:[%s10965_s1 + $0x28] sm:$0xff]   ;;  %s11105_s12 = smov (!%p192_p4, %s8803_s12), 1  ;;  %vm720_vm4 = vcmask 1046532   ;;  %vm6072_vm6 = vcmask 1040384  }
   0xf   : > { %v8524_v3 = vld [vmem:[%s10965_s1 + $0xb8] sm:$0xff]   ;;  %7601 = vmatpush3.bf16.msra.mxu0 %v8523_v2  ;;  %v8528_v7 = vld [vmem:[%s10965_s1 + $0xb0] sm:$0xff]   ;;  %v8532_v11 = vld [vmem:[%s10965_s1 + $0xa8] sm:$0xff]   ;;  %s8496_s22 = smul.u32 216, %s11105_s12  ;;  %s7088_s11 = sshll.u32 %s11105_s12, 9 }
  0x10   : > { %7713 = vmatpush3.bf16.msra.mxu1 %v8524_v3  ;;  %7602 = vmatprep.subr.bf16.mxu0 %v8525_v4  ;;  %v8533_v12 = vld [vmem:[%s10965_s1 + $0x60] sm:$0xff]   ;;  %v8537_v16 = vld [vmem:[%s10965_s1 + $0x58] sm:$0xff]   ;;  %v8541_v20 = vld [vmem:[%s10965_s1 + $0x50] sm:$0xff]   ;;  %s9920_s18 = scalar_lea.vmem %s10966_s2, %s7088_s11 }
  0x11   : > { %7714 = vmatprep.subr.bf16.mxu1 %v8526_v5  ;;  %v8534_v13 = vld [vmem:[%s10965_s1 + $0xe0] sm:$0xff]   ;;  %v8538_v17 = vld [vmem:[%s10965_s1 + $0xd8] sm:$0xff]   ;;  %v8542_v21 = vld [vmem:[%s10965_s1 + $0xd0] sm:$0xff]   ;;  %s8951_s6 = scalar_lea.vmem %s10964_s0, %s8496_s22 }
  0x12   : > { %v8535_v14 = vld [vmem:[%s10965_s1 + $0x20] sm:$0xff]   ;;  %v8539_v18 = vld [vmem:[%s10965_s1 + $0x18] sm:$0xff]   ;;  %v8543_v22 = vld [vmem:[%s10965_s1 + $0x10] sm:$0xff]  }
  0x13   : > { %7603 = vmatpush3.bf16.msra.mxu0 %v8527_v6  ;;  %v8536_v15 = vld [vmem:[%s10965_s1 + $0xa0] sm:$0xff]   ;;  %v8540_v19 = vld [vmem:[%s10965_s1 + $0x98] sm:$0xff]   ;;  %v8544_v23 = vld [vmem:[%s10965_s1 + $0x90] sm:$0xff]  }
  0x14   : > { %7715 = vmatpush3.bf16.msra.mxu1 %v8528_v7  ;;  %7604 = vmatprep.subr.bf16.mxu0 %v8529_v8  ;;  %v8545_v24 = vld [vmem:[%s10965_s1 + $0x48] sm:$0xff]   ;;  %v8549_v28 = vld [vmem:[%s10965_s1 + $0x40] sm:$0xff]   ;;  %v8555_v41 = vld [vmem:[%s10965_s1 + $0x178] sm:$0xff]  }
  0x15   : > { %7716 = vmatprep.subr.bf16.mxu1 %v8530_v9  ;;  %v8546_v25 = vld [vmem:[%s10965_s1 + $0xc8] sm:$0xff]   ;;  %v8550_v29 = vld [vmem:[%s10965_s1 + $0xc0] sm:$0xff]   ;;  %v6239_v44 = vld [vmem:[%s8951_s6 + $0x10] sm:$0xf] }
  0x16   : > { %v8547_v26 = vld [vmem:[%s10965_s1 + $0x8] sm:$0xff]   ;;  %v8551_v30 = vld [vmem:[%s10965_s1] sm:$0xff]   ;;  %v6270_v45 = vld [vmem:[%s8951_s6 + $0x14] sm:$0x1]  ;;  %v896_v52 = vshll.u32 %v6239_v44, 16  ;;  %v900_v53 = vshrl.u32 %v6239_v44, 16 }
  0x17   : > { %7605 = vmatpush3.bf16.msra.mxu0 %v8531_v10  ;;  %v8548_v27 = vld [vmem:[%s10965_s1 + $0x88] sm:$0xff]   ;;  %v8552_v31 = vld [vmem:[%s10965_s1 + $0x80] sm:$0xff]   ;;  %v8556_v54 = vld [vmem:[%s10965_s1 + $0x1f8] sm:$0xff]   ;;  %v906_v58 = vshll.u32 %v6270_v45, 16 }
  0x18   : > { %7717 = vmatpush3.bf16.msra.mxu1 %v8532_v11  ;;  %7606 = vmatprep.subr.bf16.mxu0 %v8533_v12  ;;  %v8960_v32 = vld [vmem:[%s8951_s6] sm:$0xf]  ;;  %v8963_v33 = vld [vmem:[%s8951_s6 + $0x4] sm:$0xf]  ;;  %v252_v34 = vld [vmem:[%s8951_s6 + $0x8] sm:$0x1] }
  0x19   : > { %7718 = vmatprep.subr.bf16.mxu1 %v8534_v13  ;;  %v272_v35 = vshrl.u32 %v8960_v32, 16  ;;  %v275_v36 = vshll.u32 %v8960_v32, 16  ;;  %v281_v37 = vshll.u32 %v8963_v33, 16  ;;  %v285_v38 = vshrl.u32 %v8963_v33, 16  ;;  %v6238_v40 = vld [vmem:[%s8951_s6 + $0xc] sm:$0xf]  ;;  %vm8981_vm2 = vmor %vm268_vm0, %vm269_vm1 }
  0x1a   : > { %v291_v39 = vshll.u32 %v252_v34, 16  ;;  %v887_v49 = vshrl.u32 %v6238_v40, 16  ;;  %v890_v51 = vshll.u32 %v6238_v40, 16  ;;  %v898_v61 = vrot.slane %v896_v52, 5  ;;  %v8557_v5 = vld [vmem:[%s10965_s1 + $0x138] sm:$0xff]   ;;  %vm9600_vm5 = vmor %vm719_vm3, %vm720_vm4 }
  0x1b   : > { %7607 = vmatpush3.bf16.msra.mxu0 %v8535_v14  ;;  %v274_v42 = vrot.slane %v272_v35, 4  ;;  %v277_v43 = vrot.slane %v275_v36, 5  ;;  %v283_v46 = vrot.slane %v281_v37, 5  ;;  %v287_v47 = vrot.slane %v285_v38, 4  ;;  %v8993_v6 = vld [vmem:[%s8951_s6 + $0xc] sm:$0xf] }
  0x1c   : > { %7719 = vmatpush3.bf16.msra.mxu1 %v8536_v15  ;;  %7608 = vmatprep.subr.bf16.mxu0 %v8537_v16  ;;  %v293_v48 = vrot.slane %v291_v39, 5  ;;  %v889_v57 = vrot.slane %v887_v49, 4  ;;  %v892_v60 = vrot.slane %v890_v51, 5  ;;  %v902_v62 = vrot.slane %v900_v53, 4  ;;  %v9000_v9 = vld [vmem:[%s8951_s6 + $0x10] sm:$0xf] }
  0x1d   : > { %7720 = vmatprep.subr.bf16.mxu1 %v8538_v17  ;;  %v278_v50 = vor.u32 %v277_v43, %v274_v42  ;;  %v288_v56 = vor.u32 %v287_v47, %v283_v46  ;;  %v908_v0 = vrot.slane %v906_v58, 5  ;;  %v6398_v4 = vcombine.low %v8960_v32, %v8963_v33  ;;  %v253_v10 = vld [vmem:[%s8951_s6 + $0x14] sm:$0x1]  ;;  %v6240_v17 = vld [vmem:[%s8951_s6 + $0x18] sm:$0xf] }
  0x1e   : > { %v893_v2 = vor.u32 %v892_v60, %v889_v57  ;;  %v903_v3 = vor.u32 %v902_v62, %v898_v61  ;;  %v8997_v8 = vcombine.low %v6238_v40, %v6239_v44  ;;  %v296_v11 = vshrl.u32 %v8993_v6, 16  ;;  %v9026_v38 = vld [vmem:[%s8951_s6 + $0x18] sm:$0xf]  ;;  %v9032_v43 = vld [vmem:[%s8951_s6 + $0x1c] sm:$0xf] }
  0x1f   : > { %7609 = vmatpush3.bf16.msra.mxu0 %v8539_v18  ;;  %v279_v59 = vrot.slane %v278_v50, 4  ;;  %v289_v63 = vrot.slane %v288_v56, 4  ;;  %v299_v12 = vshll.u32 %v8993_v6, 16  ;;  %v305_v16 = vshll.u32 %v9000_v9, 16  ;;  %v8563_v18 = vld [vmem:[%s10965_s1 + $0x170] sm:$0xff]  }
  0x20   : > { %7721 = vmatpush3.bf16.msra.mxu1 %v8540_v19  ;;  %7610 = vmatprep.subr.bf16.mxu0 %v8541_v20  ;;  %v894_v14 = vrot.slane %v893_v2, 4  ;;  %v904_v15 = vrot.slane %v903_v3, 4  ;;  %v298_v19 = vrot.slane %v296_v11, 4  ;;  %v914_v35 = vshll.u32 %v6240_v17, 16  ;;  %v254_v44 = vld [vmem:[%s8951_s6 + $0x20] sm:$0x1] }
  0x21   : > { %7722 = vmatprep.subr.bf16.mxu1 %v8542_v21  ;;  %v284_v1 = vsel %vm8981_vm2, %v279_v59, %v283_v46  ;;  %v294_v7 = vsel %vm8981_vm2, %v289_v63, %v293_v48  ;;  %v301_v20 = vrot.slane %v299_v12, 5  ;;  %v309_v21 = vshrl.u32 %v9000_v9, 16  ;;  %v6242_v49 = vld [vmem:[%s8951_s6 + $0x24] sm:$0xf]  ;;  %v8564_v50 = vld [vmem:[%s10965_s1 + $0x1f0] sm:$0xff]  }
  0x22   : > { %v9005_v13 = vcombine.low %v284_v1, %v294_v7  ;;  %v6399_v42 = vcombine.low %v8993_v6, %v9000_v9  ;;  %v916_v45 = vrot.slane %v914_v35, 5  ;;  %v8565_v56 = vld [vmem:[%s10965_s1 + $0x130] sm:$0xff]   ;;  %v323_v59 = vshll.u32 %v9026_v38, 16  ;;  %v6272_v2 = vld [vmem:[%s8951_s6 + $0x2c] sm:$0x1] }
  0x23   : > { %7611 = vmatpush3.bf16.msra.mxu0 %v8543_v22  ;;  %v315_v22 = vshll.u32 %v253_v10, 16  ;;  %v311_v32 = vrot.slane %v309_v21, 4  ;;  %v329_v60 = vshll.u32 %v9032_v43, 16  ;;  %v339_v1 = vshll.u32 %v254_v44, 16  ;;  %v8566_v3 = vld [vmem:[%s10965_s1 + $0x1b0] sm:$0xff]   ;;  %v8571_v9 = vld [vmem:[%s10965_s1 + $0x168] sm:$0xff]  }
  0x24   : > { %7723 = vmatpush3.bf16.msra.mxu1 %v8544_v23  ;;  %7612 = vmatprep.subr.bf16.mxu0 %v8545_v24  ;;  %v6241_v23 = vld [vmem:[%s8951_s6 + $0x1c] sm:$0xf]  ;;  %v899_v24 = vsel %vm8981_vm2, %v894_v14, %v898_v61  ;;  %v6243_v61 = vld [vmem:[%s8951_s6 + $0x28] sm:$0xf]  ;;  %v325_v7 = vrot.slane %v323_v59, 5  ;;  %v935_v14 = vshrl.u32 %v6242_v49, 16 }
  0x25   : > { %7724 = vmatprep.subr.bf16.mxu1 %v8546_v25  ;;  %2634 = vmatprep.mubr.bf16.mxu0 %v9005_v13  ;;  %v909_v25 = vsel %vm8981_vm2, %v904_v15, %v908_v0  ;;  %v317_v33 = vrot.slane %v315_v22, 5  ;;  %v920_v36 = vshll.u32 %v6241_v23, 16  ;;  %v924_v37 = vshrl.u32 %v6241_v23, 16  ;;  %v6244_v44 = vld [vmem:[%s8951_s6 + $0x30] sm:$0xf] }
  0x26   : > { %v9036_v48 = vcombine.low %v6240_v17, %v6241_v23  ;;  %v333_v0 = vshrl.u32 %v9032_v43, 16  ;;  %v331_v10 = vrot.slane %v329_v60, 5  ;;  %v341_v12 = vrot.slane %v339_v1, 5 }
  0x27   : > { %7613 = vmatpush3.bf16.msra.mxu0 %v8547_v26  ;;  %v307_v26 = vrot.slane %v305_v16, 5  ;;  %v922_v46 = vrot.slane %v920_v36, 5  ;;  %v926_v47 = vrot.slane %v924_v37, 4  ;;  %v937_v22 = vrot.slane %v935_v14, 4 }
  0x28   : > { %7725 = vmatpush3.bf16.msra.mxu1 %v8548_v27  ;;  %7614 = vmatprep.subr.bf16.mxu0 %v8549_v28  ;;  %v6271_v27 = vld [vmem:[%s8951_s6 + $0x20] sm:$0x1]  ;;  %v911_v28 = vshrl.u32 %v6240_v17, 16  ;;  %11012 = vst [vmem:[#allocation2_spill] sm:$0xff] %v9036_v48  ;;  %v335_v11 = vrot.slane %v333_v0, 4  ;;  %v944_v23 = vshll.u32 %v6243_v61, 16 }
  0x29   : > { %7726 = vmatprep.subr.bf16.mxu1 %v8550_v29  ;;  %v9020_v29 = vcombine.low %v899_v24, %v909_v25  ;;  %v312_v40 = vor.u32 %v311_v32, %v307_v26  ;;  %v927_v58 = vor.u32 %v926_v47, %v922_v46  ;;  %v9074_v24 = vld [vmem:[%s8951_s6 + $0x24] sm:$0xf] }
  0x2a   : > { %v913_v34 = vrot.slane %v911_v28, 4  ;;  %v336_v21 = vor.u32 %v335_v11, %v331_v10  ;;  %v954_v28 = vshll.u32 %v6272_v2, 16  ;;  %v946_v32 = vrot.slane %v944_v23, 5  ;;  %v9117_v11 = vld [vmem:[%s8951_s6 + $0x34] sm:$0xf] }
  0x2b   : > { %7615 = vmatpush3.bf16.msra.mxu0 %v8551_v30  ;;  %v8558_v30 = vld [vmem:[%s10965_s1 + $0x1b8] sm:$0xff]   ;;  %2795 = vmatprep.mubr.bf16.mxu1 %v9020_v29  ;;  %v313_v52 = vrot.slane %v312_v40, 4  ;;  %v928_v6 = vrot.slane %v927_v58, 4  ;;  %v255_v40 = vld [vmem:[%s8951_s6 + $0x2c] sm:$0x1]  ;;  %v962_v2 = vshll.u32 %v6244_v44, 16 }
  0x2c   : > { %7727 = vmatpush3.bf16.msra.mxu1 %v8552_v31  ;;  %7824 = vmatprep.subr.bf16.mxu0 %v8555_v41  ;;  %v302_v31 = vor.u32 %v301_v20, %v298_v19  ;;  %v930_v41 = vshll.u32 %v6271_v27, 16  ;;  %v917_v57 = vor.u32 %v916_v45, %v913_v34  ;;  %v8572_v19 = vld [vmem:[%s10965_s1 + $0x1e8] sm:$0xff]   ;;  %v948_v27 = vshrl.u32 %v6243_v61, 16 }
  0x2d   : > { %7936 = vmatprep.subr.bf16.mxu1 %v8556_v54  ;;  %v320_v54 = vshrl.u32 %v9026_v38, 16  ;;  %v318_v62 = vsel %vm8981_vm2, %v313_v52, %v317_v33  ;;  %v6400_v33 = vcombine.low %v9026_v38, %v9032_v43  ;;  %v9082_v34 = vcombine.low %v6242_v49, %v6243_v61  ;;  %v8573_v45 = vld [vmem:[%s10965_s1 + $0x128] sm:$0xff]  }
  0x2e   : > { %2635 = vmatmul.mubr.bf16.vlgmr.msra.gmra.mxu0 %v6398_v4  ;;  %v303_v39 = vrot.slane %v302_v31, 4  ;;  %v932_v53 = vrot.slane %v930_v41, 5  ;;  %v337_v31 = vrot.slane %v336_v21, 4  ;;  %v950_v37 = vrot.slane %v948_v27, 4 }
  0x2f   : > { %7825 = vmatpush3.bf16.msra.mxu0 %v8557_v5  ;;  %2796 = vmatmul.mubr.bf16.vlgmr.msra.gmra.mxu1 %v8997_v8  ;;  %v322_v63 = vrot.slane %v320_v54, 4  ;;  %v918_v5 = vrot.slane %v917_v57, 4  ;;  %11014 = vst [vmem:[#allocation4_spill] sm:$0xff] %v9082_v34  ;;  %v347_v38 = vshll.u32 %v9074_v24, 16  ;;  %v6273_v57 = vld [vmem:[%s8951_s6 + $0x38] sm:$0x1] }
  0x30   : > { %7826 = vmatprep.subr.bf16.mxu0 %v8563_v18  ;;  %7937 = vmatpush3.bf16.msra.mxu1 %v8558_v30  ;;  %v308_v51 = vsel %vm8981_vm2, %v303_v39, %v307_v26  ;;  %v933_v16 = vsel %vm8981_vm2, %v928_v6, %v932_v53  ;;  %v938_v18 = vshll.u32 %v6242_v49, 16  ;;  %v9077_v30 = vld [vmem:[%s8951_s6 + $0x28] sm:$0xf]  ;;  %v956_v39 = vrot.slane %v954_v28, 5 }
  0x31   : > { %7938 = vmatprep.subr.bf16.mxu1 %v8564_v50  ;;  %v9058_v4 = vcombine.low %v308_v51, %v318_v62  ;;  %v923_v15 = vsel %vm8981_vm2, %v918_v5, %v922_v46  ;;  %v326_v17 = vor.u32 %v325_v7, %v322_v63  ;;  %v342_v41 = vsel %vm8981_vm2, %v337_v31, %v341_v12  ;;  %v6245_v51 = vld [vmem:[%s8951_s6 + $0x34] sm:$0xf]  ;;  %v9106_v62 = vld [vmem:[%s8951_s6 + $0x30] sm:$0xf]  ;;  %v8574_v63 = vld [vmem:[%s10965_s1 + $0x1a8] sm:$0xff]  }
  0x32   : > { %v9071_v20 = vcombine.low %v923_v15, %v933_v16  ;;  %v940_v26 = vrot.slane %v938_v18, 5  ;;  %v353_v43 = vshll.u32 %v9077_v30, 16  ;;  %v951_v49 = vor.u32 %v950_v37, %v946_v32  ;;  %v8579_v5 = vld [vmem:[%s10965_s1 + $0x160] sm:$0xff]  }
  0x33   : > { %7827 = vmatpush3.bf16.msra.mxu0 %v8565_v56  ;;  %2642 = vmatprep.mubr.bf16.mxu0 %v9058_v4  ;;  %v327_v25 = vrot.slane %v326_v17, 4  ;;  %v357_v50 = vshrl.u32 %v9077_v30, 16  ;;  %v349_v53 = vrot.slane %v347_v38, 5  ;;  %v363_v56 = vshll.u32 %v255_v40, 16  ;;  %v256_v17 = vld [vmem:[%s8951_s6 + $0x38] sm:$0x1] }
  0x34   : > { %7939 = vmatpush3.bf16.msra.mxu1 %v8566_v3  ;;  %7828 = vmatprep.subr.bf16.mxu0 %v8571_v9  ;;  %11013 = vst [vmem:[#allocation3_spill] sm:$0xff] %v9071_v20  ;;  %v941_v36 = vor.u32 %v940_v26, %v937_v22  ;;  %v355_v54 = vrot.slane %v353_v43, 5  ;;  %v952_v59 = vrot.slane %v951_v49, 4  ;;  %v959_v61 = vshrl.u32 %v6244_v44, 16  ;;  %v8580_v18 = vld [vmem:[%s10965_s1 + $0x1e0] sm:$0xff]  }
  0x35   : > { %7940 = vmatprep.subr.bf16.mxu1 %v8572_v19  ;;  %2803 = vmatprep.mubr.bf16.mxu1 %v9071_v20  ;;  %v332_v35 = vsel %vm8981_vm2, %v327_v25, %v331_v10  ;;  %v359_v60 = vrot.slane %v357_v50, 4  ;;  %v365_v1 = vrot.slane %v363_v56, 5  ;;  %v968_v3 = vshll.u32 %v6245_v51, 16  ;;  %v8581_v25 = vld [vmem:[%s10965_s1 + $0x120] sm:$0xff]  }
  0x36   : > { %2643 = vmatmul.mubr.bf16.gmra.mxu0 %v6399_v42  ;;  %v344_v42 = vshrl.u32 %v9074_v24, 16  ;;  %v9097_v46 = vcombine.low %v332_v35, %v342_v41  ;;  %v942_v47 = vrot.slane %v941_v36, 4  ;;  %v957_v6 = vsel %vm8981_vm2, %v952_v59, %v956_v39  ;;  %v6246_v36 = vld [vmem:[%s8951_s6 + $0x3c] sm:$0xf] }
  0x37   : > { %2804 = vmatmul.mubr.bf16.gmra.mxu1 %v9036_v48  ;;  %7829 = vmatpush3.bf16.msra.mxu0 %v8573_v45  ;;  %v360_v7 = vor.u32 %v359_v60, %v355_v54  ;;  %v961_v9 = vrot.slane %v959_v61, 4  ;;  %v972_v10 = vshrl.u32 %v6245_v51, 16  ;;  %v964_v15 = vrot.slane %v962_v2, 5  ;;  %v8589_v2 = vld [vmem:[%s10965_s1 + $0x118] sm:$0xff]  }
  0x38   : > { %v346_v52 = vrot.slane %v344_v42, 4  ;;  %2650 = vmatprep.mubr.bf16.mxu0 %v9097_v46  ;;  %v947_v58 = vsel %vm8981_vm2, %v942_v47, %v946_v32  ;;  %7941 = vmatpush3.bf16.msra.mxu1 %v8574_v63  ;;  %v970_v16 = vrot.slane %v968_v3, 5  ;;  %v978_v22 = vshll.u32 %v6273_v57, 16  ;;  %v8582_v32 = vld [vmem:[%s10965_s1 + $0x1a0] sm:$0xff]   ;;  %v8587_v42 = vld [vmem:[%s10965_s1 + $0x158] sm:$0xff]  }
  0x39   : > { %v9119_v12 = vcombine.low %v947_v58, %v957_v6  ;;  %7830 = vmatprep.subr.bf16.mxu0 %v8579_v5  ;;  %v361_v19 = vrot.slane %v360_v7, 4  ;;  %v974_v21 = vrot.slane %v972_v10, 4  ;;  %v6401_v23 = vcombine.low %v9074_v24, %v9077_v30  ;;  %7942 = vmatprep.subr.bf16.mxu1 %v8580_v18  ;;  %v6247_v47 = vld [vmem:[%s8951_s6 + $0x40] sm:$0xf]  ;;  %v8590_v10 = vld [vmem:[%s10965_s1 + $0x198] sm:$0xff]  }
  0x3a   : > { %v350_v0 = vor.u32 %v349_v53, %v346_v52  ;;  %v965_v27 = vor.u32 %v964_v15, %v961_v9  ;;  %v9133_v28 = vcombine.low %v6244_v44, %v6245_v51  ;;  %v368_v31 = vshrl.u32 %v9106_v62, 16  ;;  %v6274_v51 = vld [vmem:[%s8951_s6 + $0x44] sm:$0x1]  ;;  %v9170_v9 = vld [vmem:[%s8951_s6 + $0x40] sm:$0xf] }
  0x3b   : > { %11015 = vst [vmem:[#allocation5_spill] sm:$0xff] %v9119_v12  ;;  %2811 = vmatprep.mubr.bf16.mxu1 %v9119_v12  ;;  %v366_v24 = vsel %vm8981_vm2, %v361_v19, %v365_v1  ;;  %v975_v30 = vor.u32 %v974_v21, %v970_v16  ;;  %v371_v35 = vshll.u32 %v9106_v62, 16  ;;  %7831 = vmatpush3.bf16.msra.mxu0 %v8581_v25  ;;  %v377_v41 = vshll.u32 %v9117_v11, 16  ;;  %v9164_v1 = vld [vmem:[%s8951_s6 + $0x3c] sm:$0xf]  ;;  %v8595_v19 = vld [vmem:[%s10965_s1 + $0x150] sm:$0xff]  }
  0x3c   : > { %v351_v14 = vrot.slane %v350_v0, 4  ;;  %11016 = vst [vmem:[#allocation6_spill] sm:$0xff] %v9133_v28  ;;  %v966_v39 = vrot.slane %v965_v27, 4  ;;  %v370_v40 = vrot.slane %v368_v31, 4  ;;  %7943 = vmatpush3.bf16.msra.mxu1 %v8582_v32  ;;  %v381_v44 = vshrl.u32 %v9117_v11, 16  ;;  %7832 = vmatprep.subr.bf16.mxu0 %v8587_v42 }
  0x3d   : > { %v976_v38 = vrot.slane %v975_v30, 4  ;;  %v373_v43 = vrot.slane %v371_v35, 5  ;;  %v387_v45 = vshll.u32 %v256_v17, 16  ;;  %v379_v50 = vrot.slane %v377_v41, 5  ;;  %v257_v18 = vld [vmem:[%s8951_s6 + $0x44] sm:$0x1] }
  0x3e   : > { %2651 = vmatmul.mubr.bf16.gmra.mxu0 %v6400_v33  ;;  %v356_v26 = vsel %vm8981_vm2, %v351_v14, %v355_v54  ;;  %v980_v33 = vrot.slane %v978_v22, 5  ;;  %v971_v49 = vsel %vm8981_vm2, %v966_v39, %v970_v16  ;;  %v983_v52 = vshrl.u32 %v6246_v36, 16  ;;  %v8588_v54 = vld [vmem:[%s10965_s1 + $0x1d8] sm:$0xff]   ;;  %v6249_v27 = vld [vmem:[%s8951_s6 + $0x4c] sm:$0xf] }
  0x3f   : > { %2812 = vmatmul.mubr.bf16.gmra.mxu1 %v9082_v34  ;;  %v9144_v37 = vcombine.low %v356_v26, %v366_v24  ;;  %v986_v53 = vshll.u32 %v6246_v36, 16  ;;  %v374_v57 = vor.u32 %v373_v43, %v370_v40  ;;  %v383_v58 = vrot.slane %v381_v44, 4  ;;  %7944 = vmatprep.subr.bf16.mxu1 %v8588_v54  ;;  %v6248_v26 = vld [vmem:[%s8951_s6 + $0x48] sm:$0xf]  ;;  %v6275_v30 = vld [vmem:[%s8951_s6 + $0x50] sm:$0x1] }
  0x40   : > { %v981_v56 = vsel %vm8981_vm2, %v976_v38, %v980_v33  ;;  %v389_v59 = vrot.slane %v387_v45, 5  ;;  %v985_v61 = vrot.slane %v983_v52, 4  ;;  %v992_v0 = vshll.u32 %v6247_v47, 16  ;;  %7833 = vmatpush3.bf16.msra.mxu0 %v8589_v2  ;;  %7945 = vmatpush3.bf16.msra.mxu1 %v8590_v10  ;;  %v9212_v2 = vld [vmem:[%s8951_s6 + $0x48] sm:$0xf] }
  0x41   : > { %2658 = vmatprep.mubr.bf16.mxu0 %v9144_v37  ;;  %v9161_v60 = vcombine.low %v971_v49, %v981_v56  ;;  %v988_v63 = vrot.slane %v986_v53, 5  ;;  %v375_v3 = vrot.slane %v374_v57, 4  ;;  %v384_v5 = vor.u32 %v383_v58, %v379_v50  ;;  %7834 = vmatprep.subr.bf16.mxu0 %v8595_v19  ;;  %v8597_v53 = vld [vmem:[%s10965_s1 + $0x110] sm:$0xff]  }
  0x42   : > { %v996_v6 = vshrl.u32 %v6247_v47, 16  ;;  %v1002_v7 = vshll.u32 %v6274_v51, 16  ;;  %v994_v15 = vrot.slane %v992_v0, 5  ;;  %v6402_v16 = vcombine.low %v9106_v62, %v9117_v11  ;;  %v8596_v62 = vld [vmem:[%s10965_s1 + $0x1d0] sm:$0xff]  }
  0x43   : > { %2819 = vmatprep.mubr.bf16.mxu1 %v9161_v60  ;;  %v989_v14 = vor.u32 %v988_v63, %v985_v61  ;;  %v9178_v17 = vcombine.low %v6246_v36, %v6247_v47  ;;  %v380_v21 = vsel %vm8981_vm2, %v375_v3, %v379_v50  ;;  %v385_v22 = vrot.slane %v384_v5, 4  ;;  %7946 = vmatprep.subr.bf16.mxu1 %v8596_v62  ;;  %v8598_v3 = vld [vmem:[%s10965_s1 + $0x190] sm:$0xff]  }
  0x44   : > { %v1004_v25 = vrot.slane %v1002_v7, 5  ;;  %v392_v31 = vshrl.u32 %v9164_v1, 16  ;;  %v395_v32 = vshll.u32 %v9164_v1, 16  ;;  %v401_v24 = vshll.u32 %v9170_v9, 16  ;;  %7835 = vmatpush3.bf16.msra.mxu0 %v8597_v53  ;;  %7947 = vmatpush3.bf16.msra.mxu1 %v8598_v3  ;;  %v8711_v34 = vld [vmem:[%s8951_s6 + $0x34] sm:$0xf] }
  0x45   : > { %11017 = vst [vmem:[#allocation7_spill] sm:$0xff] %v9178_v17  ;;  %v990_v11 = vrot.slane %v989_v14, 4  ;;  %v390_v33 = vsel %vm8981_vm2, %v385_v22, %v389_v59  ;;  %v405_v36 = vshrl.u32 %v9170_v9, 16  ;;  %v411_v39 = vshll.u32 %v257_v18, 16  ;;  %v9218_v14 = vld [vmem:[%s8951_s6 + $0x4c] sm:$0xf] }
  0x46   : > { %2659 = vmatmul.mubr.bf16.gmra.mxu0 %v6401_v23  ;;  %v998_v23 = vrot.slane %v996_v6, 4  ;;  %v9199_v40 = vcombine.low %v380_v21, %v390_v33  ;;  %v394_v42 = vrot.slane %v392_v31, 4  ;;  %v397_v38 = vrot.slane %v395_v32, 5  ;;  %v258_v21 = vld [vmem:[%s8951_s6 + $0x50] sm:$0x1] }
  0x47   : > { %2820 = vmatmul.mubr.bf16.gmra.mxu1 %v9133_v28  ;;  %v995_v41 = vsel %vm8981_vm2, %v990_v11, %v994_v15  ;;  %v403_v44 = vrot.slane %v401_v24, 5  ;;  %v407_v45 = vrot.slane %v405_v36, 4  ;;  %v413_v47 = vrot.slane %v411_v39, 5  ;;  %v6250_v11 = vld [vmem:[%s8951_s6 + $0x54] sm:$0xf] }
  0x48   : > { %v999_v35 = vor.u32 %v998_v23, %v994_v15  ;;  %2666 = vmatprep.mubr.bf16.mxu0 %v9199_v40  ;;  %v398_v49 = vor.u32 %v397_v38, %v394_v42  ;;  %v1007_v50 = vshrl.u32 %v6248_v26, 16  ;;  %v1010_v51 = vshll.u32 %v6248_v26, 16  ;;  %v6276_v42 = vld [vmem:[%s8951_s6 + $0x5c] sm:$0x1] }
  0x49   : > { %v1016_v52 = vshll.u32 %v6249_v27, 16  ;;  %v408_v56 = vor.u32 %v407_v45, %v403_v44  ;;  %v1020_v57 = vshrl.u32 %v6249_v27, 16  ;;  %v1026_v58 = vshll.u32 %v6275_v30, 16 }
  0x4a   : > { %v1000_v43 = vrot.slane %v999_v35, 4  ;;  %v399_v61 = vrot.slane %v398_v49, 4  ;;  %v1009_v63 = vrot.slane %v1007_v50, 4  ;;  %v1012_v0 = vrot.slane %v1010_v51, 5  ;;  %v6251_v35 = vld [vmem:[%s8951_s6 + $0x58] sm:$0xf] }
  0x4b   : > { %v409_v5 = vrot.slane %v408_v56, 4  ;;  %v1018_v6 = vrot.slane %v1016_v52, 5  ;;  %v1022_v7 = vrot.slane %v1020_v57, 4  ;;  %v1028_v10 = vrot.slane %v1026_v58, 5  ;;  %v9252_v50 = vld [vmem:[%s8951_s6 + $0x54] sm:$0xf] }
  0x4c   : > { %v1005_v54 = vsel %vm8981_vm2, %v1000_v43, %v1004_v25  ;;  %v404_v15 = vsel %vm8981_vm2, %v399_v61, %v403_v44  ;;  %v6403_v18 = vcombine.low %v9164_v1, %v9170_v9  ;;  %v9225_v19 = vcombine.low %v6248_v26, %v6249_v27  ;;  %v8603_v26 = vld [vmem:[%s10965_s1 + $0x148] sm:$0xff]   ;;  %v9255_v51 = vld [vmem:[%s8951_s6 + $0x58] sm:$0xf] }
  0x4d   : > { %v9209_v59 = vcombine.low %v995_v41, %v1005_v54  ;;  %v414_v22 = vsel %vm8981_vm2, %v409_v5, %v413_v47  ;;  %v1023_v23 = vor.u32 %v1022_v7, %v1018_v6  ;;  %v416_v25 = vshrl.u32 %v9212_v2, 16  ;;  %7836 = vmatprep.subr.bf16.mxu0 %v8603_v26  ;;  %v8604_v43 = vld [vmem:[%s10965_s1 + $0x1c8] sm:$0xff]  }
  0x4e   : > { %2667 = vmatmul.mubr.bf16.gmra.mxu0 %v6402_v16  ;;  %v1013_v16 = vor.u32 %v1012_v0, %v1009_v63  ;;  %11018 = vst [vmem:[#allocation8_spill] sm:$0xff] %v9225_v19  ;;  %v419_v62 = vshll.u32 %v9212_v2, 16  ;;  %v9234_v31 = vcombine.low %v404_v15, %v414_v22  ;;  %v425_v1 = vshll.u32 %v9218_v14, 16  ;;  %7948 = vmatprep.subr.bf16.mxu1 %v8604_v43  ;;  %v259_v0 = vld [vmem:[%s8951_s6 + $0x5c] sm:$0x1] }
  0x4f   : > { %2827 = vmatprep.mubr.bf16.mxu1 %v9209_v59  ;;  %v429_v9 = vshrl.u32 %v9218_v14, 16  ;;  %v1024_v27 = vrot.slane %v1023_v23, 4  ;;  %v418_v24 = vrot.slane %v416_v25, 4  ;;  %v435_v33 = vshll.u32 %v258_v21, 16  ;;  %v8605_v25 = vld [vmem:[%s10965_s1 + $0x108] sm:$0xff]  }
  0x50   : > { %2828 = vmatmul.mubr.bf16.gmra.mxu1 %v9178_v17  ;;  %v1014_v32 = vrot.slane %v1013_v16, 4  ;;  %v421_v30 = vrot.slane %v419_v62, 5  ;;  %2674 = vmatprep.mubr.bf16.mxu0 %v9234_v31  ;;  %v427_v39 = vrot.slane %v425_v1, 5  ;;  %v1031_v38 = vshrl.u32 %v6250_v11, 16  ;;  %v6277_v43 = vld [vmem:[%s8951_s6 + $0x68] sm:$0x1] }
  0x51   : > { %v431_v41 = vrot.slane %v429_v9, 4  ;;  %v1029_v44 = vsel %vm8981_vm2, %v1024_v27, %v1028_v10  ;;  %v437_v47 = vrot.slane %v435_v33, 5  ;;  %v1034_v49 = vshll.u32 %v6250_v11, 16  ;;  %v6253_v9 = vld [vmem:[%s8951_s6 + $0x64] sm:$0xf]  ;;  %7837 = vmatpush3.bf16.msra.mxu0 %v8605_v25 }
  0x52   : > { %v1019_v36 = vsel %vm8981_vm2, %v1014_v32, %v1018_v6  ;;  %v422_v45 = vor.u32 %v421_v30, %v418_v24  ;;  %v1033_v54 = vrot.slane %v1031_v38, 4  ;;  %v1040_v56 = vshll.u32 %v6251_v35, 16  ;;  %v655_v17 = vld [vmem:[%s8951_s6] sm:$0xe] }
  0x53   : > { %v9257_v52 = vcombine.low %v1019_v36, %v1029_v44  ;;  %v432_v53 = vor.u32 %v431_v41, %v427_v39  ;;  %v1036_v58 = vrot.slane %v1034_v49, 5  ;;  %v1044_v61 = vshrl.u32 %v6251_v35, 16  ;;  %v8606_v41 = vld [vmem:[%s10965_s1 + $0x188] sm:$0xff]  }
  0x54   : > { %v423_v57 = vrot.slane %v422_v45, 4  ;;  %v1050_v63 = vshll.u32 %v6276_v42, 16  ;;  %v1042_v5 = vrot.slane %v1040_v56, 5  ;;  %v6404_v6 = vcombine.low %v9212_v2, %v9218_v14  ;;  %v6252_v14 = vld [vmem:[%s8951_s6 + $0x60] sm:$0xf]  ;;  %7949 = vmatpush3.bf16.msra.mxu1 %v8606_v41 }
  0x55   : > { %11019 = vst [vmem:[#allocation9_spill] sm:$0xff] %v9257_v52  ;;  %2835 = vmatprep.mubr.bf16.mxu1 %v9257_v52  ;;  %v433_v3 = vrot.slane %v432_v53, 4  ;;  %v9263_v7 = vcombine.low %v6250_v11, %v6251_v35  ;;  %v1037_v15 = vor.u32 %v1036_v58, %v1033_v54  ;;  %v1046_v16 = vrot.slane %v1044_v61, 4 }
  0x56   : > { %2675 = vmatmul.mubr.bf16.gmra.mxu0 %v6403_v18  ;;  %v428_v10 = vsel %vm8981_vm2, %v423_v57, %v427_v39  ;;  %v1052_v18 = vrot.slane %v1050_v63, 5  ;;  %v440_v22 = vshrl.u32 %v9252_v50, 16  ;;  %v443_v23 = vshll.u32 %v9252_v50, 16  ;;  %v9294_v57 = vld [vmem:[%s8951_s6 + $0x60] sm:$0xf] }
  0x57   : > { %11020 = vst [vmem:[#allocation10_spill] sm:$0xff] %v9263_v7  ;;  %v438_v21 = vsel %vm8981_vm2, %v433_v3, %v437_v47  ;;  %v449_v2 = vshll.u32 %v9255_v51, 16  ;;  %v1038_v11 = vrot.slane %v1037_v15, 4  ;;  %v1047_v32 = vor.u32 %v1046_v16, %v1042_v5  ;;  %v8611_v47 = vld [vmem:[%s10965_s1 + $0x140] sm:$0xff]  }
  0x58   : > { %2836 = vmatmul.mubr.bf16.gmra.mxu1 %v9225_v19  ;;  %v9277_v62 = vcombine.low %v428_v10, %v438_v21  ;;  %v453_v1 = vshrl.u32 %v9255_v51, 16  ;;  %v442_v26 = vrot.slane %v440_v22, 4  ;;  %v445_v27 = vrot.slane %v443_v23, 5  ;;  %7838 = vmatprep.subr.bf16.mxu0 %v8611_v47  ;;  %v8612_v3 = vld [vmem:[%s10965_s1 + $0x1c0] sm:$0xff]   ;;  %v8618_v47 = vld [vmem:[%s10965_s1 + $0x2f8] sm:$0xff]  }
  0x59   : > { %v451_v24 = vrot.slane %v449_v2, 5  ;;  %v459_v30 = vshll.u32 %v259_v0, 16  ;;  %v1043_v33 = vsel %vm8981_vm2, %v1038_v11, %v1042_v5  ;;  %v1048_v35 = vrot.slane %v1047_v32, 4  ;;  %v9304_v16 = vld [vmem:[%s8951_s6 + $0x64] sm:$0xf]  ;;  %7950 = vmatprep.subr.bf16.mxu1 %v8612_v3 }
  0x5a   : > { %2682 = vmatprep.mubr.bf16.mxu0 %v9277_v62  ;;  %v455_v36 = vrot.slane %v453_v1, 4  ;;  %v1055_v39 = vshrl.u32 %v6252_v14, 16  ;;  %v446_v42 = vor.u32 %v445_v27, %v442_v26  ;;  %v1058_v44 = vshll.u32 %v6252_v14, 16  ;;  %v260_v2 = vld [vmem:[%s8951_s6 + $0x68] sm:$0x1] }
  0x5b   : > { %v461_v38 = vrot.slane %v459_v30, 5  ;;  %v1064_v45 = vshll.u32 %v6253_v9, 16  ;;  %v1053_v49 = vsel %vm8981_vm2, %v1048_v35, %v1052_v18  ;;  %v1068_v56 = vshrl.u32 %v6253_v9, 16  ;;  %v8613_v18 = vld [vmem:[%s10965_s1 + $0x100] sm:$0xff]   ;;  %v8617_v35 = vld [vmem:[%s10965_s1 + $0x278] sm:$0xff]  }
  0x5c   : > { %v456_v53 = vor.u32 %v455_v36, %v451_v24  ;;  %v1057_v54 = vrot.slane %v1055_v39, 4  ;;  %v9296_v58 = vcombine.low %v1043_v33, %v1053_v49  ;;  %v447_v61 = vrot.slane %v446_v42, 4  ;;  %7839 = vmatpush3.bf16.msra.mxu0 %v8613_v18  ;;  %v6278_v33 = vld [vmem:[%s8951_s6 + $0x74] sm:$0x1] }
  0x5d   : > { %v1060_v63 = vrot.slane %v1058_v44, 5  ;;  %v1066_v0 = vrot.slane %v1064_v45, 5  ;;  %v1074_v10 = vshll.u32 %v6277_v43, 16  ;;  %v6405_v15 = vcombine.low %v9252_v50, %v9255_v51  ;;  %v6254_v50 = vld [vmem:[%s8951_s6 + $0x6c] sm:$0xf]  ;;  %v8614_v51 = vld [vmem:[%s10965_s1 + $0x180] sm:$0xff]   ;;  %8048 = vmatprep.subr.bf16.mxu0 %v8617_v35 }
  0x5e   : > { %2683 = vmatmul.mubr.bf16.gmra.mxu0 %v6404_v6  ;;  %v457_v5 = vrot.slane %v456_v53, 4  ;;  %v1070_v6 = vrot.slane %v1068_v56, 4  ;;  %2843 = vmatprep.mubr.bf16.mxu1 %v9296_v58  ;;  %v452_v21 = vsel %vm8981_vm2, %v447_v61, %v451_v24  ;;  %v9312_v23 = vcombine.low %v6252_v14, %v6253_v9  ;;  %v6255_v9 = vld [vmem:[%s8951_s6 + $0x70] sm:$0xf]  ;;  %v9342_v61 = vld [vmem:[%s8951_s6 + $0x6c] sm:$0xf] }
  0x5f   : > { %v1061_v22 = vor.u32 %v1060_v63, %v1057_v54  ;;  %v464_v25 = vshrl.u32 %v9294_v57, 16  ;;  %v1076_v1 = vrot.slane %v1074_v10, 5  ;;  %v467_v14 = vshll.u32 %v9294_v57, 16  ;;  %7951 = vmatpush3.bf16.msra.mxu1 %v8614_v51 }
  0x60   : > { %11021 = vst [vmem:[#allocation11_spill] sm:$0xff] %v9312_v23  ;;  %2844 = vmatmul.mubr.bf16.gmra.mxu1 %v9263_v7  ;;  %v462_v11 = vsel %vm8981_vm2, %v457_v5, %v461_v38  ;;  %v1071_v32 = vor.u32 %v1070_v6, %v1066_v0  ;;  %v473_v30 = vshll.u32 %v9304_v16, 16  ;;  %v477_v41 = vshrl.u32 %v9304_v16, 16  ;;  %8160 = vmatprep.subr.bf16.mxu1 %v8618_v47 }
  0x61   : > { %v9325_v26 = vcombine.low %v452_v21, %v462_v11  ;;  %v1062_v27 = vrot.slane %v1061_v22, 4  ;;  %v466_v24 = vrot.slane %v464_v25, 4  ;;  %v469_v39 = vrot.slane %v467_v14, 5  ;;  %v9347_v22 = vld [vmem:[%s8951_s6 + $0x70] sm:$0xf] }
  0x62   : > { %v1072_v36 = vrot.slane %v1071_v32, 4  ;;  %v483_v42 = vshll.u32 %v260_v2, 16  ;;  %v475_v43 = vrot.slane %v473_v30, 5  ;;  %v1079_v44 = vshrl.u32 %v6254_v50, 16  ;;  %v261_v11 = vld [vmem:[%s8951_s6 + $0x74] sm:$0x1] }
  0x63   : > { %2690 = vmatprep.mubr.bf16.mxu0 %v9325_v26  ;;  %v1067_v38 = vsel %vm8981_vm2, %v1062_v27, %v1066_v0  ;;  %v1082_v45 = vshll.u32 %v6254_v50, 16  ;;  %v470_v53 = vor.u32 %v469_v39, %v466_v24  ;;  %v479_v54 = vrot.slane %v477_v41, 4  ;;  %v6257_v39 = vld [vmem:[%s8951_s6 + $0x7c] sm:$0xf] }
  0x64   : > { %v1077_v49 = vsel %vm8981_vm2, %v1072_v36, %v1076_v1  ;;  %v485_v56 = vrot.slane %v483_v42, 5  ;;  %v1081_v0 = vrot.slane %v1079_v44, 4  ;;  %v1088_v5 = vshll.u32 %v6255_v9, 16  ;;  %v6256_v36 = vld [vmem:[%s8951_s6 + $0x78] sm:$0xf] }
  0x65   : > { %v9344_v63 = vcombine.low %v1067_v38, %v1077_v49  ;;  %v1084_v3 = vrot.slane %v1082_v45, 5  ;;  %v471_v6 = vrot.slane %v470_v53, 4  ;;  %v480_v10 = vor.u32 %v479_v54, %v475_v43  ;;  %v6279_v44 = vld [vmem:[%s8951_s6 + $0x80] sm:$0x1] }
  0x66   : > { %2691 = vmatmul.mubr.bf16.gmra.mxu0 %v6405_v15  ;;  %v1092_v18 = vshrl.u32 %v6255_v9, 16  ;;  %v1098_v21 = vshll.u32 %v6278_v33, 16  ;;  %v1090_v2 = vrot.slane %v1088_v5, 5  ;;  %v6406_v25 = vcombine.low %v9294_v57, %v9304_v16  ;;  %v9373_v5 = vld [vmem:[%s8951_s6 + $0x78] sm:$0xf] }
  0x67   : > { %11022 = vst [vmem:[#allocation12_spill] sm:$0xff] %v9344_v63  ;;  %2851 = vmatprep.mubr.bf16.mxu1 %v9344_v63  ;;  %v1085_v15 = vor.u32 %v1084_v3, %v1081_v0  ;;  %v9352_v51 = vcombine.low %v6254_v50, %v6255_v9  ;;  %v476_v32 = vsel %vm8981_vm2, %v471_v6, %v475_v43  ;;  %v481_v1 = vrot.slane %v480_v10, 4 }
  0x68   : > { %2852 = vmatmul.mubr.bf16.gmra.mxu1 %v9312_v23  ;;  %v1094_v14 = vrot.slane %v1092_v18, 4  ;;  %v1100_v27 = vrot.slane %v1098_v21, 5  ;;  %v488_v30 = vshrl.u32 %v9342_v61, 16  ;;  %v491_v33 = vshll.u32 %v9342_v61, 16 }
  0x69   : > { %11023 = vst [vmem:[#allocation13_spill] sm:$0xff] %v9352_v51  ;;  %v1086_v24 = vrot.slane %v1085_v15, 4  ;;  %v497_v57 = vshll.u32 %v9347_v22, 16  ;;  %v486_v16 = vsel %vm8981_vm2, %v481_v1, %v485_v56  ;;  %v501_v9 = vshrl.u32 %v9347_v22, 16  ;;  %v9378_v15 = vld [vmem:[%s8951_s6 + $0x7c] sm:$0xf] }
  0x6a   : > { %v1095_v50 = vor.u32 %v1094_v14, %v1090_v2  ;;  %v507_v35 = vshll.u32 %v261_v11, 16  ;;  %v9366_v41 = vcombine.low %v476_v32, %v486_v16  ;;  %v490_v38 = vrot.slane %v488_v30, 4  ;;  %v262_v14 = vld [vmem:[%s8951_s6 + $0x80] sm:$0x1]  ;;  %v6258_v16 = vld [vmem:[%s8951_s6 + $0x84] sm:$0xf] }
  0x6b   : > { %v1091_v42 = vsel %vm8981_vm2, %v1086_v24, %v1090_v2  ;;  %v493_v43 = vrot.slane %v491_v33, 5  ;;  %v499_v47 = vrot.slane %v497_v57, 5  ;;  %v503_v49 = vrot.slane %v501_v9, 4 }
  0x6c   : > { %v1096_v45 = vrot.slane %v1095_v50, 4  ;;  %v509_v53 = vrot.slane %v507_v35, 5  ;;  %2698 = vmatprep.mubr.bf16.mxu0 %v9366_v41  ;;  %v1103_v56 = vshrl.u32 %v6256_v36, 16  ;;  %v1106_v0 = vshll.u32 %v6256_v36, 16 }
  0x6d   : > { %v494_v54 = vor.u32 %v493_v43, %v490_v38  ;;  %v1112_v3 = vshll.u32 %v6257_v39, 16  ;;  %v504_v10 = vor.u32 %v503_v49, %v499_v47  ;;  %v1116_v18 = vshrl.u32 %v6257_v39, 16 }
  0x6e   : > { %v1101_v6 = vsel %vm8981_vm2, %v1096_v45, %v1100_v27  ;;  %2699 = vmatmul.mubr.bf16.gmra.mxu0 %v6406_v25  ;;  %v1122_v21 = vshll.u32 %v6279_v44, 16  ;;  %v1105_v32 = vrot.slane %v1103_v56, 4  ;;  %v1108_v1 = vrot.slane %v1106_v0, 5 }
  0x6f   : > { %v9380_v2 = vcombine.low %v1091_v42, %v1101_v6  ;;  %v495_v11 = vrot.slane %v494_v54, 4  ;;  %v505_v24 = vrot.slane %v504_v10, 4  ;;  %v1114_v30 = vrot.slane %v1112_v3, 5  ;;  %v6259_v54 = vld [vmem:[%s8951_s6 + $0x88] sm:$0xf] }
  0x70   : > { %v1118_v33 = vrot.slane %v1116_v18, 4  ;;  %v1124_v57 = vrot.slane %v1122_v21, 5  ;;  %v1109_v27 = vor.u32 %v1108_v1, %v1105_v32  ;;  %v6407_v50 = vcombine.low %v9342_v61, %v9347_v22  ;;  %v6280_v3 = vld [vmem:[%s8951_s6 + $0x8c] sm:$0x1] }
  0x71   : > { %11024 = vst [vmem:[#allocation14_spill] sm:$0xff] %v9380_v2  ;;  %2859 = vmatprep.mubr.bf16.mxu1 %v9380_v2  ;;  %v500_v25 = vsel %vm8981_vm2, %v495_v11, %v499_v47  ;;  %v9389_v9 = vcombine.low %v6256_v36, %v6257_v39  ;;  %v510_v35 = vsel %vm8981_vm2, %v505_v24, %v509_v53  ;;  %v512_v38 = vshrl.u32 %v9373_v5, 16 }
  0x72   : > { %2860 = vmatmul.mubr.bf16.gmra.mxu1 %v9352_v51  ;;  %v1119_v42 = vor.u32 %v1118_v33, %v1114_v30  ;;  %v515_v43 = vshll.u32 %v9373_v5, 16  ;;  %v9396_v44 = vcombine.low %v500_v25, %v510_v35  ;;  %v1110_v45 = vrot.slane %v1109_v27, 4  ;;  %v9410_v33 = vld [vmem:[%s8951_s6 + $0x84] sm:$0xf] }
  0x73   : > { %11025 = vst [vmem:[#allocation15_spill] sm:$0xff] %v9389_v9  ;;  %v521_v47 = vshll.u32 %v9378_v15, 16  ;;  %v525_v61 = vshrl.u32 %v9378_v15, 16  ;;  %v514_v36 = vrot.slane %v512_v38, 4  ;;  %v531_v49 = vshll.u32 %v262_v14, 16 }
  0x74   : > { %v1120_v22 = vrot.slane %v1119_v42, 4  ;;  %v517_v39 = vrot.slane %v515_v43, 5  ;;  %2706 = vmatprep.mubr.bf16.mxu0 %v9396_v44  ;;  %v1115_v53 = vsel %vm8981_vm2, %v1110_v45, %v1114_v30  ;;  %v1127_v6 = vshrl.u32 %v6258_v16, 16  ;;  %v9413_v42 = vld [vmem:[%s8951_s6 + $0x88] sm:$0xf] }
  0x75   : > { %v523_v56 = vrot.slane %v521_v47, 5  ;;  %v527_v0 = vrot.slane %v525_v61, 4  ;;  %v533_v21 = vrot.slane %v531_v49, 5  ;;  %v1130_v11 = vshll.u32 %v6258_v16, 16  ;;  %v263_v45 = vld [vmem:[%s8951_s6 + $0x8c] sm:$0x1] }
  0x76   : > { %v1125_v10 = vsel %vm8981_vm2, %v1120_v22, %v1124_v57  ;;  %2707 = vmatmul.mubr.bf16.gmra.mxu0 %v6407_v50  ;;  %v518_v18 = vor.u32 %v517_v39, %v514_v36  ;;  %v1129_v14 = vrot.slane %v1127_v6, 4  ;;  %v1136_v24 = vshll.u32 %v6259_v54, 16  ;;  %v6260_v39 = vld [vmem:[%s8951_s6 + $0x90] sm:$0xf]  ;;  %v6261_v49 = vld [vmem:[%s8951_s6 + $0x94] sm:$0xf] }
  0x77   : > { %v9407_v32 = vcombine.low %v1115_v53, %v1125_v10  ;;  %v528_v1 = vor.u32 %v527_v0, %v523_v56  ;;  %v1132_v25 = vrot.slane %v1130_v11, 5  ;;  %v1140_v27 = vshrl.u32 %v6259_v54, 16 }
  0x78   : > { %v519_v30 = vrot.slane %v518_v18, 4  ;;  %v1146_v35 = vshll.u32 %v6280_v3, 16  ;;  %v1138_v50 = vrot.slane %v1136_v24, 5  ;;  %v6408_v38 = vcombine.low %v9373_v5, %v9378_v15 }
  0x79   : > { %2867 = vmatprep.mubr.bf16.mxu1 %v9407_v32  ;;  %v529_v57 = vrot.slane %v528_v1, 4  ;;  %v9418_v43 = vcombine.low %v6258_v16, %v6259_v54  ;;  %v1133_v61 = vor.u32 %v1132_v25, %v1129_v14  ;;  %v1142_v22 = vrot.slane %v1140_v27, 4  ;;  %v6281_v1 = vld [vmem:[%s8951_s6 + $0x98] sm:$0x1]  ;;  %v9439_v25 = vld [vmem:[%s8951_s6 + $0x90] sm:$0xf] }
  0x7a   : > { %2868 = vmatmul.mubr.bf16.gmra.mxu1 %v9389_v9  ;;  %v524_v47 = vsel %vm8981_vm2, %v519_v30, %v523_v56  ;;  %v1148_v36 = vrot.slane %v1146_v35, 5  ;;  %v536_v0 = vshrl.u32 %v9410_v33, 16  ;;  %v539_v5 = vshll.u32 %v9410_v33, 16 }
  0x7b   : > { %11026 = vst [vmem:[#allocation16_spill] sm:$0xff] %v9418_v43  ;;  %v534_v53 = vsel %vm8981_vm2, %v529_v57, %v533_v21  ;;  %v545_v15 = vshll.u32 %v9413_v42, 16  ;;  %v1134_v54 = vrot.slane %v1133_v61, 4  ;;  %v1143_v56 = vor.u32 %v1142_v22, %v1138_v50 }
  0x7c   : > { %v9431_v16 = vcombine.low %v524_v47, %v534_v53  ;;  %v549_v3 = vshrl.u32 %v9413_v42, 16  ;;  %v538_v6 = vrot.slane %v536_v0, 4  ;;  %v541_v10 = vrot.slane %v539_v5, 5 }
  0x7d   : > { %v547_v18 = vrot.slane %v545_v15, 5  ;;  %v555_v11 = vshll.u32 %v263_v45, 16  ;;  %v1139_v21 = vsel %vm8981_vm2, %v1134_v54, %v1138_v50  ;;  %v1144_v14 = vrot.slane %v1143_v56, 4 }
  0x7e   : > { %2714 = vmatprep.mubr.bf16.mxu0 %v9431_v16  ;;  %v551_v24 = vrot.slane %v549_v3, 4  ;;  %v1151_v30 = vshrl.u32 %v6260_v39, 16  ;;  %v542_v27 = vor.u32 %v541_v10, %v538_v6  ;;  %v1154_v57 = vshll.u32 %v6260_v39, 16  ;;  %v9448_v6 = vld [vmem:[%s8951_s6 + $0x94] sm:$0xf] }
  0x7f   : > { %2715 = vmatmul.mubr.bf16.gmra.mxu0 %v6408_v38  ;;  %v557_v35 = vrot.slane %v555_v11, 5  ;;  %v1160_v47 = vshll.u32 %v6261_v49, 16  ;;  %v1149_v45 = vsel %vm8981_vm2, %v1144_v14, %v1148_v36  ;;  %v1164_v53 = vshrl.u32 %v6261_v49, 16 }
  0x80   : > { %v552_v61 = vor.u32 %v551_v24, %v547_v18  ;;  %v1153_v22 = vrot.slane %v1151_v30, 4  ;;  %v9443_v0 = vcombine.low %v1139_v21, %v1149_v45  ;;  %v543_v50 = vrot.slane %v542_v27, 4  ;;  %v264_v21 = vld [vmem:[%s8951_s6 + $0x98] sm:$0x1]  ;;  %v6262_v30 = vld [vmem:[%s8951_s6 + $0x9c] sm:$0xf] }
  0x81   : > { %v1156_v5 = vrot.slane %v1154_v57, 5  ;;  %v1162_v15 = vrot.slane %v1160_v47, 5  ;;  %v1166_v38 = vrot.slane %v1164_v53, 4  ;;  %v1170_v56 = vshll.u32 %v6281_v1, 16 }
  0x82   : > { %v553_v54 = vrot.slane %v552_v61, 4  ;;  %v6409_v3 = vcombine.low %v9410_v33, %v9413_v42  ;;  %2875 = vmatprep.mubr.bf16.mxu1 %v9443_v0  ;;  %v548_v36 = vsel %vm8981_vm2, %v543_v50, %v547_v18  ;;  %v9453_v11 = vcombine.low %v6260_v39, %v6261_v49  ;;  %v6263_v49 = vld [vmem:[%s8951_s6 + $0xa0] sm:$0xf] }
  0x83   : > { %v1157_v10 = vor.u32 %v1156_v5, %v1153_v22  ;;  %v560_v14 = vshrl.u32 %v9439_v25, 16  ;;  %2876 = vmatmul.mubr.bf16.gmra.mxu1 %v9418_v43  ;;  %v1167_v42 = vor.u32 %v1166_v38, %v1162_v15  ;;  %v1172_v1 = vrot.slane %v1170_v56, 5 }
  0x84   : > { %11027 = vst [vmem:[#allocation17_spill] sm:$0xff] %v9453_v11  ;;  %v558_v33 = vsel %vm8981_vm2, %v553_v54, %v557_v35  ;;  %v563_v24 = vshll.u32 %v9439_v25, 16  ;;  %v569_v39 = vshll.u32 %v9448_v6, 16  ;;  %v573_v61 = vshrl.u32 %v9448_v6, 16  ;;  %v6282_v35 = vld [vmem:[%s8951_s6 + $0xa4] sm:$0x1] }
  0x85   : > { %v9462_v27 = vcombine.low %v548_v36, %v558_v33  ;;  %v1158_v18 = vrot.slane %v1157_v10, 4  ;;  %v562_v57 = vrot.slane %v560_v14, 4  ;;  %v1168_v47 = vrot.slane %v1167_v42, 4  ;;  %v9474_v14 = vld [vmem:[%s8951_s6 + $0x9c] sm:$0xf] }
  0x86   : > { %v565_v45 = vrot.slane %v563_v24, 5  ;;  %v579_v22 = vshll.u32 %v264_v21, 16  ;;  %v571_v50 = vrot.slane %v569_v39, 5  ;;  %v1175_v5 = vshrl.u32 %v6262_v30, 16  ;;  %v9477_v21 = vld [vmem:[%s8951_s6 + $0xa0] sm:$0xf] }
  0x87   : > { %2722 = vmatprep.mubr.bf16.mxu0 %v9462_v27  ;;  %v1163_v53 = vsel %vm8981_vm2, %v1158_v18, %v1162_v15  ;;  %v1178_v54 = vshll.u32 %v6262_v30, 16  ;;  %v1173_v38 = vsel %vm8981_vm2, %v1168_v47, %v1172_v1  ;;  %v575_v36 = vrot.slane %v573_v61, 4  ;;  %v265_v15 = vld [vmem:[%s8951_s6 + $0xa4] sm:$0x1] }
  0x88   : > { %2723 = vmatmul.mubr.bf16.gmra.mxu0 %v6409_v3  ;;  %v566_v56 = vor.u32 %v565_v45, %v562_v57  ;;  %v581_v10 = vrot.slane %v579_v22, 5  ;;  %v9479_v33 = vcombine.low %v1163_v53, %v1173_v38  ;;  %v1177_v42 = vrot.slane %v1175_v5, 4  ;;  %v6264_v38 = vld [vmem:[%s8951_s6 + $0xa8] sm:$0xf] }
  0x89   : > { %v1180_v24 = vrot.slane %v1178_v54, 5  ;;  %v1184_v43 = vshll.u32 %v6263_v49, 16  ;;  %v576_v39 = vor.u32 %v575_v36, %v571_v50  ;;  %v1188_v9 = vshrl.u32 %v6263_v49, 16 }
  0x8a   : > { %v567_v18 = vrot.slane %v566_v56, 4  ;;  %v1194_v51 = vshll.u32 %v6282_v35, 16  ;;  %2883 = vmatprep.mubr.bf16.mxu1 %v9479_v33  ;;  %v6410_v57 = vcombine.low %v9439_v25, %v9448_v6  ;;  %v9485_v47 = vcombine.low %v6262_v30, %v6263_v49 }
  0x8b   : > { %v1181_v3 = vor.u32 %v1180_v24, %v1177_v42  ;;  %v1186_v1 = vrot.slane %v1184_v43, 5  ;;  %2884 = vmatmul.mubr.bf16.gmra.mxu1 %v9453_v11  ;;  %v577_v61 = vrot.slane %v576_v39, 4  ;;  %v1190_v22 = vrot.slane %v1188_v9, 4  ;;  %v6283_v42 = vld [vmem:[%s8951_s6 + $0xb0] sm:$0x1] }
  0x8c   : > { %11028 = vst [vmem:[#allocation18_spill] sm:$0xff] %v9485_v47  ;;  %v572_v45 = vsel %vm8981_vm2, %v567_v18, %v571_v50  ;;  %v1196_v35 = vrot.slane %v1194_v51, 5  ;;  %v584_v5 = vshrl.u32 %v9474_v14, 16  ;;  %v587_v43 = vshll.u32 %v9474_v14, 16  ;;  %v6265_v50 = vld [vmem:[%s8951_s6 + $0xac] sm:$0xf] }
  0x8d   : > { %v1182_v53 = vrot.slane %v1181_v3, 4  ;;  %v593_v54 = vshll.u32 %v9477_v21, 16  ;;  %v582_v25 = vsel %vm8981_vm2, %v577_v61, %v581_v10  ;;  %v1191_v6 = vor.u32 %v1190_v22, %v1186_v1  ;;  %v9505_v11 = vld [vmem:[%s8951_s6 + $0xa8] sm:$0xf] }
  0x8e   : > { %v597_v30 = vshrl.u32 %v9477_v21, 16  ;;  %v603_v49 = vshll.u32 %v265_v15, 16  ;;  %v9498_v9 = vcombine.low %v572_v45, %v582_v25  ;;  %v586_v56 = vrot.slane %v584_v5, 4 }
  0x8f   : > { %v1187_v51 = vsel %vm8981_vm2, %v1182_v53, %v1186_v1  ;;  %v589_v36 = vrot.slane %v587_v43, 5  ;;  %v1192_v24 = vrot.slane %v1191_v6, 4  ;;  %v595_v18 = vrot.slane %v593_v54, 5  ;;  %v9510_v43 = vld [vmem:[%s8951_s6 + $0xac] sm:$0xf] }
  0x90   : > { %v599_v39 = vrot.slane %v597_v30, 4  ;;  %v605_v10 = vrot.slane %v603_v49, 5  ;;  %2730 = vmatprep.mubr.bf16.mxu0 %v9498_v9  ;;  %v1199_v15 = vshrl.u32 %v6264_v38, 16  ;;  %v1202_v61 = vshll.u32 %v6264_v38, 16 }
  0x91   : > { %v590_v3 = vor.u32 %v589_v36, %v586_v56  ;;  %v1208_v22 = vshll.u32 %v6265_v50, 16  ;;  %v1197_v45 = vsel %vm8981_vm2, %v1192_v24, %v1196_v35  ;;  %2731 = vmatmul.mubr.bf16.gmra.mxu0 %v6410_v57  ;;  %v1212_v53 = vshrl.u32 %v6265_v50, 16  ;;  %v266_v24 = vld [vmem:[%s8951_s6 + $0xb0] sm:$0x1] }
  0x92   : > { %v600_v1 = vor.u32 %v599_v39, %v595_v18  ;;  %v1218_v5 = vshll.u32 %v6283_v42, 16  ;;  %v9512_v54 = vcombine.low %v1187_v51, %v1197_v45  ;;  %v1201_v6 = vrot.slane %v1199_v15, 4 }
  0x93   : > { %v591_v25 = vrot.slane %v590_v3, 4  ;;  %v1204_v30 = vrot.slane %v1202_v61, 5  ;;  %v1210_v56 = vrot.slane %v1208_v22, 5  ;;  %v1214_v36 = vrot.slane %v1212_v53, 4  ;;  %v6266_v22 = vld [vmem:[%s8951_s6 + $0xb4] sm:$0xf] }
  0x94   : > { %11029 = vst [vmem:[#allocation19_spill] sm:$0xff] %v9512_v54  ;;  %v601_v49 = vrot.slane %v600_v1, 4  ;;  %v1220_v23 = vrot.slane %v1218_v5, 5  ;;  %2891 = vmatprep.mubr.bf16.mxu1 %v9512_v54  ;;  %v6411_v51 = vcombine.low %v9474_v14, %v9477_v21  ;;  %v9519_v42 = vcombine.low %v6264_v38, %v6265_v50  ;;  %v6284_v38 = vld [vmem:[%s8951_s6 + $0xbc] sm:$0x1] }
  0x95   : > { %v596_v57 = vsel %vm8981_vm2, %v591_v25, %v595_v18  ;;  %v1205_v35 = vor.u32 %v1204_v30, %v1201_v6  ;;  %2892 = vmatmul.mubr.bf16.gmra.mxu1 %v9485_v47  ;;  %v1215_v3 = vor.u32 %v1214_v36, %v1210_v56  ;;  %v608_v15 = vshrl.u32 %v9505_v11, 16  ;;  %v6267_v18 = vld [vmem:[%s8951_s6 + $0xb8] sm:$0xf] }
  0x96   : > { %11030 = vst [vmem:[#allocation20_spill] sm:$0xff] %v9519_v42  ;;  %v606_v39 = vsel %vm8981_vm2, %v601_v49, %v605_v10  ;;  %v611_v61 = vshll.u32 %v9505_v11, 16  ;;  %v617_v14 = vshll.u32 %v9510_v43, 16  ;;  %v621_v21 = vshrl.u32 %v9510_v43, 16 }
  0x97   : > { %v9529_v45 = vcombine.low %v596_v57, %v606_v39  ;;  %v1206_v1 = vrot.slane %v1205_v35, 4  ;;  %v1216_v50 = vrot.slane %v1215_v3, 4  ;;  %v610_v53 = vrot.slane %v608_v15, 4  ;;  %v9540_v3 = vld [vmem:[%s8951_s6 + $0xb4] sm:$0xf] }
  0x98   : > { %v613_v10 = vrot.slane %v611_v61, 5  ;;  %v627_v5 = vshll.u32 %v266_v24, 16  ;;  %v619_v6 = vrot.slane %v617_v14, 5  ;;  %v623_v30 = vrot.slane %v621_v21, 4  ;;  %v9543_v15 = vld [vmem:[%s8951_s6 + $0xb8] sm:$0xf] }
  0x99   : > { %2738 = vmatprep.mubr.bf16.mxu0 %v9529_v45  ;;  %v1211_v25 = vsel %vm8981_vm2, %v1206_v1, %v1210_v56  ;;  %v1223_v49 = vshrl.u32 %v6266_v22, 16  ;;  %v1221_v36 = vsel %vm8981_vm2, %v1216_v50, %v1220_v23  ;;  %v1226_v39 = vshll.u32 %v6266_v22, 16 }
  0x9a   : > { %2739 = vmatmul.mubr.bf16.gmra.mxu0 %v6411_v51  ;;  %v614_v57 = vor.u32 %v613_v10, %v610_v53  ;;  %v629_v35 = vrot.slane %v627_v5, 5  ;;  %v9545_v24 = vcombine.low %v1211_v25, %v1221_v36  ;;  %v624_v61 = vor.u32 %v623_v30, %v619_v6  ;;  %v9553_v5 = vld [vmem:[%s8951_s6 + $0xbc] sm:$0x1]  ;;  %v6268_v36 = vld [vmem:[%s8951_s6 + $0xc0] sm:$0xf] }
  0x9b   : > { %v1225_v47 = vrot.slane %v1223_v49, 4  ;;  %v1232_v56 = vshll.u32 %v6267_v18, 16  ;;  %v1228_v14 = vrot.slane %v1226_v39, 5  ;;  %v1236_v21 = vshrl.u32 %v6267_v18, 16 }
  0x9c   : > { %v615_v1 = vrot.slane %v614_v57, 4  ;;  %v1242_v23 = vshll.u32 %v6284_v38, 16  ;;  %2899 = vmatprep.mubr.bf16.mxu1 %v9545_v24  ;;  %v625_v51 = vrot.slane %v624_v61, 4  ;;  %v6412_v53 = vcombine.low %v9505_v11, %v9510_v43  ;;  %v9560_v57 = vld [vmem:[%s8951_s6 + $0xc4] sm:$0xf] }
  0x9d   : > { %v1234_v50 = vrot.slane %v1232_v56, 5  ;;  %v9550_v10 = vcombine.low %v6266_v22, %v6267_v18  ;;  %2900 = vmatmul.mubr.bf16.gmra.mxu1 %v9519_v42  ;;  %v1229_v30 = vor.u32 %v1228_v14, %v1225_v47  ;;  %v1238_v49 = vrot.slane %v1236_v21, 4 }
  0x9e   : > { %v620_v25 = vsel %vm8981_vm2, %v615_v1, %v619_v6  ;;  %v1244_v38 = vrot.slane %v1242_v23, 5  ;;  %v630_v39 = vsel %vm8981_vm2, %v625_v51, %v629_v35  ;;  %v632_v11 = vshrl.u32 %v9540_v3, 16  ;;  %v9572_v23 = vld [vmem:[%s8951_s6 + $0xc8] sm:$0x1] }
  0x9f   : > { %11031 = vst [vmem:[#allocation21_spill] sm:$0xff] %v9550_v10  ;;  %v635_v43 = vshll.u32 %v9540_v3, 16  ;;  %v641_v22 = vshll.u32 %v9543_v15, 16  ;;  %v9567_v18 = vcombine.low %v620_v25, %v630_v39  ;;  %v1230_v61 = vrot.slane %v1229_v30, 4 }
  0xa0   : > { %v1239_v6 = vor.u32 %v1238_v49, %v1234_v50  ;;  %v645_v47 = vshrl.u32 %v9543_v15, 16  ;;  %v634_v56 = vrot.slane %v632_v11, 4  ;;  %v651_v21 = vshll.u32 %v9553_v5, 16 }
  0xa1   : > { %v637_v1 = vrot.slane %v635_v43, 5  ;;  %v643_v14 = vrot.slane %v641_v22, 5  ;;  %2746 = vmatprep.mubr.bf16.mxu0 %v9567_v18  ;;  %v1235_v35 = vsel %vm8981_vm2, %v1230_v61, %v1234_v50  ;;  %v1247_v25 = vshrl.u32 %v6268_v36, 16 }
  0xa2   : > { %v1240_v51 = vrot.slane %v1239_v6, 4  ;;  %v647_v42 = vrot.slane %v645_v47, 4  ;;  %2747 = vmatmul.mubr.bf16.gmra.mxu0 %v6412_v53  ;;  %v653_v49 = vrot.slane %v651_v21, 5  ;;  %v1250_v39 = vshll.u32 %v6268_v36, 16 }
  0xa3   : > { %v638_v30 = vor.u32 %v637_v1, %v634_v56  ;;  %v1256_v11 = vshll.u32 %v9560_v57, 16  ;;  %v1249_v7 = vrot.slane %v1247_v25, 4  ;;  %v1260_v19 = vshrl.u32 %v9560_v57, 16 }
  0xa4   : > { %v1245_v43 = vsel %vm8981_vm2, %v1240_v51, %v1244_v38  ;;  %v648_v22 = vor.u32 %v647_v42, %v643_v14  ;;  %v1252_v6 = vrot.slane %v1250_v39, 5  ;;  %v1266_v1 = vshll.u32 %v9572_v23, 16  ;;  %v656_v51 = vld [vmem:[%s8951_s6 + $0xc] sm:$0xe] }
  0xa5   : > { %v9581_v50 = vcombine.low %v1235_v35, %v1245_v43  ;;  %v639_v61 = vrot.slane %v638_v30, 4  ;;  %v1258_v53 = vrot.slane %v1256_v11, 5  ;;  %v1262_v56 = vrot.slane %v1260_v19, 4  ;;  %v6286_v19 = vld [vmem:[%s8951_s6 + $0xc] sm:$0xe] }
  0xa6   : > { %v649_v47 = vrot.slane %v648_v22, 4  ;;  %v6413_v21 = vcombine.low %v9540_v3, %v9543_v15  ;;  %v1253_v38 = vor.u32 %v1252_v6, %v1249_v7  ;;  %v9591_v35 = vcombine.low %v6268_v36, %v9560_v57  ;;  %v8697_v11 = vld [vmem:[%s8951_s6 + $0x4] sm:$0xf]  ;;  %v6287_v22 = vld [vmem:[%s8951_s6 + $0x18] sm:$0xe] }
  0xa7   : > { %2907 = vmatprep.mubr.bf16.mxu1 %v9581_v50  ;;  %v644_v42 = vsel %vm8981_vm2, %v639_v61, %v643_v14  ;;  %v1263_v25 = vor.u32 %v1262_v56, %v1258_v53  ;;  %v1268_v30 = vrot.slane %v1266_v1, 5  ;;  %v6222_v14 = vrot.slane %v655_v17, 9  ;;  %v8698_v6 = vld [vmem:[%s8951_s6 + $0x8] sm:$0x1] }
  0xa8   : > { %11032 = vst [vmem:[#allocation22_spill] sm:$0xff] %v9591_v35  ;;  %2908 = vmatmul.mubr.bf16.gmra.mxu1 %v9550_v10  ;;  %v654_v3 = vsel %vm8981_vm2, %v649_v47, %v653_v49  ;;  %v1254_v7 = vrot.slane %v1253_v38, 4  ;;  %v724_v43 = vrot.slane %v8697_v11, 5  ;;  %v727_v10 = vrot.slane %v8698_v6, 5  ;;  %v8699_v49 = vld [vmem:[%s8951_s6 + $0x10] sm:$0xf] }
  0xa9   : > { %v9598_v39 = vcombine.low %v644_v42, %v654_v3  ;;  %v1264_v61 = vrot.slane %v1263_v25, 4  ;;  %v6302_v28 = vrot.slane %v6286_v19, 9  ;;  %v1336_v47 = vrot.slane %v8699_v49, 5  ;;  %v8700_v42 = vld [vmem:[%s8951_s6 + $0x14] sm:$0x1] }
  0xaa   : > { %v1259_v56 = vsel %vm8981_vm2, %v1254_v7, %v1258_v53  ;;  %v725_v1 = vsel %vm9600_vm5, %v6222_v14, %v724_v43  ;;  %v726_v17 = vrot.slane %v724_v43, 4  ;;  %v1339_v38 = vrot.slane %v8700_v42, 5  ;;  %v8701_v7 = vld [vmem:[%s8951_s6 + $0x10] sm:$0xf]  ;;  %v8702_v43 = vld [vmem:[%s8951_s6 + $0x14] sm:$0x1] }
  0xab   : > { %2754 = vmatprep.mubr.bf16.mxu0 %v9598_v39  ;;  %v1269_v3 = vsel %vm8981_vm2, %v1264_v61, %v1268_v30  ;;  %v1337_v19 = vsel %vm9600_vm5, %v6302_v28, %v1336_v47  ;;  %v1338_v25 = vrot.slane %v1336_v47, 4  ;;  %v6223_v11 = vrot.slane %v656_v51, 9  ;;  %v8703_v61 = vld [vmem:[%s8951_s6 + $0x1c] sm:$0xf]  ;;  %v657_v47 = vld [vmem:[%s8951_s6 + $0x18] sm:$0xe] }
  0xac   : > { %2755 = vmatmul.mubr.bf16.gmra.mxu0 %v6413_v21  ;;  %v9618_v6 = vcombine.low %v1259_v56, %v1269_v3  ;;  %v728_v53 = vsel %vm9600_vm5, %v726_v17, %v727_v10  ;;  %v731_v14 = vrot.slane %v8701_v7, 5  ;;  %v734_v49 = vrot.slane %v8702_v43, 5  ;;  %v8704_v17 = vld [vmem:[%s8951_s6 + $0x20] sm:$0x1]  ;;  %v8705_v3 = vld [vmem:[%s8951_s6 + $0x1c] sm:$0xf] }
  0xad   : > { %v6526_v42 = vcombine.low %v725_v1, %v728_v53  ;;  %v1340_v21 = vsel %vm9600_vm5, %v1338_v25, %v1339_v38  ;;  %v6303_v30 = vrot.slane %v6287_v22, 9  ;;  %v1343_v28 = vrot.slane %v8703_v61, 5  ;;  %v8619_v22 = vld [vmem:[%s10965_s1 + $0x238] sm:$0xff]   ;;  %v8621_v25 = vld [vmem:[%s10965_s1 + $0x270] sm:$0xff]  }
  0xae   : > { %2915 = vmatprep.mubr.bf16.mxu1 %v9618_v6  ;;  %v9629_v51 = vcombine.low %v1337_v19, %v1340_v21  ;;  %v732_v10 = vsel %vm9600_vm5, %v6223_v11, %v731_v14  ;;  %v733_v56 = vrot.slane %v731_v14, 4  ;;  %v1346_v1 = vrot.slane %v8704_v17, 5  ;;  %v8706_v14 = vld [vmem:[%s8951_s6 + $0x20] sm:$0x1] }
  0xaf   : > { %3609 = vmatprep.mubr.bf16.mxu0 %v6526_v42  ;;  %v1345_v38 = vrot.slane %v1343_v28, 4  ;;  %v738_v19 = vrot.slane %v8705_v3, 5  ;;  %v1344_v53 = vsel %vm9600_vm5, %v6303_v30, %v1343_v28  ;;  %v6224_v7 = vrot.slane %v657_v47, 9  ;;  %v6288_v42 = vld [vmem:[%s8951_s6 + $0x24] sm:$0xe] }
  0xb0   : > { %11035 = vst [vmem:[#allocation23_spill] sm:$0xff] %v9629_v51  ;;  %2916 = vmatmul.mubr.bf16.gmra.mxu1 %v9591_v35  ;;  %v735_v11 = vsel %vm9600_vm5, %v733_v56, %v734_v49  ;;  %v741_v43 = vrot.slane %v8706_v14, 5  ;;  %v8707_v3 = vld [vmem:[%s8951_s6 + $0x28] sm:$0xf]  ;;  %v8620_v49 = vld [vmem:[%s10965_s1 + $0x2b8] sm:$0xff]   ;;  %v6304_v47 = vrot.slane %v6288_v42, 9 }
  0xb1   : > { %3770 = vmatprep.mubr.bf16.mxu1 %v9629_v51  ;;  %v6527_v21 = vcombine.low %v732_v10, %v735_v11  ;;  %v1347_v61 = vsel %vm9600_vm5, %v1345_v38, %v1346_v1  ;;  %v740_v17 = vrot.slane %v738_v19, 4  ;;  %v1350_v35 = vrot.slane %v8707_v3, 5  ;;  %v8622_v10 = vld [vmem:[%s10965_s1 + $0x2f0] sm:$0xff]   ;;  %v658_v56 = vld [vmem:[%s8951_s6 + $0x24] sm:$0xe]  ;;  %v8625_v14 = vld [vmem:[%s10965_s1 + $0x268] sm:$0xff]  }
  0xb2   : > { %v9656_v30 = vcombine.low %v1344_v53, %v1347_v61  ;;  %v739_v28 = vsel %vm9600_vm5, %v6224_v7, %v738_v19  ;;  %v8623_v11 = vld [vmem:[%s10965_s1 + $0x230] sm:$0xff]   ;;  %v8709_v53 = vld [vmem:[%s8951_s6 + $0x28] sm:$0xf]  ;;  %v6225_v61 = vrot.slane %v658_v56, 9  ;;  %v1357_v48 = vrot.slane %v8711_v34, 5  ;;  %v8630_v56 = vld [vmem:[%s10965_s1 + $0x2e0] sm:$0xff]  }
  0xb3   : > { %v1352_v1 = vrot.slane %v1350_v35, 4  ;;  %v745_v19 = vrot.slane %v8709_v53, 5  ;;  %v8624_v7 = vld [vmem:[%s10965_s1 + $0x2b0] sm:$0xff]   ;;  %v8627_v42 = vld [vmem:[%s10965_s1 + $0x228] sm:$0xff]  }
  0xb4   : > { %3610 = vmatmul.mubr.bf16.vlgmr.msra.gmra.mxu0 %v9005_v13  ;;  %v742_v13 = vsel %vm9600_vm5, %v740_v17, %v741_v43  ;;  %v6289_v43 = vld [vmem:[%s8951_s6 + $0x30] sm:$0xe]  ;;  %v8710_v17 = vld [vmem:[%s8951_s6 + $0x2c] sm:$0x1] }
  0xb5   : > { %8049 = vmatpush3.bf16.msra.mxu0 %v8619_v22  ;;  %3617 = vmatprep.mubr.bf16.mxu0 %v6527_v21  ;;  %v8708_v22 = vld [vmem:[%s8951_s6 + $0x2c] sm:$0x1]  ;;  %v6528_v21 = vcombine.low %v739_v28, %v742_v13  ;;  %v748_v3 = vrot.slane %v8710_v17, 5  ;;  %v747_v51 = vrot.slane %v745_v19, 4  ;;  %v1359_v13 = vrot.slane %v1357_v48, 4 }
  0xb6   : > { %v1353_v38 = vrot.slane %v8708_v22, 5  ;;  %8050 = vmatprep.subr.bf16.mxu0 %v8621_v25  ;;  %v8626_v25 = vld [vmem:[%s10965_s1 + $0x2e8] sm:$0xff]   ;;  %v1351_v22 = vsel %vm9600_vm5, %v6304_v47, %v1350_v35  ;;  %v746_v35 = vsel %vm9600_vm5, %v6225_v61, %v745_v19  ;;  %v6305_v47 = vrot.slane %v6289_v43, 9  ;;  %v8631_v19 = vld [vmem:[%s10965_s1 + $0x220] sm:$0xff]   ;;  %v6290_v43 = vld [vmem:[%s8951_s6 + $0x3c] sm:$0xe] }
  0xb7   : > { %v8628_v34 = vld [vmem:[%s10965_s1 + $0x2a8] sm:$0xff]   ;;  %v8634_v61 = vld [vmem:[%s10965_s1 + $0x2d8] sm:$0xff]  }
  0xb8   : > { %3771 = vmatmul.mubr.bf16.vlgmr.msra.gmra.mxu1 %v9020_v29  ;;  %v1354_v53 = vsel %vm9600_vm5, %v1352_v1, %v1353_v38  ;;  %v8712_v1 = vld [vmem:[%s8951_s6 + $0x38] sm:$0x1] }
  0xb9   : > { %8161 = vmatpush3.bf16.msra.mxu1 %v8620_v49  ;;  %3778 = vmatprep.mubr.bf16.mxu1 %v9656_v30  ;;  %v8629_v49 = vld [vmem:[%s10965_s1 + $0x260] sm:$0xff]   ;;  %v9696_v28 = vcombine.low %v1351_v22, %v1354_v53  ;;  %v1360_v38 = vrot.slane %v8712_v1, 5  ;;  %v8714_v22 = vld [vmem:[%s8951_s6 + $0x38] sm:$0x1] }
  0xba   : > { %8162 = vmatprep.subr.bf16.mxu1 %v8622_v10  ;;  %8051 = vmatpush3.bf16.msra.mxu0 %v8623_v11  ;;  %v659_v10 = vld [vmem:[%s8951_s6 + $0x30] sm:$0xe]  ;;  %v8713_v11 = vld [vmem:[%s8951_s6 + $0x34] sm:$0xf]  ;;  %v755_v53 = vrot.slane %v8714_v22, 5  ;;  %v8642_v22 = vld [vmem:[%s10965_s1 + $0x2c8] sm:$0xff]  }
  0xbb   : > { %8052 = vmatprep.subr.bf16.mxu0 %v8625_v14  ;;  %11036 = vst [vmem:[#allocation24_spill] sm:$0xff] %v9696_v28  ;;  %v8632_v14 = vld [vmem:[%s10965_s1 + $0x2a0] sm:$0xff]   ;;  %v1361_v17 = vsel %vm9600_vm5, %v1359_v13, %v1360_v38 }
  0xbc   : > { %3618 = vmatmul.mubr.bf16.gmra.mxu0 %v9058_v4  ;;  %v749_v4 = vsel %vm9600_vm5, %v747_v51, %v748_v3  ;;  %v8633_v51 = vld [vmem:[%s10965_s1 + $0x258] sm:$0xff]   ;;  %v8716_v38 = vld [vmem:[%s8951_s6 + $0x44] sm:$0x1] }
  0xbd   : > { %3625 = vmatprep.mubr.bf16.mxu0 %v6528_v21  ;;  %8163 = vmatpush3.bf16.msra.mxu1 %v8624_v7  ;;  %v752_v7 = vrot.slane %v8713_v11, 5  ;;  %v6226_v21 = vrot.slane %v659_v10, 9  ;;  %v1367_v11 = vrot.slane %v8716_v38, 5 }
  0xbe   : > { %8164 = vmatprep.subr.bf16.mxu1 %v8626_v25  ;;  %8053 = vmatpush3.bf16.msra.mxu0 %v8627_v42  ;;  %v6529_v25 = vcombine.low %v746_v35, %v749_v4  ;;  %v1358_v42 = vsel %vm9600_vm5, %v6305_v47, %v1357_v48  ;;  %v8635_v48 = vld [vmem:[%s10965_s1 + $0x218] sm:$0xff]   ;;  %v8637_v35 = vld [vmem:[%s10965_s1 + $0x250] sm:$0xff]  }
  0xbf   : > { %8054 = vmatprep.subr.bf16.mxu0 %v8629_v49  ;;  %v754_v3 = vrot.slane %v752_v7, 4  ;;  %v8715_v49 = vld [vmem:[%s8951_s6 + $0x40] sm:$0xf]  ;;  %v9739_v47 = vcombine.low %v1358_v42, %v1361_v17  ;;  %v753_v10 = vsel %vm9600_vm5, %v6226_v21, %v752_v7  ;;  %v8638_v4 = vld [vmem:[%s10965_s1 + $0x2d0] sm:$0xff]   ;;  %v6291_v42 = vld [vmem:[%s8951_s6 + $0x48] sm:$0xe] }
  0xc0   : > { %3779 = vmatmul.mubr.bf16.gmra.mxu1 %v9071_v20  ;;  %v1364_v1 = vrot.slane %v8715_v49, 5  ;;  %v8717_v7 = vld [vmem:[%s8951_s6 + $0x40] sm:$0xf]  ;;  %v8718_v17 = vld [vmem:[%s8951_s6 + $0x44] sm:$0x1] }
  0xc1   : > { %3786 = vmatprep.mubr.bf16.mxu1 %v9696_v28  ;;  %8165 = vmatpush3.bf16.msra.mxu1 %v8628_v34  ;;  %11037 = vst [vmem:[#allocation25_spill] sm:$0xff] %v9739_v47  ;;  %v6306_v34 = vrot.slane %v6290_v43, 9  ;;  %v8640_v43 = vld [vmem:[%s10965_s1 + $0x290] sm:$0xff]  }
  0xc2   : > { %8166 = vmatprep.subr.bf16.mxu1 %v8630_v56  ;;  %8055 = vmatpush3.bf16.msra.mxu0 %v8631_v19  ;;  %v8636_v56 = vld [vmem:[%s10965_s1 + $0x298] sm:$0xff]   ;;  %v1366_v13 = vrot.slane %v1364_v1, 4 }
  0xc3   : > { %8056 = vmatprep.subr.bf16.mxu0 %v8633_v51  ;;  %v660_v19 = vld [vmem:[%s8951_s6 + $0x3c] sm:$0xe]  ;;  %v759_v51 = vrot.slane %v8717_v7, 5  ;;  %v1365_v49 = vsel %vm9600_vm5, %v6306_v34, %v1364_v1  ;;  %v6307_v34 = vrot.slane %v6291_v42, 9  ;;  %v8720_v7 = vld [vmem:[%s8951_s6 + $0x50] sm:$0x1] }
  0xc4   : > { %3626 = vmatmul.mubr.bf16.gmra.mxu0 %v9097_v46  ;;  %v756_v46 = vsel %vm9600_vm5, %v754_v3, %v755_v53  ;;  %v762_v3 = vrot.slane %v8718_v17, 5  ;;  %v8643_v53 = vld [vmem:[%s10965_s1 + $0x208] sm:$0xff]   ;;  %v8650_v42 = vld [vmem:[%s10965_s1 + $0x378] sm:$0xff]  }
  0xc5   : > { %3633 = vmatprep.mubr.bf16.mxu0 %v6529_v25  ;;  %8167 = vmatpush3.bf16.msra.mxu1 %v8632_v14  ;;  %v8639_v14 = vld [vmem:[%s10965_s1 + $0x210] sm:$0xff]   ;;  %v8641_v25 = vld [vmem:[%s10965_s1 + $0x248] sm:$0xff]   ;;  %v6530_v21 = vcombine.low %v753_v10, %v756_v46  ;;  %v8651_v17 = vld [vmem:[%s10965_s1 + $0x3f8] sm:$0xff]  }
  0xc6   : > { %8168 = vmatprep.subr.bf16.mxu1 %v8634_v61  ;;  %8057 = vmatpush3.bf16.msra.mxu0 %v8635_v48  ;;  %v6227_v61 = vrot.slane %v660_v19, 9  ;;  %v1368_v48 = vsel %vm9600_vm5, %v1366_v13, %v1367_v11  ;;  %v8719_v10 = vld [vmem:[%s8951_s6 + $0x4c] sm:$0xf]  ;;  %v661_v13 = vld [vmem:[%s8951_s6 + $0x48] sm:$0xe] }
  0xc7   : > { %8058 = vmatprep.subr.bf16.mxu0 %v8637_v35  ;;  %v761_v35 = vrot.slane %v759_v51, 4  ;;  %v1371_v46 = vrot.slane %v8719_v10, 5  ;;  %v9782_v38 = vcombine.low %v1365_v49, %v1368_v48 }
  0xc8   : > { %3787 = vmatmul.mubr.bf16.gmra.mxu1 %v9119_v12  ;;  %v760_v1 = vsel %vm9600_vm5, %v6227_v61, %v759_v51  ;;  %v8646_v51 = vld [vmem:[%s10965_s1 + $0x2c0] sm:$0xff]  }
  0xc9   : > { %3794 = vmatprep.mubr.bf16.mxu1 %v9739_v47  ;;  %8169 = vmatpush3.bf16.msra.mxu1 %v8636_v56  ;;  %v8645_v56 = vld [vmem:[%s10965_s1 + $0x240] sm:$0xff]   ;;  %11038 = vst [vmem:[#allocation26_spill] sm:$0xff] %v9782_v38  ;;  %v763_v11 = vsel %vm9600_vm5, %v761_v35, %v762_v3  ;;  %v1373_v19 = vrot.slane %v1371_v46, 4  ;;  %v1372_v48 = vsel %vm9600_vm5, %v6307_v34, %v1371_v46 }
  0xca   : > { %8170 = vmatprep.subr.bf16.mxu1 %v8638_v4  ;;  %8059 = vmatpush3.bf16.msra.mxu0 %v8639_v14  ;;  %v8644_v4 = vld [vmem:[%s10965_s1 + $0x288] sm:$0xff]   ;;  %v8648_v61 = vld [vmem:[%s10965_s1 + $0x280] sm:$0xff]   ;;  %v6531_v3 = vcombine.low %v760_v1, %v763_v11  ;;  %v8724_v11 = vld [vmem:[%s8951_s6 + $0x5c] sm:$0x1] }
  0xcb   : > { %8060 = vmatprep.subr.bf16.mxu0 %v8641_v25  ;;  %v8721_v14 = vld [vmem:[%s8951_s6 + $0x4c] sm:$0xf] }
  0xcc   : > { %3634 = vmatmul.mubr.bf16.gmra.mxu0 %v9144_v37  ;;  %v1374_v37 = vrot.slane %v8720_v7, 5  ;;  %v766_v25 = vrot.slane %v8721_v14, 5  ;;  %v8725_v14 = vld [vmem:[%s8951_s6 + $0x58] sm:$0xf] }
  0xcd   : > { %3641 = vmatprep.mubr.bf16.mxu0 %v6530_v21  ;;  %8171 = vmatpush3.bf16.msra.mxu1 %v8640_v43  ;;  %v8647_v43 = vld [vmem:[%s10965_s1 + $0x200] sm:$0xff]   ;;  %v6292_v21 = vld [vmem:[%s8951_s6 + $0x54] sm:$0xe] }
  0xce   : > { %8172 = vmatprep.subr.bf16.mxu1 %v8642_v22  ;;  %8061 = vmatpush3.bf16.msra.mxu0 %v8643_v53  ;;  %v6228_v22 = vrot.slane %v661_v13, 9  ;;  %v8722_v53 = vld [vmem:[%s8951_s6 + $0x50] sm:$0x1]  ;;  %v1375_v35 = vsel %vm9600_vm5, %v1373_v19, %v1374_v37  ;;  %v768_v10 = vrot.slane %v766_v25, 4  ;;  %v6308_v34 = vrot.slane %v6292_v21, 9 }
  0xcf   : > { %8062 = vmatprep.subr.bf16.mxu0 %v8645_v56  ;;  %v769_v49 = vrot.slane %v8722_v53, 5  ;;  %v8723_v56 = vld [vmem:[%s8951_s6 + $0x58] sm:$0xf]  ;;  %v9819_v1 = vcombine.low %v1372_v48, %v1375_v35  ;;  %v1381_v19 = vrot.slane %v8724_v11, 5  ;;  %v662_v37 = vld [vmem:[%s8951_s6 + $0x54] sm:$0xe] }
  0xd0   : > { %3795 = vmatmul.mubr.bf16.gmra.mxu1 %v9161_v60  ;;  %v1378_v7 = vrot.slane %v8723_v56, 5  ;;  %v767_v46 = vsel %vm9600_vm5, %v6228_v22, %v766_v25  ;;  %v6293_v25 = vld [vmem:[%s8951_s6 + $0x60] sm:$0xe]  ;;  %v8727_v22 = vld [vmem:[%s8951_s6 + $0x5c] sm:$0x1] }
  0xd1   : > { %3802 = vmatprep.mubr.bf16.mxu1 %v9782_v38  ;;  %8173 = vmatpush3.bf16.msra.mxu1 %v8644_v4  ;;  %11039 = vst [vmem:[#allocation27_spill] sm:$0xff] %v9819_v1  ;;  %v770_v13 = vsel %vm9600_vm5, %v768_v10, %v769_v49  ;;  %v776_v53 = vrot.slane %v8727_v22, 5  ;;  %v6309_v49 = vrot.slane %v6293_v25, 9  ;;  %v8728_v48 = vld [vmem:[%s8951_s6 + $0x68] sm:$0x1] }
  0xd2   : > { %8174 = vmatprep.subr.bf16.mxu1 %v8646_v51  ;;  %8063 = vmatpush3.bf16.msra.mxu0 %v8647_v43  ;;  %v1380_v4 = vrot.slane %v1378_v7, 4  ;;  %v6532_v51 = vcombine.low %v767_v46, %v770_v13  ;;  %v6229_v43 = vrot.slane %v662_v37, 9  ;;  %v1388_v35 = vrot.slane %v8728_v48, 5  ;;  %v663_v10 = vld [vmem:[%s8951_s6 + $0x60] sm:$0xe] }
  0xd3   : > { %8272 = vmatprep.subr.bf16.mxu0 %v8650_v42  ;;  %v8726_v42 = vld [vmem:[%s8951_s6 + $0x64] sm:$0xf]  ;;  %v670_v56 = vld [vmem:[%s8951_s6 + $0xb4] sm:$0xe]  ;;  %v6301_v46 = vld [vmem:[%s8951_s6 + $0xc0] sm:$0xe] }
  0xd4   : > { %3642 = vmatmul.mubr.bf16.gmra.mxu0 %v9199_v40  ;;  %v773_v40 = vrot.slane %v8725_v14, 5  ;;  %v1385_v21 = vrot.slane %v8726_v42, 5  ;;  %v8729_v11 = vld [vmem:[%s8951_s6 + $0x64] sm:$0xf]  ;;  %v6237_v37 = vrot.slane %v670_v56, 9  ;;  %v829_v14 = vrot.slane %v9543_v15, 5 }
  0xd5   : > { %3649 = vmatprep.mubr.bf16.mxu0 %v6531_v3  ;;  %8175 = vmatpush3.bf16.msra.mxu1 %v8648_v61  ;;  %v1379_v61 = vsel %vm9600_vm5, %v6308_v34, %v1378_v7  ;;  %v1382_v3 = vsel %vm9600_vm5, %v1380_v4, %v1381_v19  ;;  %v780_v4 = vrot.slane %v8729_v11, 5  ;;  %v8731_v48 = vld [vmem:[%s8951_s6 + $0x68] sm:$0x1]  ;;  %v666_v56 = vld [vmem:[%s8951_s6 + $0x84] sm:$0xe] }
  0xd6   : > { %8384 = vmatprep.subr.bf16.mxu1 %v8651_v17  ;;  %v775_v17 = vrot.slane %v773_v40, 4  ;;  %v9842_v13 = vcombine.low %v1379_v61, %v1382_v3  ;;  %v774_v7 = vsel %vm9600_vm5, %v6229_v43, %v773_v40  ;;  %v1387_v34 = vrot.slane %v1385_v21, 4 }
  0xd7   : > { %v1386_v25 = vsel %vm9600_vm5, %v6309_v49, %v1385_v21  ;;  %v1441_v40 = vrot.slane %v9560_v57, 5  ;;  %v6230_v43 = vrot.slane %v663_v10, 9  ;;  %v9857_v42 = vsel %vm9600_vm5, %v6237_v37, %v829_v14 }
  0xd8   : > { %3803 = vmatmul.mubr.bf16.gmra.mxu1 %v9209_v59  ;;  %11040 = vst [vmem:[#allocation28_spill] sm:$0xff] %v9842_v13  ;;  %v777_v19 = vsel %vm9600_vm5, %v775_v17, %v776_v53  ;;  %v831_v61 = vrot.slane %v829_v14, 4  ;;  %v1444_v3 = vrot.slane %v9572_v23, 5  ;;  %v8730_v17 = vld [vmem:[%s8951_s6 + $0x70] sm:$0xf]  ;;  %v1389_v53 = vsel %vm9600_vm5, %v1387_v34, %v1388_v35 }
  0xd9   : > { %3810 = vmatprep.mubr.bf16.mxu1 %v9819_v1  ;;  %v6533_v15 = vcombine.low %v774_v7, %v777_v19  ;;  %v1392_v21 = vrot.slane %v8730_v17, 5  ;;  %v1443_v22 = vrot.slane %v1441_v40, 4  ;;  %v782_v49 = vrot.slane %v780_v4, 4  ;;  %v8732_v19 = vld [vmem:[%s8951_s6 + $0x74] sm:$0x1] }
  0xda   : > { %v783_v10 = vrot.slane %v8731_v48, 5  ;;  %v9879_v35 = vcombine.low %v1386_v25, %v1389_v53  ;;  %v1395_v37 = vrot.slane %v8732_v19, 5 }
  0xdb   : > { %v1394_v34 = vrot.slane %v1392_v21, 4 }
  0xdc   : > { %3650 = vmatmul.mubr.bf16.gmra.mxu0 %v9234_v31  ;;  %v832_v31 = vrot.slane %v9553_v5, 5  ;;  %v6294_v5 = vld [vmem:[%s8951_s6 + $0x6c] sm:$0xe]  ;;  %11042 = vst [vmem:[#allocation30_spill] sm:$0xff] %v9879_v35 }
  0xdd   : > { %3657 = vmatprep.mubr.bf16.mxu0 %v6532_v51  ;;  %v6317_v51 = vrot.slane %v6301_v46, 9  ;;  %v1445_v46 = vsel %vm9600_vm5, %v1443_v22, %v1444_v3  ;;  %v6310_v7 = vrot.slane %v6294_v5, 9  ;;  %v8734_v22 = vld [vmem:[%s8951_s6 + $0x7c] sm:$0xf] }
  0xde   : > { %v9870_v23 = vsel %vm9600_vm5, %v831_v61, %v832_v31  ;;  %v781_v31 = vsel %vm9600_vm5, %v6230_v43, %v780_v4  ;;  %v1396_v4 = vsel %vm9600_vm5, %v1394_v34, %v1395_v37  ;;  %v1399_v53 = vrot.slane %v8734_v22, 5  ;;  %v8737_v22 = vld [vmem:[%s8951_s6 + $0x7c] sm:$0xf] }
  0xdf   : > { %v1442_v57 = vsel %vm9600_vm5, %v6317_v51, %v1441_v40  ;;  %v784_v51 = vsel %vm9600_vm5, %v782_v49, %v783_v10  ;;  %v664_v40 = vld [vmem:[%s8951_s6 + $0x6c] sm:$0xe]  ;;  %v1393_v25 = vsel %vm9600_vm5, %v6310_v7, %v1392_v21 }
  0xe0   : > { %3811 = vmatmul.mubr.bf16.gmra.mxu1 %v9257_v52  ;;  %v9877_v11 = vcombine.low %v1442_v57, %v1445_v46  ;;  %v6534_v5 = vcombine.low %v781_v31, %v784_v51  ;;  %v6231_v17 = vrot.slane %v664_v40, 9  ;;  %v6295_v57 = vld [vmem:[%s8951_s6 + $0x78] sm:$0xe]  ;;  %v8735_v46 = vld [vmem:[%s8951_s6 + $0x74] sm:$0x1]  ;;  %v9898_v31 = vcombine.low %v1393_v25, %v1396_v4 }
  0xe1   : > { %3818 = vmatprep.mubr.bf16.mxu1 %v9842_v13  ;;  %v790_v21 = vrot.slane %v8735_v46, 5  ;;  %v6311_v37 = vrot.slane %v6295_v57, 9  ;;  %v665_v51 = vld [vmem:[%s8951_s6 + $0x78] sm:$0xe]  ;;  %v794_v46 = vrot.slane %v8737_v22, 5 }
  0xe2   : > { %11041 = vst [vmem:[#allocation29_spill] sm:$0xff] %v9877_v11  ;;  %11043 = vst [vmem:[#allocation31_spill] sm:$0xff] %v9898_v31 }
  0xe4   : > { %3658 = vmatmul.mubr.bf16.gmra.mxu0 %v9277_v62  ;;  %v8733_v62 = vld [vmem:[%s8951_s6 + $0x70] sm:$0xf] }
  0xe5   : > { %3665 = vmatprep.mubr.bf16.mxu0 %v6533_v15  ;;  %v787_v61 = vrot.slane %v8733_v62, 5  ;;  %v1401_v62 = vrot.slane %v1399_v53, 4 }
  0xe7   : > { %v789_v10 = vrot.slane %v787_v61, 4 }
  0xe8   : > { %3819 = vmatmul.mubr.bf16.gmra.mxu1 %v9296_v58 }
  0xe9   : > { %3826 = vmatprep.mubr.bf16.mxu1 %v9879_v35  ;;  %v791_v25 = vsel %vm9600_vm5, %v789_v10, %v790_v21 }
  0xec   : > { %3666 = vmatmul.mubr.bf16.gmra.mxu0 %v9325_v26  ;;  %v788_v26 = vsel %vm9600_vm5, %v6231_v17, %v787_v61 }
  0xed   : > { %3673 = vmatprep.mubr.bf16.mxu0 %v6534_v5  ;;  %v6296_v5 = vld [vmem:[%s8951_s6 + $0x84] sm:$0xe]  ;;  %v6535_v17 = vcombine.low %v788_v26, %v791_v25 }
  0xee   : > { %v7616_v14 = vpop.f32.mrf.mxu0 }
  0xef   : > { %v7728_v15 = vpop.f32.mrf.mxu1 }
  0xf0   : > { %v7617_v3 = vpop.f32.mrf.mxu0  ;;  %3827 = vmatmul.mubr.bf16.gmra.mxu1 %v9344_v63 }
  0xf1   : > { %v7618_v49 = vadd.f32 %v7617_v3, %v7616_v14  ;;  %v7729_v48 = vpop.f32.mrf.mxu1  ;;  %v8736_v14 = vld [vmem:[%s8951_s6 + $0x80] sm:$0x1]  ;;  %3834 = vmatprep.mubr.bf16.mxu1 %v9898_v31 }
  0xf2   : > { %v7619_v43 = vpop.f32.mrf.mxu0  ;;  %v7730_v7 = vadd.f32 %v7729_v48, %v7728_v15  ;;  %v1402_v3 = vrot.slane %v8736_v14, 5  ;;  %v8738_v14 = vld [vmem:[%s8951_s6 + $0x80] sm:$0x1] }
  0xf3   : > { %v7731_v34 = vpop.f32.mrf.mxu1  ;;  %v797_v22 = vrot.slane %v8738_v14, 5 }
  0xf4   : > { %v7620_v19 = vpop.f32.mrf.mxu0  ;;  %v2798_v15 = vadd.f32 %v7730_v7, %v7618_v49  ;;  %v8739_v49 = vld [vmem:[%s8951_s6 + $0x88] sm:$0xf]  ;;  %v1403_v10 = vsel %vm9600_vm5, %v1401_v62, %v1402_v3  ;;  %3674 = vmatmul.mubr.bf16.gmra.mxu0 %v9366_v41 }
  0xf5   : > { %v7621_v40 = vadd.f32 %v7620_v19, %v7619_v43  ;;  %v7732_v48 = vpop.f32.mrf.mxu1  ;;  %v1400_v43 = vsel %vm9600_vm5, %v6311_v37, %v1399_v53  ;;  %v6232_v19 = vrot.slane %v665_v51, 9  ;;  %v1406_v7 = vrot.slane %v8739_v49, 5  ;;  %3681 = vmatprep.mubr.bf16.mxu0 %v6535_v17 }
  0xf6   : > { %v7733_v4 = vadd.f32 %v7732_v48, %v7731_v34  ;;  %v7622_v57 = vpop.f32.mrf.mxu0  ;;  %v796_v34 = vrot.slane %v794_v46, 4  ;;  %v3122_v48 = vmul.f32 %v2798_v15, %v2798_v15  ;;  %v9923_v62 = vcombine.low %v1400_v43, %v1403_v10 }
  0xf7   : > { %v7734_v53 = vpop.f32.mrf.mxu1  ;;  %v795_v25 = vsel %vm9600_vm5, %v6232_v19, %v794_v46  ;;  %v1408_v49 = vrot.slane %v1406_v7, 4 }
  0xf8   : > { %v2801_v61 = vadd.f32 %v7733_v4, %v7621_v40  ;;  %v7623_v21 = vpop.f32.mrf.mxu0  ;;  %11044 = vst [vmem:[#allocation32_spill] sm:$0xff] %v9923_v62  ;;  %v6312_v4 = vrot.slane %v6296_v5, 9  ;;  %v798_v41 = vsel %vm9600_vm5, %v796_v34, %v797_v22  ;;  %3835 = vmatmul.mubr.bf16.gmra.mxu1 %v9380_v2 }
  0xf9   : > { %v7624_v40 = vadd.f32 %v7623_v21, %v7622_v57  ;;  %v7735_v3 = vpop.f32.mrf.mxu1  ;;  %v8740_v57 = vld [vmem:[%s8951_s6 + $0x8c] sm:$0x1]  ;;  %v8741_v21 = vld [vmem:[%s8951_s6 + $0x88] sm:$0xf]  ;;  %v6536_v17 = vcombine.low %v795_v25, %v798_v41  ;;  %3842 = vmatprep.mubr.bf16.mxu1 %v9923_v62 }
  0xfa   : > { %v7220_v37 = vpack.c.bf16 %v2801_v61, %v2798_v15  ;;  %v3084_v51 = vadd.f32 %v2801_v61, %v2798_v15  ;;  %v3123_v14 = vmul.f32 %v2801_v61, %v2801_v61  ;;  %v7625_v26 = vpop.f32.mrf.mxu0  ;;  %v7736_v15 = vadd.f32 %v7735_v3, %v7734_v53 }
  0xfb   : > { %v1409_v43 = vrot.slane %v8740_v57, 5  ;;  %v7737_v10 = vpop.f32.mrf.mxu1  ;;  %v801_v35 = vrot.slane %v8741_v21, 5  ;;  %v6233_v53 = vrot.slane %v666_v56, 9 }
  0xfc   : > { %7221 = vst [vmem:[%s9920_s18] sm:$0xff] %v7220_v37   ;;  %v3154_v31 = vadd.f32 %v3123_v14, %v3122_v48  ;;  %v7626_v61 = vpop.f32.mrf.mxu0  ;;  %v2806_v13 = vadd.f32 %v7736_v15, %v7624_v40  ;;  %v1407_v48 = vsel %vm9600_vm5, %v6312_v4, %v1406_v7  ;;  %v6297_v37 = vld [vmem:[%s8951_s6 + $0x90] sm:$0xe]  ;;  %v8742_v14 = vld [vmem:[%s8951_s6 + $0x94] sm:$0xf]  ;;  %3682 = vmatmul.mubr.bf16.gmra.mxu0 %v9396_v44 }
  0xfd   : > { %v7627_v46 = vadd.f32 %v7626_v61, %v7625_v26  ;;  %v7738_v19 = vpop.f32.mrf.mxu1  ;;  %v1413_v22 = vrot.slane %v8742_v14, 5  ;;  %v1410_v26 = vsel %vm9600_vm5, %v1408_v49, %v1409_v43  ;;  %v803_v25 = vrot.slane %v801_v35, 4  ;;  %v8743_v61 = vld [vmem:[%s8951_s6 + $0x8c] sm:$0x1]  ;;  %v667_v49 = vld [vmem:[%s8951_s6 + $0x90] sm:$0xe]  ;;  %3689 = vmatprep.mubr.bf16.mxu0 %v6536_v17 }
  0xfe   : > { %v7628_v5 = vpop.f32.mrf.mxu0  ;;  %v3085_v34 = vadd.f32 %v3084_v51, %v2806_v13  ;;  %v3124_v3 = vmul.f32 %v2806_v13, %v2806_v13  ;;  %v7739_v40 = vadd.f32 %v7738_v19, %v7737_v10  ;;  %v804_v41 = vrot.slane %v8743_v61, 5  ;;  %v8744_v19 = vld [vmem:[%s8951_s6 + $0x98] sm:$0x1]  ;;  %v8745_v43 = vld [vmem:[%s8951_s6 + $0x94] sm:$0xf] }
  0xff   : > { %v6313_v57 = vrot.slane %v6297_v37, 9  ;;  %v9943_v21 = vcombine.low %v1407_v48, %v1410_v26  ;;  %v7740_v51 = vpop.f32.mrf.mxu1  ;;  %v1415_v10 = vrot.slane %v1413_v22, 4  ;;  %v1416_v14 = vrot.slane %v8744_v19, 5 }
 0x100   : > { %v7629_v15 = vpop.f32.mrf.mxu0  ;;  %v3155_v7 = vadd.f32 %v3154_v31, %v3124_v3  ;;  %v2809_v56 = vadd.f32 %v7739_v40, %v7627_v46  ;;  %v808_v62 = vrot.slane %v8745_v43, 5  ;;  %v802_v48 = vsel %vm9600_vm5, %v6233_v53, %v801_v35  ;;  %v6298_v3 = vld [vmem:[%s8951_s6 + $0x9c] sm:$0xe]  ;;  %3843 = vmatmul.mubr.bf16.gmra.mxu1 %v9407_v32  ;;  %v8747_v35 = vld [vmem:[%s8951_s6 + $0xa0] sm:$0xf] }
 0x101   : > { %11045 = vst [vmem:[#allocation33_spill] sm:$0xff] %v9943_v21  ;;  %v7630_v31 = vadd.f32 %v7629_v15, %v7628_v5  ;;  %v7741_v44 = vpop.f32.mrf.mxu1  ;;  %v805_v37 = vsel %vm9600_vm5, %v803_v25, %v804_v41  ;;  %v6234_v19 = vrot.slane %v667_v49, 9  ;;  %v1414_v5 = vsel %vm9600_vm5, %v6313_v57, %v1413_v22  ;;  %v8746_v15 = vld [vmem:[%s8951_s6 + $0x98] sm:$0x1]  ;;  %3850 = vmatprep.mubr.bf16.mxu1 %v9943_v21 }
 0x102   : > { %v7631_v4 = vpop.f32.mrf.mxu0  ;;  %v7225_v1 = vpack.c.bf16 %v2809_v56, %v2806_v13  ;;  %v3086_v38 = vadd.f32 %v3085_v34, %v2809_v56  ;;  %v3125_v61 = vmul.f32 %v2809_v56, %v2809_v56  ;;  %v7742_v26 = vadd.f32 %v7741_v44, %v7740_v51 }
 0x103   : > { %v7743_v13 = vpop.f32.mrf.mxu1  ;;  %v810_v34 = vrot.slane %v808_v62, 4  ;;  %v811_v56 = vrot.slane %v8746_v15, 5  ;;  %v1420_v53 = vrot.slane %v8747_v35, 5  ;;  %v6537_v41 = vcombine.low %v802_v48, %v805_v37  ;;  %v668_v15 = vld [vmem:[%s8951_s6 + $0x9c] sm:$0xe] }
 0x104   : > { %v7632_v46 = vpop.f32.mrf.mxu0  ;;  %7537 = vst [vmem:[%s9920_s18 + $0x8] sm:$0xff] %v7225_v1   ;;  %v3156_v40 = vadd.f32 %v3155_v7, %v3125_v61  ;;  %v2814_v25 = vadd.f32 %v7742_v26, %v7630_v31  ;;  %v1417_v7 = vsel %vm9600_vm5, %v1415_v10, %v1416_v14  ;;  %v6314_v43 = vrot.slane %v6298_v3, 9  ;;  %3690 = vmatmul.mubr.bf16.gmra.mxu0 %v9431_v16  ;;  %v8748_v48 = vld [vmem:[%s8951_s6 + $0xa4] sm:$0x1] }
 0x105   : > { %v7633_v1 = vadd.f32 %v7632_v46, %v7631_v4  ;;  %v7744_v51 = vpop.f32.mrf.mxu1  ;;  %v809_v44 = vsel %vm9600_vm5, %v6234_v19, %v808_v62  ;;  %v9966_v31 = vcombine.low %v1414_v5, %v1417_v7  ;;  %v812_v10 = vsel %vm9600_vm5, %v810_v34, %v811_v56  ;;  %3697 = vmatprep.mubr.bf16.mxu0 %v6537_v41  ;;  %v8749_v62 = vld [vmem:[%s8951_s6 + $0xa0] sm:$0xf]  ;;  %v8750_v41 = vld [vmem:[%s8951_s6 + $0xa4] sm:$0x1] }
 0x106   : > { %v7634_v17 = vpop.f32.mrf.mxu0  ;;  %v3087_v22 = vadd.f32 %v3086_v38, %v2814_v25  ;;  %v3126_v57 = vmul.f32 %v2814_v25, %v2814_v25  ;;  %v7745_v61 = vadd.f32 %v7744_v51, %v7743_v13  ;;  %v1422_v14 = vrot.slane %v1420_v53, 4 }
 0x107   : > { %11046 = vst [vmem:[#allocation34_spill] sm:$0xff] %v9966_v31  ;;  %v7746_v4 = vpop.f32.mrf.mxu1  ;;  %v1423_v38 = vrot.slane %v8748_v48, 5  ;;  %v815_v19 = vrot.slane %v8749_v62, 5  ;;  %v1421_v5 = vsel %vm9600_vm5, %v6314_v43, %v1420_v53  ;;  %v6235_v35 = vrot.slane %v668_v15, 9  ;;  %v6299_v48 = vld [vmem:[%s8951_s6 + $0xa8] sm:$0xe] }
 0x108   : > { %v7635_v49 = vpop.f32.mrf.mxu0  ;;  %v3157_v37 = vadd.f32 %v3156_v40, %v3126_v57  ;;  %v2817_v3 = vadd.f32 %v7745_v61, %v7633_v1  ;;  %3851 = vmatmul.mubr.bf16.gmra.mxu1 %v9443_v0  ;;  %v8751_v57 = vld [vmem:[%s8951_s6 + $0xac] sm:$0xf] }
 0x109   : > { %v7636_v26 = vadd.f32 %v7635_v49, %v7634_v17  ;;  %v7747_v16 = vpop.f32.mrf.mxu1  ;;  %v6538_v17 = vcombine.low %v809_v44, %v812_v10  ;;  %v1424_v1 = vsel %vm9600_vm5, %v1422_v14, %v1423_v38  ;;  %v818_v49 = vrot.slane %v8750_v41, 5  ;;  %3858 = vmatprep.mubr.bf16.mxu1 %v9966_v31 }
 0x10a   : > { %v7637_v46 = vpop.f32.mrf.mxu0  ;;  %v7230_v34 = vpack.c.bf16 %v2817_v3, %v2814_v25  ;;  %v3088_v56 = vadd.f32 %v3087_v22, %v2817_v3  ;;  %v3127_v7 = vmul.f32 %v2817_v3, %v2817_v3  ;;  %v7748_v51 = vadd.f32 %v7747_v16, %v7746_v4 }
 0x10b   : > { %v7749_v40 = vpop.f32.mrf.mxu1  ;;  %v1427_v61 = vrot.slane %v8751_v57, 5  ;;  %v817_v43 = vrot.slane %v815_v19, 4  ;;  %v6315_v4 = vrot.slane %v6299_v48, 9  ;;  %v9983_v38 = vcombine.low %v1421_v5, %v1424_v1 }
 0x10c   : > { %v7638_v13 = vpop.f32.mrf.mxu0  ;;  %7538 = vst [vmem:[%s9920_s18 + $0x10] sm:$0xff] %v7230_v34   ;;  %v3158_v62 = vadd.f32 %v3157_v37, %v3127_v7  ;;  %v2822_v53 = vadd.f32 %v7748_v51, %v7636_v26  ;;  %3698 = vmatmul.mubr.bf16.gmra.mxu0 %v9462_v27  ;;  %v816_v37 = vsel %vm9600_vm5, %v6235_v35, %v815_v19  ;;  %v8752_v26 = vld [vmem:[%s8951_s6 + $0xb0] sm:$0x1]  ;;  %v8753_v51 = vld [vmem:[%s8951_s6 + $0xac] sm:$0xf] }
 0x10d   : > { %v7639_v25 = vadd.f32 %v7638_v13, %v7637_v46  ;;  %v7750_v22 = vpop.f32.mrf.mxu1  ;;  %11047 = vst [vmem:[#allocation35_spill] sm:$0xff] %v9983_v38  ;;  %v1429_v16 = vrot.slane %v1427_v61, 4  ;;  %v1430_v46 = vrot.slane %v8752_v26, 5  ;;  %3705 = vmatprep.mubr.bf16.mxu0 %v6538_v17  ;;  %v819_v7 = vsel %vm9600_vm5, %v817_v43, %v818_v49 }
 0x10e   : > { %v7640_v15 = vpop.f32.mrf.mxu0  ;;  %v3089_v44 = vadd.f32 %v3088_v56, %v2822_v53  ;;  %v3128_v10 = vmul.f32 %v2822_v53, %v2822_v53  ;;  %v7751_v14 = vadd.f32 %v7750_v22, %v7749_v40  ;;  %v669_v56 = vld [vmem:[%s8951_s6 + $0xa8] sm:$0xe]  ;;  %v822_v27 = vrot.slane %v8753_v51, 5  ;;  %v8755_v22 = vld [vmem:[%s8951_s6 + $0xb8] sm:$0xf] }
 0x10f   : > { %v1428_v19 = vsel %vm9600_vm5, %v6315_v4, %v1427_v61  ;;  %v6539_v57 = vcombine.low %v816_v37, %v819_v7  ;;  %v6300_v4 = vld [vmem:[%s8951_s6 + $0xb4] sm:$0xe]  ;;  %v10006_v7 = vld [vmem:[%s8951_s6 + $0x1c] sm:$0xf] }
 0x110   : > { %v7641_v3 = vpop.f32.mrf.mxu0  ;;  %v3159_v13 = vadd.f32 %v3158_v62, %v3128_v10  ;;  %v2825_v34 = vadd.f32 %v7751_v14, %v7639_v25  ;;  %v7752_v5 = vpop.f32.mrf.mxu1  ;;  %3859 = vmatmul.mubr.bf16.gmra.mxu1 %v9479_v33  ;;  %v6236_v62 = vrot.slane %v669_v56, 9  ;;  %v8754_v25 = vld [vmem:[%s8951_s6 + $0xb0] sm:$0x1]  ;;  %v1434_v10 = vrot.slane %v8755_v22, 5 }
 0x111   : > { %v7642_v41 = vadd.f32 %v7641_v3, %v7640_v15  ;;  %v825_v43 = vrot.slane %v8754_v25, 5  ;;  %3866 = vmatprep.mubr.bf16.mxu1 %v9983_v38  ;;  %v824_v15 = vrot.slane %v822_v27, 4  ;;  %v8756_v25 = vld [vmem:[%s8951_s6 + $0xbc] sm:$0x1] }
 0x112   : > { %v7643_v48 = vpop.f32.mrf.mxu0  ;;  %v7235_v35 = vpack.c.bf16 %v2825_v34, %v2822_v53  ;;  %v3090_v40 = vadd.f32 %v3089_v44, %v2825_v34  ;;  %v3129_v1 = vmul.f32 %v2825_v34, %v2825_v34  ;;  %v7753_v17 = vpop.f32.mrf.mxu1  ;;  %v1431_v53 = vsel %vm9600_vm5, %v1429_v16, %v1430_v46  ;;  %v10003_v34 = vld [vmem:[%s8951_s6 + $0x18] sm:$0xf] }
 0x113   : > { %v7754_v61 = vadd.f32 %v7753_v17, %v7752_v5  ;;  %v10009_v56 = vcombine.low %v1428_v19, %v1431_v53  ;;  %v823_v16 = vsel %vm9600_vm5, %v6236_v62, %v822_v27  ;;  %v6316_v46 = vrot.slane %v6300_v4, 9 }
 0x114   : > { %v7644_v49 = vpop.f32.mrf.mxu0  ;;  %7539 = vst [vmem:[%s9920_s18 + $0x18] sm:$0xff] %v7235_v35   ;;  %v3160_v14 = vadd.f32 %v3159_v13, %v3129_v1  ;;  %v7755_v44 = vpop.f32.mrf.mxu1  ;;  %3706 = vmatmul.mubr.bf16.gmra.mxu0 %v9498_v9  ;;  %v1436_v5 = vrot.slane %v1434_v10, 4  ;;  %v1437_v9 = vrot.slane %v8756_v25, 5  ;;  %v1499_v19 = vshrl.u32 %v10003_v34, 16 }
 0x115   : > { %v2830_v37 = vadd.f32 %v7754_v61, %v7642_v41  ;;  %v7645_v26 = vadd.f32 %v7644_v49, %v7643_v48  ;;  %11048 = vst [vmem:[#allocation36_spill] sm:$0xff] %v10009_v56  ;;  %3713 = vmatprep.mubr.bf16.mxu0 %v6539_v57  ;;  %v826_v48 = vsel %vm9600_vm5, %v824_v15, %v825_v43  ;;  %v1502_v22 = vshll.u32 %v10003_v34, 16 }
 0x116   : > { %v7646_v3 = vpop.f32.mrf.mxu0  ;;  %v7756_v13 = vpop.f32.mrf.mxu1  ;;  %v1508_v61 = vshll.u32 %v10006_v7, 16  ;;  %v6540_v15 = vcombine.low %v823_v16, %v826_v48  ;;  %v1435_v4 = vsel %vm9600_vm5, %v6316_v46, %v1434_v10 }
 0x117   : > { %v3091_v35 = vadd.f32 %v3090_v40, %v2830_v37  ;;  %v3130_v1 = vmul.f32 %v2830_v37, %v2830_v37  ;;  %v7757_v41 = vadd.f32 %v7756_v13, %v7755_v44  ;;  %v1512_v40 = vshrl.u32 %v10006_v7, 16 }
 0x118   : > { %v7647_v51 = vpop.f32.mrf.mxu0  ;;  %v7758_v17 = vpop.f32.mrf.mxu1  ;;  %3867 = vmatmul.mubr.bf16.gmra.mxu1 %v9512_v54 }
 0x119   : > { %v3161_v27 = vadd.f32 %v3160_v14, %v3130_v1  ;;  %v2833_v62 = vadd.f32 %v7757_v41, %v7645_v26  ;;  %v7648_v53 = vadd.f32 %v7647_v51, %v7646_v3  ;;  %3874 = vmatprep.mubr.bf16.mxu1 %v10009_v56  ;;  %v1438_v26 = vsel %vm9600_vm5, %v1436_v5, %v1437_v9 }
 0x11a   : > { %v7649_v49 = vpop.f32.mrf.mxu0  ;;  %v7759_v57 = vpop.f32.mrf.mxu1  ;;  %v1501_v51 = vrot.slane %v1499_v19, 4  ;;  %v1504_v1 = vrot.slane %v1502_v22, 5  ;;  %v10026_v41 = vrot.slane %v1508_v61, 5  ;;  %v1514_v48 = vrot.slane %v1512_v40, 4  ;;  %v10037_v22 = vld [vmem:[%s8951_s6 + $0x28] sm:$0xf] }
 0x11b   : > { %v7240_v44 = vpack.c.bf16 %v2833_v62, %v2830_v37  ;;  %v3092_v13 = vadd.f32 %v3091_v35, %v2833_v62  ;;  %v3131_v25 = vmul.f32 %v2833_v62, %v2833_v62  ;;  %v7760_v14 = vadd.f32 %v7759_v57, %v7758_v17  ;;  %v6350_v35 = vld [vmem:[%s8951_s6 + $0x20] sm:$0x1]  ;;  %v10031_v62 = vld [vmem:[%s8951_s6 + $0x24] sm:$0xf] }
 0x11c   : > { %v7650_v43 = vpop.f32.mrf.mxu0  ;;  %v7761_v3 = vpop.f32.mrf.mxu1  ;;  %3714 = vmatmul.mubr.bf16.gmra.mxu0 %v9529_v45  ;;  %v10034_v9 = vcombine.low %v1435_v4, %v1438_v26  ;;  %v1505_v61 = vor.u32 %v1504_v1, %v1501_v51  ;;  %v6351_v4 = vld [vmem:[%s8951_s6 + $0x2c] sm:$0x1]  ;;  %v10048_v1 = vld [vmem:[%s8951_s6 + $0x30] sm:$0xf] }
 0x11d   : > { %7540 = vst [vmem:[%s9920_s18 + $0x20] sm:$0xff] %v7240_v44   ;;  %v3162_v16 = vadd.f32 %v3161_v27, %v3131_v25  ;;  %v2838_v10 = vadd.f32 %v7760_v14, %v7648_v53  ;;  %v7651_v46 = vadd.f32 %v7650_v43, %v7649_v49  ;;  %3721 = vmatprep.mubr.bf16.mxu0 %v6540_v15  ;;  %v1518_v49 = vshll.u32 %v6350_v35, 16 }
 0x11e   : > { %v7652_v37 = vpop.f32.mrf.mxu0  ;;  %v7762_v17 = vpop.f32.mrf.mxu1  ;;  %11049 = vst [vmem:[#allocation37_spill] sm:$0xff] %v10034_v9  ;;  %v1523_v27 = vshrl.u32 %v10031_v62, 16  ;;  %v1526_v53 = vshll.u32 %v10031_v62, 16  ;;  %v1515_v44 = vor.u32 %v1514_v48, %v10026_v41  ;;  %v1536_v25 = vshrl.u32 %v10037_v22, 16 }
 0x11f   : > { %v3093_v57 = vadd.f32 %v3092_v13, %v2838_v10  ;;  %v3132_v56 = vmul.f32 %v2838_v10, %v2838_v10  ;;  %v7763_v5 = vadd.f32 %v7762_v17, %v7761_v3  ;;  %v1532_v13 = vshll.u32 %v10037_v22, 16 }
 0x120   : > { %v7653_v19 = vpop.f32.mrf.mxu0  ;;  %3875 = vmatmul.mubr.bf16.gmra.mxu1 %v9545_v24  ;;  %v7764_v15 = vpop.f32.mrf.mxu1  ;;  %v1520_v35 = vrot.slane %v1518_v49, 5  ;;  %v1525_v48 = vrot.slane %v1523_v27, 4  ;;  %v1528_v17 = vrot.slane %v1526_v53, 5  ;;  %v1516_v31 = vrot.slane %v1515_v44, 4 }
 0x121   : > { %v3163_v40 = vadd.f32 %v3162_v16, %v3132_v56  ;;  %v2841_v45 = vadd.f32 %v7763_v5, %v7651_v46  ;;  %3882 = vmatprep.mubr.bf16.mxu1 %v10034_v9  ;;  %v7654_v56 = vadd.f32 %v7653_v19, %v7652_v37  ;;  %v1506_v46 = vrot.slane %v1505_v61, 4 }
 0x122   : > { %v7655_v43 = vpop.f32.mrf.mxu0  ;;  %v7765_v16 = vpop.f32.mrf.mxu1  ;;  %v1542_v21 = vshll.u32 %v6351_v4, 16  ;;  %v10055_v19 = vrot.slane %v1532_v13, 5  ;;  %v1547_v61 = vshrl.u32 %v10048_v1, 16  ;;  %v1550_v49 = vshll.u32 %v10048_v1, 16 }
 0x123   : > { %v7245_v14 = vpack.c.bf16 %v2841_v45, %v2838_v10  ;;  %v3094_v3 = vadd.f32 %v3093_v57, %v2841_v45  ;;  %v3133_v26 = vmul.f32 %v2841_v45, %v2841_v45  ;;  %v7766_v38 = vadd.f32 %v7765_v16, %v7764_v15  ;;  %v10052_v10 = vld [vmem:[%s8951_s6 + $0x34] sm:$0xf] }
 0x124   : > { %v7656_v51 = vpop.f32.mrf.mxu0  ;;  %3722 = vmatmul.mubr.bf16.gmra.mxu0 %v9567_v18  ;;  %v7767_v57 = vpop.f32.mrf.mxu1  ;;  %v1538_v45 = vrot.slane %v1536_v25, 4  ;;  %v1511_v18 = vsel %vm8981_vm2, %v1506_v46, %v10026_v41  ;;  %v1529_v4 = vor.u32 %v1528_v17, %v1525_v48  ;;  %v1556_v13 = vshll.u32 %v10052_v10, 16 }
 0x125   : > { %7541 = vst [vmem:[%s9920_s18 + $0x28] sm:$0xff] %v7245_v14   ;;  %v3164_v5 = vadd.f32 %v3163_v40, %v3133_v26  ;;  %v2846_v27 = vadd.f32 %v7766_v38, %v7654_v56  ;;  %v7657_v53 = vadd.f32 %v7656_v51, %v7655_v43  ;;  %v11050_v40 = vcombine.low %v9857_v42, %v9870_v23  ;;  %v10068_v14 = vld [vmem:[%s8951_s6 + $0x3c] sm:$0xf] }
 0x126   : > { %v7658_v37 = vpop.f32.mrf.mxu0  ;;  %v7768_v44 = vpop.f32.mrf.mxu1  ;;  %v1560_v25 = vshrl.u32 %v10052_v10, 16  ;;  %v1521_v42 = vsel %vm8981_vm2, %v1516_v31, %v1520_v35  ;;  %v1539_v41 = vor.u32 %v1538_v45, %v10055_v19  ;;  %v10074_v51 = vrot.slane %v1542_v21, 5 }
 0x127   : > { %3729 = vmatprep.mubr.bf16.mxu0 %v11050_v40  ;;  %v3095_v38 = vadd.f32 %v3094_v3, %v2846_v27  ;;  %v3134_v43 = vmul.f32 %v2846_v27, %v2846_v27  ;;  %v7769_v26 = vadd.f32 %v7768_v44, %v7767_v57  ;;  %v1549_v16 = vrot.slane %v1547_v61, 4  ;;  %v6352_v57 = vld [vmem:[%s8951_s6 + $0x38] sm:$0x1] }
 0x128   : > { %v7659_v15 = vpop.f32.mrf.mxu0  ;;  %3883 = vmatmul.mubr.bf16.gmra.mxu1 %v9581_v50  ;;  %v7770_v23 = vpop.f32.mrf.mxu1  ;;  %v1552_v46 = vrot.slane %v1550_v49, 5  ;;  %v1571_v40 = vshrl.u32 %v10068_v14, 16  ;;  %v10079_v44 = vcombine.low %v1511_v18, %v1521_v42  ;;  %v10081_v9 = vrot.slane %v1556_v13, 5 }
 0x129   : > { %v3165_v48 = vadd.f32 %v3164_v5, %v3134_v43  ;;  %v2849_v17 = vadd.f32 %v7769_v26, %v7657_v53  ;;  %3890 = vmatprep.mubr.bf16.mxu1 %v9877_v11  ;;  %v7660_v3 = vadd.f32 %v7659_v15, %v7658_v37  ;;  %v1562_v21 = vrot.slane %v1560_v25, 4  ;;  %v10085_v43 = vld [vmem:[%s8951_s6 + $0x40] sm:$0xf] }
 0x12a   : > { %v7661_v56 = vpop.f32.mrf.mxu0  ;;  %v7771_v31 = vpop.f32.mrf.mxu1  ;;  %v1574_v45 = vshll.u32 %v10068_v14, 16  ;;  %v1530_v15 = vrot.slane %v1529_v4, 4  ;;  %v1540_v26 = vrot.slane %v1539_v41, 4  ;;  %v1553_v11 = vor.u32 %v1552_v46, %v1549_v16 }
 0x12b   : > { %v7250_v61 = vpack.c.bf16 %v2849_v17, %v2846_v27  ;;  %v3096_v5 = vadd.f32 %v3095_v38, %v2849_v17  ;;  %v3135_v49 = vmul.f32 %v2849_v17, %v2849_v17  ;;  %v7772_v53 = vadd.f32 %v7771_v31, %v7770_v23 }
 0x12c   : > { %v7662_v35 = vpop.f32.mrf.mxu0  ;;  %3730 = vmatmul.mubr.bf16.gmra.mxu0 %v9598_v39  ;;  %v7773_v37 = vpop.f32.mrf.mxu1  ;;  %v1566_v47 = vshll.u32 %v6352_v57, 16  ;;  %v1573_v25 = vrot.slane %v1571_v40, 4  ;;  %v1563_v23 = vor.u32 %v1562_v21, %v10081_v9  ;;  %v1576_v17 = vrot.slane %v1574_v45, 5  ;;  %v8652_v40 = vld [vmem:[%s10965_s1 + $0x338] sm:$0xff]  }
 0x12d   : > { %7542 = vst [vmem:[%s9920_s18 + $0x30] sm:$0xff] %v7250_v61   ;;  %v3166_v18 = vadd.f32 %v3165_v48, %v3135_v49  ;;  %v2854_v13 = vadd.f32 %v7772_v53, %v7660_v3  ;;  %v7663_v42 = vadd.f32 %v7662_v35, %v7661_v56  ;;  %4601 = vmatprep.mubr.bf16.mxu0 %v9020_v29  ;;  %v1580_v31 = vshll.u32 %v10085_v43, 16 }
 0x12e   : > { %v7774_v27 = vpop.f32.mrf.mxu1  ;;  %v7664_v38 = vpop.f32.mrf.mxu0  ;;  %v1584_v39 = vshrl.u32 %v10085_v43, 16  ;;  %v1535_v56 = vsel %vm8981_vm2, %v1530_v15, %v10055_v19  ;;  %v1545_v48 = vsel %vm8981_vm2, %v1540_v26, %v10074_v51  ;;  %v1554_v35 = vrot.slane %v1553_v11, 4  ;;  %v8656_v19 = vld [vmem:[%s10965_s1 + $0x370] sm:$0xff]   ;;  %v6353_v11 = vld [vmem:[%s8951_s6 + $0x44] sm:$0x1] }
 0x12f   : > { %v3097_v4 = vadd.f32 %v3096_v5, %v2854_v13  ;;  %v3136_v41 = vmul.f32 %v2854_v13, %v2854_v13  ;;  %v7775_v16 = vadd.f32 %v7774_v27, %v7773_v37  ;;  %v1568_v21 = vrot.slane %v1566_v47, 5 }
 0x130   : > { %3891 = vmatmul.mubr.bf16.gmra.mxu1 %v9618_v6  ;;  %v7665_v46 = vpop.f32.mrf.mxu0  ;;  %v1564_v5 = vrot.slane %v1563_v23, 4  ;;  %v1577_v51 = vor.u32 %v1576_v17, %v1573_v25  ;;  %v10107_v49 = vrot.slane %v1580_v31, 5  ;;  %v1586_v53 = vrot.slane %v1584_v39, 4  ;;  %v10124_v31 = vld [vmem:[%s8951_s6 + $0x4c] sm:$0xf]  ;;  %v8657_v39 = vld [vmem:[%s10965_s1 + $0x3f0] sm:$0xff]  }
 0x131   : > { %v3167_v3 = vadd.f32 %v3166_v18, %v3136_v41  ;;  %v2857_v57 = vadd.f32 %v7775_v16, %v7663_v42  ;;  %4762 = vmatprep.mubr.bf16.mxu1 %v10079_v44  ;;  %v7666_v18 = vadd.f32 %v7665_v46, %v7664_v38  ;;  %v6718_v47 = vcombine.low %v10003_v34, %v10006_v7  ;;  %v10121_v38 = vld [vmem:[%s8951_s6 + $0x48] sm:$0xf] }
 0x132   : > { %v7776_v45 = vpop.f32.mrf.mxu1  ;;  %v7667_v61 = vpop.f32.mrf.mxu0  ;;  %v10118_v17 = vcombine.low %v1535_v56, %v1545_v48  ;;  %v1559_v7 = vsel %vm8981_vm2, %v1554_v35, %v10081_v9  ;;  %v10135_v41 = vrot.slane %v1577_v51, 4  ;;  %v1590_v16 = vshll.u32 %v6353_v11, 16  ;;  %v8662_v9 = vld [vmem:[%s10965_s1 + $0x368] sm:$0xff]   ;;  %v8659_v11 = vld [vmem:[%s10965_s1 + $0x3b0] sm:$0xff]  }
 0x133   : > { %v7255_v37 = vpack.c.bf16 %v2857_v57, %v2854_v13  ;;  %v3098_v15 = vadd.f32 %v3097_v4, %v2857_v57  ;;  %v3137_v26 = vmul.f32 %v2857_v57, %v2857_v57  ;;  %v8653_v13 = vld [vmem:[%s10965_s1 + $0x3b8] sm:$0xff]   ;;  %v8658_v4 = vld [vmem:[%s10965_s1 + $0x330] sm:$0xff]   ;;  %v1569_v48 = vsel %vm8981_vm2, %v1564_v5, %v1568_v21 }
 0x134   : > { %4602 = vmatmul.mubr.bf16.vlgmr.msra.gmra.mxu0 %v8997_v8  ;;  %v7777_v42 = vpop.f32.mrf.mxu1  ;;  %v7668_v27 = vpop.f32.mrf.mxu0  ;;  %11051 = vst [vmem:[#allocation38_spill] sm:$0xff] %v10118_v17  ;;  %v1595_v35 = vshrl.u32 %v10121_v38, 16 }
 0x135   : > { %7543 = vst [vmem:[%s9920_s18 + $0x38] sm:$0xff] %v7255_v37   ;;  %v3168_v23 = vadd.f32 %v3167_v3, %v3137_v26  ;;  %8273 = vmatpush3.bf16.msra.mxu0 %v8652_v40  ;;  %v7778_v25 = vadd.f32 %v7777_v42, %v7776_v45  ;;  %4609 = vmatprep.mubr.bf16.mxu0 %v9071_v20  ;;  %v1598_v45 = vshll.u32 %v10121_v38, 16 }
 0x136   : > { %v7779_v34 = vpop.f32.mrf.mxu1  ;;  %v7670_v8 = vpop.f32.mrf.mxu0  ;;  %8274 = vmatprep.subr.bf16.mxu0 %v8656_v19  ;;  %v7669_v56 = vadd.f32 %v7668_v27, %v7667_v61  ;;  %v1587_v3 = vor.u32 %v1586_v53, %v10107_v49  ;;  %v1604_v19 = vshll.u32 %v10124_v31, 16  ;;  %v1608_v61 = vshrl.u32 %v10124_v31, 16 }
 0x137   : > { %v2862_v46 = vadd.f32 %v7778_v25, %v7666_v18  ;;  %v6719_v37 = vcombine.low %v10031_v62, %v10037_v22  ;;  %v10150_v18 = vcombine.low %v1559_v7, %v1569_v48  ;;  %v8663_v62 = vld [vmem:[%s10965_s1 + $0x3e8] sm:$0xff]   ;;  %v10171_v7 = vld [vmem:[%s8951_s6 + $0x58] sm:$0xf] }
 0x138   : > { %4763 = vmatmul.mubr.bf16.vlgmr.msra.gmra.mxu1 %v6718_v47  ;;  %v7780_v57 = vpop.f32.mrf.mxu1  ;;  %v7671_v40 = vpop.f32.mrf.mxu0  ;;  %v10159_v47 = vrot.slane %v1590_v16, 5  ;;  %v8664_v22 = vld [vmem:[%s10965_s1 + $0x328] sm:$0xff]   ;;  %v1588_v25 = vrot.slane %v1587_v3, 4 }
 0x139   : > { %8385 = vmatpush3.bf16.msra.mxu1 %v8653_v13  ;;  %v3099_v51 = vadd.f32 %v3098_v15, %v2862_v46  ;;  %v3138_v21 = vmul.f32 %v2862_v46, %v2862_v46  ;;  %v7781_v5 = vadd.f32 %v7780_v57, %v7779_v34  ;;  %4770 = vmatprep.mubr.bf16.mxu1 %v10118_v17  ;;  %v10168_v34 = vld [vmem:[%s8951_s6 + $0x54] sm:$0xf]  ;;  %v1597_v57 = vrot.slane %v1595_v35, 4 }
 0x13a   : > { %v7782_v53 = vpop.f32.mrf.mxu1  ;;  %v7673_v26 = vpop.f32.mrf.mxu0  ;;  %8386 = vmatprep.subr.bf16.mxu1 %v8657_v39  ;;  %8275 = vmatpush3.bf16.msra.mxu0 %v8658_v4  ;;  %v7672_v13 = vadd.f32 %v7671_v40, %v7670_v8  ;;  %v8668_v39 = vld [vmem:[%s10965_s1 + $0x360] sm:$0xff]   ;;  %v11052_v4 = vld [vmem:[#allocation2_spill] sm:$0xff]  ;;  %v1600_v15 = vrot.slane %v1598_v45, 5  ;;  %v1610_v8 = vrot.slane %v1608_v61, 4  ;;  %v1619_v35 = vshrl.u32 %v10168_v34, 16 }
 0x13b   : > { %v3169_v42 = vadd.f32 %v3168_v23, %v3138_v21  ;;  %v2865_v27 = vadd.f32 %v7781_v5, %v7669_v56  ;;  %8276 = vmatprep.subr.bf16.mxu0 %v8662_v9  ;;  %v10177_v23 = vrot.slane %v1604_v19, 5  ;;  %v6354_v21 = vld [vmem:[%s8951_s6 + $0x50] sm:$0x1]  ;;  %v1622_v45 = vshll.u32 %v10168_v34, 16  ;;  %v8670_v61 = vld [vmem:[%s10965_s1 + $0x320] sm:$0xff]  }
 0x13c   : > { %4610 = vmatmul.mubr.bf16.gmra.mxu0 %v11052_v4  ;;  %v7783_v16 = vpop.f32.mrf.mxu1  ;;  %v7674_v48 = vpop.f32.mrf.mxu0  ;;  %v8665_v4 = vld [vmem:[%s10965_s1 + $0x3a8] sm:$0xff]   ;;  %v1628_v19 = vshll.u32 %v10171_v7, 16  ;;  %v1621_v17 = vrot.slane %v1619_v35, 4  ;;  %v11054_v35 = vld [vmem:[#allocation4_spill] sm:$0xff] }
 0x13d   : > { %v7260_v56 = vpack.c.bf16 %v2865_v27, %v2862_v46  ;;  %v3100_v3 = vadd.f32 %v3099_v51, %v2865_v27  ;;  %v3139_v9 = vmul.f32 %v2865_v27, %v2865_v27  ;;  %v7784_v40 = vadd.f32 %v7783_v16, %v7782_v53  ;;  %4617 = vmatprep.mubr.bf16.mxu0 %v9119_v12  ;;  %v8669_v27 = vld [vmem:[%s10965_s1 + $0x3e0] sm:$0xff]   ;;  %v8674_v16 = vld [vmem:[%s10965_s1 + $0x358] sm:$0xff]  }
 0x13e   : > { %v7785_v5 = vpop.f32.mrf.mxu1  ;;  %8387 = vmatpush3.bf16.msra.mxu1 %v8659_v11  ;;  %8277 = vmatpush3.bf16.msra.mxu0 %v8664_v22  ;;  %v1632_v46 = vshrl.u32 %v10171_v7, 16  ;;  %v7675_v11 = vadd.f32 %v7674_v48, %v7673_v26  ;;  %v1611_v26 = vor.u32 %v1610_v8, %v10177_v23  ;;  %v1624_v28 = vrot.slane %v1622_v45, 5 }
 0x13f   : > { %7544 = vst [vmem:[%s9920_s18 + $0x40] sm:$0xff] %v7260_v56   ;;  %v3170_v51 = vadd.f32 %v3169_v42, %v3139_v9  ;;  %v2870_v53 = vadd.f32 %v7784_v40, %v7672_v13  ;;  %v7676_v22 = vpop.f32.mrf.mxu0  ;;  %8388 = vmatprep.subr.bf16.mxu1 %v8663_v62  ;;  %8278 = vmatprep.subr.bf16.mxu0 %v8668_v39  ;;  %v1614_v62 = vshll.u32 %v6354_v21, 16  ;;  %v10206_v20 = vrot.slane %v1628_v19, 5  ;;  %v8675_v21 = vld [vmem:[%s10965_s1 + $0x3d8] sm:$0xff]  }
 0x140   : > { %4771 = vmatmul.mubr.bf16.gmra.mxu1 %v6719_v37  ;;  %v7786_v12 = vpop.f32.mrf.mxu1  ;;  %v1593_v42 = vsel %vm8981_vm2, %v1588_v25, %v10159_v47  ;;  %v1601_v13 = vor.u32 %v1600_v15, %v1597_v57  ;;  %v6720_v9 = vcombine.low %v10048_v1, %v10052_v10  ;;  %v6355_v37 = vld [vmem:[%s8951_s6 + $0x5c] sm:$0x1]  ;;  %v1634_v15 = vrot.slane %v1632_v46, 4  ;;  %v8671_v47 = vld [vmem:[%s10965_s1 + $0x3a0] sm:$0xff]  }
 0x141   : > { %v3101_v48 = vadd.f32 %v3100_v3, %v2870_v53  ;;  %v3140_v39 = vmul.f32 %v2870_v53, %v2870_v53  ;;  %v7787_v56 = vadd.f32 %v7786_v12, %v7785_v5  ;;  %4778 = vmatprep.mubr.bf16.mxu1 %v10150_v18  ;;  %v7677_v40 = vpop.f32.mrf.mxu0  ;;  %v8676_v12 = vld [vmem:[%s10965_s1 + $0x318] sm:$0xff]   ;;  %v11053_v10 = vsel %vm8981_vm2, %v10135_v41, %v10107_v49  ;;  %v10222_v3 = vld [vmem:[%s8951_s6 + $0x60] sm:$0xf]  ;;  %v8680_v5 = vld [vmem:[%s10965_s1 + $0x350] sm:$0xff]  }
 0x142   : > { %8389 = vmatpush3.bf16.msra.mxu1 %v8665_v4  ;;  %8279 = vmatpush3.bf16.msra.mxu0 %v8670_v61  ;;  %v10219_v8 = vcombine.low %v11053_v10, %v1593_v42  ;;  %v10231_v45 = vrot.slane %v1601_v13, 4  ;;  %v10233_v49 = vrot.slane %v1611_v26, 4  ;;  %v10235_v41 = vrot.slane %v1614_v62, 5 }
 0x143   : > { %v3171_v25 = vadd.f32 %v3170_v51, %v3140_v39  ;;  %v2873_v57 = vadd.f32 %v7787_v56, %v7675_v11  ;;  %v7679_v1 = vpop.f32.mrf.mxu0  ;;  %8390 = vmatprep.subr.bf16.mxu1 %v8669_v27  ;;  %8280 = vmatprep.subr.bf16.mxu0 %v8674_v16  ;;  %v7788_v4 = vpop.f32.mrf.mxu1  ;;  %v1638_v19 = vshll.u32 %v6355_v37, 16  ;;  %v7678_v11 = vadd.f32 %v7677_v40, %v7676_v22  ;;  %v10239_v16 = vld [vmem:[%s8951_s6 + $0x64] sm:$0xf]  ;;  %v8682_v22 = vld [vmem:[%s10965_s1 + $0x310] sm:$0xff]  }
 0x144   : > { %4618 = vmatmul.mubr.bf16.gmra.mxu0 %v11054_v35  ;;  %v1625_v39 = vor.u32 %v1624_v28, %v1621_v17  ;;  %v1635_v13 = vor.u32 %v1634_v15, %v10206_v20  ;;  %v1643_v26 = vshrl.u32 %v10222_v3, 16  ;;  %v1646_v62 = vshll.u32 %v10222_v3, 16  ;;  %v8681_v28 = vld [vmem:[%s10965_s1 + $0x3d0] sm:$0xff]  }
 0x145   : > { %v7265_v46 = vpack.c.bf16 %v2873_v57, %v2870_v53  ;;  %v3102_v61 = vadd.f32 %v3101_v48, %v2873_v57  ;;  %v3141_v51 = vmul.f32 %v2873_v57, %v2873_v57  ;;  %v7680_v27 = vpop.f32.mrf.mxu0  ;;  %4625 = vmatprep.mubr.bf16.mxu0 %v9161_v60  ;;  %v7789_v42 = vpop.f32.mrf.mxu1  ;;  %v8677_v53 = vld [vmem:[%s10965_s1 + $0x398] sm:$0xff]   ;;  %v1607_v37 = vsel %vm8981_vm2, %v10231_v45, %v10177_v23 }
 0x146   : > { %8391 = vmatpush3.bf16.msra.mxu1 %v8671_v47  ;;  %8281 = vmatpush3.bf16.msra.mxu0 %v8676_v12  ;;  %v7790_v56 = vadd.f32 %v7789_v42, %v7788_v4  ;;  %v1652_v15 = vshll.u32 %v10239_v16, 16  ;;  %v1656_v47 = vshrl.u32 %v10239_v16, 16  ;;  %v8686_v12 = vld [vmem:[%s10965_s1 + $0x348] sm:$0xff]   ;;  %v7681_v57 = vadd.f32 %v7680_v27, %v7679_v1  ;;  %v8683_v1 = vld [vmem:[%s10965_s1 + $0x390] sm:$0xff]  }
 0x147   : > { %7545 = vst [vmem:[%s9920_s18 + $0x48] sm:$0xff] %v7265_v46   ;;  %v3172_v48 = vadd.f32 %v3171_v25, %v3141_v51  ;;  %8392 = vmatprep.subr.bf16.mxu1 %v8675_v21  ;;  %8282 = vmatprep.subr.bf16.mxu0 %v8680_v5  ;;  %v7791_v17 = vpop.f32.mrf.mxu1  ;;  %v10268_v10 = vrot.slane %v1638_v19, 5  ;;  %v1626_v5 = vrot.slane %v1625_v39, 4  ;;  %v1636_v4 = vrot.slane %v1635_v13, 4  ;;  %v10281_v51 = vld [vmem:[%s8951_s6 + $0x68] sm:$0x1] }
 0x148   : > { %4779 = vmatmul.mubr.bf16.gmra.mxu1 %v6720_v9  ;;  %v7682_v40 = vpop.f32.mrf.mxu0  ;;  %v2878_v25 = vadd.f32 %v7790_v56, %v7678_v11  ;;  %v1617_v9 = vsel %vm8981_vm2, %v10233_v49, %v10235_v41  ;;  %v10270_v35 = vrot.slane %v1643_v26, 4  ;;  %v10272_v45 = vrot.slane %v1646_v62, 5  ;;  %v8688_v49 = vld [vmem:[%s10965_s1 + $0x308] sm:$0xff]   ;;  %v11055_v42 = vld [vmem:[#allocation6_spill] sm:$0xff]  ;;  %v8692_v62 = vld [vmem:[%s10965_s1 + $0x340] sm:$0xff]  }
 0x149   : > { %4786 = vmatprep.mubr.bf16.mxu1 %v10219_v8  ;;  %v7792_v23 = vpop.f32.mrf.mxu1  ;;  %v8687_v11 = vld [vmem:[%s10965_s1 + $0x3c8] sm:$0xff]   ;;  %v6721_v39 = vcombine.low %v10068_v14, %v10085_v43  ;;  %v10289_v26 = vrot.slane %v1652_v15, 5  ;;  %v1631_v15 = vsel %vm8981_vm2, %v1626_v5, %v10206_v20  ;;  %v8694_v20 = vld [vmem:[%s10965_s1 + $0x300] sm:$0xff]  }
 0x14a   : > { %v7683_v21 = vpop.f32.mrf.mxu0  ;;  %8393 = vmatpush3.bf16.msra.mxu1 %v8677_v53  ;;  %8283 = vmatpush3.bf16.msra.mxu0 %v8682_v22  ;;  %v3103_v41 = vadd.f32 %v3102_v61, %v2878_v25  ;;  %v3142_v19 = vmul.f32 %v2878_v25, %v2878_v25  ;;  %v7793_v46 = vadd.f32 %v7792_v23, %v7791_v17  ;;  %v1658_v61 = vrot.slane %v1656_v47, 4  ;;  %v10298_v17 = vld [vmem:[%s8951_s6 + $0x6c] sm:$0xf]  ;;  %v10301_v23 = vld [vmem:[%s8951_s6 + $0x70] sm:$0xf] }
 0x14b   : > { %8394 = vmatprep.subr.bf16.mxu1 %v8681_v28  ;;  %v7794_v27 = vpop.f32.mrf.mxu1  ;;  %8284 = vmatprep.subr.bf16.mxu0 %v8686_v12  ;;  %v7684_v56 = vadd.f32 %v7683_v21, %v7682_v40  ;;  %v10295_v28 = vcombine.low %v1607_v37, %v1617_v9  ;;  %v1649_v40 = vor.u32 %v10272_v45, %v10270_v35  ;;  %v1662_v37 = vshll.u32 %v10281_v51, 16  ;;  %v8689_v47 = vld [vmem:[%s10965_s1 + $0x388] sm:$0xff]   ;;  %v8693_v21 = vld [vmem:[%s10965_s1 + $0x3c0] sm:$0xff]  }
 0x14c   : > { %4626 = vmatmul.mubr.bf16.gmra.mxu0 %v11055_v42  ;;  %v7685_v13 = vpop.f32.mrf.mxu0  ;;  %v3173_v53 = vadd.f32 %v3172_v48, %v3142_v19  ;;  %v2881_v22 = vadd.f32 %v7793_v46, %v7681_v57  ;;  %v1641_v48 = vsel %vm8981_vm2, %v1636_v4, %v10268_v10  ;;  %v1659_v4 = vor.u32 %v1658_v61, %v10289_v26  ;;  %v8695_v42 = vld [vmem:[%s10965_s1 + $0x380] sm:$0xff]  }
 0x14d   : > { %4633 = vmatprep.mubr.bf16.mxu0 %v9209_v59  ;;  %v7795_v14 = vpop.f32.mrf.mxu1  ;;  %v1667_v35 = vshrl.u32 %v10298_v17, 16  ;;  %v1670_v45 = vshll.u32 %v10298_v17, 16  ;;  %v1680_v19 = vshrl.u32 %v10301_v23, 16 }
 0x14e   : > { %v7686_v43 = vpop.f32.mrf.mxu0  ;;  %8395 = vmatpush3.bf16.msra.mxu1 %v8683_v1  ;;  %8285 = vmatpush3.bf16.msra.mxu0 %v8688_v49  ;;  %v7270_v12 = vpack.c.bf16 %v2881_v22, %v2878_v25  ;;  %v3104_v57 = vadd.f32 %v3103_v41, %v2881_v22  ;;  %v3143_v9 = vmul.f32 %v2881_v22, %v2881_v22  ;;  %v1676_v1 = vshll.u32 %v10301_v23, 16  ;;  %v10339_v22 = vld [vmem:[%s8951_s6 + $0x7c] sm:$0xf] }
 0x14f   : > { %v7796_v10 = vadd.f32 %v7795_v14, %v7794_v27  ;;  %8396 = vmatprep.subr.bf16.mxu1 %v8687_v11  ;;  %v7797_v5 = vpop.f32.mrf.mxu1  ;;  %8286 = vmatprep.subr.bf16.mxu0 %v8692_v62  ;;  %v7687_v41 = vadd.f32 %v7686_v43, %v7685_v13  ;;  %v6722_v11 = vcombine.low %v10121_v38, %v10124_v31  ;;  %v1650_v62 = vrot.slane %v1649_v40, 4 }
 0x150   : > { %4787 = vmatmul.mubr.bf16.gmra.mxu1 %v6721_v39  ;;  %7546 = vst [vmem:[%s9920_s18 + $0x50] sm:$0xff] %v7270_v12   ;;  %v3174_v25 = vadd.f32 %v3173_v53, %v3143_v9  ;;  %v10330_v27 = vcombine.low %v1631_v15, %v1641_v48  ;;  %v10336_v53 = vld [vmem:[%s8951_s6 + $0x78] sm:$0xf]  ;;  %v1660_v31 = vrot.slane %v1659_v4, 4  ;;  %v1664_v14 = vrot.slane %v1662_v37, 5 }
 0x151   : > { %v2886_v49 = vadd.f32 %v7796_v10, %v7684_v56  ;;  %4794 = vmatprep.mubr.bf16.mxu1 %v10295_v28  ;;  %v7798_v46 = vpop.f32.mrf.mxu1  ;;  %v7688_v51 = vpop.f32.mrf.mxu0  ;;  %v11056_v56 = vld [vmem:[#allocation7_spill] sm:$0xff]  ;;  %v1669_v43 = vrot.slane %v1667_v35, 4  ;;  %v1672_v15 = vrot.slane %v1670_v45, 5  ;;  %v1682_v40 = vrot.slane %v1680_v19, 4  ;;  %v6357_v9 = vld [vmem:[%s8951_s6 + $0x74] sm:$0x1] }
 0x152   : > { %8397 = vmatpush3.bf16.msra.mxu1 %v8689_v47  ;;  %8287 = vmatpush3.bf16.msra.mxu0 %v8694_v20  ;;  %v7799_v13 = vadd.f32 %v7798_v46, %v7797_v5  ;;  %v10343_v20 = vrot.slane %v1676_v1, 5  ;;  %v1691_v10 = vshrl.u32 %v10336_v53, 16  ;;  %v1700_v5 = vshll.u32 %v10339_v22, 16 }
 0x153   : > { %v3105_v39 = vadd.f32 %v3104_v57, %v2886_v49  ;;  %v3144_v61 = vmul.f32 %v2886_v49, %v2886_v49  ;;  %8398 = vmatprep.subr.bf16.mxu1 %v8693_v21  ;;  %v7689_v38 = vpop.f32.mrf.mxu0  ;;  %v1694_v21 = vshll.u32 %v10336_v53, 16  ;;  %v1704_v37 = vshrl.u32 %v10339_v22, 16 }
 0x154   : > { %4634 = vmatmul.mubr.bf16.gmra.mxu0 %v11056_v56  ;;  %v2889_v47 = vadd.f32 %v7799_v13, %v7687_v41  ;;  %v1655_v19 = vsel %vm8981_vm2, %v1650_v62, %v10289_v26  ;;  %v1693_v56 = vrot.slane %v1691_v10, 4  ;;  %v6358_v26 = vld [vmem:[%s8951_s6 + $0x80] sm:$0x1]  ;;  %v10359_v62 = vrot.slane %v1700_v5, 5  ;;  %v10373_v5 = vld [vmem:[%s8951_s6 + $0x88] sm:$0xf] }
 0x155   : > { %v3175_v48 = vadd.f32 %v3174_v25, %v3144_v61  ;;  %4641 = vmatprep.mubr.bf16.mxu0 %v9257_v52  ;;  %v7800_v12 = vpop.f32.mrf.mxu1  ;;  %v7691_v57 = vpop.f32.mrf.mxu0  ;;  %v7690_v25 = vadd.f32 %v7689_v38, %v7688_v51  ;;  %v1673_v51 = vor.u32 %v1672_v15, %v1669_v43  ;;  %v1696_v38 = vrot.slane %v1694_v21, 5  ;;  %v10370_v21 = vld [vmem:[%s8951_s6 + $0x84] sm:$0xf] }
 0x156   : > { %8399 = vmatpush3.bf16.msra.mxu1 %v8695_v42  ;;  %v7275_v4 = vpack.c.bf16 %v2889_v47, %v2886_v49  ;;  %v3106_v35 = vadd.f32 %v3105_v39, %v2889_v47  ;;  %v3145_v45 = vmul.f32 %v2889_v47, %v2889_v47  ;;  %v1665_v42 = vsel %vm8981_vm2, %v1660_v31, %v1664_v14 }
 0x157   : > { %v7801_v1 = vpop.f32.mrf.mxu1  ;;  %v7692_v41 = vpop.f32.mrf.mxu0  ;;  %v1686_v49 = vshll.u32 %v6357_v9, 16  ;;  %v6723_v31 = vcombine.low %v10168_v34, %v10171_v7  ;;  %v10364_v43 = vcombine.low %v1655_v19, %v1665_v42  ;;  %v6724_v15 = vcombine.low %v10222_v3, %v10239_v16  ;;  %v6360_v3 = vld [vmem:[%s8951_s6 + $0x98] sm:$0x1] }
 0x158   : > { %4795 = vmatmul.mubr.bf16.gmra.mxu1 %v6722_v11  ;;  %7547 = vst [vmem:[%s9920_s18 + $0x58] sm:$0xff] %v7275_v4   ;;  %v3176_v46 = vadd.f32 %v3175_v48, %v3145_v45  ;;  %v7802_v61 = vadd.f32 %v7801_v1, %v7800_v12  ;;  %v1683_v11 = vor.u32 %v1682_v40, %v10343_v20  ;;  %v1706_v48 = vrot.slane %v1704_v37, 4  ;;  %v11057_v4 = vld [vmem:[#allocation8_spill] sm:$0xff] }
 0x159   : > { %4802 = vmatprep.mubr.bf16.mxu1 %v10330_v27  ;;  %v7803_v39 = vpop.f32.mrf.mxu1  ;;  %v7693_v52 = vadd.f32 %v7692_v41, %v7691_v57  ;;  %11058 = vst [vmem:[#allocation2_spill] sm:$0xff] %v10364_v43  ;;  %v1688_v10 = vrot.slane %v1686_v49, 5  ;;  %v1697_v7 = vor.u32 %v1696_v38, %v1693_v56  ;;  %v1710_v1 = vshll.u32 %v6358_v26, 16 }
 0x15a   : > { %v7694_v13 = vpop.f32.mrf.mxu0  ;;  %v2894_v47 = vadd.f32 %v7802_v61, %v7690_v25  ;;  %v1674_v25 = vrot.slane %v1673_v51, 4  ;;  %v1684_v34 = vrot.slane %v1683_v11, 4  ;;  %v1715_v49 = vshrl.u32 %v10370_v21, 16 }
 0x15b   : > { %v7804_v12 = vpop.f32.mrf.mxu1  ;;  %v1728_v51 = vshrl.u32 %v10373_v5, 16 }
 0x15c   : > { %4642 = vmatmul.mubr.bf16.gmra.mxu0 %v11057_v4  ;;  %v7695_v14 = vpop.f32.mrf.mxu0  ;;  %v3107_v40 = vadd.f32 %v3106_v35, %v2894_v47  ;;  %v3146_v9 = vmul.f32 %v2894_v47, %v2894_v47  ;;  %v7805_v57 = vadd.f32 %v7804_v12, %v7803_v39  ;;  %v1707_v35 = vor.u32 %v1706_v48, %v10359_v62 }
 0x15d   : > { %4649 = vmatprep.mubr.bf16.mxu0 %v9296_v58  ;;  %v7806_v37 = vpop.f32.mrf.mxu1  ;;  %v7696_v61 = vadd.f32 %v7695_v14, %v7694_v13  ;;  %v1718_v12 = vshll.u32 %v10370_v21, 16  ;;  %v1724_v4 = vshll.u32 %v10373_v5, 16  ;;  %v1679_v38 = vsel %vm8981_vm2, %v1674_v25, %v10343_v20  ;;  %v11059_v20 = vld [vmem:[#allocation10_spill] sm:$0xff] }
 0x15e   : > { %v7697_v45 = vpop.f32.mrf.mxu0  ;;  %v3177_v41 = vadd.f32 %v3176_v46, %v3146_v9  ;;  %v2897_v19 = vadd.f32 %v7805_v57, %v7693_v52  ;;  %v1689_v26 = vsel %vm8981_vm2, %v1684_v34, %v1688_v10  ;;  %v10386_v48 = vrot.slane %v1697_v7, 4 }
 0x15f   : > { %v7807_v42 = vpop.f32.mrf.mxu1  ;;  %v1708_v57 = vrot.slane %v1707_v35, 4  ;;  %v1717_v25 = vrot.slane %v1715_v49, 4  ;;  %v1720_v10 = vrot.slane %v1718_v12, 5  ;;  %v10398_v34 = vrot.slane %v1724_v4, 5  ;;  %v6359_v35 = vld [vmem:[%s8951_s6 + $0x8c] sm:$0x1] }
 0x160   : > { %4803 = vmatmul.mubr.bf16.gmra.mxu1 %v6723_v31  ;;  %v7698_v39 = vpop.f32.mrf.mxu0  ;;  %v7280_v11 = vpack.c.bf16 %v2897_v19, %v2894_v47  ;;  %v3108_v56 = vadd.f32 %v3107_v40, %v2897_v19  ;;  %v3147_v52 = vmul.f32 %v2897_v19, %v2897_v19  ;;  %v7808_v46 = vadd.f32 %v7807_v42, %v7806_v37  ;;  %v10392_v37 = vld [vmem:[%s8951_s6 + $0x90] sm:$0xf]  ;;  %v10395_v19 = vld [vmem:[%s8951_s6 + $0x94] sm:$0xf] }
 0x161   : > { %4810 = vmatprep.mubr.bf16.mxu1 %v10364_v43  ;;  %v7809_v13 = vpop.f32.mrf.mxu1  ;;  %v10388_v31 = vrot.slane %v1710_v1, 5  ;;  %v7699_v40 = vadd.f32 %v7698_v39, %v7697_v45  ;;  %v1730_v7 = vrot.slane %v1728_v51, 4  ;;  %v10401_v45 = vcombine.low %v1679_v38, %v1689_v26 }
 0x162   : > { %7548 = vst [vmem:[%s9920_s18 + $0x60] sm:$0xff] %v7280_v11   ;;  %v3178_v47 = vadd.f32 %v3177_v41, %v3147_v52  ;;  %v2902_v14 = vadd.f32 %v7808_v46, %v7696_v61  ;;  %v7700_v9 = vpop.f32.mrf.mxu0  ;;  %v1739_v39 = vshrl.u32 %v10392_v37, 16  ;;  %v1742_v52 = vshll.u32 %v10392_v37, 16 }
 0x163   : > { %v7810_v42 = vpop.f32.mrf.mxu1  ;;  %11060 = vst [vmem:[#allocation4_spill] sm:$0xff] %v10401_v45  ;;  %v1748_v46 = vshll.u32 %v10395_v19, 16  ;;  %v1752_v49 = vshrl.u32 %v10395_v19, 16  ;;  %v1713_v38 = vsel %vm8981_vm2, %v1708_v57, %v10388_v31  ;;  %v1721_v26 = vor.u32 %v1720_v10, %v1717_v25  ;;  %v10425_v10 = vld [vmem:[%s8951_s6 + $0x9c] sm:$0xf] }
 0x164   : > { %4650 = vmatmul.mubr.bf16.gmra.mxu0 %v11059_v20  ;;  %v3109_v1 = vadd.f32 %v3108_v56, %v2902_v14  ;;  %v3148_v11 = vmul.f32 %v2902_v14, %v2902_v14  ;;  %v7811_v41 = vadd.f32 %v7810_v42, %v7809_v13  ;;  %v7701_v61 = vpop.f32.mrf.mxu0  ;;  %v1703_v56 = vsel %vm8981_vm2, %v10386_v48, %v10359_v62 }
 0x165   : > { %4657 = vmatprep.mubr.bf16.mxu0 %v9344_v63  ;;  %v1741_v16 = vrot.slane %v1739_v39, 4  ;;  %v10421_v63 = vrot.slane %v1748_v46, 5  ;;  %v1754_v31 = vrot.slane %v1752_v49, 4  ;;  %v10431_v49 = vcombine.low %v1703_v56, %v1713_v38 }
 0x166   : > { %v3179_v12 = vadd.f32 %v3178_v47, %v3148_v11  ;;  %v2905_v4 = vadd.f32 %v7811_v41, %v7699_v40  ;;  %v7703_v51 = vpop.f32.mrf.mxu0  ;;  %v1731_v47 = vor.u32 %v1730_v7, %v10398_v34  ;;  %v1734_v40 = vshll.u32 %v6359_v35, 16 }
 0x167   : > { %v7702_v41 = vadd.f32 %v7701_v61, %v7700_v9  ;;  %v6725_v9 = vcombine.low %v10298_v17, %v10301_v23  ;;  %v1722_v61 = vrot.slane %v1721_v26, 4  ;;  %v1766_v17 = vshll.u32 %v10425_v10, 16 }
 0x168   : > { %v7812_v13 = vpop.f32.mrf.mxu1  ;;  %4811 = vmatmul.mubr.bf16.gmra.mxu1 %v6724_v15  ;;  %v7285_v42 = vpack.c.bf16 %v2905_v4, %v2902_v14  ;;  %v3110_v20 = vadd.f32 %v3109_v1, %v2905_v4  ;;  %v3149_v11 = vmul.f32 %v2905_v4, %v2905_v4  ;;  %v7704_v62 = vpop.f32.mrf.mxu0  ;;  %v1744_v15 = vrot.slane %v1742_v52, 5  ;;  %v11061_v1 = vld [vmem:[#allocation11_spill] sm:$0xff]  ;;  %v10434_v4 = vld [vmem:[%s8951_s6 + $0xa0] sm:$0xf] }
 0x169   : > { %4818 = vmatprep.mubr.bf16.mxu1 %v10401_v45  ;;  %v1732_v35 = vrot.slane %v1731_v47, 4  ;;  %v1736_v39 = vrot.slane %v1734_v40, 5  ;;  %v7705_v46 = vadd.f32 %v7704_v62, %v7703_v51  ;;  %v1727_v56 = vsel %vm8981_vm2, %v1722_v61, %v10398_v34  ;;  %v6361_v45 = vld [vmem:[%s8951_s6 + $0xa4] sm:$0x1] }
 0x16a   : > { %v7813_v48 = vpop.f32.mrf.mxu1  ;;  %7549 = vst [vmem:[%s9920_s18 + $0x68] sm:$0xff] %v7285_v42   ;;  %v3180_v57 = vadd.f32 %v3179_v12, %v3149_v11  ;;  %v1758_v12 = vshll.u32 %v6360_v3, 16  ;;  %v1745_v11 = vor.u32 %v1744_v15, %v1741_v16  ;;  %v1776_v62 = vshrl.u32 %v10434_v4, 16 }
 0x16b   : > { %v7814_v25 = vadd.f32 %v7813_v48, %v7812_v13  ;;  %v1755_v48 = vor.u32 %v1754_v31, %v10421_v63  ;;  %v1737_v38 = vsel %vm8981_vm2, %v1732_v35, %v1736_v39  ;;  %v1768_v61 = vrot.slane %v1766_v17, 5 }
 0x16c   : > { %v7815_v14 = vpop.f32.mrf.mxu1  ;;  %v7706_v7 = vpop.f32.mrf.mxu0  ;;  %4658 = vmatmul.mubr.bf16.gmra.mxu0 %v11061_v1  ;;  %v1763_v1 = vshrl.u32 %v10425_v10, 16  ;;  %v1760_v15 = vrot.slane %v1758_v12, 5  ;;  %v10458_v17 = vcombine.low %v1727_v56, %v1737_v38 }
 0x16d   : > { %v2910_v52 = vadd.f32 %v7814_v25, %v7702_v41  ;;  %4665 = vmatprep.mubr.bf16.mxu0 %v9380_v2  ;;  %v1772_v41 = vshll.u32 %v10434_v4, 16  ;;  %v1756_v34 = vrot.slane %v1755_v48, 4 }
 0x16e   : > { %v7816_v13 = vpop.f32.mrf.mxu1  ;;  %v7707_v42 = vpop.f32.mrf.mxu0 }
 0x16f   : > { %v3111_v23 = vadd.f32 %v3110_v20, %v2910_v52  ;;  %v3150_v26 = vmul.f32 %v2910_v52, %v2910_v52  ;;  %v7817_v47 = vadd.f32 %v7816_v13, %v7815_v14  ;;  %v7708_v20 = vadd.f32 %v7707_v42, %v7706_v7 }
 0x170   : > { %v7818_v51 = vpop.f32.mrf.mxu1  ;;  %4819 = vmatmul.mubr.bf16.gmra.mxu1 %v6725_v9  ;;  %v7709_v40 = vpop.f32.mrf.mxu0  ;;  %v1746_v14 = vrot.slane %v1745_v11, 4  ;;  %v1765_v9 = vrot.slane %v1763_v1, 4  ;;  %v6726_v7 = vcombine.low %v10336_v53, %v10339_v22  ;;  %v10451_v12 = vrot.slane %v1772_v41, 5  ;;  %v10454_v11 = vld [vmem:[%s8951_s6 + $0xa8] sm:$0xf] }
 0x171   : > { %v3181_v3 = vadd.f32 %v3180_v57, %v3150_v26  ;;  %v2913_v16 = vadd.f32 %v7817_v47, %v7705_v46  ;;  %4826 = vmatprep.mubr.bf16.mxu1 %v10431_v49  ;;  %v11062_v46 = vld [vmem:[#allocation13_spill] sm:$0xff]  ;;  %v1778_v42 = vrot.slane %v1776_v62, 4  ;;  %v1761_v22 = vsel %vm8981_vm2, %v1756_v34, %v1760_v15 }
 0x172   : > { %v7819_v31 = vpop.f32.mrf.mxu1  ;;  %v7710_v25 = vpop.f32.mrf.mxu0  ;;  %v1751_v53 = vsel %vm8981_vm2, %v1746_v14, %v10421_v63  ;;  %v1769_v47 = vor.u32 %v1768_v61, %v1765_v9  ;;  %v10466_v41 = vld [vmem:[%s8951_s6 + $0xac] sm:$0xf]  ;;  %v6727_v14 = vcombine.low %v10370_v21, %v10373_v5 }
 0x173   : > { %v7290_v35 = vpack.c.bf16 %v2913_v16, %v2910_v52  ;;  %v3112_v39 = vadd.f32 %v3111_v23, %v2913_v16  ;;  %v3151_v13 = vmul.f32 %v2913_v16, %v2913_v16  ;;  %v7820_v2 = vadd.f32 %v7819_v31, %v7818_v51 }
 0x174   : > { %v7821_v43 = vpop.f32.mrf.mxu1  ;;  %v7840_v57 = vpop.f32.mrf.mxu0  ;;  %4666 = vmatmul.mubr.bf16.gmra.mxu0 %v11062_v46  ;;  %v7711_v1 = vadd.f32 %v7710_v25, %v7709_v40  ;;  %v1782_v51 = vshll.u32 %v6361_v45, 16  ;;  %v1779_v16 = vor.u32 %v1778_v42, %v10451_v12  ;;  %v1796_v45 = vshll.u32 %v10466_v41, 16 }
 0x175   : > { %7550 = vst [vmem:[%s9920_s18 + $0x70] sm:$0xff] %v7290_v35   ;;  %v3182_v48 = vadd.f32 %v3181_v3, %v3151_v13  ;;  %v2918_v52 = vadd.f32 %v7820_v2, %v7708_v20  ;;  %4673 = vmatprep.mubr.bf16.mxu0 %v9407_v32  ;;  %v1787_v3 = vshrl.u32 %v10454_v11, 16  ;;  %v1790_v20 = vshll.u32 %v10454_v11, 16 }
 0x176   : > { %v7822_v23 = vpop.f32.mrf.mxu1  ;;  %v7841_v26 = vpop.f32.mrf.mxu0  ;;  %v1800_v15 = vshrl.u32 %v10466_v41, 16  ;;  %v10476_v34 = vcombine.low %v1751_v53, %v1761_v22  ;;  %v1770_v9 = vrot.slane %v1769_v47, 4  ;;  %v1784_v61 = vrot.slane %v1782_v51, 5  ;;  %v10485_v53 = vld [vmem:[%s8951_s6 + $0xb8] sm:$0xf] }
 0x177   : > { %v3113_v62 = vadd.f32 %v3112_v39, %v2918_v52  ;;  %v3152_v2 = vmul.f32 %v2918_v52, %v2918_v52  ;;  %v7823_v40 = vadd.f32 %v7822_v23, %v7821_v43  ;;  %v1789_v46 = vrot.slane %v1787_v3, 4  ;;  %v6362_v47 = vld [vmem:[%s8951_s6 + $0xb0] sm:$0x1] }
 0x178   : > { %v7952_v56 = vpop.f32.mrf.mxu1  ;;  %4827 = vmatmul.mubr.bf16.gmra.mxu1 %v6726_v7  ;;  %v7843_v38 = vpop.f32.mrf.mxu0  ;;  %11063 = vst [vmem:[#allocation6_spill] sm:$0xff] %v10476_v34  ;;  %v10481_v7 = vld [vmem:[%s8951_s6 + $0xb4] sm:$0xf]  ;;  %v7842_v42 = vadd.f32 %v7841_v26, %v7840_v57  ;;  %v1780_v21 = vrot.slane %v1779_v16, 4  ;;  %v1792_v5 = vrot.slane %v1790_v20, 5  ;;  %v10492_v51 = vrot.slane %v1796_v45, 5 }
 0x179   : > { %v3183_v63 = vadd.f32 %v3182_v48, %v3152_v2  ;;  %v2921_v31 = vadd.f32 %v7823_v40, %v7711_v1  ;;  %4834 = vmatprep.mubr.bf16.mxu1 %v10458_v17  ;;  %v11064_v2 = vld [vmem:[#allocation15_spill] sm:$0xff]  ;;  %v1811_v40 = vshrl.u32 %v10481_v7, 16  ;;  %v1814_v3 = vshll.u32 %v10481_v7, 16 }
 0x17a   : > { %v7953_v25 = vpop.f32.mrf.mxu1  ;;  %v7844_v43 = vpop.f32.mrf.mxu0  ;;  %v1820_v16 = vshll.u32 %v10485_v53, 16  ;;  %v1824_v20 = vshrl.u32 %v10485_v53, 16  ;;  %v1775_v45 = vsel %vm8981_vm2, %v1770_v9, %v10451_v12 }
 0x17b   : > { %v7295_v35 = vpack.c.bf16 %v2921_v31, %v2918_v52  ;;  %v10478_v39 = vadd.f32 %v3113_v62, %v2921_v31  ;;  %v3153_v13 = vmul.f32 %v2921_v31, %v2921_v31  ;;  %v7954_v48 = vadd.f32 %v7953_v25, %v7952_v56 }
 0x17c   : > { %v7955_v1 = vpop.f32.mrf.mxu1  ;;  %v7846_v23 = vpop.f32.mrf.mxu0  ;;  %4674 = vmatmul.mubr.bf16.gmra.mxu0 %v11064_v2  ;;  %v7845_v52 = vadd.f32 %v7844_v43, %v7843_v38  ;;  %v1802_v62 = vrot.slane %v1800_v15, 4  ;;  %v1806_v15 = vshll.u32 %v6362_v47, 16  ;;  %v1785_v43 = vsel %vm8981_vm2, %v1780_v21, %v1784_v61 }
 0x17d   : > { %7551 = vst [vmem:[%s9920_s18 + $0x78] sm:$0xff] %v7295_v35   ;;  %v10488_v22 = vadd.f32 %v3183_v63, %v3153_v13  ;;  %4681 = vmatprep.mubr.bf16.mxu0 %v9443_v0  ;;  %v3773_v63 = vadd.f32 %v7954_v48, %v7842_v42  ;;  %v1793_v35 = vor.u32 %v1792_v5, %v1789_v46  ;;  %v1813_v2 = vrot.slane %v1811_v40, 4 }
 0x17e   : > { %v7956_v57 = vpop.f32.mrf.mxu1  ;;  %v7847_v26 = vpop.f32.mrf.mxu0  ;;  %v1803_v13 = vor.u32 %v1802_v62, %v10492_v51  ;;  %v10508_v47 = vrot.slane %v1820_v16, 5  ;;  %v11065_v62 = vld [vmem:[#allocation16_spill] sm:$0xff] }
 0x17f   : > { %v7957_v56 = vadd.f32 %v7956_v57, %v7955_v1  ;;  %v7848_v1 = vadd.f32 %v7847_v26, %v7846_v23  ;;  %v1816_v57 = vrot.slane %v1814_v3, 5  ;;  %v4098_v61 = vmul.f32 %v3773_v63, %v3773_v63  ;;  %v10516_v16 = vld [vmem:[%s8951_s6 + $0xc0] sm:$0xf] }
 0x180   : > { %v7958_v31 = vpop.f32.mrf.mxu1  ;;  %4835 = vmatmul.mubr.bf16.gmra.mxu1 %v6727_v14  ;;  %v7849_v38 = vpop.f32.mrf.mxu0  ;;  %v6728_v14 = vcombine.low %v10392_v37, %v10395_v19  ;;  %v10511_v26 = vcombine.low %v1775_v45, %v1785_v43  ;;  %v1794_v19 = vrot.slane %v1793_v35, 4  ;;  %v1804_v40 = vrot.slane %v1803_v13, 4 }
 0x181   : > { %v3776_v25 = vadd.f32 %v7957_v56, %v7845_v52  ;;  %4842 = vmatprep.mubr.bf16.mxu1 %v10476_v34  ;;  %v6363_v52 = vld [vmem:[%s8951_s6 + $0xbc] sm:$0x1]  ;;  %v1826_v56 = vrot.slane %v1824_v20, 4  ;;  %v1808_v3 = vrot.slane %v1806_v15, 5  ;;  %v6729_v45 = vcombine.low %v10425_v10, %v10434_v4 }
 0x182   : > { %v7959_v42 = vpop.f32.mrf.mxu1  ;;  %v7850_v48 = vpop.f32.mrf.mxu0  ;;  %11066 = vst [vmem:[#allocation7_spill] sm:$0xff] %v10511_v26  ;;  %v1817_v43 = vor.u32 %v1816_v57, %v1813_v2  ;;  %v1799_v10 = vsel %vm8981_vm2, %v1794_v19, %v10492_v51  ;;  %v11067_v51 = vld [vmem:[#allocation17_spill] sm:$0xff] }
 0x183   : > { %v7300_v12 = vpack.c.bf16 %v3776_v25, %v3773_v63  ;;  %v4060_v9 = vadd.f32 %v3776_v25, %v3773_v63  ;;  %v4099_v46 = vmul.f32 %v3776_v25, %v3776_v25  ;;  %v7960_v21 = vadd.f32 %v7959_v42, %v7958_v31 }
 0x184   : > { %v7961_v5 = vpop.f32.mrf.mxu1  ;;  %v7852_v23 = vpop.f32.mrf.mxu0  ;;  %4682 = vmatmul.mubr.bf16.gmra.mxu0 %v11065_v62  ;;  %v7851_v37 = vadd.f32 %v7850_v48, %v7849_v38  ;;  %v1830_v42 = vshll.u32 %v6363_v52, 16  ;;  %v10522_v38 = vld [vmem:[%s8951_s6 + $0xc4] sm:$0xf]  ;;  %v1809_v4 = vsel %vm8981_vm2, %v1804_v40, %v1808_v3  ;;  %v1818_v19 = vrot.slane %v1817_v43, 4 }
 0x185   : > { %7552 = vst [vmem:[%s9920_s18 + $0x80] sm:$0xff] %v7300_v12   ;;  %4689 = vmatprep.mubr.bf16.mxu0 %v9479_v33  ;;  %v4130_v20 = vadd.f32 %v4099_v46, %v4098_v61  ;;  %v3781_v63 = vadd.f32 %v7960_v21, %v7848_v1  ;;  %v1827_v12 = vor.u32 %v1826_v56, %v10508_v47  ;;  %v1835_v61 = vshrl.u32 %v10516_v16, 16 }
 0x186   : > { %v7962_v25 = vpop.f32.mrf.mxu1  ;;  %v7853_v31 = vpop.f32.mrf.mxu0  ;;  %v1838_v1 = vshll.u32 %v10516_v16, 16  ;;  %v1844_v56 = vshll.u32 %v10522_v38, 16  ;;  %v1848_v21 = vshrl.u32 %v10522_v38, 16 }
 0x187   : > { %v7963_v34 = vadd.f32 %v7962_v25, %v7961_v5  ;;  %v4061_v48 = vadd.f32 %v4060_v9, %v3781_v63  ;;  %v4100_v35 = vmul.f32 %v3781_v63, %v3781_v63  ;;  %v7854_v52 = vadd.f32 %v7853_v31, %v7852_v23 }
 0x188   : > { %v7964_v13 = vpop.f32.mrf.mxu1  ;;  %4843 = vmatmul.mubr.bf16.gmra.mxu1 %v6728_v14  ;;  %v7855_v15 = vpop.f32.mrf.mxu0  ;;  %v1832_v9 = vrot.slane %v1830_v42, 5  ;;  %v1828_v40 = vrot.slane %v1827_v12, 4  ;;  %v1837_v3 = vrot.slane %v1835_v61, 4 }
 0x189   : > { %v3784_v46 = vadd.f32 %v7963_v34, %v7851_v37  ;;  %4850 = vmatprep.mubr.bf16.mxu1 %v10511_v26  ;;  %v4131_v2 = vadd.f32 %v4130_v20, %v4100_v35  ;;  %v1840_v20 = vrot.slane %v1838_v1, 5  ;;  %v10543_v26 = vld [vmem:[%s8951_s6 + $0xcc] sm:$0xf]  ;;  %v10546_v1 = vld [vmem:[%s8951_s6 + $0xd0] sm:$0xf] }
 0x18a   : > { %v7965_v57 = vpop.f32.mrf.mxu1  ;;  %v7856_v14 = vpop.f32.mrf.mxu0 }
 0x18b   : > { %v7305_v34 = vpack.c.bf16 %v3784_v46, %v3781_v63  ;;  %v4062_v5 = vadd.f32 %v4061_v48, %v3784_v46  ;;  %v4101_v23 = vmul.f32 %v3784_v46, %v3784_v46  ;;  %v7966_v62 = vadd.f32 %v7965_v57, %v7964_v13  ;;  %v6364_v48 = vld [vmem:[%s8951_s6 + $0xc8] sm:$0x1] }
 0x18c   : > { %v7967_v37 = vpop.f32.mrf.mxu1  ;;  %v7858_v25 = vpop.f32.mrf.mxu0  ;;  %4690 = vmatmul.mubr.bf16.gmra.mxu0 %v11067_v51  ;;  %v7857_v35 = vadd.f32 %v7856_v14, %v7855_v15  ;;  %v10537_v63 = vcombine.low %v1799_v10, %v1809_v4  ;;  %v10540_v57 = vrot.slane %v1844_v56, 5  ;;  %v1850_v51 = vrot.slane %v1848_v21, 4 }
 0x18d   : > { %7553 = vst [vmem:[%s9920_s18 + $0x88] sm:$0xff] %v7305_v34   ;;  %v4132_v31 = vadd.f32 %v4131_v2, %v4101_v23  ;;  %v3789_v42 = vadd.f32 %v7966_v62, %v7854_v52  ;;  %4697 = vmatprep.mubr.bf16.mxu0 %v9512_v54  ;;  %v1823_v52 = vsel %vm8981_vm2, %v1818_v19, %v10508_v47  ;;  %v1854_v14 = vshll.u32 %v6364_v48, 16 }
 0x18e   : > { %11068 = vst [vmem:[#allocation8_spill] sm:$0xff] %v10537_v63  ;;  %v7968_v13 = vpop.f32.mrf.mxu1  ;;  %v7859_v46 = vpop.f32.mrf.mxu0  ;;  %v1833_v10 = vsel %vm8981_vm2, %v1828_v40, %v1832_v9  ;;  %v1841_v4 = vor.u32 %v1840_v20, %v1837_v3  ;;  %v1868_v47 = vshll.u32 %v10546_v1, 16  ;;  %v1872_v9 = vshrl.u32 %v10546_v1, 16 }
 0x18f   : > { %v4063_v43 = vadd.f32 %v4062_v5, %v3789_v42  ;;  %v4102_v12 = vmul.f32 %v3789_v42, %v3789_v42  ;;  %v7969_v61 = vadd.f32 %v7968_v13, %v7967_v37  ;;  %v7860_v34 = vadd.f32 %v7859_v46, %v7858_v25 }
 0x190   : > { %v7970_v2 = vpop.f32.mrf.mxu1  ;;  %4851 = vmatmul.mubr.bf16.gmra.mxu1 %v6729_v45  ;;  %v7861_v15 = vpop.f32.mrf.mxu0  ;;  %v1859_v5 = vshrl.u32 %v10543_v26, 16  ;;  %v1851_v45 = vor.u32 %v1850_v51, %v10540_v57  ;;  %v1862_v37 = vshll.u32 %v10543_v26, 16  ;;  %v6730_v48 = vcombine.low %v10454_v11, %v10466_v41 }
 0x191   : > { %v4133_v56 = vadd.f32 %v4132_v31, %v4102_v12  ;;  %v3792_v21 = vadd.f32 %v7969_v61, %v7857_v35  ;;  %4858 = vmatprep.mubr.bf16.mxu1 %v10537_v63  ;;  %v11069_v35 = vld [vmem:[#allocation18_spill] sm:$0xff]  ;;  %v10562_v13 = vcombine.low %v1823_v52, %v1833_v10  ;;  %v1842_v46 = vrot.slane %v1841_v4, 4 }
 0x192   : > { %v7971_v23 = vpop.f32.mrf.mxu1  ;;  %v7862_v62 = vpop.f32.mrf.mxu0  ;;  %v1856_v51 = vrot.slane %v1854_v14, 5  ;;  %v1874_v54 = vrot.slane %v1872_v9, 4  ;;  %v6365_v10 = vld [vmem:[%s8951_s6 + $0xd4] sm:$0x1] }
 0x193   : > { %v7310_v19 = vpack.c.bf16 %v3792_v21, %v3789_v42  ;;  %v4064_v40 = vadd.f32 %v4063_v43, %v3792_v21  ;;  %v4103_v3 = vmul.f32 %v3792_v21, %v3792_v21  ;;  %v7972_v20 = vadd.f32 %v7971_v23, %v7970_v2 }
 0x194   : > { %v7973_v25 = vpop.f32.mrf.mxu1  ;;  %v7864_v31 = vpop.f32.mrf.mxu0  ;;  %4698 = vmatmul.mubr.bf16.gmra.mxu0 %v11069_v35  ;;  %v7863_v63 = vadd.f32 %v7862_v62, %v7861_v15  ;;  %v1861_v42 = vrot.slane %v1859_v5, 4  ;;  %v1852_v21 = vrot.slane %v1851_v45, 4  ;;  %v1864_v23 = vrot.slane %v1862_v37, 5 }
 0x195   : > { %7554 = vst [vmem:[%s9920_s18 + $0x90] sm:$0xff] %v7310_v19   ;;  %v4134_v12 = vadd.f32 %v4133_v56, %v4103_v3  ;;  %v3797_v61 = vadd.f32 %v7972_v20, %v7860_v34  ;;  %4705 = vmatprep.mubr.bf16.mxu0 %v9545_v24  ;;  %v10566_v35 = vrot.slane %v1868_v47, 5  ;;  %v1847_v5 = vsel %vm8981_vm2, %v1842_v46, %v10540_v57 }
 0x196   : > { %v7974_v43 = vpop.f32.mrf.mxu1  ;;  %v7865_v2 = vpop.f32.mrf.mxu0  ;;  %v1857_v37 = vsel %vm8981_vm2, %v1852_v21, %v1856_v51  ;;  %v1865_v47 = vor.u32 %v1864_v23, %v1861_v42  ;;  %v1878_v19 = vshll.u32 %v6365_v10, 16  ;;  %v6731_v57 = vcombine.low %v10481_v7, %v10485_v53 }
 0x197   : > { %v4065_v11 = vadd.f32 %v4064_v40, %v3797_v61  ;;  %v4104_v41 = vmul.f32 %v3797_v61, %v3797_v61  ;;  %v7975_v52 = vadd.f32 %v7974_v43, %v7973_v25  ;;  %v7866_v15 = vadd.f32 %v7865_v2, %v7864_v31 }
 0x198   : > { %v7976_v4 = vpop.f32.mrf.mxu1  ;;  %4859 = vmatmul.mubr.bf16.gmra.mxu1 %v6730_v48  ;;  %v7867_v14 = vpop.f32.mrf.mxu0  ;;  %v1875_v9 = vor.u32 %v1874_v54, %v10566_v35  ;;  %v11070_v48 = vld [vmem:[#allocation20_spill] sm:$0xff]  ;;  %v10581_v51 = vcombine.low %v1847_v5, %v1857_v37  ;;  %v1866_v42 = vrot.slane %v1865_v47, 4  ;;  %v1880_v21 = vrot.slane %v1878_v19, 5  ;;  %v8757_v5 = vld [vmem:[%s8951_s6 + $0x1c] sm:$0xf] }
 0x199   : > { %v4135_v56 = vadd.f32 %v4134_v12, %v4104_v41  ;;  %v3800_v34 = vadd.f32 %v7975_v52, %v7863_v63  ;;  %4866 = vmatprep.mubr.bf16.mxu1 %v10562_v13  ;;  %v6366_v19 = vld [vmem:[%s8951_s6 + $0x18] sm:$0xe] }
 0x19a   : > { %v7977_v62 = vpop.f32.mrf.mxu1  ;;  %v7868_v45 = vpop.f32.mrf.mxu0  ;;  %v1876_v2 = vrot.slane %v1875_v9, 4 }
 0x19b   : > { %v7315_v40 = vpack.c.bf16 %v3800_v34, %v3797_v61  ;;  %v4066_v3 = vadd.f32 %v4065_v11, %v3800_v34  ;;  %v4105_v63 = vmul.f32 %v3800_v34, %v3800_v34  ;;  %v7978_v20 = vadd.f32 %v7977_v62, %v7976_v4 }
 0x19c   : > { %v7979_v25 = vpop.f32.mrf.mxu1  ;;  %v7870_v31 = vpop.f32.mrf.mxu0  ;;  %4706 = vmatmul.mubr.bf16.gmra.mxu0 %v11070_v48  ;;  %v7869_v43 = vadd.f32 %v7868_v45, %v7867_v14  ;;  %v1871_v34 = vsel %vm8981_vm2, %v1866_v42, %v10566_v35  ;;  %v1948_v62 = vrot.slane %v8757_v5, 5  ;;  %v6367_v5 = vld [vmem:[%s8951_s6 + $0x24] sm:$0xe] }
 0x19d   : > { %7555 = vst [vmem:[%s9920_s18 + $0x98] sm:$0xff] %v7315_v40   ;;  %v4136_v46 = vadd.f32 %v4135_v56, %v4105_v63  ;;  %v3805_v12 = vadd.f32 %v7978_v20, %v7866_v15  ;;  %4713 = vmatprep.mubr.bf16.mxu0 %v9581_v50  ;;  %v1881_v15 = vsel %vm8981_vm2, %v1876_v2, %v1880_v21  ;;  %v11071_v63 = vld [vmem:[#allocation21_spill] sm:$0xff] }
 0x19e   : > { %v7980_v54 = vpop.f32.mrf.mxu1  ;;  %v7871_v61 = vpop.f32.mrf.mxu0  ;;  %v6732_v20 = vcombine.low %v10516_v16, %v10522_v38 }
 0x19f   : > { %v4067_v23 = vadd.f32 %v4066_v3, %v3805_v12  ;;  %v4106_v11 = vmul.f32 %v3805_v12, %v3805_v12  ;;  %v7981_v41 = vadd.f32 %v7980_v54, %v7979_v25  ;;  %v7872_v4 = vadd.f32 %v7871_v61, %v7870_v31 }
 0x1a0   : > { %v7982_v52 = vpop.f32.mrf.mxu1  ;;  %4867 = vmatmul.mubr.bf16.gmra.mxu1 %v6731_v57  ;;  %v7873_v7 = vpop.f32.mrf.mxu0  ;;  %v10596_v31 = vcombine.low %v1871_v34, %v1881_v15 }
 0x1a1   : > { %v4137_v53 = vadd.f32 %v4136_v46, %v4106_v11  ;;  %v3808_v10 = vadd.f32 %v7981_v41, %v7869_v43  ;;  %4874 = vmatprep.mubr.bf16.mxu1 %v10581_v51  ;;  %v6382_v46 = vrot.slane %v6366_v19, 9  ;;  %v8758_v43 = vld [vmem:[%s8951_s6 + $0x20] sm:$0x1] }
 0x1a2   : > { %v7983_v14 = vpop.f32.mrf.mxu1  ;;  %v7874_v56 = vpop.f32.mrf.mxu0  ;;  %v1951_v54 = vrot.slane %v8758_v43, 5 }
 0x1a3   : > { %v7320_v45 = vpack.c.bf16 %v3808_v10, %v3805_v12  ;;  %v4068_v37 = vadd.f32 %v4067_v23, %v3808_v10  ;;  %v4107_v47 = vmul.f32 %v3808_v10, %v3808_v10  ;;  %v7984_v9 = vadd.f32 %v7983_v14, %v7982_v52  ;;  %v8759_v10 = vld [vmem:[%s8951_s6 + $0x28] sm:$0xf] }
 0x1a4   : > { %v7985_v40 = vpop.f32.mrf.mxu1  ;;  %v7876_v3 = vpop.f32.mrf.mxu0  ;;  %4714 = vmatmul.mubr.bf16.gmra.mxu0 %v11071_v63  ;;  %v7875_v55 = vadd.f32 %v7874_v56, %v7873_v7  ;;  %v1950_v12 = vrot.slane %v1948_v62, 4  ;;  %v1949_v7 = vsel %vm9600_vm5, %v6382_v46, %v1948_v62 }
 0x1a5   : > { %7556 = vst [vmem:[%s9920_s18 + $0xa0] sm:$0xff] %v7320_v45   ;;  %v4138_v35 = vadd.f32 %v4137_v53, %v4107_v47  ;;  %v3813_v25 = vadd.f32 %v7984_v9, %v7872_v4  ;;  %4721 = vmatprep.mubr.bf16.mxu0 %v9618_v6  ;;  %v1955_v4 = vrot.slane %v8759_v10, 5  ;;  %v11072_v47 = vld [vmem:[#allocation22_spill] sm:$0xff]  ;;  %v6733_v9 = vcombine.low %v10543_v26, %v10546_v1 }
 0x1a6   : > { %v7986_v48 = vpop.f32.mrf.mxu1  ;;  %v7877_v57 = vpop.f32.mrf.mxu0  ;;  %v1952_v53 = vsel %vm9600_vm5, %v1950_v12, %v1951_v54  ;;  %v6368_v10 = vld [vmem:[%s8951_s6 + $0x30] sm:$0xe] }
 0x1a7   : > { %v4069_v61 = vadd.f32 %v4068_v37, %v3813_v25  ;;  %v4108_v42 = vmul.f32 %v3813_v25, %v3813_v25  ;;  %v7987_v2 = vadd.f32 %v7986_v48, %v7985_v40  ;;  %v7878_v11 = vadd.f32 %v7877_v57, %v7876_v3  ;;  %v11073_v3 = vld [vmem:[#allocation23_spill] sm:$0xff]  ;;  %v8760_v48 = vld [vmem:[%s8951_s6 + $0x2c] sm:$0x1] }
 0x1a8   : > { %v7988_v21 = vpop.f32.mrf.mxu1  ;;  %4875 = vmatmul.mubr.bf16.gmra.mxu1 %v6732_v20  ;;  %v7879_v16 = vpop.f32.mrf.mxu0  ;;  %v6910_v63 = vcombine.low %v1949_v7, %v1952_v53  ;;  %v1958_v57 = vrot.slane %v8760_v48, 5 }
 0x1a9   : > { %v4139_v38 = vadd.f32 %v4138_v35, %v4108_v42  ;;  %v3816_v23 = vadd.f32 %v7987_v2, %v7875_v55  ;;  %4882 = vmatprep.mubr.bf16.mxu1 %v10596_v31  ;;  %v1957_v55 = vrot.slane %v1955_v4, 4 }
 0x1aa   : > { %v7989_v41 = vpop.f32.mrf.mxu1  ;;  %v7880_v52 = vpop.f32.mrf.mxu0 }
 0x1ab   : > { %v7325_v14 = vpack.c.bf16 %v3816_v23, %v3813_v25  ;;  %v4070_v56 = vadd.f32 %v4069_v61, %v3816_v23  ;;  %v4109_v34 = vmul.f32 %v3816_v23, %v3816_v23  ;;  %v7990_v15 = vadd.f32 %v7989_v41, %v7988_v21  ;;  %v8761_v23 = vld [vmem:[%s8951_s6 + $0x34] sm:$0xf] }
 0x1ac   : > { %v7991_v45 = vpop.f32.mrf.mxu1  ;;  %v7882_v37 = vpop.f32.mrf.mxu0  ;;  %4722 = vmatmul.mubr.bf16.gmra.mxu0 %v11072_v47  ;;  %v7881_v40 = vadd.f32 %v7880_v52, %v7879_v16  ;;  %v6383_v25 = vrot.slane %v6367_v5, 9  ;;  %v6384_v47 = vrot.slane %v6368_v10, 9 }
 0x1ad   : > { %7557 = vst [vmem:[%s9920_s18 + $0xa8] sm:$0xff] %v7325_v14   ;;  %v4140_v62 = vadd.f32 %v4139_v38, %v4109_v34  ;;  %v3821_v19 = vadd.f32 %v7990_v15, %v7878_v11  ;;  %5513 = vmatprep.mubr.bf16.mxu0 %v11073_v3  ;;  %v1959_v38 = vsel %vm9600_vm5, %v1957_v55, %v1958_v57  ;;  %v1962_v11 = vrot.slane %v8761_v23, 5 }
 0x1ae   : > { %v7992_v20 = vpop.f32.mrf.mxu1  ;;  %v7883_v35 = vpop.f32.mrf.mxu0  ;;  %v1956_v16 = vsel %vm9600_vm5, %v6383_v25, %v1955_v4 }
 0x1af   : > { %v4071_v46 = vadd.f32 %v4070_v56, %v3821_v19  ;;  %v4110_v12 = vmul.f32 %v3821_v19, %v3821_v19  ;;  %v7993_v43 = vadd.f32 %v7992_v20, %v7991_v45  ;;  %v7884_v42 = vadd.f32 %v7883_v35, %v7882_v37 }
 0x1b0   : > { %v7994_v54 = vpop.f32.mrf.mxu1  ;;  %4883 = vmatmul.mubr.bf16.gmra.mxu1 %v6733_v9  ;;  %v7885_v26 = vpop.f32.mrf.mxu0  ;;  %v6911_v4 = vcombine.low %v1956_v16, %v1959_v38  ;;  %v1964_v9 = vrot.slane %v1962_v11, 4  ;;  %v1963_v57 = vsel %vm9600_vm5, %v6384_v47, %v1962_v11  ;;  %v11075_v11 = vld [vmem:[#allocation24_spill] sm:$0xff] }
 0x1b1   : > { %v4141_v1 = vadd.f32 %v4140_v62, %v4110_v12  ;;  %v3824_v61 = vadd.f32 %v7993_v43, %v7881_v40  ;;  %5674 = vmatprep.mubr.bf16.mxu1 %v6910_v63  ;;  %v8762_v62 = vld [vmem:[%s8951_s6 + $0x38] sm:$0x1]  ;;  %v8763_v12 = vld [vmem:[%s8951_s6 + $0x40] sm:$0xf] }
 0x1b2   : > { %v7995_v2 = vpop.f32.mrf.mxu1  ;;  %v7886_v21 = vpop.f32.mrf.mxu0  ;;  %v1969_v43 = vrot.slane %v8763_v12, 5  ;;  %v11077_v12 = vld [vmem:[#allocation5_spill] sm:$0xff] }
 0x1b3   : > { %v7330_v41 = vpack.c.bf16 %v3824_v61, %v3821_v19  ;;  %v4072_v52 = vadd.f32 %v4071_v46, %v3824_v61  ;;  %v4111_v7 = vmul.f32 %v3824_v61, %v3824_v61  ;;  %v7996_v53 = vadd.f32 %v7995_v2, %v7994_v54  ;;  %v6369_v61 = vld [vmem:[%s8951_s6 + $0x3c] sm:$0xe] }
 0x1b4   : > { %v7997_v14 = vpop.f32.mrf.mxu1  ;;  %v7888_v56 = vpop.f32.mrf.mxu0  ;;  %5514 = vmatmul.mubr.bf16.vlgmr.msra.gmra.mxu0 %v9020_v29  ;;  %v7887_v5 = vadd.f32 %v7886_v21, %v7885_v26  ;;  %v1965_v19 = vrot.slane %v8762_v62, 5  ;;  %v11074_v21 = vld [vmem:[#allocation3_spill] sm:$0xff]  ;;  %v1971_v10 = vrot.slane %v1969_v43, 4 }
 0x1b5   : > { %7558 = vst [vmem:[%s9920_s18 + $0xb0] sm:$0xff] %v7330_v41   ;;  %v4142_v34 = vadd.f32 %v4141_v1, %v4111_v7  ;;  %v3829_v15 = vadd.f32 %v7996_v53, %v7884_v42  ;;  %5521 = vmatprep.mubr.bf16.mxu0 %v9656_v30  ;;  %v6385_v53 = vrot.slane %v6369_v61, 9 }
 0x1b6   : > { %v7998_v45 = vpop.f32.mrf.mxu1  ;;  %v7889_v37 = vpop.f32.mrf.mxu0  ;;  %v1966_v46 = vsel %vm9600_vm5, %v1964_v9, %v1965_v19 }
 0x1b7   : > { %v4073_v40 = vadd.f32 %v4072_v52, %v3829_v15  ;;  %v4112_v3 = vmul.f32 %v3829_v15, %v3829_v15  ;;  %v7999_v63 = vadd.f32 %v7998_v45, %v7997_v14  ;;  %v7890_v55 = vadd.f32 %v7889_v37, %v7888_v56  ;;  %v8764_v14 = vld [vmem:[%s8951_s6 + $0x44] sm:$0x1]  ;;  %v11076_v45 = vld [vmem:[#allocation38_spill] sm:$0xff] }
 0x1b8   : > { %v8000_v20 = vpop.f32.mrf.mxu1  ;;  %5675 = vmatmul.mubr.bf16.vlgmr.msra.gmra.mxu1 %v10079_v44  ;;  %v7891_v29 = vpop.f32.mrf.mxu0  ;;  %v6912_v41 = vcombine.low %v1963_v57, %v1966_v46  ;;  %v1972_v56 = vrot.slane %v8764_v14, 5 }
 0x1b9   : > { %v4143_v35 = vadd.f32 %v4142_v34, %v4112_v3  ;;  %v3832_v25 = vadd.f32 %v7999_v63, %v7887_v5  ;;  %5682 = vmatprep.mubr.bf16.mxu1 %v6911_v4  ;;  %v1970_v3 = vsel %vm9600_vm5, %v6385_v53, %v1969_v43  ;;  %v11078_v43 = vld [vmem:[#allocation25_spill] sm:$0xff] }
 0x1ba   : > { %v8001_v30 = vpop.f32.mrf.mxu1  ;;  %v7892_v48 = vpop.f32.mrf.mxu0  ;;  %v1973_v63 = vsel %vm9600_vm5, %v1971_v10, %v1972_v56 }
 0x1bb   : > { %v7335_v54 = vpack.c.bf16 %v3832_v25, %v3829_v15  ;;  %v4074_v26 = vadd.f32 %v4073_v40, %v3832_v25  ;;  %v4113_v44 = vmul.f32 %v3832_v25, %v3832_v25  ;;  %v8002_v1 = vadd.f32 %v8001_v30, %v8000_v20  ;;  %v8765_v20 = vld [vmem:[%s8951_s6 + $0x4c] sm:$0xf] }
 0x1bc   : > { %v8003_v42 = vpop.f32.mrf.mxu1  ;;  %v7894_v2 = vpop.f32.mrf.mxu0  ;;  %5522 = vmatmul.mubr.bf16.gmra.mxu0 %v11074_v21  ;;  %v7893_v23 = vadd.f32 %v7892_v48, %v7891_v29  ;;  %v1976_v29 = vrot.slane %v8765_v20, 5  ;;  %v6370_v48 = vld [vmem:[%s8951_s6 + $0x48] sm:$0xe] }
 0x1bd   : > { %7559 = vst [vmem:[%s9920_s18 + $0xb8] sm:$0xff] %v7335_v54   ;;  %v4144_v16 = vadd.f32 %v4143_v35, %v4113_v44  ;;  %v3837_v38 = vadd.f32 %v8002_v1, %v7890_v55  ;;  %5529 = vmatprep.mubr.bf16.mxu0 %v11075_v11  ;;  %v6913_v1 = vcombine.low %v1970_v3, %v1973_v63 }
 0x1be   : > { %v8004_v52 = vpop.f32.mrf.mxu1  ;;  %v7895_v7 = vpop.f32.mrf.mxu0  ;;  %v1978_v21 = vrot.slane %v1976_v29, 4 }
 0x1bf   : > { %v4075_v34 = vadd.f32 %v4074_v26, %v3837_v38  ;;  %v4114_v15 = vmul.f32 %v3837_v38, %v3837_v38  ;;  %v8005_v5 = vadd.f32 %v8004_v52, %v8003_v42  ;;  %v7896_v62 = vadd.f32 %v7895_v7, %v7894_v2 }
 0x1c0   : > { %v8006_v4 = vpop.f32.mrf.mxu1  ;;  %5683 = vmatmul.mubr.bf16.gmra.mxu1 %v11076_v45  ;;  %v7897_v37 = vpop.f32.mrf.mxu0  ;;  %v6386_v2 = vrot.slane %v6370_v48, 9 }
 0x1c1   : > { %v4145_v47 = vadd.f32 %v4144_v16, %v4114_v15  ;;  %v3840_v9 = vadd.f32 %v8005_v5, %v7893_v23  ;;  %5690 = vmatprep.mubr.bf16.mxu1 %v6912_v41  ;;  %v8766_v16 = vld [vmem:[%s8951_s6 + $0x50] sm:$0x1] }
 0x1c2   : > { %v8007_v19 = vpop.f32.mrf.mxu1  ;;  %v7898_v40 = vpop.f32.mrf.mxu0  ;;  %v1977_v15 = vsel %vm9600_vm5, %v6386_v2, %v1976_v29  ;;  %v11079_v29 = vld [vmem:[#allocation26_spill] sm:$0xff] }
 0x1c3   : > { %v7340_v35 = vpack.c.bf16 %v3840_v9, %v3837_v38  ;;  %v4076_v25 = vadd.f32 %v4075_v34, %v3840_v9  ;;  %v4115_v55 = vmul.f32 %v3840_v9, %v3840_v9  ;;  %v8008_v30 = vadd.f32 %v8007_v19, %v8006_v4  ;;  %v8767_v4 = vld [vmem:[%s8951_s6 + $0x58] sm:$0xf] }
 0x1c4   : > { %v8009_v57 = vpop.f32.mrf.mxu1  ;;  %v7900_v46 = vpop.f32.mrf.mxu0  ;;  %5530 = vmatmul.mubr.bf16.gmra.mxu0 %v11077_v12  ;;  %v7899_v44 = vadd.f32 %v7898_v40, %v7897_v37  ;;  %v1979_v38 = vrot.slane %v8766_v16, 5  ;;  %v1983_v45 = vrot.slane %v8767_v4, 5 }
 0x1c5   : > { %7560 = vst [vmem:[%s9920_s18 + $0xc0] sm:$0xff] %v7340_v35   ;;  %v4146_v54 = vadd.f32 %v4145_v47, %v4115_v55  ;;  %v3845_v26 = vadd.f32 %v8008_v30, %v7896_v62  ;;  %5537 = vmatprep.mubr.bf16.mxu0 %v11078_v43  ;;  %v6371_v62 = vld [vmem:[%s8951_s6 + $0x54] sm:$0xe] }
 0x1c6   : > { %v8010_v61 = vpop.f32.mrf.mxu1  ;;  %v7901_v42 = vpop.f32.mrf.mxu0  ;;  %v1980_v5 = vsel %vm9600_vm5, %v1978_v21, %v1979_v38  ;;  %v6387_v30 = vrot.slane %v6371_v62, 9  ;;  %v1985_v48 = vrot.slane %v1983_v45, 4  ;;  %v8769_v38 = vld [vmem:[%s8951_s6 + $0x64] sm:$0xf] }
 0x1c7   : > { %v4077_v23 = vadd.f32 %v4076_v25, %v3845_v26  ;;  %v4116_v11 = vmul.f32 %v3845_v26, %v3845_v26  ;;  %v8011_v41 = vadd.f32 %v8010_v61, %v8009_v57  ;;  %v7902_v14 = vadd.f32 %v7901_v42, %v7900_v46  ;;  %v8768_v57 = vld [vmem:[%s8951_s6 + $0x5c] sm:$0x1] }
 0x1c8   : > { %v8012_v52 = vpop.f32.mrf.mxu1  ;;  %5691 = vmatmul.mubr.bf16.gmra.mxu1 %v10150_v18  ;;  %v7903_v7 = vpop.f32.mrf.mxu0  ;;  %v6914_v35 = vcombine.low %v1977_v15, %v1980_v5  ;;  %v1986_v46 = vrot.slane %v8768_v57, 5  ;;  %v1984_v21 = vsel %vm9600_vm5, %v6387_v30, %v1983_v45  ;;  %v11080_v15 = vld [vmem:[#allocation27_spill] sm:$0xff] }
 0x1c9   : > { %v4147_v53 = vadd.f32 %v4146_v54, %v4116_v11  ;;  %v3848_v10 = vadd.f32 %v8011_v41, %v7899_v44  ;;  %5698 = vmatprep.mubr.bf16.mxu1 %v6913_v1 }
 0x1ca   : > { %v8013_v56 = vpop.f32.mrf.mxu1  ;;  %v7904_v34 = vpop.f32.mrf.mxu0  ;;  %v1987_v16 = vsel %vm9600_vm5, %v1985_v48, %v1986_v46  ;;  %v8771_v48 = vld [vmem:[%s8951_s6 + $0x70] sm:$0xf] }
 0x1cb   : > { %v7345_v37 = vpack.c.bf16 %v3848_v10, %v3845_v26  ;;  %v4078_v47 = vadd.f32 %v4077_v23, %v3848_v10  ;;  %v4117_v18 = vmul.f32 %v3848_v10, %v3848_v10  ;;  %v8014_v9 = vadd.f32 %v8013_v56, %v8012_v52 }
 0x1cc   : > { %v8015_v19 = vpop.f32.mrf.mxu1  ;;  %v7906_v40 = vpop.f32.mrf.mxu0  ;;  %5538 = vmatmul.mubr.bf16.gmra.mxu0 %v9161_v60  ;;  %v7905_v20 = vadd.f32 %v7904_v34, %v7903_v7  ;;  %v1990_v23 = vrot.slane %v8769_v38, 5  ;;  %v6372_v7 = vld [vmem:[%s8951_s6 + $0x60] sm:$0xe]  ;;  %v6915_v5 = vcombine.low %v1984_v21, %v1987_v16  ;;  %v1997_v57 = vrot.slane %v8771_v48, 5 }
 0x1cd   : > { %7561 = vst [vmem:[%s9920_s18 + $0xc8] sm:$0xff] %v7345_v37   ;;  %v4148_v3 = vadd.f32 %v4147_v53, %v4117_v18  ;;  %v3853_v63 = vadd.f32 %v8014_v9, %v7902_v14  ;;  %5545 = vmatprep.mubr.bf16.mxu0 %v11079_v29  ;;  %v6388_v37 = vrot.slane %v6372_v7, 9  ;;  %v8770_v18 = vld [vmem:[%s8951_s6 + $0x68] sm:$0x1] }
 0x1ce   : > { %v8016_v25 = vpop.f32.mrf.mxu1  ;;  %v7907_v55 = vpop.f32.mrf.mxu0  ;;  %v1993_v9 = vrot.slane %v8770_v18, 5 }
 0x1cf   : > { %v4079_v12 = vadd.f32 %v4078_v47, %v3853_v63  ;;  %v4118_v54 = vmul.f32 %v3853_v63, %v3853_v63  ;;  %v8017_v26 = vadd.f32 %v8016_v25, %v8015_v19  ;;  %v7908_v61 = vadd.f32 %v7907_v55, %v7906_v40 }
 0x1d0   : > { %v8018_v44 = vpop.f32.mrf.mxu1  ;;  %5699 = vmatmul.mubr.bf16.gmra.mxu1 %v10219_v8  ;;  %v7909_v60 = vpop.f32.mrf.mxu0  ;;  %v1992_v47 = vrot.slane %v1990_v23, 4  ;;  %v1991_v55 = vsel %vm9600_vm5, %v6388_v37, %v1990_v23 }
 0x1d1   : > { %v4149_v43 = vadd.f32 %v4148_v3, %v4118_v54  ;;  %v3856_v1 = vadd.f32 %v8017_v26, %v7905_v20  ;;  %5706 = vmatprep.mubr.bf16.mxu1 %v6914_v35  ;;  %v6373_v26 = vld [vmem:[%s8951_s6 + $0x6c] sm:$0xe] }
 0x1d2   : > { %v8019_v42 = vpop.f32.mrf.mxu1  ;;  %v7910_v2 = vpop.f32.mrf.mxu0  ;;  %v1994_v30 = vsel %vm9600_vm5, %v1992_v47, %v1993_v9  ;;  %v6389_v23 = vrot.slane %v6373_v26, 9  ;;  %v8773_v47 = vld [vmem:[%s8951_s6 + $0x7c] sm:$0xf] }
 0x1d3   : > { %v7350_v11 = vpack.c.bf16 %v3856_v1, %v3853_v63  ;;  %v4080_v41 = vadd.f32 %v4079_v12, %v3856_v1  ;;  %v4119_v8 = vmul.f32 %v3856_v1, %v3856_v1  ;;  %v8020_v52 = vadd.f32 %v8019_v42, %v8018_v44 }
 0x1d4   : > { %v8021_v53 = vpop.f32.mrf.mxu1  ;;  %v7912_v10 = vpop.f32.mrf.mxu0  ;;  %5546 = vmatmul.mubr.bf16.gmra.mxu0 %v9209_v59  ;;  %v7911_v34 = vadd.f32 %v7910_v2, %v7909_v60  ;;  %v11082_v2 = vld [vmem:[#allocation28_spill] sm:$0xff]  ;;  %v6916_v21 = vcombine.low %v1991_v55, %v1994_v30  ;;  %v2004_v18 = vrot.slane %v8773_v47, 5 }
 0x1d5   : > { %7562 = vst [vmem:[%s9920_s18 + $0xd0] sm:$0xff] %v7350_v11   ;;  %v4150_v14 = vadd.f32 %v4149_v43, %v4119_v8  ;;  %v3861_v56 = vadd.f32 %v8020_v52, %v7908_v61  ;;  %5553 = vmatprep.mubr.bf16.mxu0 %v11080_v15  ;;  %v11081_v43 = vld [vmem:[#allocation9_spill] sm:$0xff]  ;;  %v1999_v11 = vrot.slane %v1997_v57, 4 }
 0x1d6   : > { %v8022_v4 = vpop.f32.mrf.mxu1  ;;  %v7913_v45 = vpop.f32.mrf.mxu0 }
 0x1d7   : > { %v4081_v62 = vadd.f32 %v4080_v41, %v3861_v56  ;;  %v4120_v19 = vmul.f32 %v3861_v56, %v3861_v56  ;;  %v8023_v40 = vadd.f32 %v8022_v4, %v8021_v53  ;;  %v7914_v29 = vadd.f32 %v7913_v45, %v7912_v10  ;;  %v8772_v41 = vld [vmem:[%s8951_s6 + $0x74] sm:$0x1] }
 0x1d8   : > { %v8024_v3 = vpop.f32.mrf.mxu1  ;;  %5707 = vmatmul.mubr.bf16.gmra.mxu1 %v10295_v28  ;;  %v7915_v59 = vpop.f32.mrf.mxu0  ;;  %v2000_v8 = vrot.slane %v8772_v41, 5  ;;  %v1998_v45 = vsel %vm9600_vm5, %v6389_v23, %v1997_v57  ;;  %v2006_v57 = vrot.slane %v2004_v18, 4 }
 0x1d9   : > { %v4151_v63 = vadd.f32 %v4150_v14, %v4120_v19  ;;  %v3864_v20 = vadd.f32 %v8023_v40, %v7911_v34  ;;  %5714 = vmatprep.mubr.bf16.mxu1 %v6915_v5  ;;  %v6374_v40 = vld [vmem:[%s8951_s6 + $0x78] sm:$0xe] }
 0x1da   : > { %v8025_v35 = vpop.f32.mrf.mxu1  ;;  %v7916_v25 = vpop.f32.mrf.mxu0  ;;  %v2001_v37 = vsel %vm9600_vm5, %v1999_v11, %v2000_v8  ;;  %v6390_v48 = vrot.slane %v6374_v40, 9 }
 0x1db   : > { %v7355_v46 = vpack.c.bf16 %v3864_v20, %v3861_v56  ;;  %v4082_v12 = vadd.f32 %v4081_v62, %v3864_v20  ;;  %v4121_v28 = vmul.f32 %v3864_v20, %v3864_v20  ;;  %v8026_v54 = vadd.f32 %v8025_v35, %v8024_v3  ;;  %v11083_v35 = vld [vmem:[#allocation30_spill] sm:$0xff] }
 0x1dc   : > { %v8027_v44 = vpop.f32.mrf.mxu1  ;;  %v7918_v60 = vpop.f32.mrf.mxu0  ;;  %5554 = vmatmul.mubr.bf16.gmra.mxu0 %v11081_v43  ;;  %v7917_v42 = vadd.f32 %v7916_v25, %v7915_v59  ;;  %v6917_v25 = vcombine.low %v1998_v45, %v2001_v37 }
 0x1dd   : > { %7563 = vst [vmem:[%s9920_s18 + $0xd8] sm:$0xff] %v7355_v46   ;;  %v4152_v1 = vadd.f32 %v4151_v63, %v4121_v28  ;;  %v3869_v61 = vadd.f32 %v8026_v54, %v7914_v29  ;;  %5561 = vmatprep.mubr.bf16.mxu0 %v11082_v2  ;;  %v8774_v46 = vld [vmem:[%s8951_s6 + $0x80] sm:$0x1] }
 0x1de   : > { %v8028_v16 = vpop.f32.mrf.mxu1  ;;  %v7919_v38 = vpop.f32.mrf.mxu0 }
 0x1df   : > { %v4083_v52 = vadd.f32 %v4082_v12, %v3869_v61  ;;  %v4122_v7 = vmul.f32 %v3869_v61, %v3869_v61  ;;  %v8029_v53 = vadd.f32 %v8028_v16, %v8027_v44  ;;  %v7920_v15 = vadd.f32 %v7919_v38, %v7918_v60  ;;  %v11084_v60 = vld [vmem:[#allocation2_spill] sm:$0xff]  ;;  %v8775_v38 = vld [vmem:[%s8951_s6 + $0x88] sm:$0xf] }
 0x1e0   : > { %v8030_v10 = vpop.f32.mrf.mxu1  ;;  %5715 = vmatmul.mubr.bf16.gmra.mxu1 %v10330_v27  ;;  %v7921_v14 = vpop.f32.mrf.mxu0  ;;  %v2007_v12 = vrot.slane %v8774_v46, 5  ;;  %v2011_v23 = vrot.slane %v8775_v38, 5 }
 0x1e1   : > { %v4153_v56 = vadd.f32 %v4152_v1, %v4122_v7  ;;  %v3872_v34 = vadd.f32 %v8029_v53, %v7917_v42  ;;  %5722 = vmatprep.mubr.bf16.mxu1 %v6916_v21  ;;  %v2005_v21 = vsel %vm9600_vm5, %v6390_v48, %v2004_v18  ;;  %v6375_v7 = vld [vmem:[%s8951_s6 + $0x84] sm:$0xe]  ;;  %v3115_v48 = vrot.slane %v10478_v39, 4 }
 0x1e2   : > { %v8031_v5 = vpop.f32.mrf.mxu1  ;;  %v7922_v4 = vpop.f32.mrf.mxu0  ;;  %v2008_v16 = vsel %vm9600_vm5, %v2006_v57, %v2007_v12  ;;  %v6391_v47 = vrot.slane %v6375_v7, 9  ;;  %v2013_v18 = vrot.slane %v2011_v23, 4  ;;  %v3185_v57 = vrot.slane %v10488_v22, 4 }
 0x1e3   : > { %v7360_v9 = vpack.c.bf16 %v3872_v34, %v3869_v61  ;;  %v4084_v62 = vadd.f32 %v4083_v52, %v3872_v34  ;;  %v4123_v27 = vmul.f32 %v3872_v34, %v3872_v34  ;;  %v8032_v19 = vadd.f32 %v8031_v5, %v8030_v10  ;;  %v11086_v5 = vld [vmem:[#allocation31_spill] sm:$0xff] }
 0x1e4   : > { %v8033_v3 = vpop.f32.mrf.mxu1  ;;  %v7924_v59 = vpop.f32.mrf.mxu0  ;;  %5562 = vmatmul.mubr.bf16.gmra.mxu0 %v9296_v58  ;;  %v7923_v29 = vadd.f32 %v7922_v4, %v7921_v14  ;;  %v11085_v14 = vld [vmem:[#allocation12_spill] sm:$0xff]  ;;  %v6918_v4 = vcombine.low %v2005_v21, %v2008_v16  ;;  %v8778_v21 = vld [vmem:[%s8951_s6 + $0x98] sm:$0x1]  ;;  %v3186_v7 = vadd.f32 %v3185_v57, %v10488_v22 }
 0x1e5   : > { %7564 = vst [vmem:[%s9920_s18 + $0xe0] sm:$0xff] %v7360_v9   ;;  %v4154_v63 = vadd.f32 %v4153_v56, %v4123_v27  ;;  %v3877_v20 = vadd.f32 %v8032_v19, %v7920_v15  ;;  %5569 = vmatprep.mubr.bf16.mxu0 %v11083_v35  ;;  %v8776_v9 = vld [vmem:[%s8951_s6 + $0x8c] sm:$0x1]  ;;  %v2021_v16 = vrot.slane %v8778_v21, 5 }
 0x1e6   : > { %v8034_v55 = vpop.f32.mrf.mxu1  ;;  %v7925_v30 = vpop.f32.mrf.mxu0 }
 0x1e7   : > { %v4085_v28 = vadd.f32 %v4084_v62, %v3877_v20  ;;  %v4124_v54 = vmul.f32 %v3877_v20, %v3877_v20  ;;  %v8035_v26 = vadd.f32 %v8034_v55, %v8033_v3  ;;  %v7926_v61 = vadd.f32 %v7925_v30, %v7924_v59  ;;  %v11087_v59 = vld [vmem:[#allocation4_spill] sm:$0xff]  ;;  %v6376_v30 = vld [vmem:[%s8951_s6 + $0x90] sm:$0xe] }
 0x1e8   : > { %v8036_v44 = vpop.f32.mrf.mxu1  ;;  %5723 = vmatmul.mubr.bf16.gmra.mxu1 %v11084_v60  ;;  %v7927_v58 = vpop.f32.mrf.mxu0  ;;  %v2014_v62 = vrot.slane %v8776_v9, 5 }
 0x1e9   : > { %v4155_v43 = vadd.f32 %v4154_v63, %v4124_v54  ;;  %v3880_v1 = vadd.f32 %v8035_v26, %v7923_v29  ;;  %5730 = vmatprep.mubr.bf16.mxu1 %v6917_v25 }
 0x1ea   : > { %v8037_v42 = vpop.f32.mrf.mxu1  ;;  %v7928_v2 = vpop.f32.mrf.mxu0  ;;  %v2015_v54 = vsel %vm9600_vm5, %v2013_v18, %v2014_v62  ;;  %v6377_v18 = vld [vmem:[%s8951_s6 + $0x9c] sm:$0xe]  ;;  %v3187_v62 = vrot.slane %v3186_v7, 2 }
 0x1eb   : > { %v7365_v11 = vpack.c.bf16 %v3880_v1, %v3877_v20  ;;  %v4086_v41 = vadd.f32 %v4085_v28, %v3880_v1  ;;  %v4125_v8 = vmul.f32 %v3880_v1, %v3880_v1  ;;  %v8038_v52 = vadd.f32 %v8037_v42, %v8036_v44  ;;  %v8777_v20 = vld [vmem:[%s8951_s6 + $0x94] sm:$0xf] }
 0x1ec   : > { %v8039_v53 = vpop.f32.mrf.mxu1  ;;  %v7930_v10 = vpop.f32.mrf.mxu0  ;;  %5570 = vmatmul.mubr.bf16.gmra.mxu0 %v11085_v14  ;;  %v7929_v15 = vadd.f32 %v7928_v2, %v7927_v58  ;;  %v2018_v29 = vrot.slane %v8777_v20, 5  ;;  %v2012_v28 = vsel %vm9600_vm5, %v6391_v47, %v2011_v23  ;;  %v6392_v42 = vrot.slane %v6376_v30, 9 }
 0x1ed   : > { %7565 = vst [vmem:[%s9920_s18 + $0xe8] sm:$0xff] %v7365_v11   ;;  %v4156_v56 = vadd.f32 %v4155_v43, %v4125_v8  ;;  %v3885_v34 = vadd.f32 %v8038_v52, %v7926_v61  ;;  %5577 = vmatprep.mubr.bf16.mxu0 %v11086_v5  ;;  %v11088_v61 = vld [vmem:[#allocation14_spill] sm:$0xff]  ;;  %v6919_v8 = vcombine.low %v2012_v28, %v2015_v54 }
 0x1ee   : > { %v8040_v45 = vpop.f32.mrf.mxu1  ;;  %v7931_v37 = vpop.f32.mrf.mxu0  ;;  %v2020_v2 = vrot.slane %v2018_v29, 4  ;;  %v3116_v52 = vadd.f32 %v3115_v48, %v10478_v39 }
 0x1ef   : > { %v4087_v27 = vadd.f32 %v4086_v41, %v3885_v34  ;;  %v4126_v19 = vmul.f32 %v3885_v34, %v3885_v34  ;;  %v8041_v40 = vadd.f32 %v8040_v45, %v8039_v53  ;;  %v7932_v55 = vadd.f32 %v7931_v37, %v7930_v10  ;;  %v11089_v41 = vld [vmem:[#allocation32_spill] sm:$0xff] }
 0x1f0   : > { %v8042_v3 = vpop.f32.mrf.mxu1  ;;  %5731 = vmatmul.mubr.bf16.gmra.mxu1 %v11087_v59  ;;  %v7933_v63 = vpop.f32.mrf.mxu0  ;;  %v2022_v45 = vsel %vm9600_vm5, %v2020_v2, %v2021_v16  ;;  %v8779_v37 = vld [vmem:[%s8951_s6 + $0xa0] sm:$0xf]  ;;  %v3117_v9 = vrot.slane %v3116_v52, 2 }
 0x1f1   : > { %v4157_v35 = vadd.f32 %v4156_v56, %v4126_v19  ;;  %v3888_v25 = vadd.f32 %v8041_v40, %v7929_v15  ;;  %5738 = vmatprep.mubr.bf16.mxu1 %v6918_v4  ;;  %v2019_v4 = vsel %vm9600_vm5, %v6392_v42, %v2018_v29  ;;  %v2025_v39 = vrot.slane %v8779_v37, 5 }
 0x1f2   : > { %v8043_v46 = vpop.f32.mrf.mxu1  ;;  %v7934_v12 = vpop.f32.mrf.mxu0  ;;  %v6920_v59 = vcombine.low %v2019_v4, %v2022_v45  ;;  %v3118_v54 = vadd.f32 %v3117_v9, %v3116_v52 }
 0x1f3   : > { %v7370_v26 = vpack.c.bf16 %v3888_v25, %v3885_v34  ;;  %v4088_v44 = vadd.f32 %v4087_v27, %v3888_v25  ;;  %v4127_v60 = vmul.f32 %v3888_v25, %v3888_v25  ;;  %v8044_v58 = vadd.f32 %v8043_v46, %v8042_v3  ;;  %v11090_v46 = vld [vmem:[#allocation33_spill] sm:$0xff] }
 0x1f4   : > { %v8045_v43 = vpop.f32.mrf.mxu1  ;;  %v8064_v1 = vpop.f32.mrf.mxu0  ;;  %5578 = vmatmul.mubr.bf16.gmra.mxu0 %v11088_v61  ;;  %v7935_v23 = vadd.f32 %v7934_v12, %v7933_v63  ;;  %v6393_v25 = vrot.slane %v6377_v18, 9  ;;  %v8780_v12 = vld [vmem:[%s8951_s6 + $0xa4] sm:$0x1] }
 0x1f5   : > { %7566 = vst [vmem:[%s9920_s18 + $0xf0] sm:$0xff] %v7370_v26   ;;  %v4158_v38 = vadd.f32 %v4157_v35, %v4127_v60  ;;  %v3893_v11 = vadd.f32 %v8044_v58, %v7932_v55  ;;  %5585 = vmatprep.mubr.bf16.mxu0 %v11089_v41  ;;  %v2027_v55 = vrot.slane %v2025_v39, 4  ;;  %v2028_v28 = vrot.slane %v8780_v12, 5 }
 0x1f6   : > { %v8046_v53 = vpop.f32.mrf.mxu1  ;;  %v8065_v10 = vpop.f32.mrf.mxu0  ;;  %v3188_v26 = vadd.f32 %v3187_v62, %v3186_v7  ;;  %v2026_v2 = vsel %vm9600_vm5, %v6393_v25, %v2025_v39  ;;  %v11091_v62 = vld [vmem:[#allocation34_spill] sm:$0xff] }
 0x1f7   : > { %v4089_v14 = vadd.f32 %v4088_v44, %v3893_v11  ;;  %v4128_v56 = vmul.f32 %v3893_v11, %v3893_v11  ;;  %v8047_v34 = vadd.f32 %v8046_v53, %v8045_v43  ;;  %v8066_v63 = vadd.f32 %v8065_v10, %v8064_v1  ;;  %v6378_v53 = vld [vmem:[%s8951_s6 + $0xa8] sm:$0xe]  ;;  %v8781_v10 = vld [vmem:[%s8951_s6 + $0xac] sm:$0xf] }
 0x1f8   : > { %v8176_v15 = vpop.f32.mrf.mxu1  ;;  %5739 = vmatmul.mubr.bf16.gmra.mxu1 %v10431_v49  ;;  %v8067_v5 = vpop.f32.mrf.mxu0  ;;  %v3189_v41 = vrot.slane %v3188_v26, 1 }
 0x1f9   : > { %v4159_v47 = vadd.f32 %v4158_v38, %v4128_v56  ;;  %v3896_v22 = vadd.f32 %v8047_v34, %v7935_v23  ;;  %5746 = vmatprep.mubr.bf16.mxu1 %v6919_v8  ;;  %v3119_v23 = vrot.slane %v3118_v54, 1 }
 0x1fa   : > { %v8177_v27 = vpop.f32.mrf.mxu1  ;;  %v8068_v19 = vpop.f32.mrf.mxu0 }
 0x1fb   : > { %v7375_v40 = vpack.c.bf16 %v3896_v22, %v3893_v11  ;;  %v4090_v49 = vadd.f32 %v4089_v14, %v3896_v22  ;;  %v4129_v3 = vmul.f32 %v3896_v22, %v3896_v22  ;;  %v8178_v20 = vadd.f32 %v8177_v27, %v8176_v15 }
 0x1fc   : > { %v8179_v29 = vpop.f32.mrf.mxu1  ;;  %v8070_v35 = vpop.f32.mrf.mxu0  ;;  %5586 = vmatmul.mubr.bf16.gmra.mxu0 %v9407_v32  ;;  %v8069_v57 = vadd.f32 %v8068_v19, %v8067_v5  ;;  %v2029_v11 = vsel %vm9600_vm5, %v2027_v55, %v2028_v28  ;;  %v6394_v27 = vrot.slane %v6378_v53, 9  ;;  %v11093_v53 = vld [vmem:[#allocation35_spill] sm:$0xff] }
 0x1fd   : > { %7567 = vst [vmem:[%s9920_s18 + $0xf8] sm:$0xff] %v7375_v40   ;;  %v4091_v30 = vrot.slane %v4090_v49, 4  ;;  %v4160_v48 = vadd.f32 %v4159_v47, %v4129_v3  ;;  %5593 = vmatprep.mubr.bf16.mxu0 %v11090_v46  ;;  %v4765_v61 = vadd.f32 %v8178_v20, %v8066_v63  ;;  %v6921_v47 = vcombine.low %v2026_v2, %v2029_v11  ;;  %v8782_v63 = vld [vmem:[%s8951_s6 + $0xb0] sm:$0x1]  ;;  %v6379_v11 = vld [vmem:[%s8951_s6 + $0xb4] sm:$0xe] }
 0x1fe   : > { %v8180_v44 = vpop.f32.mrf.mxu1  ;;  %v8071_v60 = vpop.f32.mrf.mxu0  ;;  %v2035_v20 = vrot.slane %v8782_v63, 5  ;;  %v11092_v46 = vld [vmem:[#allocation6_spill] sm:$0xff] }
 0x1ff   : > { %v4092_v58 = vadd.f32 %v4091_v30, %v4090_v49  ;;  %v4161_v43 = vrot.slane %v4160_v48, 4  ;;  %v8181_v1 = vadd.f32 %v8180_v44, %v8179_v29  ;;  %v8072_v8 = vadd.f32 %v8071_v60, %v8070_v35 }
 0x200   : > { %v8182_v32 = vpop.f32.mrf.mxu1  ;;  %5747 = vmatmul.mubr.bf16.gmra.mxu1 %v10458_v17  ;;  %v8073_v42 = vpop.f32.mrf.mxu0  ;;  %v2032_v17 = vrot.slane %v8781_v10, 5  ;;  %v5090_v5 = vmul.f32 %v4765_v61, %v4765_v61  ;;  %v3120_v29 = vadd.f32 %v3119_v23, %v3118_v54 }
 0x201   : > { %v4093_v21 = vrot.slane %v4092_v58, 2  ;;  %v4162_v16 = vadd.f32 %v4161_v43, %v4160_v48  ;;  %v4768_v38 = vadd.f32 %v8181_v1, %v8069_v57  ;;  %5754 = vmatprep.mubr.bf16.mxu1 %v6920_v59 }
 0x202   : > { %v8183_v52 = vpop.f32.mrf.mxu1  ;;  %v8074_v7 = vpop.f32.mrf.mxu0  ;;  %v2034_v59 = vrot.slane %v2032_v17, 4  ;;  %v2033_v54 = vsel %vm9600_vm5, %v6394_v27, %v2032_v17 }
 0x203   : > { %v4094_v14 = vadd.f32 %v4093_v21, %v4092_v58  ;;  %v4163_v56 = vrot.slane %v4162_v16, 2  ;;  %v7380_v34 = vpack.c.bf16 %v4768_v38, %v4765_v61  ;;  %v5052_v15 = vadd.f32 %v4768_v38, %v4765_v61 }
 0x204   : > { %v5091_v4 = vmul.f32 %v4768_v38, %v4768_v38  ;;  %v8184_v45 = vadd.f32 %v8183_v52, %v8182_v32  ;;  %v8185_v37 = vpop.f32.mrf.mxu1  ;;  %v8076_v39 = vpop.f32.mrf.mxu0  ;;  %5594 = vmatmul.mubr.bf16.gmra.mxu0 %v9443_v0  ;;  %v8075_v9 = vadd.f32 %v8074_v7, %v8073_v42  ;;  %v3190_v0 = vadd.f32 %v3189_v41, %v3188_v26  ;;  %v8783_v32 = vld [vmem:[%s8951_s6 + $0xb8] sm:$0xf] }
 0x205   : > { %v4095_v22 = vrot.slane %v4094_v14, 1  ;;  %v4164_v18 = vadd.f32 %v4163_v56, %v4162_v16  ;;  %7568 = vst [vmem:[%s9920_s18 + $0x100] sm:$0xff] %v7380_v34   ;;  %5601 = vmatprep.mubr.bf16.mxu0 %v11091_v62  ;;  %v2036_v61 = vsel %vm9600_vm5, %v2034_v59, %v2035_v20  ;;  %v2039_v42 = vrot.slane %v8783_v32, 5 }
 0x206   : > { %v5122_v19 = vadd.f32 %v5091_v4, %v5090_v5  ;;  %v4773_v40 = vadd.f32 %v8184_v45, %v8072_v8  ;;  %v8186_v49 = vpop.f32.mrf.mxu1  ;;  %v8077_v3 = vpop.f32.mrf.mxu0  ;;  %v6922_v10 = vcombine.low %v2033_v54, %v2036_v61  ;;  %v6395_v34 = vrot.slane %v6379_v11, 9  ;;  %v8784_v5 = vld [vmem:[%s8951_s6 + $0xbc] sm:$0x1] }
 0x207   : > { %v4096_v35 = vadd.f32 %v4095_v22, %v4094_v14  ;;  %v4165_v25 = vrot.slane %v4164_v18, 1  ;;  %v8187_v55 = vadd.f32 %v8186_v49, %v8185_v37  ;;  %v8078_v43 = vadd.f32 %v8077_v3, %v8076_v39  ;;  %v11094_v22 = vld [vmem:[#allocation7_spill] sm:$0xff]  ;;  %v8785_v3 = vld [vmem:[%s8951_s6 + $0xc4] sm:$0xf] }
 0x208   : > { %v5053_v30 = vadd.f32 %v5052_v15, %v4773_v40  ;;  %v5092_v48 = vmul.f32 %v4773_v40, %v4773_v40  ;;  %v8188_v57 = vpop.f32.mrf.mxu1  ;;  %5755 = vmatmul.mubr.bf16.gmra.mxu1 %v11092_v46  ;;  %v8079_v12 = vpop.f32.mrf.mxu0  ;;  %v2041_v15 = vrot.slane %v2039_v42, 4  ;;  %v2042_v4 = vrot.slane %v8784_v5, 5  ;;  %v6381_v5 = vld [vmem:[%s8951_s6 + $0xcc] sm:$0xe] }
 0x209   : > { %v10737_v28 = vadd.f32 %v4096_v35, %v3120_v29  ;;  %v4166_v44 = vadd.f32 %v4165_v25, %v4164_v18  ;;  %v4776_v60 = vadd.f32 %v8187_v55, %v8075_v9  ;;  %5762 = vmatprep.mubr.bf16.mxu1 %v6921_v47  ;;  %v2046_v59 = vrot.slane %v8785_v3, 5  ;;  %v6380_v25 = vld [vmem:[%s8951_s6 + $0xc0] sm:$0xe] }
 0x20a   : > { %v5123_v58 = vadd.f32 %v5122_v19, %v5092_v48  ;;  %v8189_v26 = vpop.f32.mrf.mxu1  ;;  %v8080_v1 = vpop.f32.mrf.mxu0  ;;  %v2043_v49 = vsel %vm9600_vm5, %v2041_v15, %v2042_v4 }
 0x20b   : > { %v10744_v2 = vadd.f32 %v4166_v44, %v3190_v0  ;;  %v7385_v21 = vpack.c.bf16 %v4776_v60, %v4773_v40  ;;  %v5054_v16 = vadd.f32 %v5053_v30, %v4776_v60  ;;  %v5093_v38 = vmul.f32 %v4776_v60, %v4776_v60  ;;  %v11095_v30 = vld [vmem:[#allocation19_spill] sm:$0xff] }
 0x20c   : > { %v8190_v23 = vadd.f32 %v8189_v26, %v8188_v57  ;;  %v8191_v41 = vpop.f32.mrf.mxu1  ;;  %v8082_v8 = vpop.f32.mrf.mxu0  ;;  %5602 = vmatmul.mubr.bf16.gmra.mxu0 %v9479_v33  ;;  %v8081_v7 = vadd.f32 %v8080_v1, %v8079_v12  ;;  %v2040_v40 = vsel %vm9600_vm5, %v6395_v34, %v2039_v42  ;;  %v11096_v12 = vld [vmem:[#allocation36_spill] sm:$0xff]  ;;  %v8786_v26 = vld [vmem:[%s8951_s6 + $0xc8] sm:$0x1] }
 0x20d   : > { %7569 = vst [vmem:[%s9920_s18 + $0x108] sm:$0xff] %v7385_v21   ;;  %v5124_v52 = vadd.f32 %v5123_v58, %v5093_v38  ;;  %5609 = vmatprep.mubr.bf16.mxu0 %v11093_v53  ;;  %v6923_v44 = vcombine.low %v2040_v40, %v2043_v49  ;;  %v6396_v58 = vrot.slane %v6380_v25, 9  ;;  %v2049_v1 = vrot.slane %v8786_v26, 5 }
 0x20e   : > { %v4781_v17 = vadd.f32 %v8190_v23, %v8078_v43  ;;  %v8192_v14 = vpop.f32.mrf.mxu1  ;;  %v8083_v56 = vpop.f32.mrf.mxu0  ;;  %v2048_v43 = vrot.slane %v2046_v59, 4 }
 0x20f   : > { %v8193_v45 = vadd.f32 %v8192_v14, %v8191_v41  ;;  %v8084_v9 = vadd.f32 %v8083_v56, %v8082_v8 }
 0x210   : > { %v5055_v37 = vadd.f32 %v5054_v16, %v4781_v17  ;;  %v5094_v39 = vmul.f32 %v4781_v17, %v4781_v17  ;;  %v8194_v47 = vpop.f32.mrf.mxu1  ;;  %5763 = vmatmul.mubr.bf16.gmra.mxu1 %v11094_v22  ;;  %v8085_v33 = vpop.f32.mrf.mxu0  ;;  %v11097_v16 = vld [vmem:[#allocation8_spill] sm:$0xff]  ;;  %v2050_v53 = vsel %vm9600_vm5, %v2048_v43, %v2049_v1  ;;  %v11098_v22 = vld [vmem:[#allocation37_spill] sm:$0xff] }
 0x211   : > { %v4784_v18 = vadd.f32 %v8193_v45, %v8081_v7  ;;  %5770 = vmatprep.mubr.bf16.mxu1 %v6922_v10  ;;  %v2047_v7 = vsel %vm9600_vm5, %v6396_v58, %v2046_v59  ;;  %v8787_v10 = vld [vmem:[%s8951_s6 + $0xd0] sm:$0xf]  ;;  %v11099_v43 = vld [vmem:[#allocation29_spill] sm:$0xff] }
 0x212   : > { %v5125_v62 = vadd.f32 %v5124_v52, %v5094_v39  ;;  %v8195_v27 = vpop.f32.mrf.mxu1  ;;  %v8086_v19 = vpop.f32.mrf.mxu0 }
 0x213   : > { %v7390_v63 = vpack.c.bf16 %v4784_v18, %v4781_v17  ;;  %v5056_v20 = vadd.f32 %v5055_v37, %v4784_v18  ;;  %v5095_v29 = vmul.f32 %v4784_v18, %v4784_v18  ;;  %v8196_v35 = vadd.f32 %v8195_v27, %v8194_v47 }
 0x214   : > { %v8197_v55 = vpop.f32.mrf.mxu1  ;;  %v8088_v0 = vpop.f32.mrf.mxu0  ;;  %5610 = vmatmul.mubr.bf16.gmra.mxu0 %v11095_v30  ;;  %v8087_v46 = vadd.f32 %v8086_v19, %v8085_v33  ;;  %v2053_v17 = vrot.slane %v8787_v10, 5  ;;  %v6924_v33 = vcombine.low %v2047_v7, %v2050_v53  ;;  %v8788_v19 = vld [vmem:[%s8951_s6 + $0xd4] sm:$0x1]  ;;  %s6221_s6 = sshll.u32 %s11105_s12, 1 }
 0x215   : > { %7570 = vst [vmem:[%s9920_s18 + $0x110] sm:$0xff] %v7390_v63   ;;  %v5126_v48 = vadd.f32 %v5125_v62, %v5095_v29  ;;  %v4789_v57 = vadd.f32 %v8196_v35, %v8084_v9  ;;  %5617 = vmatprep.mubr.bf16.mxu0 %v11096_v12  ;;  %v6397_v62 = vrot.slane %v6381_v5, 9  ;;  %v2056_v40 = vrot.slane %v8788_v19, 5  ;;  %s214_s17 = scalar_lea.vmem %s10967_s3, %s6221_s6 }
 0x216   : > { %v8198_v60 = vpop.f32.mrf.mxu1  ;;  %v8089_v54 = vpop.f32.mrf.mxu0  ;;  %v2055_v27 = vrot.slane %v2053_v17, 4 }
 0x217   : > { %v5057_v61 = vadd.f32 %v5056_v20, %v4789_v57  ;;  %v5096_v32 = vmul.f32 %v4789_v57, %v4789_v57  ;;  %v8199_v42 = vadd.f32 %v8198_v60, %v8197_v55  ;;  %v8090_v41 = vadd.f32 %v8089_v54, %v8088_v0 }
 0x218   : > { %v8200_v21 = vpop.f32.mrf.mxu1  ;;  %5771 = vmatmul.mubr.bf16.gmra.mxu1 %v11097_v16  ;;  %v8091_v38 = vpop.f32.mrf.mxu0  ;;  %v2054_v0 = vsel %vm9600_vm5, %v6397_v62, %v2053_v17  ;;  %v2057_v30 = vsel %vm9600_vm5, %v2055_v27, %v2056_v40 }
 0x219   : > { %v5127_v11 = vadd.f32 %v5126_v48, %v5096_v32  ;;  %v4792_v23 = vadd.f32 %v8199_v42, %v8087_v46  ;;  %5778 = vmatprep.mubr.bf16.mxu1 %v6923_v44  ;;  %v6925_v26 = vcombine.low %v2054_v0, %v2057_v30 }
 0x21a   : > { %v8201_v8 = vpop.f32.mrf.mxu1  ;;  %v8092_v52 = vpop.f32.mrf.mxu0 }
 0x21b   : > { %v7395_v14 = vpack.c.bf16 %v4792_v23, %v4789_v57  ;;  %v5058_v56 = vadd.f32 %v5057_v61, %v4792_v23  ;;  %v5097_v34 = vmul.f32 %v4792_v23, %v4792_v23  ;;  %v8202_v15 = vadd.f32 %v8201_v8, %v8200_v21 }
 0x21c   : > { %v8203_v4 = vpop.f32.mrf.mxu1  ;;  %v8094_v45 = vpop.f32.mrf.mxu0  ;;  %5618 = vmatmul.mubr.bf16.gmra.mxu0 %v9545_v24  ;;  %v8093_v47 = vadd.f32 %v8092_v52, %v8091_v38 }
 0x21d   : > { %7571 = vst [vmem:[%s9920_s18 + $0x118] sm:$0xff] %v7395_v14   ;;  %v5128_v37 = vadd.f32 %v5127_v11, %v5097_v34  ;;  %v4797_v39 = vadd.f32 %v8202_v15, %v8090_v41  ;;  %5625 = vmatprep.mubr.bf16.mxu0 %v11098_v22 }
 0x21e   : > { %v8204_v18 = vpop.f32.mrf.mxu1  ;;  %v8095_v9 = vpop.f32.mrf.mxu0 }
 0x21f   : > { %v5059_v49 = vadd.f32 %v5058_v56, %v4797_v39  ;;  %v5098_v3 = vmul.f32 %v4797_v39, %v4797_v39  ;;  %v8205_v59 = vadd.f32 %v8204_v18, %v8203_v4  ;;  %v8096_v35 = vadd.f32 %v8095_v9, %v8094_v45 }
 0x220   : > { %v8206_v63 = vpop.f32.mrf.mxu1  ;;  %5779 = vmatmul.mubr.bf16.gmra.mxu1 %v10562_v13  ;;  %v8097_v24 = vpop.f32.mrf.mxu0 }
 0x221   : > { %v5129_v20 = vadd.f32 %v5128_v37, %v5098_v3  ;;  %v4800_v29 = vadd.f32 %v8205_v59, %v8093_v47  ;;  %5786 = vmatprep.mubr.bf16.mxu1 %v6924_v33 }
 0x222   : > { %v8207_v25 = vpop.f32.mrf.mxu1  ;;  %v8098_v55 = vpop.f32.mrf.mxu0 }
 0x223   : > { %v7400_v48 = vpack.c.bf16 %v4800_v29, %v4797_v39  ;;  %v5060_v57 = vadd.f32 %v5059_v49, %v4800_v29  ;;  %v5099_v46 = vmul.f32 %v4800_v29, %v4800_v29  ;;  %v8208_v12 = vadd.f32 %v8207_v25, %v8206_v63 }
 0x224   : > { %v8209_v44 = vpop.f32.mrf.mxu1  ;;  %v8100_v13 = vpop.f32.mrf.mxu0  ;;  %5626 = vmatmul.mubr.bf16.gmra.mxu0 %v9581_v50  ;;  %v8099_v58 = vadd.f32 %v8098_v55, %v8097_v24 }
 0x225   : > { %7572 = vst [vmem:[%s9920_s18 + $0x120] sm:$0xff] %v7400_v48   ;;  %v5130_v60 = vadd.f32 %v5129_v20, %v5099_v46  ;;  %v4805_v54 = vadd.f32 %v8208_v12, %v8096_v35  ;;  %5633 = vmatprep.mubr.bf16.mxu0 %v11099_v43 }
 0x226   : > { %v8210_v1 = vpop.f32.mrf.mxu1  ;;  %v8101_v61 = vpop.f32.mrf.mxu0 }
 0x227   : > { %v5061_v32 = vadd.f32 %v5060_v57, %v4805_v54  ;;  %v5100_v36 = vmul.f32 %v4805_v54, %v4805_v54  ;;  %v8211_v42 = vadd.f32 %v8210_v1, %v8209_v44  ;;  %v8102_v50 = vadd.f32 %v8101_v61, %v8100_v13 }
 0x228   : > { %v8212_v21 = vpop.f32.mrf.mxu1  ;;  %5787 = vmatmul.mubr.bf16.gmra.mxu1 %v10581_v51  ;;  %v8103_v16 = vpop.f32.mrf.mxu0 }
 0x229   : > { %v5131_v38 = vadd.f32 %v5130_v60, %v5100_v36  ;;  %v4808_v11 = vadd.f32 %v8211_v42, %v8099_v58  ;;  %5794 = vmatprep.mubr.bf16.mxu1 %v6925_v26 }
 0x22a   : > { %v8213_v23 = vpop.f32.mrf.mxu1  ;;  %v8104_v41 = vpop.f32.mrf.mxu0 }
 0x22b   : > { %v7405_v8 = vpack.c.bf16 %v4808_v11, %v4805_v54  ;;  %v5062_v52 = vadd.f32 %v5061_v32, %v4808_v11  ;;  %v5101_v7 = vmul.f32 %v4808_v11, %v4808_v11  ;;  %v8214_v53 = vadd.f32 %v8213_v23, %v8212_v21 }
 0x22c   : > { %v8215_v10 = vpop.f32.mrf.mxu1  ;;  %v8106_v17 = vpop.f32.mrf.mxu0  ;;  %5634 = vmatmul.mubr.bf16.gmra.mxu0 %v9618_v6  ;;  %v8105_v34 = vadd.f32 %v8104_v41, %v8103_v16 }
 0x22d   : > { %7573 = vst [vmem:[%s9920_s18 + $0x128] sm:$0xff] %v7405_v8   ;;  %v5132_v14 = vadd.f32 %v5131_v38, %v5101_v7  ;;  %v4813_v56 = vadd.f32 %v8214_v53, %v8102_v50 }
 0x22e   : > { %v8216_v51 = vpop.f32.mrf.mxu1  ;;  %v8107_v15 = vpop.f32.mrf.mxu0 }
 0x22f   : > { %v5063_v5 = vadd.f32 %v5062_v52, %v4813_v56  ;;  %v5102_v4 = vmul.f32 %v4813_v56, %v4813_v56  ;;  %v8217_v45 = vadd.f32 %v8216_v51, %v8215_v10  ;;  %v8108_v33 = vadd.f32 %v8107_v15, %v8106_v17 }
 0x230   : > { %v8218_v37 = vpop.f32.mrf.mxu1  ;;  %5795 = vmatmul.mubr.bf16.gmra.mxu1 %v10596_v31  ;;  %v8109_v39 = vpop.f32.mrf.mxu0 }
 0x231   : > { %v5133_v47 = vadd.f32 %v5132_v14, %v5102_v4  ;;  %v4816_v22 = vadd.f32 %v8217_v45, %v8105_v34 }
 0x232   : > { %v8219_v18 = vpop.f32.mrf.mxu1  ;;  %v8110_v9 = vpop.f32.mrf.mxu0 }
 0x233   : > { %v7410_v6 = vpack.c.bf16 %v4816_v22, %v4813_v56  ;;  %v5064_v62 = vadd.f32 %v5063_v5, %v4816_v22  ;;  %v5103_v27 = vmul.f32 %v4816_v22, %v4816_v22  ;;  %v8220_v19 = vadd.f32 %v8219_v18, %v8218_v37 }
 0x234   : > { %v8221_v40 = vpop.f32.mrf.mxu1  ;;  %v8112_v49 = vpop.f32.mrf.mxu0  ;;  %v8111_v63 = vadd.f32 %v8110_v9, %v8109_v39 }
 0x235   : > { %7574 = vst [vmem:[%s9920_s18 + $0x130] sm:$0xff] %v7410_v6   ;;  %v5134_v3 = vadd.f32 %v5133_v47, %v5103_v27  ;;  %v4821_v59 = vadd.f32 %v8220_v19, %v8108_v33 }
 0x236   : > { %v8222_v24 = vpop.f32.mrf.mxu1  ;;  %v8113_v20 = vpop.f32.mrf.mxu0 }
 0x237   : > { %v5065_v29 = vadd.f32 %v5064_v62, %v4821_v59  ;;  %v5104_v31 = vmul.f32 %v4821_v59, %v4821_v59  ;;  %v8223_v35 = vadd.f32 %v8222_v24, %v8221_v40  ;;  %v8114_v48 = vadd.f32 %v8113_v20, %v8112_v49 }
 0x238   : > { %v8224_v25 = vpop.f32.mrf.mxu1  ;;  %v8115_v55 = vpop.f32.mrf.mxu0 }
 0x239   : > { %v5135_v0 = vadd.f32 %v5134_v3, %v5104_v31  ;;  %v4824_v30 = vadd.f32 %v8223_v35, %v8111_v63 }
 0x23a   : > { %v8225_v57 = vpop.f32.mrf.mxu1  ;;  %v8116_v46 = vpop.f32.mrf.mxu0 }
 0x23b   : > { %v7415_v12 = vpack.c.bf16 %v4824_v30, %v4821_v59  ;;  %v5066_v44 = vadd.f32 %v5065_v29, %v4824_v30  ;;  %v5105_v13 = vmul.f32 %v4824_v30, %v4824_v30  ;;  %v8226_v60 = vadd.f32 %v8225_v57, %v8224_v25 }
 0x23c   : > { %v8227_v54 = vpop.f32.mrf.mxu1  ;;  %v8118_v58 = vpop.f32.mrf.mxu0  ;;  %v8117_v1 = vadd.f32 %v8116_v46, %v8115_v55 }
 0x23d   : > { %7575 = vst [vmem:[%s9920_s18 + $0x138] sm:$0xff] %v7415_v12   ;;  %v5136_v43 = vadd.f32 %v5135_v0, %v5105_v13  ;;  %v4829_v26 = vadd.f32 %v8226_v60, %v8114_v48 }
 0x23e   : > { %v8228_v61 = vpop.f32.mrf.mxu1  ;;  %v8119_v32 = vpop.f32.mrf.mxu0 }
 0x23f   : > { %v5067_v36 = vadd.f32 %v5066_v44, %v4829_v26  ;;  %v5106_v42 = vmul.f32 %v4829_v26, %v4829_v26  ;;  %v8229_v21 = vadd.f32 %v8228_v61, %v8227_v54  ;;  %v8120_v23 = vadd.f32 %v8119_v32, %v8118_v58 }
 0x240   : > { %v8230_v16 = vpop.f32.mrf.mxu1  ;;  %v8121_v38 = vpop.f32.mrf.mxu0 }
 0x241   : > { %v5137_v11 = vadd.f32 %v5136_v43, %v5106_v42  ;;  %v4832_v50 = vadd.f32 %v8229_v21, %v8117_v1 }
 0x242   : > { %v8231_v41 = vpop.f32.mrf.mxu1  ;;  %v8122_v8 = vpop.f32.mrf.mxu0 }
 0x243   : > { %v7420_v52 = vpack.c.bf16 %v4832_v50, %v4829_v26  ;;  %v5068_v7 = vadd.f32 %v5067_v36, %v4832_v50  ;;  %v5107_v53 = vmul.f32 %v4832_v50, %v4832_v50  ;;  %v8232_v10 = vadd.f32 %v8231_v41, %v8230_v16 }
 0x244   : > { %v8233_v17 = vpop.f32.mrf.mxu1  ;;  %v8124_v14 = vpop.f32.mrf.mxu0  ;;  %v8123_v51 = vadd.f32 %v8122_v8, %v8121_v38 }
 0x245   : > { %7576 = vst [vmem:[%s9920_s18 + $0x140] sm:$0xff] %v7420_v52   ;;  %v5138_v56 = vadd.f32 %v5137_v11, %v5107_v53  ;;  %v4837_v34 = vadd.f32 %v8232_v10, %v8120_v23 }
 0x246   : > { %v8234_v15 = vpop.f32.mrf.mxu1  ;;  %v8125_v5 = vpop.f32.mrf.mxu0 }
 0x247   : > { %v5069_v4 = vadd.f32 %v5068_v7, %v4837_v34  ;;  %v5108_v45 = vmul.f32 %v4837_v34, %v4837_v34  ;;  %v8235_v37 = vadd.f32 %v8234_v15, %v8233_v17  ;;  %v8126_v18 = vadd.f32 %v8125_v5, %v8124_v14 }
 0x248   : > { %v8236_v39 = vpop.f32.mrf.mxu1  ;;  %v8127_v47 = vpop.f32.mrf.mxu0 }
 0x249   : > { %v5139_v22 = vadd.f32 %v5138_v56, %v5108_v45  ;;  %v4840_v33 = vadd.f32 %v8235_v37, %v8123_v51 }
 0x24a   : > { %v8237_v9 = vpop.f32.mrf.mxu1  ;;  %v8128_v6 = vpop.f32.mrf.mxu0 }
 0x24b   : > { %v7425_v62 = vpack.c.bf16 %v4840_v33, %v4837_v34  ;;  %v5070_v27 = vadd.f32 %v5069_v4, %v4840_v33  ;;  %v5109_v19 = vmul.f32 %v4840_v33, %v4840_v33  ;;  %v8238_v40 = vadd.f32 %v8237_v9, %v8236_v39 }
 0x24c   : > { %v8239_v49 = vpop.f32.mrf.mxu1  ;;  %v8130_v3 = vpop.f32.mrf.mxu0  ;;  %v8129_v24 = vadd.f32 %v8128_v6, %v8127_v47 }
 0x24d   : > { %7577 = vst [vmem:[%s9920_s18 + $0x148] sm:$0xff] %v7425_v62   ;;  %v5140_v59 = vadd.f32 %v5139_v22, %v5109_v19  ;;  %v4845_v63 = vadd.f32 %v8238_v40, %v8126_v18 }
 0x24e   : > { %v8240_v20 = vpop.f32.mrf.mxu1  ;;  %v8131_v29 = vpop.f32.mrf.mxu0 }
 0x24f   : > { %v5071_v31 = vadd.f32 %v5070_v27, %v4845_v63  ;;  %v5110_v35 = vmul.f32 %v4845_v63, %v4845_v63  ;;  %v8241_v25 = vadd.f32 %v8240_v20, %v8239_v49  ;;  %v8132_v57 = vadd.f32 %v8131_v29, %v8130_v3 }
 0x250   : > { %v8242_v55 = vpop.f32.mrf.mxu1  ;;  %v8133_v0 = vpop.f32.mrf.mxu0 }
 0x251   : > { %v5141_v30 = vadd.f32 %v5140_v59, %v5110_v35  ;;  %v4848_v48 = vadd.f32 %v8241_v25, %v8129_v24 }
 0x252   : > { %v8243_v46 = vpop.f32.mrf.mxu1  ;;  %v8134_v12 = vpop.f32.mrf.mxu0 }
 0x253   : > { %v7430_v44 = vpack.c.bf16 %v4848_v48, %v4845_v63  ;;  %v5072_v13 = vadd.f32 %v5071_v31, %v4848_v48  ;;  %v5111_v60 = vmul.f32 %v4848_v48, %v4848_v48  ;;  %v8244_v54 = vadd.f32 %v8243_v46, %v8242_v55 }
 0x254   : > { %v8245_v58 = vpop.f32.mrf.mxu1  ;;  %v8136_v43 = vpop.f32.mrf.mxu0  ;;  %v8135_v61 = vadd.f32 %v8134_v12, %v8133_v0 }
 0x255   : > { %7578 = vst [vmem:[%s9920_s18 + $0x150] sm:$0xff] %v7430_v44   ;;  %v5142_v26 = vadd.f32 %v5141_v30, %v5111_v60  ;;  %v4853_v1 = vadd.f32 %v8244_v54, %v8132_v57 }
 0x256   : > { %v8246_v32 = vpop.f32.mrf.mxu1  ;;  %v8137_v36 = vpop.f32.mrf.mxu0 }
 0x257   : > { %v5073_v42 = vadd.f32 %v5072_v13, %v4853_v1  ;;  %v5112_v21 = vmul.f32 %v4853_v1, %v4853_v1  ;;  %v8247_v16 = vadd.f32 %v8246_v32, %v8245_v58  ;;  %v8138_v41 = vadd.f32 %v8137_v36, %v8136_v43 }
 0x258   : > { %v8248_v38 = vpop.f32.mrf.mxu1  ;;  %v8139_v11 = vpop.f32.mrf.mxu0 }
 0x259   : > { %v5143_v50 = vadd.f32 %v5142_v26, %v5112_v21  ;;  %v4856_v23 = vadd.f32 %v8247_v16, %v8135_v61 }
 0x25a   : > { %v8249_v8 = vpop.f32.mrf.mxu1  ;;  %v8140_v52 = vpop.f32.mrf.mxu0 }
 0x25b   : > { %v7435_v7 = vpack.c.bf16 %v4856_v23, %v4853_v1  ;;  %v5074_v53 = vadd.f32 %v5073_v42, %v4856_v23  ;;  %v5113_v10 = vmul.f32 %v4856_v23, %v4856_v23  ;;  %v8250_v17 = vadd.f32 %v8249_v8, %v8248_v38 }
 0x25c   : > { %v8251_v14 = vpop.f32.mrf.mxu1  ;;  %v8142_v56 = vpop.f32.mrf.mxu0  ;;  %v8141_v15 = vadd.f32 %v8140_v52, %v8139_v11 }
 0x25d   : > { %7579 = vst [vmem:[%s9920_s18 + $0x158] sm:$0xff] %v7435_v7   ;;  %v5144_v34 = vadd.f32 %v5143_v50, %v5113_v10  ;;  %v4861_v51 = vadd.f32 %v8250_v17, %v8138_v41 }
 0x25e   : > { %v8252_v5 = vpop.f32.mrf.mxu1  ;;  %v8143_v4 = vpop.f32.mrf.mxu0 }
 0x25f   : > { %v5075_v45 = vadd.f32 %v5074_v53, %v4861_v51  ;;  %v5114_v37 = vmul.f32 %v4861_v51, %v4861_v51  ;;  %v8253_v39 = vadd.f32 %v8252_v5, %v8251_v14  ;;  %v8144_v9 = vadd.f32 %v8143_v4, %v8142_v56 }
 0x260   : > { %v8254_v47 = vpop.f32.mrf.mxu1  ;;  %v8145_v22 = vpop.f32.mrf.mxu0 }
 0x261   : > { %v5145_v33 = vadd.f32 %v5144_v34, %v5114_v37  ;;  %v4864_v18 = vadd.f32 %v8253_v39, %v8141_v15 }
 0x262   : > { %v8255_v6 = vpop.f32.mrf.mxu1  ;;  %v8146_v62 = vpop.f32.mrf.mxu0 }
 0x263   : > { %v7440_v27 = vpack.c.bf16 %v4864_v18, %v4861_v51  ;;  %v5076_v19 = vadd.f32 %v5075_v45, %v4864_v18  ;;  %v5115_v40 = vmul.f32 %v4864_v18, %v4864_v18  ;;  %v8256_v49 = vadd.f32 %v8255_v6, %v8254_v47 }
 0x264   : > { %v8257_v3 = vpop.f32.mrf.mxu1  ;;  %v8148_v59 = vpop.f32.mrf.mxu0  ;;  %v8147_v20 = vadd.f32 %v8146_v62, %v8145_v22 }
 0x265   : > { %7580 = vst [vmem:[%s9920_s18 + $0x160] sm:$0xff] %v7440_v27   ;;  %v5146_v63 = vadd.f32 %v5145_v33, %v5115_v40  ;;  %v4869_v24 = vadd.f32 %v8256_v49, %v8144_v9 }
 0x266   : > { %v8258_v29 = vpop.f32.mrf.mxu1  ;;  %v8149_v31 = vpop.f32.mrf.mxu0 }
 0x267   : > { %v5077_v35 = vadd.f32 %v5076_v19, %v4869_v24  ;;  %v5116_v25 = vmul.f32 %v4869_v24, %v4869_v24  ;;  %v8259_v55 = vadd.f32 %v8258_v29, %v8257_v3  ;;  %v8150_v46 = vadd.f32 %v8149_v31, %v8148_v59 }
 0x268   : > { %v8260_v0 = vpop.f32.mrf.mxu1  ;;  %v8151_v30 = vpop.f32.mrf.mxu0 }
 0x269   : > { %v5147_v48 = vadd.f32 %v5146_v63, %v5116_v25  ;;  %v4872_v57 = vadd.f32 %v8259_v55, %v8147_v20 }
 0x26a   : > { %v8261_v12 = vpop.f32.mrf.mxu1  ;;  %v8152_v44 = vpop.f32.mrf.mxu0 }
 0x26b   : > { %v7445_v13 = vpack.c.bf16 %v4872_v57, %v4869_v24  ;;  %v5078_v60 = vadd.f32 %v5077_v35, %v4872_v57  ;;  %v5117_v54 = vmul.f32 %v4872_v57, %v4872_v57  ;;  %v8262_v58 = vadd.f32 %v8261_v12, %v8260_v0 }
 0x26c   : > { %v8263_v43 = vpop.f32.mrf.mxu1  ;;  %v8154_v26 = vpop.f32.mrf.mxu0  ;;  %v8153_v32 = vadd.f32 %v8152_v44, %v8151_v30 }
 0x26d   : > { %7581 = vst [vmem:[%s9920_s18 + $0x168] sm:$0xff] %v7445_v13   ;;  %v5148_v1 = vadd.f32 %v5147_v48, %v5117_v54  ;;  %v4877_v61 = vadd.f32 %v8262_v58, %v8150_v46 }
 0x26e   : > { %v8264_v36 = vpop.f32.mrf.mxu1  ;;  %v8155_v42 = vpop.f32.mrf.mxu0 }
 0x26f   : > { %v5079_v21 = vadd.f32 %v5078_v60, %v4877_v61  ;;  %v5118_v16 = vmul.f32 %v4877_v61, %v4877_v61  ;;  %v8265_v38 = vadd.f32 %v8264_v36, %v8263_v43  ;;  %v8156_v8 = vadd.f32 %v8155_v42, %v8154_v26 }
 0x270   : > { %v8266_v11 = vpop.f32.mrf.mxu1  ;;  %v8157_v50 = vpop.f32.mrf.mxu0 }
 0x271   : > { %v5149_v23 = vadd.f32 %v5148_v1, %v5118_v16  ;;  %v4880_v41 = vadd.f32 %v8265_v38, %v8153_v32 }
 0x272   : > { %v8267_v52 = vpop.f32.mrf.mxu1  ;;  %v8158_v7 = vpop.f32.mrf.mxu0 }
 0x273   : > { %v7450_v53 = vpack.c.bf16 %v4880_v41, %v4877_v61  ;;  %v5080_v10 = vadd.f32 %v5079_v21, %v4880_v41  ;;  %v5119_v17 = vmul.f32 %v4880_v41, %v4880_v41  ;;  %v8268_v14 = vadd.f32 %v8267_v52, %v8266_v11 }
 0x274   : > { %v8269_v56 = vpop.f32.mrf.mxu1  ;;  %v8288_v34 = vpop.f32.mrf.mxu0  ;;  %v8159_v5 = vadd.f32 %v8158_v7, %v8157_v50 }
 0x275   : > { %7582 = vst [vmem:[%s9920_s18 + $0x170] sm:$0xff] %v7450_v53   ;;  %v5150_v51 = vadd.f32 %v5149_v23, %v5119_v17  ;;  %v4885_v15 = vadd.f32 %v8268_v14, %v8156_v8 }
 0x276   : > { %v8270_v4 = vpop.f32.mrf.mxu1  ;;  %v8289_v45 = vpop.f32.mrf.mxu0 }
 0x277   : > { %v5081_v37 = vadd.f32 %v5080_v10, %v4885_v15  ;;  %v5120_v39 = vmul.f32 %v4885_v15, %v4885_v15  ;;  %v8271_v47 = vadd.f32 %v8270_v4, %v8269_v56  ;;  %v8290_v49 = vadd.f32 %v8289_v45, %v8288_v34 }
 0x278   : > { %v8400_v22 = vpop.f32.mrf.mxu1  ;;  %v8291_v33 = vpop.f32.mrf.mxu0 }
 0x279   : > { %v5151_v18 = vadd.f32 %v5150_v51, %v5120_v39  ;;  %v4888_v9 = vadd.f32 %v8271_v47, %v8159_v5 }
 0x27a   : > { %v8401_v6 = vpop.f32.mrf.mxu1  ;;  %v8292_v62 = vpop.f32.mrf.mxu0 }
 0x27b   : > { %v7455_v27 = vpack.c.bf16 %v4888_v9, %v4885_v15  ;;  %v5082_v19 = vadd.f32 %v5081_v37, %v4888_v9  ;;  %v5121_v40 = vmul.f32 %v4888_v9, %v4888_v9  ;;  %v8402_v20 = vadd.f32 %v8401_v6, %v8400_v22 }
 0x27c   : > { %v8403_v3 = vpop.f32.mrf.mxu1  ;;  %v8294_v59 = vpop.f32.mrf.mxu0  ;;  %v8293_v29 = vadd.f32 %v8292_v62, %v8291_v33 }
 0x27d   : > { %7583 = vst [vmem:[%s9920_s18 + $0x178] sm:$0xff] %v7455_v27   ;;  %v5083_v63 = vrot.slane %v5082_v19, 4  ;;  %v5152_v24 = vadd.f32 %v5151_v18, %v5121_v40  ;;  %v10795_v12 = vadd.f32 %v8402_v20, %v8290_v49 }
 0x27e   : > { %v8404_v31 = vpop.f32.mrf.mxu1  ;;  %v8295_v35 = vpop.f32.mrf.mxu0 }
 0x27f   : > { %v5084_v25 = vadd.f32 %v5083_v63, %v5082_v19  ;;  %v5153_v55 = vrot.slane %v5152_v24, 4  ;;  %v8405_v0 = vadd.f32 %v8404_v31, %v8403_v3  ;;  %v8296_v26 = vadd.f32 %v8295_v35, %v8294_v59 }
 0x280   : > { %v8406_v30 = vpop.f32.mrf.mxu1  ;;  %v8297_v48 = vpop.f32.mrf.mxu0 }
 0x281   : > { %v5085_v57 = vrot.slane %v5084_v25, 2  ;;  %v5154_v46 = vadd.f32 %v5153_v55, %v5152_v24  ;;  %v10797_v44 = vadd.f32 %v8405_v0, %v8293_v29 }
 0x282   : > { %v8407_v13 = vpop.f32.mrf.mxu1  ;;  %v8298_v60 = vpop.f32.mrf.mxu0 }
 0x283   : > { %v5086_v54 = vadd.f32 %v5085_v57, %v5084_v25  ;;  %v5155_v58 = vrot.slane %v5154_v46, 2  ;;  %v7460_v43 = vpack.c.bf16 %v10797_v44, %v10795_v12  ;;  %v8408_v42 = vadd.f32 %v8407_v13, %v8406_v30 }
 0x284   : > { %v8409_v1 = vpop.f32.mrf.mxu1  ;;  %v8300_v61 = vpop.f32.mrf.mxu0  ;;  %v8299_v21 = vadd.f32 %v8298_v60, %v8297_v48 }
 0x285   : > { %v5087_v32 = vrot.slane %v5086_v54, 1  ;;  %v5156_v36 = vadd.f32 %v5155_v58, %v5154_v46  ;;  %7584 = vst [vmem:[%s9920_s18 + $0x180] sm:$0xff] %v7460_v43   ;;  %v10805_v53 = vadd.f32 %v8408_v42, %v8296_v26 }
 0x286   : > { %v8410_v16 = vpop.f32.mrf.mxu1  ;;  %v8301_v38 = vpop.f32.mrf.mxu0 }
 0x287   : > { %v5088_v11 = vadd.f32 %v5087_v32, %v5086_v54  ;;  %v5157_v50 = vrot.slane %v5156_v36, 1  ;;  %v8411_v23 = vadd.f32 %v8410_v16, %v8409_v1  ;;  %v8302_v5 = vadd.f32 %v8301_v38, %v8300_v61 }
 0x288   : > { %v8412_v41 = vpop.f32.mrf.mxu1  ;;  %v8303_v8 = vpop.f32.mrf.mxu0 }
 0x289   : > { %v10803_v52 = vadd.f32 %v5088_v11, %v10737_v28  ;;  %v5158_v7 = vadd.f32 %v5157_v50, %v5156_v36  ;;  %v10807_v10 = vadd.f32 %v8411_v23, %v8299_v21 }
 0x28a   : > { %v8413_v17 = vpop.f32.mrf.mxu1  ;;  %v8304_v14 = vpop.f32.mrf.mxu0 }
 0x28b   : > { %v10810_v56 = vadd.f32 %v5158_v7, %v10744_v2  ;;  %v7465_v34 = vpack.c.bf16 %v10807_v10, %v10805_v53  ;;  %v8414_v28 = vadd.f32 %v8413_v17, %v8412_v41  ;;  %v8305_v4 = vadd.f32 %v8304_v14, %v8303_v8 }
 0x28c   : > { %v8415_v51 = vpop.f32.mrf.mxu1  ;;  %v8306_v15 = vpop.f32.mrf.mxu0 }
 0x28d   : > { %7585 = vst [vmem:[%s9920_s18 + $0x188] sm:$0xff] %v7465_v34   ;;  %v10815_v33 = vadd.f32 %v8414_v28, %v8302_v5 }
 0x28e   : > { %v8416_v45 = vpop.f32.mrf.mxu1  ;;  %v8307_v37 = vpop.f32.mrf.mxu0 }
 0x28f   : > { %v8417_v39 = vadd.f32 %v8416_v45, %v8415_v51  ;;  %v8308_v19 = vadd.f32 %v8307_v37, %v8306_v15 }
 0x290   : > { %v8418_v47 = vpop.f32.mrf.mxu1  ;;  %v8309_v22 = vpop.f32.mrf.mxu0 }
 0x291   : > { %v10817_v18 = vadd.f32 %v8417_v39, %v8305_v4 }
 0x292   : > { %v8419_v2 = vpop.f32.mrf.mxu1  ;;  %v8310_v9 = vpop.f32.mrf.mxu0 }
 0x293   : > { %v7470_v6 = vpack.c.bf16 %v10817_v18, %v10815_v33  ;;  %v8420_v40 = vadd.f32 %v8419_v2, %v8418_v47  ;;  %v8311_v49 = vadd.f32 %v8310_v9, %v8309_v22 }
 0x294   : > { %v8421_v62 = vpop.f32.mrf.mxu1  ;;  %v8312_v27 = vpop.f32.mrf.mxu0 }
 0x295   : > { %7586 = vst [vmem:[%s9920_s18 + $0x190] sm:$0xff] %v7470_v6   ;;  %v10822_v29 = vadd.f32 %v8420_v40, %v8308_v19 }
 0x296   : > { %v8422_v3 = vpop.f32.mrf.mxu1  ;;  %v8313_v59 = vpop.f32.mrf.mxu0 }
 0x297   : > { %v8423_v63 = vadd.f32 %v8422_v3, %v8421_v62  ;;  %v8314_v48 = vadd.f32 %v8313_v59, %v8312_v27 }
 0x298   : > { %v8424_v24 = vpop.f32.mrf.mxu1  ;;  %v8315_v20 = vpop.f32.mrf.mxu0 }
 0x299   : > { %v10824_v31 = vadd.f32 %v8423_v63, %v8311_v49 }
 0x29a   : > { %v8425_v35 = vpop.f32.mrf.mxu1  ;;  %v8316_v25 = vpop.f32.mrf.mxu0 }
 0x29b   : > { %v7475_v55 = vpack.c.bf16 %v10824_v31, %v10822_v29  ;;  %v8426_v57 = vadd.f32 %v8425_v35, %v8424_v24  ;;  %v8317_v46 = vadd.f32 %v8316_v25, %v8315_v20 }
 0x29c   : > { %v8427_v0 = vpop.f32.mrf.mxu1  ;;  %v8318_v30 = vpop.f32.mrf.mxu0 }
 0x29d   : > { %7587 = vst [vmem:[%s9920_s18 + $0x198] sm:$0xff] %v7475_v55   ;;  %v10829_v26 = vadd.f32 %v8426_v57, %v8314_v48 }
 0x29e   : > { %v8428_v13 = vpop.f32.mrf.mxu1  ;;  %v8319_v60 = vpop.f32.mrf.mxu0 }
 0x29f   : > { %v8429_v54 = vadd.f32 %v8428_v13, %v8427_v0  ;;  %v8320_v16 = vadd.f32 %v8319_v60, %v8318_v30  ;;  %v6003_v60 = vmul.f32 %v10797_v44, %v10797_v44 }
 0x2a0   : > { %v8430_v58 = vpop.f32.mrf.mxu1  ;;  %v8321_v43 = vpop.f32.mrf.mxu0 }
 0x2a1   : > { %v10831_v1 = vadd.f32 %v8429_v54, %v8317_v46 }
 0x2a2   : > { %v8431_v61 = vpop.f32.mrf.mxu1  ;;  %v8322_v32 = vpop.f32.mrf.mxu0 }
 0x2a3   : > { %v7480_v36 = vpack.c.bf16 %v10831_v1, %v10829_v26  ;;  %v8432_v38 = vadd.f32 %v8431_v61, %v8430_v58  ;;  %v8323_v11 = vadd.f32 %v8322_v32, %v8321_v43 }
 0x2a4   : > { %v8433_v42 = vpop.f32.mrf.mxu1  ;;  %v8324_v21 = vpop.f32.mrf.mxu0 }
 0x2a5   : > { %7588 = vst [vmem:[%s9920_s18 + $0x1a0] sm:$0xff] %v7480_v36   ;;  %v10836_v17 = vadd.f32 %v8432_v38, %v8320_v16  ;;  %v6002_v36 = vmul.f32 %v10795_v12, %v10795_v12  ;;  %v5964_v38 = vadd.f32 %v10797_v44, %v10795_v12 }
 0x2a6   : > { %v8434_v50 = vpop.f32.mrf.mxu1  ;;  %v8325_v23 = vpop.f32.mrf.mxu0 }
 0x2a7   : > { %v8435_v41 = vadd.f32 %v8434_v50, %v8433_v42  ;;  %v8326_v4 = vadd.f32 %v8325_v23, %v8324_v21  ;;  %v6004_v42 = vmul.f32 %v10805_v53, %v10805_v53  ;;  %v6034_v50 = vadd.f32 %v6003_v60, %v6002_v36 }
 0x2a8   : > { %v8436_v8 = vpop.f32.mrf.mxu1  ;;  %v8327_v7 = vpop.f32.mrf.mxu0  ;;  %v6005_v23 = vmul.f32 %v10807_v10, %v10807_v10 }
 0x2a9   : > { %v10838_v14 = vadd.f32 %v8435_v41, %v8323_v11 }
 0x2aa   : > { %v8437_v34 = vpop.f32.mrf.mxu1  ;;  %v8328_v51 = vpop.f32.mrf.mxu0 }
 0x2ab   : > { %v7485_v15 = vpack.c.bf16 %v10838_v14, %v10836_v17  ;;  %v8438_v45 = vadd.f32 %v8437_v34, %v8436_v8  ;;  %v8329_v37 = vadd.f32 %v8328_v51, %v8327_v7  ;;  %v5965_v7 = vadd.f32 %v5964_v38, %v10805_v53 }
 0x2ac   : > { %v8439_v5 = vpop.f32.mrf.mxu1  ;;  %v8330_v28 = vpop.f32.mrf.mxu0 }
 0x2ad   : > { %7589 = vst [vmem:[%s9920_s18 + $0x1a8] sm:$0xff] %v7485_v15   ;;  %v10843_v6 = vadd.f32 %v8438_v45, %v8326_v4  ;;  %v6035_v15 = vadd.f32 %v6034_v50, %v6004_v42  ;;  %v5966_v44 = vadd.f32 %v5965_v7, %v10807_v10 }
 0x2ae   : > { %v8440_v39 = vpop.f32.mrf.mxu1  ;;  %v8331_v47 = vpop.f32.mrf.mxu0 }
 0x2af   : > { %v8441_v22 = vadd.f32 %v8440_v39, %v8439_v5  ;;  %v8332_v59 = vadd.f32 %v8331_v47, %v8330_v28  ;;  %v6006_v5 = vmul.f32 %v10815_v33, %v10815_v33  ;;  %v6036_v45 = vadd.f32 %v6035_v15, %v6005_v23 }
 0x2b0   : > { %v8442_v2 = vpop.f32.mrf.mxu1  ;;  %v8333_v9 = vpop.f32.mrf.mxu0  ;;  %v5967_v47 = vadd.f32 %v5966_v44, %v10815_v33  ;;  %v6013_v23 = vmul.f32 %v10838_v14, %v10838_v14 }
 0x2b1   : > { %v10845_v62 = vadd.f32 %v8441_v22, %v8329_v37  ;;  %v6007_v37 = vmul.f32 %v10817_v18, %v10817_v18 }
 0x2b2   : > { %v8443_v27 = vpop.f32.mrf.mxu1  ;;  %v8334_v19 = vpop.f32.mrf.mxu0 }
 0x2b3   : > { %v7490_v40 = vpack.c.bf16 %v10845_v62, %v10843_v6  ;;  %v8444_v63 = vadd.f32 %v8443_v27, %v8442_v2  ;;  %v8335_v24 = vadd.f32 %v8334_v19, %v8333_v9  ;;  %v6037_v27 = vadd.f32 %v6036_v45, %v6006_v5 }
 0x2b4   : > { %v8445_v49 = vpop.f32.mrf.mxu1  ;;  %v8336_v3 = vpop.f32.mrf.mxu0  ;;  %v6008_v19 = vmul.f32 %v10822_v29, %v10822_v29 }
 0x2b5   : > { %7590 = vst [vmem:[%s9920_s18 + $0x1b0] sm:$0xff] %v7490_v40   ;;  %v10850_v30 = vadd.f32 %v8444_v63, %v8332_v59  ;;  %v6038_v59 = vadd.f32 %v6037_v27, %v6007_v37  ;;  %v6009_v63 = vmul.f32 %v10824_v31, %v10824_v31  ;;  %v6015_v37 = vmul.f32 %v10845_v62, %v10845_v62 }
 0x2b6   : > { %v8446_v20 = vpop.f32.mrf.mxu1  ;;  %v8337_v35 = vpop.f32.mrf.mxu0 }
 0x2b7   : > { %v8447_v25 = vadd.f32 %v8446_v20, %v8445_v49  ;;  %v8338_v43 = vadd.f32 %v8337_v35, %v8336_v3  ;;  %v5968_v49 = vadd.f32 %v5967_v47, %v10817_v18  ;;  %v6016_v27 = vmul.f32 %v10850_v30, %v10850_v30 }
 0x2b8   : > { %v8448_v55 = vpop.f32.mrf.mxu1  ;;  %v8339_v0 = vpop.f32.mrf.mxu0 }
 0x2b9   : > { %v10852_v48 = vadd.f32 %v8447_v25, %v8335_v24  ;;  %v5969_v20 = vadd.f32 %v5968_v49, %v10822_v29 }
 0x2ba   : > { %v8449_v57 = vpop.f32.mrf.mxu1  ;;  %v8340_v46 = vpop.f32.mrf.mxu0 }
 0x2bb   : > { %v7495_v13 = vpack.c.bf16 %v10852_v48, %v10850_v30  ;;  %v8450_v61 = vadd.f32 %v8449_v57, %v8448_v55  ;;  %v8341_v32 = vadd.f32 %v8340_v46, %v8339_v0  ;;  %v6039_v55 = vadd.f32 %v6038_v59, %v6008_v19 }
 0x2bc   : > { %v8451_v54 = vpop.f32.mrf.mxu1  ;;  %v8342_v58 = vpop.f32.mrf.mxu0  ;;  %v6010_v0 = vmul.f32 %v10829_v26, %v10829_v26  ;;  %v5970_v46 = vadd.f32 %v5969_v20, %v10824_v31 }
 0x2bd   : > { %7591 = vst [vmem:[%s9920_s18 + $0x1b8] sm:$0xff] %v7495_v13   ;;  %v10868_v34 = vadd.f32 %v8450_v61, %v8338_v43  ;;  %v6040_v60 = vadd.f32 %v6039_v55, %v6009_v63 }
 0x2be   : > { %v8452_v21 = vpop.f32.mrf.mxu1  ;;  %v8343_v16 = vpop.f32.mrf.mxu0  ;;  %v5971_v43 = vadd.f32 %v5970_v46, %v10829_v26 }
 0x2bf   : > { %v8453_v11 = vadd.f32 %v8452_v21, %v8451_v54  ;;  %v8344_v22 = vadd.f32 %v8343_v16, %v8342_v58  ;;  %v6011_v54 = vmul.f32 %v10831_v1, %v10831_v1  ;;  %v6041_v42 = vadd.f32 %v6040_v60, %v6010_v0 }
 0x2c0   : > { %v8454_v41 = vpop.f32.mrf.mxu1  ;;  %v8345_v8 = vpop.f32.mrf.mxu0  ;;  %v6012_v21 = vmul.f32 %v10836_v17, %v10836_v17  ;;  %v5972_v38 = vadd.f32 %v5971_v43, %v10831_v1  ;;  %v6018_v55 = vmul.f32 %v10868_v34, %v10868_v34 }
 0x2c1   : > { %v10870_v51 = vadd.f32 %v8453_v11, %v8341_v32  ;;  %v6042_v50 = vadd.f32 %v6041_v42, %v6011_v54 }
 0x2c2   : > { %v8455_v28 = vpop.f32.mrf.mxu1  ;;  %v8346_v12 = vpop.f32.mrf.mxu0 }
 0x2c3   : > { %v7500_v4 = vpack.c.bf16 %v10870_v51, %v10868_v34  ;;  %v8456_v2 = vadd.f32 %v8455_v28, %v8454_v41  ;;  %v8347_v9 = vadd.f32 %v8346_v12, %v8345_v8  ;;  %v5973_v8 = vadd.f32 %v5972_v38, %v10836_v17 }
 0x2c4   : > { %v8457_v53 = vpop.f32.mrf.mxu1  ;;  %v8348_v39 = vpop.f32.mrf.mxu0  ;;  %v6043_v5 = vadd.f32 %v6042_v50, %v6012_v21  ;;  %v6014_v28 = vmul.f32 %v10843_v6, %v10843_v6 }
 0x2c5   : > { %7592 = vst [vmem:[%s9920_s18 + $0x1c0] sm:$0xff] %v7500_v4   ;;  %v10887_v35 = vadd.f32 %v8456_v2, %v8344_v22  ;;  %v5974_v44 = vadd.f32 %v5973_v8, %v10838_v14 }
 0x2c6   : > { %v8458_v10 = vpop.f32.mrf.mxu1  ;;  %v8349_v40 = vpop.f32.mrf.mxu0  ;;  %v6044_v45 = vadd.f32 %v6043_v5, %v6013_v23 }
 0x2c7   : > { %v8459_v3 = vadd.f32 %v8458_v10, %v8457_v53  ;;  %v8350_v61 = vadd.f32 %v8349_v40, %v8348_v39  ;;  %v5975_v39 = vadd.f32 %v5974_v44, %v10843_v6 }
 0x2c8   : > { %v8460_v24 = vpop.f32.mrf.mxu1  ;;  %v8351_v33 = vpop.f32.mrf.mxu0 }
 0x2c9   : > { %v10889_v25 = vadd.f32 %v8459_v3, %v8347_v9  ;;  %v6045_v9 = vadd.f32 %v6044_v45, %v6014_v28  ;;  %v5976_v10 = vadd.f32 %v5975_v39, %v10845_v62  ;;  %v6017_v3 = vmul.f32 %v10852_v48, %v10852_v48 }
 0x2ca   : > { %v8461_v57 = vpop.f32.mrf.mxu1  ;;  %v8352_v18 = vpop.f32.mrf.mxu0 }
 0x2cb   : > { %v7505_v13 = vpack.c.bf16 %v10889_v25, %v10887_v35  ;;  %v8462_v32 = vadd.f32 %v8461_v57, %v8460_v24  ;;  %v8353_v36 = vadd.f32 %v8352_v18, %v8351_v33  ;;  %v6046_v49 = vadd.f32 %v6045_v9, %v6015_v37 }
 0x2cc   : > { %v8463_v29 = vpop.f32.mrf.mxu1  ;;  %v8354_v58 = vpop.f32.mrf.mxu0  ;;  %v5977_v63 = vadd.f32 %v5976_v10, %v10850_v30 }
 0x2cd   : > { %7593 = vst [vmem:[%s9920_s18 + $0x1c8] sm:$0xff] %v7505_v13   ;;  %v10906_v7 = vadd.f32 %v8462_v32, %v8350_v61  ;;  %v6047_v20 = vadd.f32 %v6046_v49, %v6016_v27  ;;  %v6019_v13 = vmul.f32 %v10870_v51, %v10870_v51  ;;  %v6020_v32 = vmul.f32 %v10887_v35, %v10887_v35 }
 0x2ce   : > { %v8464_v31 = vpop.f32.mrf.mxu1  ;;  %v8355_v16 = vpop.f32.mrf.mxu0  ;;  %v5978_v62 = vadd.f32 %v5977_v63, %v10852_v48 }
 0x2cf   : > { %v8465_v11 = vadd.f32 %v8464_v31, %v8463_v29  ;;  %v8356_v47 = vadd.f32 %v8355_v16, %v8354_v58  ;;  %v6048_v46 = vadd.f32 %v6047_v20, %v6017_v3  ;;  %v6021_v16 = vmul.f32 %v10889_v25, %v10889_v25 }
 0x2d0   : > { %v8466_v41 = vpop.f32.mrf.mxu1  ;;  %v8357_v26 = vpop.f32.mrf.mxu0  ;;  %v5979_v29 = vadd.f32 %v5978_v62, %v10868_v34 }
 0x2d1   : > { %v10908_v15 = vadd.f32 %v8465_v11, %v8353_v36  ;;  %v6049_v61 = vadd.f32 %v6048_v46, %v6018_v55 }
 0x2d2   : > { %v8467_v12 = vpop.f32.mrf.mxu1  ;;  %v8358_v1 = vpop.f32.mrf.mxu0  ;;  %v5980_v48 = vadd.f32 %v5979_v29, %v10870_v51 }
 0x2d3   : > { %v7510_v4 = vpack.c.bf16 %v10908_v15, %v10906_v7  ;;  %v8468_v22 = vadd.f32 %v8467_v12, %v8466_v41  ;;  %v8359_v2 = vadd.f32 %v8358_v1, %v8357_v26  ;;  %v6050_v31 = vadd.f32 %v6049_v61, %v6019_v13 }
 0x2d4   : > { %v8469_v17 = vpop.f32.mrf.mxu1  ;;  %v8360_v53 = vpop.f32.mrf.mxu0  ;;  %v5981_v11 = vadd.f32 %v5980_v48, %v10887_v35  ;;  %v6022_v26 = vmul.f32 %v10906_v7, %v10906_v7  ;;  %v6023_v1 = vmul.f32 %v10908_v15, %v10908_v15 }
 0x2d5   : > { %7594 = vst [vmem:[%s9920_s18 + $0x1d0] sm:$0xff] %v7510_v4   ;;  %v5765_v24 = vadd.f32 %v8468_v22, %v8356_v47  ;;  %v6051_v41 = vadd.f32 %v6050_v31, %v6020_v32 }
 0x2d6   : > { %v8470_v14 = vpop.f32.mrf.mxu1  ;;  %v8361_v19 = vpop.f32.mrf.mxu0  ;;  %v5982_v51 = vadd.f32 %v5981_v11, %v10889_v25 }
 0x2d7   : > { %v8471_v40 = vadd.f32 %v8470_v14, %v8469_v17  ;;  %v8362_v30 = vadd.f32 %v8361_v19, %v8360_v53  ;;  %v6052_v12 = vadd.f32 %v6051_v41, %v6021_v16  ;;  %v6024_v39 = vmul.f32 %v5765_v24, %v5765_v24 }
 0x2d8   : > { %v8472_v59 = vpop.f32.mrf.mxu1  ;;  %v8363_v6 = vpop.f32.mrf.mxu0  ;;  %v5983_v45 = vadd.f32 %v5982_v51, %v10906_v7 }
 0x2d9   : > { %v5768_v33 = vadd.f32 %v8471_v40, %v8359_v2  ;;  %v6053_v53 = vadd.f32 %v6052_v12, %v6022_v26 }
 0x2da   : > { %v8473_v0 = vpop.f32.mrf.mxu1  ;;  %v8364_v57 = vpop.f32.mrf.mxu0  ;;  %v5984_v2 = vadd.f32 %v5983_v45, %v10908_v15 }
 0x2db   : > { %v7515_v18 = vpack.c.bf16 %v5768_v33, %v5765_v24  ;;  %v8474_v58 = vadd.f32 %v8473_v0, %v8472_v59  ;;  %v8365_v43 = vadd.f32 %v8364_v57, %v8363_v6  ;;  %v6054_v9 = vadd.f32 %v6053_v53, %v6023_v1 }
 0x2dc   : > { %v8475_v60 = vpop.f32.mrf.mxu1  ;;  %v8366_v54 = vpop.f32.mrf.mxu0  ;;  %v6025_v27 = vmul.f32 %v5768_v33, %v5768_v33  ;;  %v5985_v10 = vadd.f32 %v5984_v2, %v5765_v24 }
 0x2dd   : > { %7595 = vst [vmem:[%s9920_s18 + $0x1d8] sm:$0xff] %v7515_v18   ;;  %v5773_v50 = vadd.f32 %v8474_v58, %v8362_v30  ;;  %v6055_v7 = vadd.f32 %v6054_v9, %v6024_v39 }
 0x2de   : > { %v8476_v36 = vpop.f32.mrf.mxu1  ;;  %v8367_v42 = vpop.f32.mrf.mxu0  ;;  %v5986_v63 = vadd.f32 %v5985_v10, %v5768_v33 }
 0x2df   : > { %v8477_v21 = vadd.f32 %v8476_v36, %v8475_v60  ;;  %v8368_v35 = vadd.f32 %v8367_v42, %v8366_v54  ;;  %v6026_v3 = vmul.f32 %v5773_v50, %v5773_v50  ;;  %v6056_v57 = vadd.f32 %v6055_v7, %v6025_v27 }
 0x2e0   : > { %v8478_v38 = vpop.f32.mrf.mxu1  ;;  %v8369_v34 = vpop.f32.mrf.mxu0  ;;  %v5987_v46 = vadd.f32 %v5986_v63, %v5773_v50 }
 0x2e1   : > { %v5776_v23 = vadd.f32 %v8477_v21, %v8365_v43  ;;  %v6057_v60 = vadd.f32 %v6056_v57, %v6026_v3 }
 0x2e2   : > { %v8479_v8 = vpop.f32.mrf.mxu1  ;;  %v8370_v5 = vpop.f32.mrf.mxu0 }
 0x2e3   : > { %v7520_v28 = vpack.c.bf16 %v5776_v23, %v5773_v50  ;;  %v8480_v37 = vadd.f32 %v8479_v8, %v8478_v38  ;;  %v8371_v17 = vadd.f32 %v8370_v5, %v8369_v34  ;;  %v6027_v62 = vmul.f32 %v5776_v23, %v5776_v23 }
 0x2e4   : > { %v8481_v44 = vpop.f32.mrf.mxu1  ;;  %v8372_v4 = vpop.f32.mrf.mxu0  ;;  %v5988_v30 = vadd.f32 %v5987_v46, %v5776_v23 }
 0x2e5   : > { %7596 = vst [vmem:[%s9920_s18 + $0x1e0] sm:$0xff] %v7520_v28   ;;  %v5781_v40 = vadd.f32 %v8480_v37, %v8368_v35  ;;  %v6058_v61 = vadd.f32 %v6057_v60, %v6027_v62 }
 0x2e6   : > { %v8482_v47 = vpop.f32.mrf.mxu1  ;;  %v8373_v22 = vpop.f32.mrf.mxu0 }
 0x2e7   : > { %v8483_v25 = vadd.f32 %v8482_v47, %v8481_v44  ;;  %v8374_v55 = vadd.f32 %v8373_v22, %v8372_v4  ;;  %v6028_v24 = vmul.f32 %v5781_v40, %v5781_v40  ;;  %v5989_v42 = vadd.f32 %v5988_v30, %v5781_v40 }
 0x2e8   : > { %v8484_v14 = vpop.f32.mrf.mxu1  ;;  %v8375_v19 = vpop.f32.mrf.mxu0 }
 0x2e9   : > { %v5784_v49 = vadd.f32 %v8483_v25, %v8371_v17  ;;  %v6059_v31 = vadd.f32 %v6058_v61, %v6028_v24 }
 0x2ea   : > { %v8485_v59 = vpop.f32.mrf.mxu1  ;;  %v8376_v6 = vpop.f32.mrf.mxu0 }
 0x2eb   : > { %v7525_v20 = vpack.c.bf16 %v5784_v49, %v5781_v40  ;;  %v8486_v0 = vadd.f32 %v8485_v59, %v8484_v14  ;;  %v8377_v13 = vadd.f32 %v8376_v6, %v8375_v19  ;;  %v6029_v32 = vmul.f32 %v5784_v49, %v5784_v49 }
 0x2ec   : > { %v8487_v15 = vpop.f32.mrf.mxu1  ;;  %v8378_v18 = vpop.f32.mrf.mxu0  ;;  %v5990_v34 = vadd.f32 %v5989_v42, %v5784_v49 }
 0x2ed   : > { %7597 = vst [vmem:[%s9920_s18 + $0x1e8] sm:$0xff] %v7525_v20   ;;  %v5789_v58 = vadd.f32 %v8486_v0, %v8374_v55  ;;  %v6060_v26 = vadd.f32 %v6059_v31, %v6029_v32 }
 0x2ee   : > { %v8488_v54 = vpop.f32.mrf.mxu1  ;;  %v8379_v29 = vpop.f32.mrf.mxu0 }
 0x2ef   : > { %v8489_v43 = vadd.f32 %v8488_v54, %v8487_v15  ;;  %v8380_v21 = vadd.f32 %v8379_v29, %v8378_v18  ;;  %v6030_v11 = vmul.f32 %v5789_v58, %v5789_v58  ;;  %v5991_v23 = vadd.f32 %v5990_v34, %v5789_v58 }
 0x2f0   : > { %v8490_v33 = vpop.f32.mrf.mxu1  ;;  %v8381_v36 = vpop.f32.mrf.mxu0 }
 0x2f1   : > { %v5792_v48 = vadd.f32 %v8489_v43, %v8377_v13  ;;  %v6061_v1 = vadd.f32 %v6060_v26, %v6030_v11 }
 0x2f2   : > { %v8491_v16 = vpop.f32.mrf.mxu1  ;;  %v8382_v38 = vpop.f32.mrf.mxu0 }
 0x2f3   : > { %v7530_v50 = vpack.c.bf16 %v5792_v48, %v5789_v58  ;;  %v8492_v41 = vadd.f32 %v8491_v16, %v8490_v33  ;;  %v6031_v5 = vmul.f32 %v5792_v48, %v5792_v48  ;;  %v8383_v28 = vadd.f32 %v8382_v38, %v8381_v36 }
 0x2f4   : > { %v8493_v8 = vpop.f32.mrf.mxu1  ;;  %v5992_v44 = vadd.f32 %v5991_v23, %v5792_v48 }
 0x2f5   : > { %7598 = vst [vmem:[%s9920_s18 + $0x1f0] sm:$0xff] %v7530_v50   ;;  %v5797_v51 = vadd.f32 %v8492_v41, %v8380_v21  ;;  %v6062_v35 = vadd.f32 %v6061_v1, %v6031_v5 }
 0x2f6   : > { %v8494_v12 = vpop.f32.mrf.mxu1 }
 0x2f7   : > { %v6032_v4 = vmul.f32 %v5797_v51, %v5797_v51  ;;  %v8495_v45 = vadd.f32 %v8494_v12, %v8493_v8  ;;  %v5993_v37 = vadd.f32 %v5992_v44, %v5797_v51 }
 0x2f9   : > { %v5800_v17 = vadd.f32 %v8495_v45, %v8383_v28  ;;  %v6063_v53 = vadd.f32 %v6062_v35, %v6032_v4 }
 0x2fb   : > { %v7535_v39 = vpack.c.bf16 %v5800_v17, %v5797_v51  ;;  %v5994_v47 = vadd.f32 %v5993_v37, %v5800_v17  ;;  %v6033_v22 = vmul.f32 %v5800_v17, %v5800_v17 }
 0x2fd   : > { %7599 = vst [vmem:[%s9920_s18 + $0x1f8] sm:$0xff] %v7535_v39   ;;  %v5995_v2 = vrot.slane %v5994_v47, 4  ;;  %v6064_v25 = vadd.f32 %v6063_v53, %v6033_v22 }
 0x2ff   : > { %v5996_v9 = vadd.f32 %v5995_v2, %v5994_v47  ;;  %v6065_v27 = vrot.slane %v6064_v25, 4 }
 0x301   : > { %v5997_v14 = vrot.slane %v5996_v9, 2  ;;  %v6066_v19 = vadd.f32 %v6065_v27, %v6064_v25 }
 0x303   : > { %v5998_v10 = vadd.f32 %v5997_v14, %v5996_v9  ;;  %v6067_v40 = vrot.slane %v6066_v19, 2 }
 0x305   : > { %v5999_v49 = vrot.slane %v5998_v10, 1  ;;  %v6068_v7 = vadd.f32 %v6067_v40, %v6066_v19 }
 0x307   : > { %v6000_v3 = vadd.f32 %v5999_v49, %v5998_v10  ;;  %v6069_v59 = vrot.slane %v6068_v7, 1 }
 0x309   : > { %v6070_v6 = vadd.f32 %v6069_v59, %v6068_v7  ;;  %v6001_v63 = vadd.f32 %v6000_v3, %v10803_v52 }
 0x30b   : > { %v6071_v20 = vadd.f32 %v6070_v6, %v10810_v56 }
 0x30d   : > { %v6073_v55 = vsel %vm6072_vm6, %v6001_v63, %v6071_v20 }
 0x30e   : > { %6074 = vst [vmem:[%s214_s17] sm:$0x3] %v6073_v55 }
 0x30f PF: > { %s14_s14 = sadd.s32 1, %s8811_s14   ;;  %s11100_s12 = smov %s8807_s13 }
 0x310   : > { %p11_p5 = scmp.ge.s32.totalorder %s14_s14, 4   ;;  %s11101_s13 = smov %s11103_s15 }
 0x312   :  { %13 = sbr.rel (!%p11_p5) target bundleno = 2 (0x2), region = 79 }

</bundles_post_ra>
